<compile_context>
chip_gen: v5e
topology: v5e:2x2
jax: 0.10.0
libtpu: 0.0.40
codegen_flags: <defaults>
</compile_context>

<pallas_src>
import functools
import math

import jax
import jax.numpy as jnp
from jax import lax
from jax.experimental import pallas as pl
from jax.experimental.pallas import tpu as pltpu

LEAKY_SLOPE = 0.2


def find_w(n: int):
    """Smallest w with w*w >= n, plus the zero-padding amount."""
    w = math.isqrt(n)
    if w * w < n:
        w += 1
    return w, w * w - n


def _disc_kernel(Bt, H, W, K,
                 x_ref, mask_ref, w1_ref, b1_ref, w2_ref, b2_ref, w3_ref, b3_ref,
                 wl_ref, sel_ref, bl_ref, o_ref):
    """One batch tile: 3x (conv3x3 + bias + LeakyReLU) -> Linear(1), fully fused."""
    HW = H * W
    BHW = Bt * HW
    offsets = [dh * W + dw for dh in (-1, 0, 1) for dw in (-1, 0, 1)]
    center = offsets.index(0)

    def masked_taps(act):
        """Rolled + masked 3x3 taps of a (BHW, C) f32 slab (rolls use the XLU slot).

        The precomputed mask zeroes both out-of-image taps and the cross-image /
        wrap-around rows that the tile-wide roll introduces.
        """
        taps = []
        for t, off in enumerate(offsets):
            if t == center:
                taps.append(act)                      # (0,0) tap: no shift, mask == 1
            else:
                shifted = pltpu.roll(act, shift=(-off) % BHW, axis=0)
                taps.append(shifted * mask_ref[:, t:t + 1])
        return taps

    # ---- conv1 (cin = 1): VPU formulation, no single-lane concat, no depth-9 MXU pass ----
    x_col = x_ref[...]                                # (BHW, 1) f32
    acc = jnp.zeros((BHW, K), jnp.float32)
    for t, tap in enumerate(masked_taps(x_col)):
        acc = acc + tap * w1_ref[t:t + 1, :]          # (BHW,1)*(1,K) broadcast, f32
    acc = acc + b1_ref[...]
    act = jnp.maximum(acc, LEAKY_SLOPE * acc)         # LeakyReLU(0.2); Dropout = identity

    # ---- conv2 / conv3: one im2col MXU matmul each (bf16 patches, f32 accumulation) ----
    def conv3x3_mxu(act, w_ref, b_ref):
        patches = jnp.concatenate(
            [tp.astype(jnp.bfloat16) for tp in masked_taps(act)], axis=1)   # (BHW, 9K)
        r = jnp.dot(patches, w_ref[...], preferred_element_type=jnp.float32)
        r = r + b_ref[...]                                                  # f32 bias
        return jnp.maximum(r, LEAKY_SLOPE * r)

    act = conv3x3_mxu(act, w2_ref, b2_ref)
    act = conv3x3_mxu(act, w3_ref, b3_ref)

    # ---- head: Linear(K*H*W -> 1) via MXU, bf16 operands / f32 accumulation ----
    prod = act.astype(jnp.bfloat16) * wl_ref[...]                           # (BHW, K) bf16
    per_chan = jnp.dot(sel_ref[...], prod,
                       preferred_element_type=jnp.float32)                  # (Bt, K) f32
    out = jnp.dot(per_chan.astype(jnp.bfloat16), jnp.ones((K, 1), jnp.bfloat16),
                  preferred_element_type=jnp.float32)                        # (Bt, 1)
    o_ref[...] = out + bl_ref[...]


def _pick_batch_tile(B, HW, target_rows=2048, max_tile=256):
    """Default batch-tile policy: ~1-4K activation rows per step, tile divides B,
    sublane-aligned blocks, tile capped at 256 (selector is quadratic; v7x has 64 MiB
    VMEM), grid length >= 2 and preferably even (v7x has two TensorCores)."""
    cands = [bt for bt in range(1, B + 1)
             if B % bt == 0 and (bt % 8 == 0 or bt == B)]
    capped = [bt for bt in cands if bt <= max_tile] or cands
    multi = [bt for bt in capped if B // bt >= 2] or capped
    even = [bt for bt in multi if (B // bt) % 2 == 0] or multi
    return min(even, key=lambda bt: abs(bt * HW - target_rows))


def conv_discriminator_forward(x, params, n_units_total, K, batch_tile=None):
    """params: dict with torch-layout weights; returns shape (B,) like PyTorch .view(-1)."""
    B = x.shape[0]
    w, extra = find_w(n_units_total)
    if extra > 0:
        x = jnp.concatenate([x, jnp.zeros((B, extra), x.dtype)], axis=1)
    HW = w * w

    if batch_tile is None:
        batch_tile = _pick_batch_tile(B, HW)
    assert B % batch_tile == 0
    grid = (B // batch_tile,)
    BHW = batch_tile * HW

    # NCHW view with a single input channel == row-major (b, h, w) flatten used here.
    xin = x.reshape(B * HW, 1).astype(jnp.float32)

    # ---- constants precomputed once in the wrapper (hoisted out of the kernel) ----
    # 3x3 tap validity mask, periodic over HW, tiled over the batch tile: mask[r, t] == 1
    # iff tap t=(dh,dw) of spatial position r%HW stays inside the w x w image.  This also
    # covers the cross-image / wrap-around rows introduced by the in-kernel rolls.
    hh = jnp.arange(HW, dtype=jnp.int32) // w
    ww = jnp.arange(HW, dtype=jnp.int32) % w
    cols = []
    for dh in (-1, 0, 1):
        for dw in (-1, 0, 1):
            cols.append((hh + dh >= 0) & (hh + dh < w) & (ww + dw >= 0) & (ww + dw < w))
    mask = jnp.tile(jnp.stack(cols, axis=1).astype(jnp.float32), (batch_tile, 1))  # (BHW, 9)

    # Batch selector (bf16): sel[b, r] == 1 iff activation row r belongs to image b.
    sel = (jnp.arange(BHW, dtype=jnp.int32)[None, :] // HW ==
           jnp.arange(batch_tile, dtype=jnp.int32)[:, None]).astype(jnp.bfloat16)

    # Torch-layout -> kernel-layout parameter conversion (plain-JAX glue).
    def conv_mat(wt, dtype):   # OIHW -> (kh*kw*cin, cout), rows ordered tap-major / cin-minor.
        return jnp.transpose(wt, (2, 3, 1, 0)).reshape(-1, wt.shape[0]).astype(dtype)

    w1 = conv_mat(params["conv1_w"], jnp.float32)      # (9, K), VPU conv1
    w2 = conv_mat(params["conv2_w"], jnp.bfloat16)     # (9K, K), MXU
    w3 = conv_mat(params["conv3_w"], jnp.bfloat16)
    b1 = params["conv1_b"].reshape(1, K).astype(jnp.float32)
    b2 = params["conv2_b"].reshape(1, K).astype(jnp.float32)
    b3 = params["conv3_b"].reshape(1, K).astype(jnp.float32)
    # Linear weight: torch (1, K*w*w) in (C,H,W)-flatten order -> per-row (h,w,c) weights,
    # tiled over the batch tile so the head is elementwise-mul + selector matmul.
    wl_hw_k = jnp.transpose(params["lin_w"].reshape(K, w, w), (1, 2, 0)).reshape(HW, K)
    wl_tiled = jnp.tile(wl_hw_k, (batch_tile, 1)).astype(jnp.bfloat16)     # (BHW, K)
    bl = params["lin_b"].reshape(1, 1).astype(jnp.float32)

    def full(arr):
        nd = arr.ndim
        return pl.BlockSpec(arr.shape, lambda i, _nd=nd: (0,) * _nd)

    out = pl.pallas_call(
        functools.partial(_disc_kernel, batch_tile, w, w, K),
        out_shape=jax.ShapeDtypeStruct((B, 1), jnp.float32),
        grid=grid,
        in_specs=[
            pl.BlockSpec((BHW, 1), lambda i: (i, 0)),   # xin, tiled over batch
            full(mask), full(w1), full(b1), full(w2), full(b2), full(w3), full(b3),
            full(wl_tiled), full(sel), full(bl),
        ],
        out_specs=pl.BlockSpec((batch_tile, 1), lambda i: (i, 0)),
        compiler_params=pltpu.CompilerParams(
            dimension_semantics=("parallel",),          # megacore split on v7x
            # Raised above the default scoped limit so larger batch tiles fit on v5e/v6e
            # (128 MiB physical); _pick_batch_tile's cap keeps the footprint under v7x's 64 MiB.
            vmem_limit_bytes=64 * 1024 * 1024,
        ),
    )(xin, mask, w1, b1, w2, b2, w3, b3, wl_tiled, sel, bl)
    return out.reshape(-1)


def reference_forward(x, params, n_units_total, K):
    """Pure-JAX (lax.conv) reference with identical semantics, for verification."""
    B = x.shape[0]
    w, extra = find_w(n_units_total)
    if extra > 0:
        x = jnp.concatenate([x, jnp.zeros((B, extra), x.dtype)], axis=1)
    h = x.reshape(B, 1, w, w).astype(jnp.float32)
    for i in (1, 2, 3):
        W_ = params[f"conv{i}_w"]
        b_ = params[f"conv{i}_b"]
        h = lax.conv_general_dilated(h, W_, (1, 1), "SAME",
                                     dimension_numbers=("NCHW", "OIHW", "NCHW"))
        h = h + b_.reshape(1, -1, 1, 1)
        h = jnp.maximum(h, LEAKY_SLOPE * h)
    flat = h.reshape(B, -1)
    return (flat @ params["lin_w"].T + params["lin_b"]).reshape(-1)


def init_params(key, n_units_total, K):
    """Deterministic synthetic init (torch layouts): Conv2d OIHW, Linear (out,in)."""
    w, _ = find_w(n_units_total)
    ks = jax.random.split(key, 8)
    std = 0.02
    return {
        "conv1_w": std * jax.random.normal(ks[0], (K, 1, 3, 3), jnp.float32),
        "conv1_b": std * jax.random.normal(ks[1], (K,), jnp.float32),
        "conv2_w": std * jax.random.normal(ks[2], (K, K, 3, 3), jnp.float32),
        "conv2_b": std * jax.random.normal(ks[3], (K,), jnp.float32),
        "conv3_w": std * jax.random.normal(ks[4], (K, K, 3, 3), jnp.float32),
        "conv3_b": std * jax.random.normal(ks[5], (K,), jnp.float32),
        "lin_w": std * jax.random.normal(ks[6], (1, K * w * w), jnp.float32),
        "lin_b": std * jax.random.normal(ks[7], (1,), jnp.float32),
    }


if __name__ == "__main__":
    # Small config: n_units_in=13, units_conditional=1 -> 14 features -> w=4, extra=2, HW=16.
    n_units_in, n_units_cond = 13, 1
    n_total = n_units_in + n_units_cond
    K = 8          # discriminator_n_kernels_hidden (small for the demo)
    B = 16         # batch -> default tile policy picks batch_tile=8, grid=(2,), "parallel"

    key = jax.random.PRNGKey(0)
    k_params, k_x = jax.random.split(key)
    params = init_params(k_params, n_total, K)
    x = jax.random.normal(k_x, (B, n_total), jnp.float32)

    out = conv_discriminator_forward(x, params, n_total, K)
    out = jax.block_until_ready(out)

    ref = jax.block_until_ready(reference_forward(x, params, n_total, K))
    assert out.shape == (B,), out.shape
    # bf16 MXU operands (f32 accumulation) -> bf16-level tolerance.
    assert jnp.allclose(out, ref, rtol=1e-2, atol=1e-3), (out, ref)

    print("KERNEL_OK")
</pallas_src>

<mosaic_0001>
module attributes {stable_mosaic.version = 11 : i64} {
  func.func @_disc_kernel(%arg0: i32, %arg1: memref<128x1xf32, #tpu.memory_space<vmem>>, %arg2: memref<128x9xf32, #tpu.memory_space<vmem>>, %arg3: memref<9x8xf32, #tpu.memory_space<vmem>>, %arg4: memref<1x8xf32, #tpu.memory_space<vmem>>, %arg5: memref<72x8xbf16, #tpu.memory_space<vmem>>, %arg6: memref<1x8xf32, #tpu.memory_space<vmem>>, %arg7: memref<72x8xbf16, #tpu.memory_space<vmem>>, %arg8: memref<1x8xf32, #tpu.memory_space<vmem>>, %arg9: memref<128x8xbf16, #tpu.memory_space<vmem>>, %arg10: memref<8x128xbf16, #tpu.memory_space<vmem>>, %arg11: memref<1x1xf32, #tpu.memory_space<vmem>>, %arg12: memref<8x1xf32, #tpu.memory_space<vmem>>) attributes {dimension_semantics = [#tpu.dimension_semantics<parallel>], iteration_bounds = array<i64: 2>, scalar_prefetch = 0 : i64, scratch_operands = 0 : i64, tpu.core_type = #tpu.core_type<tc>, window_params = [{transform_indices = @transform_0, window_bounds = array<i64: 128, 1>}, {pipeline_mode = #tpu.pipeline_mode<synchronous>, transform_indices = @transform_1, window_bounds = array<i64: 128, 9>}, {pipeline_mode = #tpu.pipeline_mode<synchronous>, transform_indices = @transform_2, window_bounds = array<i64: 9, 8>}, {pipeline_mode = #tpu.pipeline_mode<synchronous>, transform_indices = @transform_3, window_bounds = array<i64: 1, 8>}, {pipeline_mode = #tpu.pipeline_mode<synchronous>, transform_indices = @transform_4, window_bounds = array<i64: 72, 8>}, {pipeline_mode = #tpu.pipeline_mode<synchronous>, transform_indices = @transform_5, window_bounds = array<i64: 1, 8>}, {pipeline_mode = #tpu.pipeline_mode<synchronous>, transform_indices = @transform_6, window_bounds = array<i64: 72, 8>}, {pipeline_mode = #tpu.pipeline_mode<synchronous>, transform_indices = @transform_7, window_bounds = array<i64: 1, 8>}, {pipeline_mode = #tpu.pipeline_mode<synchronous>, transform_indices = @transform_8, window_bounds = array<i64: 128, 8>}, {pipeline_mode = #tpu.pipeline_mode<synchronous>, transform_indices = @transform_9, window_bounds = array<i64: 8, 128>}, {pipeline_mode = #tpu.pipeline_mode<synchronous>, transform_indices = @transform_10, window_bounds = array<i64: 1, 1>}, {transform_indices = @transform_11, window_bounds = array<i64: 8, 1>}]} {
    %c0 = arith.constant 0 : index
    %c0_0 = arith.constant 0 : index
    %0 = vector.load %arg1[%c0, %c0_0] : memref<128x1xf32, #tpu.memory_space<vmem>>, vector<128x1xf32>
    %cst = arith.constant 0.000000e+00 : f32
    %1 = vector.broadcast %cst : f32 to vector<128x8xf32>
    %c5_i32 = arith.constant 5 : i32
    %2 = tpu.dynamic_rotate %0 by %c5_i32 dim 0 : vector<128x1xf32>, i32 -> vector<128x1xf32>
    %c0_1 = arith.constant 0 : index
    %c0_2 = arith.constant 0 : index
    %3 = vector.load %arg2[%c0_1, %c0_2] : memref<128x9xf32, #tpu.memory_space<vmem>>, vector<128x1xf32>
    %4 = arith.mulf %2, %3 : vector<128x1xf32>
    %c4_i32 = arith.constant 4 : i32
    %5 = tpu.dynamic_rotate %0 by %c4_i32 dim 0 : vector<128x1xf32>, i32 -> vector<128x1xf32>
    %c0_3 = arith.constant 0 : index
    %c1 = arith.constant 1 : index
    %6 = vector.load %arg2[%c0_3, %c1] : memref<128x9xf32, #tpu.memory_space<vmem>>, vector<128x1xf32>
    %7 = arith.mulf %5, %6 : vector<128x1xf32>
    %c3_i32 = arith.constant 3 : i32
    %8 = tpu.dynamic_rotate %0 by %c3_i32 dim 0 : vector<128x1xf32>, i32 -> vector<128x1xf32>
    %c0_4 = arith.constant 0 : index
    %c2 = arith.constant 2 : index
    %9 = vector.load %arg2[%c0_4, %c2] : memref<128x9xf32, #tpu.memory_space<vmem>>, vector<128x1xf32>
    %10 = arith.mulf %8, %9 : vector<128x1xf32>
    %c1_i32 = arith.constant 1 : i32
    %11 = tpu.dynamic_rotate %0 by %c1_i32 dim 0 : vector<128x1xf32>, i32 -> vector<128x1xf32>
    %c0_5 = arith.constant 0 : index
    %c3 = arith.constant 3 : index
    %12 = vector.load %arg2[%c0_5, %c3] : memref<128x9xf32, #tpu.memory_space<vmem>>, vector<128x1xf32>
    %13 = arith.mulf %11, %12 : vector<128x1xf32>
    %c127_i32 = arith.constant 127 : i32
    %14 = tpu.dynamic_rotate %0 by %c127_i32 dim 0 : vector<128x1xf32>, i32 -> vector<128x1xf32>
    %c0_6 = arith.constant 0 : index
    %c5 = arith.constant 5 : index
    %15 = vector.load %arg2[%c0_6, %c5] : memref<128x9xf32, #tpu.memory_space<vmem>>, vector<128x1xf32>
    %16 = arith.mulf %14, %15 : vector<128x1xf32>
    %c125_i32 = arith.constant 125 : i32
    %17 = tpu.dynamic_rotate %0 by %c125_i32 dim 0 : vector<128x1xf32>, i32 -> vector<128x1xf32>
    %c0_7 = arith.constant 0 : index
    %c6 = arith.constant 6 : index
    %18 = vector.load %arg2[%c0_7, %c6] : memref<128x9xf32, #tpu.memory_space<vmem>>, vector<128x1xf32>
    %19 = arith.mulf %17, %18 : vector<128x1xf32>
    %c124_i32 = arith.constant 124 : i32
    %20 = tpu.dynamic_rotate %0 by %c124_i32 dim 0 : vector<128x1xf32>, i32 -> vector<128x1xf32>
    %c0_8 = arith.constant 0 : index
    %c7 = arith.constant 7 : index
    %21 = vector.load %arg2[%c0_8, %c7] : memref<128x9xf32, #tpu.memory_space<vmem>>, vector<128x1xf32>
    %22 = arith.mulf %20, %21 : vector<128x1xf32>
    %c123_i32 = arith.constant 123 : i32
    %23 = tpu.dynamic_rotate %0 by %c123_i32 dim 0 : vector<128x1xf32>, i32 -> vector<128x1xf32>
    %c0_9 = arith.constant 0 : index
    %c8 = arith.constant 8 : index
    %24 = vector.load %arg2[%c0_9, %c8] : memref<128x9xf32, #tpu.memory_space<vmem>>, vector<128x1xf32>
    %25 = arith.mulf %23, %24 : vector<128x1xf32>
    %c0_10 = arith.constant 0 : index
    %c0_11 = arith.constant 0 : index
    %26 = vector.load %arg3[%c0_10, %c0_11] : memref<9x8xf32, #tpu.memory_space<vmem>>, vector<1x8xf32>
    %27 = vector.broadcast %4 : vector<128x1xf32> to vector<128x8xf32>
    %28 = vector.broadcast %26 : vector<1x8xf32> to vector<128x8xf32>
    %29 = arith.mulf %27, %28 : vector<128x8xf32>
    %30 = arith.addf %1, %29 : vector<128x8xf32>
    %c1_12 = arith.constant 1 : index
    %c0_13 = arith.constant 0 : index
    %31 = vector.load %arg3[%c1_12, %c0_13] : memref<9x8xf32, #tpu.memory_space<vmem>>, vector<1x8xf32>
    %32 = vector.broadcast %7 : vector<128x1xf32> to vector<128x8xf32>
    %33 = vector.broadcast %31 : vector<1x8xf32> to vector<128x8xf32>
    %34 = arith.mulf %32, %33 : vector<128x8xf32>
    %35 = arith.addf %30, %34 : vector<128x8xf32>
    %c2_14 = arith.constant 2 : index
    %c0_15 = arith.constant 0 : index
    %36 = vector.load %arg3[%c2_14, %c0_15] : memref<9x8xf32, #tpu.memory_space<vmem>>, vector<1x8xf32>
    %37 = vector.broadcast %10 : vector<128x1xf32> to vector<128x8xf32>
    %38 = vector.broadcast %36 : vector<1x8xf32> to vector<128x8xf32>
    %39 = arith.mulf %37, %38 : vector<128x8xf32>
    %40 = arith.addf %35, %39 : vector<128x8xf32>
    %c3_16 = arith.constant 3 : index
    %c0_17 = arith.constant 0 : index
    %41 = vector.load %arg3[%c3_16, %c0_17] : memref<9x8xf32, #tpu.memory_space<vmem>>, vector<1x8xf32>
    %42 = vector.broadcast %13 : vector<128x1xf32> to vector<128x8xf32>
    %43 = vector.broadcast %41 : vector<1x8xf32> to vector<128x8xf32>
    %44 = arith.mulf %42, %43 : vector<128x8xf32>
    %45 = arith.addf %40, %44 : vector<128x8xf32>
    %c4 = arith.constant 4 : index
    %c0_18 = arith.constant 0 : index
    %46 = vector.load %arg3[%c4, %c0_18] : memref<9x8xf32, #tpu.memory_space<vmem>>, vector<1x8xf32>
    %47 = vector.broadcast %0 : vector<128x1xf32> to vector<128x8xf32>
    %48 = vector.broadcast %46 : vector<1x8xf32> to vector<128x8xf32>
    %49 = arith.mulf %47, %48 : vector<128x8xf32>
    %50 = arith.addf %45, %49 : vector<128x8xf32>
    %c5_19 = arith.constant 5 : index
    %c0_20 = arith.constant 0 : index
    %51 = vector.load %arg3[%c5_19, %c0_20] : memref<9x8xf32, #tpu.memory_space<vmem>>, vector<1x8xf32>
    %52 = vector.broadcast %16 : vector<128x1xf32> to vector<128x8xf32>
    %53 = vector.broadcast %51 : vector<1x8xf32> to vector<128x8xf32>
    %54 = arith.mulf %52, %53 : vector<128x8xf32>
    %55 = arith.addf %50, %54 : vector<128x8xf32>
    %c6_21 = arith.constant 6 : index
    %c0_22 = arith.constant 0 : index
    %56 = vector.load %arg3[%c6_21, %c0_22] : memref<9x8xf32, #tpu.memory_space<vmem>>, vector<1x8xf32>
    %57 = vector.broadcast %19 : vector<128x1xf32> to vector<128x8xf32>
    %58 = vector.broadcast %56 : vector<1x8xf32> to vector<128x8xf32>
    %59 = arith.mulf %57, %58 : vector<128x8xf32>
    %60 = arith.addf %55, %59 : vector<128x8xf32>
    %c7_23 = arith.constant 7 : index
    %c0_24 = arith.constant 0 : index
    %61 = vector.load %arg3[%c7_23, %c0_24] : memref<9x8xf32, #tpu.memory_space<vmem>>, vector<1x8xf32>
    %62 = vector.broadcast %22 : vector<128x1xf32> to vector<128x8xf32>
    %63 = vector.broadcast %61 : vector<1x8xf32> to vector<128x8xf32>
    %64 = arith.mulf %62, %63 : vector<128x8xf32>
    %65 = arith.addf %60, %64 : vector<128x8xf32>
    %c8_25 = arith.constant 8 : index
    %c0_26 = arith.constant 0 : index
    %66 = vector.load %arg3[%c8_25, %c0_26] : memref<9x8xf32, #tpu.memory_space<vmem>>, vector<1x8xf32>
    %67 = vector.broadcast %25 : vector<128x1xf32> to vector<128x8xf32>
    %68 = vector.broadcast %66 : vector<1x8xf32> to vector<128x8xf32>
    %69 = arith.mulf %67, %68 : vector<128x8xf32>
    %70 = arith.addf %65, %69 : vector<128x8xf32>
    %c0_27 = arith.constant 0 : index
    %c0_28 = arith.constant 0 : index
    %71 = vector.load %arg4[%c0_27, %c0_28] : memref<1x8xf32, #tpu.memory_space<vmem>>, vector<1x8xf32>
    %72 = vector.broadcast %71 : vector<1x8xf32> to vector<128x8xf32>
    %73 = arith.addf %70, %72 : vector<128x8xf32>
    %cst_29 = arith.constant 2.000000e-01 : f32
    %74 = vector.broadcast %cst_29 : f32 to vector<128x8xf32>
    %75 = arith.mulf %74, %73 : vector<128x8xf32>
    %76 = arith.maximumf %73, %75 : vector<128x8xf32>
    %c5_i32_30 = arith.constant 5 : i32
    %77 = tpu.dynamic_rotate %76 by %c5_i32_30 dim 0 : vector<128x8xf32>, i32 -> vector<128x8xf32>
    %c0_31 = arith.constant 0 : index
    %c0_32 = arith.constant 0 : index
    %78 = vector.load %arg2[%c0_31, %c0_32] : memref<128x9xf32, #tpu.memory_space<vmem>>, vector<128x1xf32>
    %79 = vector.broadcast %78 : vector<128x1xf32> to vector<128x8xf32>
    %80 = arith.mulf %77, %79 : vector<128x8xf32>
    %c4_i32_33 = arith.constant 4 : i32
    %81 = tpu.dynamic_rotate %76 by %c4_i32_33 dim 0 : vector<128x8xf32>, i32 -> vector<128x8xf32>
    %c0_34 = arith.constant 0 : index
    %c1_35 = arith.constant 1 : index
    %82 = vector.load %arg2[%c0_34, %c1_35] : memref<128x9xf32, #tpu.memory_space<vmem>>, vector<128x1xf32>
    %83 = vector.broadcast %82 : vector<128x1xf32> to vector<128x8xf32>
    %84 = arith.mulf %81, %83 : vector<128x8xf32>
    %c3_i32_36 = arith.constant 3 : i32
    %85 = tpu.dynamic_rotate %76 by %c3_i32_36 dim 0 : vector<128x8xf32>, i32 -> vector<128x8xf32>
    %c0_37 = arith.constant 0 : index
    %c2_38 = arith.constant 2 : index
    %86 = vector.load %arg2[%c0_37, %c2_38] : memref<128x9xf32, #tpu.memory_space<vmem>>, vector<128x1xf32>
    %87 = vector.broadcast %86 : vector<128x1xf32> to vector<128x8xf32>
    %88 = arith.mulf %85, %87 : vector<128x8xf32>
    %c1_i32_39 = arith.constant 1 : i32
    %89 = tpu.dynamic_rotate %76 by %c1_i32_39 dim 0 : vector<128x8xf32>, i32 -> vector<128x8xf32>
    %c0_40 = arith.constant 0 : index
    %c3_41 = arith.constant 3 : index
    %90 = vector.load %arg2[%c0_40, %c3_41] : memref<128x9xf32, #tpu.memory_space<vmem>>, vector<128x1xf32>
    %91 = vector.broadcast %90 : vector<128x1xf32> to vector<128x8xf32>
    %92 = arith.mulf %89, %91 : vector<128x8xf32>
    %c127_i32_42 = arith.constant 127 : i32
    %93 = tpu.dynamic_rotate %76 by %c127_i32_42 dim 0 : vector<128x8xf32>, i32 -> vector<128x8xf32>
    %c0_43 = arith.constant 0 : index
    %c5_44 = arith.constant 5 : index
    %94 = vector.load %arg2[%c0_43, %c5_44] : memref<128x9xf32, #tpu.memory_space<vmem>>, vector<128x1xf32>
    %95 = vector.broadcast %94 : vector<128x1xf32> to vector<128x8xf32>
    %96 = arith.mulf %93, %95 : vector<128x8xf32>
    %c125_i32_45 = arith.constant 125 : i32
    %97 = tpu.dynamic_rotate %76 by %c125_i32_45 dim 0 : vector<128x8xf32>, i32 -> vector<128x8xf32>
    %c0_46 = arith.constant 0 : index
    %c6_47 = arith.constant 6 : index
    %98 = vector.load %arg2[%c0_46, %c6_47] : memref<128x9xf32, #tpu.memory_space<vmem>>, vector<128x1xf32>
    %99 = vector.broadcast %98 : vector<128x1xf32> to vector<128x8xf32>
    %100 = arith.mulf %97, %99 : vector<128x8xf32>
    %c124_i32_48 = arith.constant 124 : i32
    %101 = tpu.dynamic_rotate %76 by %c124_i32_48 dim 0 : vector<128x8xf32>, i32 -> vector<128x8xf32>
    %c0_49 = arith.constant 0 : index
    %c7_50 = arith.constant 7 : index
    %102 = vector.load %arg2[%c0_49, %c7_50] : memref<128x9xf32, #tpu.memory_space<vmem>>, vector<128x1xf32>
    %103 = vector.broadcast %102 : vector<128x1xf32> to vector<128x8xf32>
    %104 = arith.mulf %101, %103 : vector<128x8xf32>
    %c123_i32_51 = arith.constant 123 : i32
    %105 = tpu.dynamic_rotate %76 by %c123_i32_51 dim 0 : vector<128x8xf32>, i32 -> vector<128x8xf32>
    %c0_52 = arith.constant 0 : index
    %c8_53 = arith.constant 8 : index
    %106 = vector.load %arg2[%c0_52, %c8_53] : memref<128x9xf32, #tpu.memory_space<vmem>>, vector<128x1xf32>
    %107 = vector.broadcast %106 : vector<128x1xf32> to vector<128x8xf32>
    %108 = arith.mulf %105, %107 : vector<128x8xf32>
    %109 = arith.truncf %80 : vector<128x8xf32> to vector<128x8xbf16>
    %110 = arith.truncf %84 : vector<128x8xf32> to vector<128x8xbf16>
    %111 = arith.truncf %88 : vector<128x8xf32> to vector<128x8xbf16>
    %112 = arith.truncf %92 : vector<128x8xf32> to vector<128x8xbf16>
    %113 = arith.truncf %76 : vector<128x8xf32> to vector<128x8xbf16>
    %114 = arith.truncf %96 : vector<128x8xf32> to vector<128x8xbf16>
    %115 = arith.truncf %100 : vector<128x8xf32> to vector<128x8xbf16>
    %116 = arith.truncf %104 : vector<128x8xf32> to vector<128x8xbf16>
    %117 = arith.truncf %108 : vector<128x8xf32> to vector<128x8xbf16>
    %118 = tpu.concatenate %109, %110, %111, %112, %113, %114, %115, %116, %117 in 1 : vector<128x8xbf16>, vector<128x8xbf16>, vector<128x8xbf16>, vector<128x8xbf16>, vector<128x8xbf16>, vector<128x8xbf16>, vector<128x8xbf16>, vector<128x8xbf16>, vector<128x8xbf16> -> vector<128x72xbf16>
    %c0_54 = arith.constant 0 : index
    %c0_55 = arith.constant 0 : index
    %119 = vector.load %arg5[%c0_54, %c0_55] : memref<72x8xbf16, #tpu.memory_space<vmem>>, vector<72x8xbf16>
    %cst_56 = arith.constant dense<0.000000e+00> : vector<128x8xf32>
    %120 = tpu.matmul %118, %119, %cst_56 {dimension_numbers = #tpu.dot_dimension_numbers<[1], [0], [0], [1], [0, 0, 1, 1], [], []>} : vector<128x72xbf16>, vector<72x8xbf16>, vector<128x8xf32> -> vector<128x8xf32>
    %c0_57 = arith.constant 0 : index
    %c0_58 = arith.constant 0 : index
    %121 = vector.load %arg6[%c0_57, %c0_58] : memref<1x8xf32, #tpu.memory_space<vmem>>, vector<1x8xf32>
    %122 = vector.broadcast %121 : vector<1x8xf32> to vector<128x8xf32>
    %123 = arith.addf %120, %122 : vector<128x8xf32>
    %cst_59 = arith.constant 2.000000e-01 : f32
    %124 = vector.broadcast %cst_59 : f32 to vector<128x8xf32>
    %125 = arith.mulf %124, %123 : vector<128x8xf32>
    %126 = arith.maximumf %123, %125 : vector<128x8xf32>
    %c5_i32_60 = arith.constant 5 : i32
    %127 = tpu.dynamic_rotate %126 by %c5_i32_60 dim 0 : vector<128x8xf32>, i32 -> vector<128x8xf32>
    %c0_61 = arith.constant 0 : index
    %c0_62 = arith.constant 0 : index
    %128 = vector.load %arg2[%c0_61, %c0_62] : memref<128x9xf32, #tpu.memory_space<vmem>>, vector<128x1xf32>
    %129 = vector.broadcast %128 : vector<128x1xf32> to vector<128x8xf32>
    %130 = arith.mulf %127, %129 : vector<128x8xf32>
    %c4_i32_63 = arith.constant 4 : i32
    %131 = tpu.dynamic_rotate %126 by %c4_i32_63 dim 0 : vector<128x8xf32>, i32 -> vector<128x8xf32>
    %c0_64 = arith.constant 0 : index
    %c1_65 = arith.constant 1 : index
    %132 = vector.load %arg2[%c0_64, %c1_65] : memref<128x9xf32, #tpu.memory_space<vmem>>, vector<128x1xf32>
    %133 = vector.broadcast %132 : vector<128x1xf32> to vector<128x8xf32>
    %134 = arith.mulf %131, %133 : vector<128x8xf32>
    %c3_i32_66 = arith.constant 3 : i32
    %135 = tpu.dynamic_rotate %126 by %c3_i32_66 dim 0 : vector<128x8xf32>, i32 -> vector<128x8xf32>
    %c0_67 = arith.constant 0 : index
    %c2_68 = arith.constant 2 : index
    %136 = vector.load %arg2[%c0_67, %c2_68] : memref<128x9xf32, #tpu.memory_space<vmem>>, vector<128x1xf32>
    %137 = vector.broadcast %136 : vector<128x1xf32> to vector<128x8xf32>
    %138 = arith.mulf %135, %137 : vector<128x8xf32>
    %c1_i32_69 = arith.constant 1 : i32
    %139 = tpu.dynamic_rotate %126 by %c1_i32_69 dim 0 : vector<128x8xf32>, i32 -> vector<128x8xf32>
    %c0_70 = arith.constant 0 : index
    %c3_71 = arith.constant 3 : index
    %140 = vector.load %arg2[%c0_70, %c3_71] : memref<128x9xf32, #tpu.memory_space<vmem>>, vector<128x1xf32>
    %141 = vector.broadcast %140 : vector<128x1xf32> to vector<128x8xf32>
    %142 = arith.mulf %139, %141 : vector<128x8xf32>
    %c127_i32_72 = arith.constant 127 : i32
    %143 = tpu.dynamic_rotate %126 by %c127_i32_72 dim 0 : vector<128x8xf32>, i32 -> vector<128x8xf32>
    %c0_73 = arith.constant 0 : index
    %c5_74 = arith.constant 5 : index
    %144 = vector.load %arg2[%c0_73, %c5_74] : memref<128x9xf32, #tpu.memory_space<vmem>>, vector<128x1xf32>
    %145 = vector.broadcast %144 : vector<128x1xf32> to vector<128x8xf32>
    %146 = arith.mulf %143, %145 : vector<128x8xf32>
    %c125_i32_75 = arith.constant 125 : i32
    %147 = tpu.dynamic_rotate %126 by %c125_i32_75 dim 0 : vector<128x8xf32>, i32 -> vector<128x8xf32>
    %c0_76 = arith.constant 0 : index
    %c6_77 = arith.constant 6 : index
    %148 = vector.load %arg2[%c0_76, %c6_77] : memref<128x9xf32, #tpu.memory_space<vmem>>, vector<128x1xf32>
    %149 = vector.broadcast %148 : vector<128x1xf32> to vector<128x8xf32>
    %150 = arith.mulf %147, %149 : vector<128x8xf32>
    %c124_i32_78 = arith.constant 124 : i32
    %151 = tpu.dynamic_rotate %126 by %c124_i32_78 dim 0 : vector<128x8xf32>, i32 -> vector<128x8xf32>
    %c0_79 = arith.constant 0 : index
    %c7_80 = arith.constant 7 : index
    %152 = vector.load %arg2[%c0_79, %c7_80] : memref<128x9xf32, #tpu.memory_space<vmem>>, vector<128x1xf32>
    %153 = vector.broadcast %152 : vector<128x1xf32> to vector<128x8xf32>
    %154 = arith.mulf %151, %153 : vector<128x8xf32>
    %c123_i32_81 = arith.constant 123 : i32
    %155 = tpu.dynamic_rotate %126 by %c123_i32_81 dim 0 : vector<128x8xf32>, i32 -> vector<128x8xf32>
    %c0_82 = arith.constant 0 : index
    %c8_83 = arith.constant 8 : index
    %156 = vector.load %arg2[%c0_82, %c8_83] : memref<128x9xf32, #tpu.memory_space<vmem>>, vector<128x1xf32>
    %157 = vector.broadcast %156 : vector<128x1xf32> to vector<128x8xf32>
    %158 = arith.mulf %155, %157 : vector<128x8xf32>
    %159 = arith.truncf %130 : vector<128x8xf32> to vector<128x8xbf16>
    %160 = arith.truncf %134 : vector<128x8xf32> to vector<128x8xbf16>
    %161 = arith.truncf %138 : vector<128x8xf32> to vector<128x8xbf16>
    %162 = arith.truncf %142 : vector<128x8xf32> to vector<128x8xbf16>
    %163 = arith.truncf %126 : vector<128x8xf32> to vector<128x8xbf16>
    %164 = arith.truncf %146 : vector<128x8xf32> to vector<128x8xbf16>
    %165 = arith.truncf %150 : vector<128x8xf32> to vector<128x8xbf16>
    %166 = arith.truncf %154 : vector<128x8xf32> to vector<128x8xbf16>
    %167 = arith.truncf %158 : vector<128x8xf32> to vector<128x8xbf16>
    %168 = tpu.concatenate %159, %160, %161, %162, %163, %164, %165, %166, %167 in 1 : vector<128x8xbf16>, vector<128x8xbf16>, vector<128x8xbf16>, vector<128x8xbf16>, vector<128x8xbf16>, vector<128x8xbf16>, vector<128x8xbf16>, vector<128x8xbf16>, vector<128x8xbf16> -> vector<128x72xbf16>
    %c0_84 = arith.constant 0 : index
    %c0_85 = arith.constant 0 : index
    %169 = vector.load %arg7[%c0_84, %c0_85] : memref<72x8xbf16, #tpu.memory_space<vmem>>, vector<72x8xbf16>
    %cst_86 = arith.constant dense<0.000000e+00> : vector<128x8xf32>
    %170 = tpu.matmul %168, %169, %cst_86 {dimension_numbers = #tpu.dot_dimension_numbers<[1], [0], [0], [1], [0, 0, 1, 1], [], []>} : vector<128x72xbf16>, vector<72x8xbf16>, vector<128x8xf32> -> vector<128x8xf32>
    %c0_87 = arith.constant 0 : index
    %c0_88 = arith.constant 0 : index
    %171 = vector.load %arg8[%c0_87, %c0_88] : memref<1x8xf32, #tpu.memory_space<vmem>>, vector<1x8xf32>
    %172 = vector.broadcast %171 : vector<1x8xf32> to vector<128x8xf32>
    %173 = arith.addf %170, %172 : vector<128x8xf32>
    %cst_89 = arith.constant 2.000000e-01 : f32
    %174 = vector.broadcast %cst_89 : f32 to vector<128x8xf32>
    %175 = arith.mulf %174, %173 : vector<128x8xf32>
    %176 = arith.maximumf %173, %175 : vector<128x8xf32>
    %177 = arith.truncf %176 : vector<128x8xf32> to vector<128x8xbf16>
    %c0_90 = arith.constant 0 : index
    %c0_91 = arith.constant 0 : index
    %178 = vector.load %arg9[%c0_90, %c0_91] : memref<128x8xbf16, #tpu.memory_space<vmem>>, vector<128x8xbf16>
    %179 = arith.mulf %177, %178 : vector<128x8xbf16>
    %c0_92 = arith.constant 0 : index
    %c0_93 = arith.constant 0 : index
    %180 = vector.load %arg10[%c0_92, %c0_93] : memref<8x128xbf16, #tpu.memory_space<vmem>>, vector<8x128xbf16>
    %cst_94 = arith.constant dense<0.000000e+00> : vector<8x8xf32>
    %181 = tpu.matmul %180, %179, %cst_94 {dimension_numbers = #tpu.dot_dimension_numbers<[1], [0], [0], [1], [0, 0, 1, 1], [], []>} : vector<8x128xbf16>, vector<128x8xbf16>, vector<8x8xf32> -> vector<8x8xf32>
    %182 = arith.truncf %181 : vector<8x8xf32> to vector<8x8xbf16>
    %cst_95 = arith.constant 1.000000e+00 : bf16
    %183 = vector.broadcast %cst_95 : bf16 to vector<8x1xbf16>
    %cst_96 = arith.constant dense<0.000000e+00> : vector<8x1xf32>
    %184 = tpu.matmul %182, %183, %cst_96 {dimension_numbers = #tpu.dot_dimension_numbers<[1], [0], [0], [1], [0, 0, 1, 1], [], []>} : vector<8x8xbf16>, vector<8x1xbf16>, vector<8x1xf32> -> vector<8x1xf32>
    %c0_97 = arith.constant 0 : index
    %c0_98 = arith.constant 0 : index
    %185 = vector.load %arg11[%c0_97, %c0_98] : memref<1x1xf32, #tpu.memory_space<vmem>>, vector<1x1xf32>
    %186 = vector.broadcast %185 : vector<1x1xf32> to vector<8x1xf32>
    %187 = arith.addf %184, %186 : vector<8x1xf32>
    %c0_99 = arith.constant 0 : index
    %c0_100 = arith.constant 0 : index
    %188 = vector.load %arg12[%c0_99, %c0_100] : memref<8x1xf32, #tpu.memory_space<vmem>>, vector<8x1xf32>
    tpu.vector_store %arg12[%c0_99, %c0_100], %187 {strides = array<i32>} : memref<8x1xf32, #tpu.memory_space<vmem>>, vector<8x1xf32>,
    return
  }
  func.func @transform_0(%arg0: i32) -> (i32, i32) {
    %c0_i32 = arith.constant 0 : i32
    %c0_i32_0 = arith.constant 0 : i32
    return %arg0, %c0_i32 : i32, i32
  }
  func.func @transform_1(%arg0: i32) -> (i32, i32) {
    %c0_i32 = arith.constant 0 : i32
    %c0_i32_0 = arith.constant 0 : i32
    %c0_i32_1 = arith.constant 0 : i32
    return %c0_i32, %c0_i32_0 : i32, i32
  }
  func.func @transform_2(%arg0: i32) -> (i32, i32) {
    %c0_i32 = arith.constant 0 : i32
    %c0_i32_0 = arith.constant 0 : i32
    %c0_i32_1 = arith.constant 0 : i32
    return %c0_i32, %c0_i32_0 : i32, i32
  }
  func.func @transform_3(%arg0: i32) -> (i32, i32) {
    %c0_i32 = arith.constant 0 : i32
    %c0_i32_0 = arith.constant 0 : i32
    %c0_i32_1 = arith.constant 0 : i32
    return %c0_i32, %c0_i32_0 : i32, i32
  }
  func.func @transform_4(%arg0: i32) -> (i32, i32) {
    %c0_i32 = arith.constant 0 : i32
    %c0_i32_0 = arith.constant 0 : i32
    %c0_i32_1 = arith.constant 0 : i32
    return %c0_i32, %c0_i32_0 : i32, i32
  }
  func.func @transform_5(%arg0: i32) -> (i32, i32) {
    %c0_i32 = arith.constant 0 : i32
    %c0_i32_0 = arith.constant 0 : i32
    %c0_i32_1 = arith.constant 0 : i32
    return %c0_i32, %c0_i32_0 : i32, i32
  }
  func.func @transform_6(%arg0: i32) -> (i32, i32) {
    %c0_i32 = arith.constant 0 : i32
    %c0_i32_0 = arith.constant 0 : i32
    %c0_i32_1 = arith.constant 0 : i32
    return %c0_i32, %c0_i32_0 : i32, i32
  }
  func.func @transform_7(%arg0: i32) -> (i32, i32) {
    %c0_i32 = arith.constant 0 : i32
    %c0_i32_0 = arith.constant 0 : i32
    %c0_i32_1 = arith.constant 0 : i32
    return %c0_i32, %c0_i32_0 : i32, i32
  }
  func.func @transform_8(%arg0: i32) -> (i32, i32) {
    %c0_i32 = arith.constant 0 : i32
    %c0_i32_0 = arith.constant 0 : i32
    %c0_i32_1 = arith.constant 0 : i32
    return %c0_i32, %c0_i32_0 : i32, i32
  }
  func.func @transform_9(%arg0: i32) -> (i32, i32) {
    %c0_i32 = arith.constant 0 : i32
    %c0_i32_0 = arith.constant 0 : i32
    %c0_i32_1 = arith.constant 0 : i32
    return %c0_i32, %c0_i32_0 : i32, i32
  }
  func.func @transform_10(%arg0: i32) -> (i32, i32) {
    %c0_i32 = arith.constant 0 : i32
    %c0_i32_0 = arith.constant 0 : i32
    %c0_i32_1 = arith.constant 0 : i32
    return %c0_i32, %c0_i32_0 : i32, i32
  }
  func.func @transform_11(%arg0: i32) -> (i32, i32) {
    %c0_i32 = arith.constant 0 : i32
    %c0_i32_0 = arith.constant 0 : i32
    return %arg0, %c0_i32 : i32, i32
  }
}

</mosaic_0001>

<bundles_post_ra>
// kernel: tpu_custom_call.1
= control target key start
LH: loop header
LB: loop body
LE: loop exit
PB: predicated region body
PF: predicated region fallthrough
CT: control target
= control target key end

     0   :  { %s5612_s19 = smov 0   ;;  %s10671_s0 = inlined_call_operand.vmem [shape: f32[256,1], index: 0, kind: input, shape index: {}]   ;;  %s10672_s1 = inlined_call_operand.vmem [shape: f32[128,9], index: 1, kind: input, shape index: {}]   ;;  %s10673_s2 = inlined_call_operand.vmem [shape: f32[9,8], index: 2, kind: input, shape index: {}]   ;;  %s10674_s3 = inlined_call_operand.vmem [shape: f32[1,8], index: 3, kind: input, shape index: {}]   ;;  %s10675_s4 = inlined_call_operand.vmem [shape: bf16[72,8], index: 4, kind: input, shape index: {}]   ;;  %s10676_s5 = inlined_call_operand.vmem [shape: f32[1,8], index: 5, kind: input, shape index: {}]   ;;  %s10677_s6 = inlined_call_operand.vmem [shape: bf16[72,8], index: 6, kind: input, shape index: {}]   ;;  %s10678_s7 = inlined_call_operand.vmem [shape: f32[1,8], index: 7, kind: input, shape index: {}]   ;;  %s10679_s8 = inlined_call_operand.vmem [shape: bf16[128,8], index: 8, kind: input, shape index: {}]   ;;  %s10680_s9 = inlined_call_operand.vmem [shape: bf16[8,128], index: 9, kind: input, shape index: {}]   ;;  %s10681_s10 = inlined_call_operand.<no memory space> [shape: f32[1,1], index: 10, kind: input, shape index: {}]   ;;  %s10682_s11 = inlined_call_operand.vmem [shape: f32[16,1], index: 11, kind: output, shape index: {}]  }
   0x1   :  { %v16_v0 = vstv %s10681_s10 }
   0x2   :  { %17 = vst [vmem:[#allocation2] sm:$0x1] %v16_v0 }
   0x3 LB: > { %s5618_s20 = sadd.s32 4294967295, %s5524_s19   ;;  %p5247_p0 = scmp.ge.s32.totalorder %s5524_s19, 1  ;;  %s5524_s19 = sphi %s5612_s19, %s23_s19  }
   0x4   : > { %p340_p1 = scmp.lt.s32.totalorder %s5524_s19, 3 }
   0x6   : > { %p341_p2 = pnand %p5247_p0, %p340_p1 }
   0x8   : > { %344 = sbr.rel (%p341_p2) target bundleno = 2271 (0x8df), region = 64 }
   0xd   : > { %v5625_v1 = vld [vmem:[%s10672_s1 + $0x20] sm:$0xff]  ;;  %v5630_v2 = vld [vmem:[%s10672_s1 + $0x10] sm:$0xff]  ;;  %s5526_s26 = smov 127   ;;  %v5646_v4 = vld [vmem:[%s10672_s1 + $0x28] sm:$0xff]  ;;  %s5527_s17 = smov 126   ;;  %vm3781_vm5 = vcmask 1043456  }
   0xe   : > { %v5635_v3 = vld [vmem:[%s10672_s1] sm:$0xff]  ;;  %531 = vrot.lane.b32.xlu2 %v5625_v1, %s5526_s26  ;;  %527 = vrot.lane.b32.xlu1 %v5630_v2, %s5526_s26  ;;  %v5651_v5 = vld [vmem:[%s10672_s1 + $0x18] sm:$0xff]  ;;  %s5529_s18 = smov 123   ;;  %s5530_s21 = smov 122   ;;  %vm3580_vm6 = vcmask 64512   ;;  %vm3605_vm7 = vcmask 130048  }
   0xf   : > { %523 = vrot.lane.b32.xlu0 %v5635_v3, %s5526_s26  ;;  %v5656_v6 = vld [vmem:[%s10672_s1 + $0x8] sm:$0xff]  ;;  %v5667_v7 = vld [vmem:[%s10672_s1 + $0x40] sm:$0xff]  ;;  %v5672_v8 = vld [vmem:[%s10672_s1 + $0x38] sm:$0xff]  ;;  %s5531_s22 = smov 121   ;;  %s5532_s10 = smov 120   ;;  %vm3622_vm8 = vcmask 195584  }
  0x10   : > { %v5677_v9 = vld [vmem:[%s10672_s1 + $0x30] sm:$0xff]  ;;  %v5688_v10 = vld [vmem:[%s10672_s1 + $0x58] sm:$0xff]  ;;  %v5698_v12 = vld [vmem:[%s10672_s1 + $0x48] sm:$0xff]  ;;  %s5248_s23 = sshll.u32 %s5618_s20, 4  ;;  %s5541_s14 = smov 8   ;;  %vm3639_vm9 = vcmask 261120  }
  0x11   : > { %v5693_v11 = vld [vmem:[%s10672_s1 + $0x50] sm:$0xff]  ;;  %v5714_v14 = vld [vmem:[%s10672_s1 + $0x68] sm:$0xff]  ;;  %v5719_v15 = vld [vmem:[%s10672_s1 + $0x60] sm:$0xff]  ;;  %p380_p3 = scmp.lt.s32.totalorder %s5248_s23, 31  ;;  %s5542_s15 = smov 16   ;;  %vm3656_vm10 = vcmask 326656  }
  0x12   : > { %v5709_v13 = vld [vmem:[%s10672_s1 + $0x70] sm:$0xff]  ;;  %v5730_v16 = vld [vmem:[%s10672_s1 + $0x78] sm:$0xff]  ;;  %s5543_s29 = smov 24   ;;  %s5548_s12 = smov 40   ;;  %vm3673_vm11 = vcmask 392192   ;;  %vm3690_vm12 = vcmask 457728  }
  0x13   : > { %s11981_s23 = smov (!%p380_p3, %s5248_s23), 31  ;;  %vm3707_vm13 = vcmask 523264   ;;  %vm3764_vm14 = vcmask 588800   ;;  %p385_p4 = scmp.lt.s32.totalorder %s5618_s20, 1  ;;  %vm5188_vm15 = vcmask 7168  }
  0x14   : > { %s5249_s24 = sshll.u32 %s11981_s23, 3  ;;  %s5546_s23 = smov 64  }
  0x15   : > { %s6029_s28 = scalar_lea.vmem %s10671_s0, %s5249_s24  ;;  %s5547_s24 = smov 32  }
  0x16   : > { %533 = vrot.lane.b32.xlu2 %v5646_v4, %s5526_s26  ;;  %529 = vrot.lane.b32.xlu1 %v5651_v5, %s5526_s26  ;;  %s11983_s20 = smov (!%p385_p4, %s5618_s20), 1 }
  0x17   : > { %525 = vrot.lane.b32.xlu0 %v5656_v6, %s5526_s26 }
  0x1e   : > { %539 = vrot.lane.b32.xlu2 %v5667_v7, %s5526_s26  ;;  %537 = vrot.lane.b32.xlu1 %v5672_v8, %s5526_s26 }
  0x1f   : > { %535 = vrot.lane.b32.xlu0 %v5677_v9, %s5526_s26 }
  0x26   : > { %545 = vrot.lane.b32.xlu2 %v5688_v10, %s5526_s26  ;;  %543 = vrot.lane.b32.xlu1 %v5693_v11, %s5526_s26 }
  0x27   : > { %541 = vrot.lane.b32.xlu0 %v5698_v12, %s5526_s26 }
  0x2e   : > { %551 = vrot.lane.b32.xlu2 %v5709_v13, %s5526_s26  ;;  %549 = vrot.lane.b32.xlu1 %v5714_v14, %s5526_s26 }
  0x2f   : > { %547 = vrot.lane.b32.xlu0 %v5719_v15, %s5526_s26 }
  0x36   : > { %622 = vrot.lane.b32.xlu2 %v5656_v6, %s5527_s17  ;;  %620 = vrot.lane.b32.xlu1 %v5635_v3, %s5527_s17 }
  0x37   : > { %553 = vrot.lane.b32.xlu0 %v5730_v16, %s5526_s26  ;;  %s5528_s26 = smov 125  }
  0x3e   : > { %628 = vrot.lane.b32.xlu2 %v5625_v1, %s5527_s17  ;;  %626 = vrot.lane.b32.xlu1 %v5651_v5, %s5527_s17 }
  0x3f   : > { %624 = vrot.lane.b32.xlu0 %v5630_v2, %s5527_s17 }
  0x46   : > { %634 = vrot.lane.b32.xlu2 %v5672_v8, %s5527_s17  ;;  %632 = vrot.lane.b32.xlu1 %v5677_v9, %s5527_s17 }
  0x47   : > { %630 = vrot.lane.b32.xlu0 %v5646_v4, %s5527_s17 }
  0x4e   : > { %640 = vrot.lane.b32.xlu2 %v5693_v11, %s5527_s17  ;;  %638 = vrot.lane.b32.xlu1 %v5698_v12, %s5527_s17 }
  0x4f   : > { %636 = vrot.lane.b32.xlu0 %v5667_v7, %s5527_s17 }
  0x56   : > { %646 = vrot.lane.b32.xlu2 %v5714_v14, %s5527_s17  ;;  %644 = vrot.lane.b32.xlu1 %v5719_v15, %s5527_s17 }
  0x57   : > { %642 = vrot.lane.b32.xlu0 %v5688_v10, %s5527_s17 }
  0x5e   : > { %717 = vrot.lane.b32.xlu2 %v5635_v3, %s5528_s26  ;;  %650 = vrot.lane.b32.xlu1 %v5730_v16, %s5527_s17 }
  0x5f   : > { %648 = vrot.lane.b32.xlu0 %v5709_v13, %s5527_s17 }
  0x66   : > { %723 = vrot.lane.b32.xlu2 %v5651_v5, %s5528_s26  ;;  %721 = vrot.lane.b32.xlu1 %v5630_v2, %s5528_s26 }
  0x67   : > { %719 = vrot.lane.b32.xlu0 %v5656_v6, %s5528_s26 }
  0x68   : > { %v5754_v17 = vpop.permute.xlu2 %531 }
  0x6e   : > { %729 = vrot.lane.b32.xlu2 %v5677_v9, %s5528_s26  ;;  %727 = vrot.lane.b32.xlu1 %v5646_v4, %s5528_s26 }
  0x6f   : > { %725 = vrot.lane.b32.xlu0 %v5625_v1, %s5528_s26 }
  0x70   : > { %v5759_v18 = vpop.permute.xlu2 %533 }
  0x76   : > { %735 = vrot.lane.b32.xlu2 %v5698_v12, %s5528_s26  ;;  %733 = vrot.lane.b32.xlu1 %v5667_v7, %s5528_s26 }
  0x77   : > { %731 = vrot.lane.b32.xlu0 %v5672_v8, %s5528_s26 }
  0x78   : > { %v5764_v19 = vpop.permute.xlu2 %539 }
  0x7e   : > { %741 = vrot.lane.b32.xlu2 %v5719_v15, %s5528_s26  ;;  %739 = vrot.lane.b32.xlu1 %v5688_v10, %s5528_s26 }
  0x7f   : > { %737 = vrot.lane.b32.xlu0 %v5693_v11, %s5528_s26 }
  0x80   : > { %v5769_v20 = vpop.permute.xlu2 %545  ;;  %v5771_v21 = vpop.permute.xlu1 %527 }
  0x81   : > { %v5773_v22 = vpop.permute.xlu0 %523 }
  0x86   : > { %747 = vrot.lane.b32.xlu2 %v5730_v16, %s5528_s26  ;;  %745 = vrot.lane.b32.xlu1 %v5709_v13, %s5528_s26 }
  0x87   : > { %743 = vrot.lane.b32.xlu0 %v5714_v14, %s5528_s26 }
  0x88   : > { %v5778_v23 = vpop.permute.xlu2 %551  ;;  %v5780_v24 = vpop.permute.xlu1 %529 }
  0x89   : > { %v5782_v25 = vpop.permute.xlu0 %525 }
  0x8e   : > { %818 = vrot.lane.b32.xlu2 %v5630_v2, %s5529_s18  ;;  %816 = vrot.lane.b32.xlu1 %v5656_v6, %s5529_s18 }
  0x8f   : > { %814 = vrot.lane.b32.xlu0 %v5635_v3, %s5529_s18 }
  0x90   : > { %v5790_v26 = vpop.permute.xlu1 %537  ;;  %v5792_v27 = vpop.permute.xlu2 %622 }
  0x91   : > { %v5794_v28 = vpop.permute.xlu0 %535 }
  0x96   : > { %824 = vrot.lane.b32.xlu2 %v5646_v4, %s5529_s18  ;;  %822 = vrot.lane.b32.xlu1 %v5625_v1, %s5529_s18 }
  0x97   : > { %820 = vrot.lane.b32.xlu0 %v5651_v5, %s5529_s18 }
  0x98   : > { %v5802_v29 = vpop.permute.xlu1 %543  ;;  %v5804_v30 = vpop.permute.xlu2 %628 }
  0x99   : > { %v5806_v31 = vpop.permute.xlu0 %541 }
  0x9e   : > { %830 = vrot.lane.b32.xlu2 %v5667_v7, %s5529_s18  ;;  %828 = vrot.lane.b32.xlu1 %v5672_v8, %s5529_s18 }
  0x9f   : > { %826 = vrot.lane.b32.xlu0 %v5677_v9, %s5529_s18 }
  0xa0   : > { %v5814_v32 = vpop.permute.xlu1 %549  ;;  %v5816_v33 = vpop.permute.xlu2 %634 }
  0xa1   : > { %v5818_v34 = vpop.permute.xlu0 %547 }
  0xa6   : > { %836 = vrot.lane.b32.xlu2 %v5688_v10, %s5529_s18  ;;  %834 = vrot.lane.b32.xlu1 %v5693_v11, %s5529_s18 }
  0xa7   : > { %832 = vrot.lane.b32.xlu0 %v5698_v12, %s5529_s18 }
  0xa8   : > { %v5826_v35 = vpop.permute.xlu2 %640  ;;  %v5828_v36 = vpop.permute.xlu1 %620 }
  0xa9   : > { %v5830_v37 = vpop.permute.xlu0 %553 }
  0xae   : > { %842 = vrot.lane.b32.xlu2 %v5709_v13, %s5529_s18  ;;  %840 = vrot.lane.b32.xlu1 %v5714_v14, %s5529_s18 }
  0xaf   : > { %838 = vrot.lane.b32.xlu0 %v5719_v15, %s5529_s18 }
  0xb0   : > { %v5838_v38 = vpop.permute.xlu2 %646  ;;  %v5840_v39 = vpop.permute.xlu1 %626 }
  0xb1   : > { %v5842_v40 = vpop.permute.xlu0 %624 }
  0xb6   : > { %880 = vrot.lane.b32.xlu2 %v5656_v6, %s5530_s21  ;;  %878 = vrot.lane.b32.xlu1 %v5635_v3, %s5530_s21 }
  0xb7   : > { %844 = vrot.lane.b32.xlu0 %v5730_v16, %s5529_s18  ;;  %s5544_s18 = smov 48  }
  0xb8   : > { %v5850_v41 = vpop.permute.xlu2 %717  ;;  %v5852_v42 = vpop.permute.xlu1 %632 }
  0xb9   : > { %11029 = vst [vmem:[#allocation3_spill] sm:$0xff] %v5850_v41  ;;  %v5854_v43 = vpop.permute.xlu0 %630 }
  0xbe   : > { %886 = vrot.lane.b32.xlu2 %v5625_v1, %s5530_s21  ;;  %884 = vrot.lane.b32.xlu1 %v5651_v5, %s5530_s21 }
  0xbf   : > { %882 = vrot.lane.b32.xlu0 %v5630_v2, %s5530_s21 }
  0xc0   : > { %v5862_v44 = vpop.permute.xlu2 %723  ;;  %v5864_v45 = vpop.permute.xlu1 %638 }
  0xc1   : > { %11030 = vst [vmem:[#allocation4_spill] sm:$0xff] %v5862_v44  ;;  %v5866_v46 = vpop.permute.xlu0 %636 }
  0xc6   : > { %892 = vrot.lane.b32.xlu2 %v5672_v8, %s5530_s21  ;;  %890 = vrot.lane.b32.xlu1 %v5677_v9, %s5530_s21 }
  0xc7   : > { %888 = vrot.lane.b32.xlu0 %v5646_v4, %s5530_s21 }
  0xc8   : > { %v5874_v47 = vpop.permute.xlu2 %729  ;;  %v5876_v48 = vpop.permute.xlu1 %644 }
  0xc9   : > { %11031 = vst [vmem:[#allocation5_spill] sm:$0xff] %v5874_v47  ;;  %v5878_v49 = vpop.permute.xlu0 %642 }
  0xce   : > { %898 = vrot.lane.b32.xlu2 %v5693_v11, %s5530_s21  ;;  %896 = vrot.lane.b32.xlu1 %v5698_v12, %s5530_s21 }
  0xcf   : > { %894 = vrot.lane.b32.xlu0 %v5667_v7, %s5530_s21 }
  0xd0   : > { %v5886_v50 = vpop.permute.xlu2 %735  ;;  %v5888_v51 = vpop.permute.xlu1 %650 }
  0xd1   : > { %11032 = vst [vmem:[#allocation6_spill] sm:$0xff] %v5886_v50  ;;  %v5890_v52 = vpop.permute.xlu0 %648 }
  0xd2   : > { %11033 = vst [vmem:[#allocation7_spill] sm:$0xff] %v5888_v51  ;;  %v6081_v51 = vld [vmem:[%s6029_s28 + $0x10] sm:$0xff] }
  0xd3   : > { %11034 = vst [vmem:[#allocation8_spill] sm:$0xff] %v5890_v52  ;;  %v6116_v52 = vld [vmem:[%s6029_s28 + $0x30] sm:$0xff] }
  0xd6   : > { %904 = vrot.lane.b32.xlu2 %v5714_v14, %s5530_s21  ;;  %902 = vrot.lane.b32.xlu1 %v5719_v15, %s5530_s21 }
  0xd7   : > { %900 = vrot.lane.b32.xlu0 %v5688_v10, %s5530_s21 }
  0xd8   : > { %v5898_v53 = vpop.permute.xlu2 %741  ;;  %v5900_v54 = vpop.permute.xlu1 %721 }
  0xd9   : > { %11035 = vst [vmem:[#allocation9_spill] sm:$0xff] %v5898_v53  ;;  %v5902_v55 = vpop.permute.xlu0 %719 }
  0xda   : > { %11036 = vst [vmem:[#allocation10_spill] sm:$0xff] %v5900_v54 }
  0xdb   : > { %11037 = vst [vmem:[#allocation11_spill] sm:$0xff] %v5902_v55  ;;  %v6075_v55 = vld [vmem:[%s6029_s28 + $0x18] sm:$0xff] }
  0xde   : > { %942 = vrot.lane.b32.xlu2 %v5635_v3, %s5531_s22  ;;  %908 = vrot.lane.b32.xlu1 %v5730_v16, %s5530_s21 }
  0xdf   : > { %906 = vrot.lane.b32.xlu0 %v5709_v13, %s5530_s21 }
  0xe0   : > { %v5910_v56 = vpop.permute.xlu2 %747  ;;  %v5912_v57 = vpop.permute.xlu1 %727 }
  0xe1   : > { %11038 = vst [vmem:[#allocation12_spill] sm:$0xff] %v5910_v56  ;;  %v5914_v58 = vpop.permute.xlu0 %725 }
  0xe2   : > { %11039 = vst [vmem:[#allocation13_spill] sm:$0xff] %v5912_v57 }
  0xe3   : > { %11040 = vst [vmem:[#allocation14_spill] sm:$0xff] %v5914_v58 }
  0xe6   : > { %948 = vrot.lane.b32.xlu2 %v5651_v5, %s5531_s22  ;;  %946 = vrot.lane.b32.xlu1 %v5630_v2, %s5531_s22 }
  0xe7   : > { %944 = vrot.lane.b32.xlu0 %v5656_v6, %s5531_s22 }
  0xe8   : > { %v5922_v59 = vpop.permute.xlu2 %818  ;;  %v5924_v60 = vpop.permute.xlu1 %733 }
  0xe9   : > { %11041 = vst [vmem:[#allocation15_spill] sm:$0xff] %v5922_v59  ;;  %v5926_v61 = vpop.permute.xlu0 %731 }
  0xea   : > { %11042 = vst [vmem:[#allocation16_spill] sm:$0xff] %v5924_v60 }
  0xeb   : > { %11043 = vst [vmem:[#allocation17_spill] sm:$0xff] %v5926_v61 }
  0xee   : > { %954 = vrot.lane.b32.xlu2 %v5677_v9, %s5531_s22  ;;  %952 = vrot.lane.b32.xlu1 %v5646_v4, %s5531_s22 }
  0xef   : > { %950 = vrot.lane.b32.xlu0 %v5625_v1, %s5531_s22 }
  0xf0   : > { %v5934_v62 = vpop.permute.xlu2 %824  ;;  %v5936_v63 = vpop.permute.xlu1 %739 }
  0xf1   : > { %11044 = vst [vmem:[#allocation18_spill] sm:$0xff] %v5934_v62  ;;  %v5938_v0 = vpop.permute.xlu0 %737 }
  0xf2   : > { %11045 = vst [vmem:[#allocation19_spill] sm:$0xff] %v5936_v63 }
  0xf3   : > { %11046 = vst [vmem:[#allocation20_spill] sm:$0xff] %v5938_v0 }
  0xf6   : > { %960 = vrot.lane.b32.xlu2 %v5698_v12, %s5531_s22  ;;  %958 = vrot.lane.b32.xlu1 %v5667_v7, %s5531_s22 }
  0xf7   : > { %956 = vrot.lane.b32.xlu0 %v5672_v8, %s5531_s22 }
  0xf8   : > { %v5946_v59 = vpop.permute.xlu2 %830  ;;  %v5948_v56 = vpop.permute.xlu1 %745 }
  0xf9   : > { %11047 = vst [vmem:[#allocation21_spill] sm:$0xff] %v5946_v59  ;;  %v5950_v53 = vpop.permute.xlu0 %743 }
  0xfa   : > { %11048 = vst [vmem:[#allocation22_spill] sm:$0xff] %v5948_v56 }
  0xfb   : > { %11049 = vst [vmem:[#allocation23_spill] sm:$0xff] %v5950_v53 }
  0xfe   : > { %966 = vrot.lane.b32.xlu2 %v5719_v15, %s5531_s22  ;;  %964 = vrot.lane.b32.xlu1 %v5688_v10, %s5531_s22 }
  0xff   : > { %962 = vrot.lane.b32.xlu0 %v5693_v11, %s5531_s22 }
 0x100   : > { %v5958_v62 = vpop.permute.xlu2 %836  ;;  %v5960_v63 = vpop.permute.xlu1 %816 }
 0x101   : > { %11050 = vst [vmem:[#allocation24_spill] sm:$0xff] %v5958_v62  ;;  %v5962_v0 = vpop.permute.xlu0 %814 }
 0x102   : > { %11051 = vst [vmem:[#allocation25_spill] sm:$0xff] %v5960_v63 }
 0x103   : > { %11052 = vst [vmem:[#allocation26_spill] sm:$0xff] %v5962_v0 }
 0x106   : > { %972 = vrot.lane.b32.xlu2 %v5730_v16, %s5531_s22  ;;  %970 = vrot.lane.b32.xlu1 %v5709_v13, %s5531_s22 }
 0x107   : > { %968 = vrot.lane.b32.xlu0 %v5714_v14, %s5531_s22 }
 0x108   : > { %v5970_v59 = vpop.permute.xlu2 %842  ;;  %v5972_v56 = vpop.permute.xlu1 %822 }
 0x109   : > { %11053 = vst [vmem:[#allocation27_spill] sm:$0xff] %v5970_v59  ;;  %v5974_v53 = vpop.permute.xlu0 %820 }
 0x10a   : > { %11054 = vst [vmem:[#allocation28_spill] sm:$0xff] %v5972_v56  ;;  %v10683_v56 = vmov 0  }
 0x10b   : > { %11055 = vst [vmem:[#allocation29_spill] sm:$0xff] %v5974_v53  ;;  %5391 = vset.pattern.permute.xlu2 %v10683_v56  ;;  %5390 = vset.pattern.permute.xlu1 %v10683_v56 }
 0x10c   : > { %5392 = vset.pattern.permute.xlu0 %v10683_v56 }
 0x10e   : > { %1010 = vrot.lane.b32.xlu2 %v5630_v2, %s5532_s10  ;;  %1008 = vrot.lane.b32.xlu1 %v5656_v6, %s5532_s10 }
 0x10f   : > { %1006 = vrot.lane.b32.xlu0 %v5635_v3, %s5532_s10 }
 0x110   : > { %v5982_v62 = vpop.permute.xlu2 %880  ;;  %v5984_v0 = vpop.permute.xlu1 %828 }
 0x111   : > { %11056 = vst [vmem:[#allocation30_spill] sm:$0xff] %v5982_v62  ;;  %v5986_v59 = vpop.permute.xlu0 %826 }
 0x112   : > { %11057 = vst [vmem:[#allocation31_spill] sm:$0xff] %v5984_v0 }
 0x113   : > { %11058 = vst [vmem:[#allocation32_spill] sm:$0xff] %v5986_v59 }
 0x116   : > { %1016 = vrot.lane.b32.xlu2 %v5646_v4, %s5532_s10  ;;  %1014 = vrot.lane.b32.xlu1 %v5625_v1, %s5532_s10 }
 0x117   : > { %1012 = vrot.lane.b32.xlu0 %v5651_v5, %s5532_s10 }
 0x118   : > { %v5997_v62 = vpop.permute.xlu2 %886  ;;  %v5999_v0 = vpop.permute.xlu1 %834 }
 0x119   : > { %11059 = vst [vmem:[#allocation33_spill] sm:$0xff] %v5997_v62  ;;  %v6001_v59 = vpop.permute.xlu0 %832 }
 0x11a   : > { %11060 = vst [vmem:[#allocation34_spill] sm:$0xff] %v5999_v0 }
 0x11b   : > { %11061 = vst [vmem:[#allocation35_spill] sm:$0xff] %v6001_v59  ;;  %v423_v59 = vlaneseq }
 0x11d   : > { %v6037_v60 = vshrl.u32 %v423_v59, 7 }
 0x11e   : > { %1022 = vrot.lane.b32.xlu2 %v5667_v7, %s5532_s10  ;;  %1020 = vrot.lane.b32.xlu1 %v5672_v8, %s5532_s10 }
 0x11f   : > { %1018 = vrot.lane.b32.xlu0 %v5677_v9, %s5532_s10  ;;  %11068 = vst [vmem:[#allocation42_spill] sm:$0xff] %v6037_v60  ;;  %vm425_vm0 = vcmp.lt.s32.totalorder %v6037_v60, 5  ;;  %vm490_vm1 = vcmp.lt.s32.totalorder %v6037_v60, 4  ;;  %vm603_vm2 = vcmp.lt.s32.totalorder %v6037_v60, 3  ;;  %vm700_vm3 = vcmp.lt.s32.totalorder %v6037_v60, 1 }
 0x120   : > { %v6010_v56 = vpop.permute.xlu2 %892  ;;  %v6012_v53 = vpop.permute.xlu1 %840  ;;  %vm797_vm4 = vcmp.lt.s32.totalorder %v6037_v60, 7 }
 0x121   : > { %11062 = vst [vmem:[#allocation36_spill] sm:$0xff] %v6010_v56  ;;  %v6014_v62 = vpop.permute.xlu0 %838 }
 0x122   : > { %11063 = vst [vmem:[#allocation37_spill] sm:$0xff] %v6012_v53 }
 0x123   : > { %11064 = vst [vmem:[#allocation38_spill] sm:$0xff] %v6014_v62  ;;  %v6034_v62 = vld [vmem:[%s6029_s28 + $0x78] sm:$0xff] }
 0x124   : > { %v10684_v53 = vrot.slane %v6034_v62, 3 }
 0x126   : > { %1028 = vrot.lane.b32.xlu2 %v5688_v10, %s5532_s10  ;;  %1026 = vrot.lane.b32.xlu1 %v5693_v11, %s5532_s10 }
 0x127   : > { %1024 = vrot.lane.b32.xlu0 %v5698_v12, %s5532_s10 }
 0x128   : > { %v6022_v0 = vpop.permute.xlu2 %898  ;;  %v6024_v63 = vpop.permute.xlu1 %878 }
 0x129   : > { %11065 = vst [vmem:[#allocation39_spill] sm:$0xff] %v6022_v0  ;;  %v6031_v56 = vpop.permute.xlu0 %844  ;;  %v6040_v0 = vld [vmem:[%s6029_s28 + $0x8] sm:$0xff] }
 0x12a   : > { %11066 = vst [vmem:[#allocation40_spill] sm:$0xff] %v6024_v63  ;;  %v6043_v63 = vld [vmem:[%s6029_s28] sm:$0xff]  ;;  %v408_v50 = vrot.slane %v6040_v0, 3 }
 0x12b   : > { %11067 = vst [vmem:[#allocation41_spill] sm:$0xff] %v6031_v56  ;;  %v407_v61 = vrot.slane %v6043_v63, 3 }
 0x12d   : > { %v6058_v59 = vsel %vm425_vm0, %v10684_v53, %v407_v61  ;;  %v6066_v47 = vsel %vm425_vm0, %v407_v61, %v408_v50  ;;  %v6078_v53 = vld [vmem:[%s6029_s28 + $0x20] sm:$0xff] }
 0x12e   : > { %1034 = vrot.lane.b32.xlu2 %v5709_v13, %s5532_s10  ;;  %1032 = vrot.lane.b32.xlu1 %v5714_v14, %s5532_s10  ;;  %11069 = vst [vmem:[#allocation43_spill] sm:$0xff] %v6058_v59  ;;  %v459_v54 = vmul.f32 %v5656_v6, %v6066_v47  ;;  %v458_v44 = vmul.f32 %v5635_v3, %v6058_v59  ;;  %v411_v61 = vrot.slane %v6078_v53, 3 }
 0x12f   : > { %1030 = vrot.lane.b32.xlu0 %v5719_v15, %s5532_s10  ;;  %11072 = vst [vmem:[#allocation46_spill] sm:$0xff] %v6066_v47 }
 0x130   : > { %v6060_v56 = vpop.permute.xlu2 %904  ;;  %v6062_v57 = vpop.permute.xlu1 %884 }
 0x131   : > { %11070 = vst [vmem:[#allocation44_spill] sm:$0xff] %v6060_v56  ;;  %v6068_v58 = vpop.permute.xlu0 %882  ;;  %v409_v56 = vrot.slane %v6081_v51, 3 }
 0x132   : > { %11071 = vst [vmem:[#allocation45_spill] sm:$0xff] %v6062_v57 }
 0x133   : > { %11073 = vst [vmem:[#allocation47_spill] sm:$0xff] %v6068_v58  ;;  %v410_v58 = vrot.slane %v6075_v55, 3 }
 0x135   : > { %v6088_v3 = vsel %vm425_vm0, %v409_v56, %v410_v58  ;;  %v6098_v57 = vsel %vm425_vm0, %v410_v58, %v411_v61  ;;  %v6119_v58 = vld [vmem:[%s6029_s28 + $0x38] sm:$0xff] }
 0x136   : > { %1073 = vperm.xlu1 %5390, %v458_v44   ;;  %1078 = vperm.xlu2 %5391, %v459_v54   ;;  %11074 = vst [vmem:[#allocation48_spill] sm:$0xff] %v6088_v3  ;;  %v6104_v44 = vsel %vm425_vm0, %v408_v50, %v409_v56  ;;  %v462_v54 = vmul.f32 %v5625_v1, %v6098_v57  ;;  %v413_v50 = vrot.slane %v6116_v52, 3  ;;  %v414_v1 = vrot.slane %v6119_v58, 3 }
 0x137   : > { %1036 = vrot.lane.b32.xlu0 %v5730_v16, %s5532_s10  ;;  %11077 = vst [vmem:[#allocation51_spill] sm:$0xff] %v6098_v57  ;;  %v461_v41 = vmul.f32 %v5651_v5, %v6088_v3  ;;  %s5545_s10 = smov 56  }
 0x138   : > { %v6092_v6 = vpop.permute.xlu2 %942  ;;  %v6094_v59 = vpop.permute.xlu1 %890  ;;  %11079 = vst [vmem:[#allocation53_spill] sm:$0xff] %v6104_v44 }
 0x139   : > { %11075 = vst [vmem:[#allocation49_spill] sm:$0xff] %v6092_v6  ;;  %v6100_v47 = vpop.permute.xlu0 %888  ;;  %v460_v6 = vmul.f32 %v5630_v2, %v6104_v44 }
 0x13a   : > { %11076 = vst [vmem:[#allocation50_spill] sm:$0xff] %v6094_v59  ;;  %v6113_v59 = vld [vmem:[%s6029_s28 + $0x28] sm:$0xff] }
 0x13b   : > { %11078 = vst [vmem:[#allocation52_spill] sm:$0xff] %v6100_v47  ;;  %v412_v47 = vrot.slane %v6113_v59, 3 }
 0x13d   : > { %v6126_v2 = vsel %vm425_vm0, %v412_v47, %v413_v50  ;;  %v6134_v3 = vsel %vm425_vm0, %v411_v61, %v412_v47  ;;  %v6155_v47 = vld [vmem:[%s6029_s28 + $0x50] sm:$0xff] }
 0x13e   : > { %1088 = vperm.xlu1 %5390, %v461_v41   ;;  %1093 = vperm.xlu2 %5391, %v462_v54   ;;  %11080 = vst [vmem:[#allocation54_spill] sm:$0xff] %v6126_v2  ;;  %v463_v44 = vmul.f32 %v5646_v4, %v6134_v3  ;;  %v6142_v41 = vsel %vm425_vm0, %v413_v50, %v414_v1  ;;  %v417_v50 = vrot.slane %v6155_v47, 3 }
 0x13f   : > { %1083 = vperm.xlu0 %5392, %v460_v6   ;;  %11083 = vst [vmem:[#allocation57_spill] sm:$0xff] %v6134_v3  ;;  %v464_v6 = vmul.f32 %v5677_v9, %v6126_v2  ;;  %v465_v54 = vmul.f32 %v5672_v8, %v6142_v41 }
 0x140   : > { %v6128_v5 = vpop.permute.xlu2 %948  ;;  %v6130_v56 = vpop.permute.xlu1 %896  ;;  %11085 = vst [vmem:[#allocation59_spill] sm:$0xff] %v6142_v41 }
 0x141   : > { %11081 = vst [vmem:[#allocation55_spill] sm:$0xff] %v6128_v5  ;;  %v6136_v57 = vpop.permute.xlu0 %894  ;;  %v6149_v5 = vld [vmem:[%s6029_s28 + $0x40] sm:$0xff] }
 0x142   : > { %11082 = vst [vmem:[#allocation56_spill] sm:$0xff] %v6130_v56  ;;  %v6152_v56 = vld [vmem:[%s6029_s28 + $0x48] sm:$0xff]  ;;  %v415_v61 = vrot.slane %v6149_v5, 3 }
 0x143   : > { %11084 = vst [vmem:[#allocation58_spill] sm:$0xff] %v6136_v57  ;;  %v416_v4 = vrot.slane %v6152_v56, 3 }
 0x144   : > { %v6170_v2 = vsel %vm425_vm0, %v414_v1, %v415_v61  ;;  %v6191_v1 = vld [vmem:[%s6029_s28 + $0x68] sm:$0xff] }
 0x145   : > { %v6162_v8 = vsel %vm425_vm0, %v415_v61, %v416_v4  ;;  %11089 = vst [vmem:[#allocation63_spill] sm:$0xff] %v6170_v2  ;;  %v466_v3 = vmul.f32 %v5667_v7, %v6170_v2 }
 0x146   : > { %1098 = vperm.xlu1 %5390, %v463_v44   ;;  %1103 = vperm.xlu2 %5391, %v464_v6   ;;  %11086 = vst [vmem:[#allocation60_spill] sm:$0xff] %v6162_v8  ;;  %v6178_v44 = vsel %vm425_vm0, %v416_v4, %v417_v50  ;;  %v467_v6 = vmul.f32 %v5698_v12, %v6162_v8  ;;  %v420_v4 = vrot.slane %v6191_v1, 3 }
 0x147   : > { %1108 = vperm.xlu0 %5392, %v465_v54   ;;  %11091 = vst [vmem:[#allocation65_spill] sm:$0xff] %v6178_v44  ;;  %v468_v54 = vmul.f32 %v5693_v11, %v6178_v44 }
 0x148   : > { %v6164_v9 = vpop.permute.xlu2 %954  ;;  %v6166_v57 = vpop.permute.xlu1 %902 }
 0x149   : > { %11087 = vst [vmem:[#allocation61_spill] sm:$0xff] %v6164_v9  ;;  %v6172_v41 = vpop.permute.xlu0 %900  ;;  %v6185_v9 = vld [vmem:[%s6029_s28 + $0x58] sm:$0xff] }
 0x14a   : > { %11088 = vst [vmem:[#allocation62_spill] sm:$0xff] %v6166_v57  ;;  %v6188_v57 = vld [vmem:[%s6029_s28 + $0x60] sm:$0xff]  ;;  %v418_v61 = vrot.slane %v6185_v9, 3 }
 0x14b   : > { %11090 = vst [vmem:[#allocation64_spill] sm:$0xff] %v6172_v41  ;;  %v419_v7 = vrot.slane %v6188_v57, 3 }
 0x14c   : > { %v6206_v8 = vsel %vm425_vm0, %v417_v50, %v418_v61 }
 0x14d   : > { %v6198_v12 = vsel %vm425_vm0, %v418_v61, %v419_v7  ;;  %v469_v2 = vmul.f32 %v5688_v10, %v6206_v8  ;;  %v474_v61 = vrot.slane %v6043_v63, 4  ;;  %v11095_v10 = vrot.slane %v6034_v62, 3 }
 0x14e   : > { %1113 = vperm.xlu1 %5390, %v466_v3   ;;  %1118 = vperm.xlu2 %5391, %v467_v6   ;;  %v6214_v3 = vsel %vm425_vm0, %v419_v7, %v420_v4  ;;  %v470_v6 = vmul.f32 %v5719_v15, %v6198_v12 }
 0x14f   : > { %1123 = vperm.xlu0 %5392, %v468_v54   ;;  %v471_v54 = vmul.f32 %v5714_v14, %v6214_v3 }
 0x150   : > { %v6200_v11 = vpop.permute.xlu2 %960  ;;  %v6202_v41 = vpop.permute.xlu1 %908 }
 0x151   : > { %11092 = vst [vmem:[#allocation66_spill] sm:$0xff] %v6200_v11  ;;  %v6208_v44 = vpop.permute.xlu0 %906  ;;  %v6221_v11 = vld [vmem:[%s6029_s28 + $0x70] sm:$0xff] }
 0x152   : > { %11093 = vst [vmem:[#allocation67_spill] sm:$0xff] %v6202_v41  ;;  %v421_v50 = vrot.slane %v6221_v11, 3 }
 0x153   : > { %11094 = vst [vmem:[#allocation68_spill] sm:$0xff] %v6208_v44 }
 0x154   : > { %v6230_v7 = vsel %vm425_vm0, %v421_v50, %v11095_v10  ;;  %v6239_v41 = vsel %vm425_vm0, %v420_v4, %v421_v50  ;;  %v477_v50 = vrot.slane %v6075_v55, 4 }
 0x155   : > { %11096 = vst [vmem:[#allocation69_spill] sm:$0xff] %v6230_v7  ;;  %v473_v10 = vmul.f32 %v5730_v16, %v6230_v7 }
 0x156   : > { %1128 = vperm.xlu1 %5390, %v469_v2   ;;  %1133 = vperm.xlu2 %5391, %v470_v6   ;;  %v11100_v2 = vrot.slane %v6034_v62, 4 }
 0x157   : > { %1138 = vperm.xlu0 %5392, %v471_v54   ;;  %v472_v54 = vmul.f32 %v5709_v13, %v6239_v41 }
 0x158   : > { %v6232_v15 = vpop.permute.xlu2 %966  ;;  %v6234_v14 = vpop.permute.xlu1 %946  ;;  %v6247_v6 = vsel %vm490_vm1, %v11100_v2, %v474_v61 }
 0x159   : > { %11097 = vst [vmem:[#allocation70_spill] sm:$0xff] %v6232_v15  ;;  %v6241_v44 = vpop.permute.xlu0 %944  ;;  %v475_v15 = vrot.slane %v6040_v0, 4  ;;  %v571_v4 = vmul.f32 %v5773_v22, %v6247_v6 }
 0x15a   : > { %11098 = vst [vmem:[#allocation71_spill] sm:$0xff] %v6234_v14  ;;  %v476_v14 = vrot.slane %v6081_v51, 4 }
 0x15b   : > { %11099 = vst [vmem:[#allocation72_spill] sm:$0xff] %v6241_v44  ;;  %v6268_v16 = vsel %vm490_vm1, %v474_v61, %v475_v15 }
 0x15c   : > { %11101 = vst [vmem:[#allocation73_spill] sm:$0xff] %v6247_v6  ;;  %v6264_v13 = vsel %vm490_vm1, %v475_v15, %v476_v14  ;;  %v6274_v22 = vsel %vm490_vm1, %v476_v14, %v477_v50  ;;  %v480_v15 = vrot.slane %v6116_v52, 4 }
 0x15d   : > { %v574_v61 = vmul.f32 %v5780_v24, %v6274_v22 }
 0x15e   : > { %1143 = vperm.xlu1 %5390, %v472_v54   ;;  %1148 = vperm.xlu2 %5391, %v473_v10   ;;  %v573_v54 = vmul.f32 %v5771_v21, %v6264_v13  ;;  %v572_v10 = vmul.f32 %v5782_v25, %v6268_v16 }
 0x15f   : > { %1187 = vperm.xlu0 %5392, %v571_v4   ;;  %v478_v4 = vrot.slane %v6078_v53, 4 }
 0x160   : > { %v6258_v2 = vpop.permute.xlu2 %972  ;;  %v6260_v44 = vpop.permute.xlu1 %952 }
 0x161   : > { %11102 = vst [vmem:[#allocation74_spill] sm:$0xff] %v6258_v2  ;;  %v6270_v7 = vpop.permute.xlu0 %950  ;;  %v479_v2 = vrot.slane %v6113_v59, 4  ;;  %v6291_v21 = vsel %vm490_vm1, %v477_v50, %v478_v4  ;;  %v482_v50 = vrot.slane %v6149_v5, 4 }
 0x162   : > { %11103 = vst [vmem:[#allocation75_spill] sm:$0xff] %v6270_v7 }
 0x163   : > { %v6295_v25 = vsel %vm490_vm1, %v478_v4, %v479_v2  ;;  %v6301_v24 = vsel %vm490_vm1, %v479_v2, %v480_v15 }
 0x164   : > { %v577_v4 = vmul.f32 %v5794_v28, %v6301_v24 }
 0x166   : > { %1192 = vperm.xlu1 %5390, %v572_v10   ;;  %1197 = vperm.xlu2 %5391, %v573_v54   ;;  %v575_v54 = vmul.f32 %v5754_v17, %v6291_v21  ;;  %v576_v10 = vmul.f32 %v5759_v18, %v6295_v25 }
 0x167   : > { %1202 = vperm.xlu0 %5392, %v574_v61   ;;  %v481_v61 = vrot.slane %v6119_v58, 4 }
 0x168   : > { %v6285_v14 = vpop.permute.xlu2 %1010  ;;  %v6287_v6 = vpop.permute.xlu1 %958 }
 0x169   : > { %11104 = vst [vmem:[#allocation76_spill] sm:$0xff] %v6285_v14  ;;  %v6297_v7 = vpop.permute.xlu0 %956  ;;  %v483_v14 = vrot.slane %v6152_v56, 4  ;;  %v6318_v17 = vsel %vm490_vm1, %v481_v61, %v482_v50  ;;  %v6322_v18 = vsel %vm490_vm1, %v480_v15, %v481_v61  ;;  %v486_v61 = vrot.slane %v6188_v57, 4 }
 0x16a   : > { %11105 = vst [vmem:[#allocation77_spill] sm:$0xff] %v6287_v6 }
 0x16b   : > { %11106 = vst [vmem:[#allocation78_spill] sm:$0xff] %v6297_v7  ;;  %v6328_v28 = vsel %vm490_vm1, %v482_v50, %v483_v14 }
 0x16c   : > { %11109 = vst [vmem:[#allocation81_spill] sm:$0xff] %v6318_v17  ;;  %v580_v15 = vmul.f32 %v5806_v31, %v6328_v28 }
 0x16e   : > { %1207 = vperm.xlu1 %5390, %v575_v54   ;;  %1212 = vperm.xlu2 %5391, %v576_v10   ;;  %v579_v54 = vmul.f32 %v5764_v19, %v6318_v17  ;;  %v578_v10 = vmul.f32 %v5790_v26, %v6322_v18 }
 0x16f   : > { %1217 = vperm.xlu0 %5392, %v577_v4   ;;  %v484_v4 = vrot.slane %v6155_v47, 4 }
 0x170   : > { %v6312_v2 = vpop.permute.xlu2 %1016  ;;  %v6314_v7 = vpop.permute.xlu1 %964 }
 0x171   : > { %11107 = vst [vmem:[#allocation79_spill] sm:$0xff] %v6312_v2  ;;  %v6324_v6 = vpop.permute.xlu0 %962  ;;  %v485_v2 = vrot.slane %v6185_v9, 4  ;;  %v6349_v26 = vsel %vm490_vm1, %v483_v14, %v484_v4 }
 0x172   : > { %11108 = vst [vmem:[#allocation80_spill] sm:$0xff] %v6314_v7 }
 0x173   : > { %11110 = vst [vmem:[#allocation82_spill] sm:$0xff] %v6324_v6  ;;  %v6345_v19 = vsel %vm490_vm1, %v484_v4, %v485_v2  ;;  %v6355_v31 = vsel %vm490_vm1, %v485_v2, %v486_v61 }
 0x174   : > { %11113 = vst [vmem:[#allocation85_spill] sm:$0xff] %v6345_v19  ;;  %v583_v14 = vmul.f32 %v5818_v34, %v6355_v31 }
 0x175   : > { %11114 = vst [vmem:[#allocation86_spill] sm:$0xff] %v6349_v26 }
 0x176   : > { %1222 = vperm.xlu1 %5390, %v578_v10   ;;  %1227 = vperm.xlu2 %5391, %v579_v54   ;;  %11116 = vst [vmem:[#allocation88_spill] sm:$0xff] %v6355_v31  ;;  %v582_v54 = vmul.f32 %v5769_v20, %v6345_v19  ;;  %v581_v10 = vmul.f32 %v5802_v29, %v6349_v26  ;;  %v696_v19 = vrot.slane %v6188_v57, 7  ;;  %v11169_v26 = vld [vmem:[#allocation23_spill] sm:$0xff] }
 0x177   : > { %1232 = vperm.xlu0 %5392, %v580_v15   ;;  %v487_v15 = vrot.slane %v6191_v1, 4 }
 0x178   : > { %v6339_v50 = vpop.permute.xlu2 %1022  ;;  %v6341_v6 = vpop.permute.xlu1 %970 }
 0x179   : > { %11111 = vst [vmem:[#allocation83_spill] sm:$0xff] %v6339_v50  ;;  %v6351_v7 = vpop.permute.xlu0 %968  ;;  %v488_v50 = vrot.slane %v6221_v11, 4  ;;  %v6375_v29 = vsel %vm490_vm1, %v486_v61, %v487_v15  ;;  %v10698_v61 = vrot.slane %v6034_v62, 5 }
 0x17a   : > { %11112 = vst [vmem:[#allocation84_spill] sm:$0xff] %v6341_v6  ;;  %v11122_v6 = vrot.slane %v6034_v62, 4 }
 0x17b   : > { %11115 = vst [vmem:[#allocation87_spill] sm:$0xff] %v6351_v7  ;;  %v6371_v20 = vsel %vm490_vm1, %v487_v15, %v488_v50 }
 0x17c   : > { %11119 = vst [vmem:[#allocation91_spill] sm:$0xff] %v6371_v20  ;;  %v6383_v34 = vsel %vm490_vm1, %v488_v50, %v11122_v6  ;;  %v589_v6 = vrot.slane %v6081_v51, 5 }
 0x17d   : > { %11120 = vst [vmem:[#allocation92_spill] sm:$0xff] %v6375_v29  ;;  %v586_v15 = vmul.f32 %v5830_v37, %v6383_v34 }
 0x17e   : > { %1237 = vperm.xlu1 %5390, %v581_v10   ;;  %1242 = vperm.xlu2 %5391, %v582_v54   ;;  %11123 = vst [vmem:[#allocation94_spill] sm:$0xff] %v6383_v34  ;;  %v585_v54 = vmul.f32 %v5778_v23, %v6371_v20  ;;  %v584_v10 = vmul.f32 %v5814_v32, %v6375_v29  ;;  %v693_v20 = vrot.slane %v6152_v56, 7  ;;  %v11163_v34 = vld [vmem:[#allocation17_spill] sm:$0xff] }
 0x17f   : > { %1247 = vperm.xlu0 %5392, %v583_v14   ;;  %v587_v14 = vrot.slane %v6043_v63, 5 }
 0x180   : > { %v6365_v4 = vpop.permute.xlu2 %1028  ;;  %v6367_v2 = vpop.permute.xlu1 %1008 }
 0x181   : > { %11117 = vst [vmem:[#allocation89_spill] sm:$0xff] %v6365_v4  ;;  %v6377_v7 = vpop.permute.xlu0 %1006  ;;  %v588_v4 = vrot.slane %v6040_v0, 5  ;;  %v6408_v37 = vsel %vm603_vm2, %v10698_v61, %v587_v14  ;;  %v592_v61 = vrot.slane %v6113_v59, 5 }
 0x182   : > { %11118 = vst [vmem:[#allocation90_spill] sm:$0xff] %v6367_v2 }
 0x183   : > { %11121 = vst [vmem:[#allocation93_spill] sm:$0xff] %v6377_v7  ;;  %v6402_v32 = vsel %vm603_vm2, %v587_v14, %v588_v4 }
 0x184   : > { %11126 = vst [vmem:[#allocation97_spill] sm:$0xff] %v6402_v32 }
 0x185   : > { %11127 = vst [vmem:[#allocation98_spill] sm:$0xff] %v6408_v37 }
 0x186   : > { %1252 = vperm.xlu1 %5390, %v584_v10   ;;  %1257 = vperm.xlu2 %5391, %v585_v54   ;;  %v6414_v54 = vsel %vm603_vm2, %v588_v4, %v589_v6  ;;  %v669_v10 = vmul.f32 %v5792_v27, %v6402_v32  ;;  %v11162_v32 = vld [vmem:[#allocation13_spill] sm:$0xff] }
 0x187   : > { %1262 = vperm.xlu0 %5392, %v586_v15   ;;  %11129 = vst [vmem:[#allocation100_spill] sm:$0xff] %v6414_v54  ;;  %v668_v15 = vmul.f32 %v5828_v36, %v6408_v37  ;;  %v670_v14 = vmul.f32 %v5842_v40, %v6414_v54  ;;  %v692_v54 = vrot.slane %v6149_v5, 7 }
 0x188   : > { %v6396_v23 = vpop.permute.xlu2 %1034  ;;  %v6398_v50 = vpop.permute.xlu1 %1014 }
 0x189   : > { %11124 = vst [vmem:[#allocation95_spill] sm:$0xff] %v6396_v23  ;;  %v6410_v7 = vpop.permute.xlu0 %1012  ;;  %v590_v23 = vrot.slane %v6075_v55, 5 }
 0x18a   : > { %11125 = vst [vmem:[#allocation96_spill] sm:$0xff] %v6398_v50  ;;  %v591_v50 = vrot.slane %v6078_v53, 5 }
 0x18b   : > { %11128 = vst [vmem:[#allocation99_spill] sm:$0xff] %v6410_v7  ;;  %v6435_v36 = vsel %vm603_vm2, %v589_v6, %v590_v23 }
 0x18c   : > { %v6431_v27 = vsel %vm603_vm2, %v590_v23, %v591_v50  ;;  %11133 = vst [vmem:[#allocation104_spill] sm:$0xff] %v6435_v36  ;;  %v6441_v40 = vsel %vm603_vm2, %v591_v50, %v592_v61  ;;  %v595_v23 = vrot.slane %v6149_v5, 5 }
 0x18d   : > { %11132 = vst [vmem:[#allocation103_spill] sm:$0xff] %v6431_v27  ;;  %v673_v6 = vmul.f32 %v5854_v43, %v6441_v40 }
 0x18e   : > { %1301 = vperm.xlu1 %5390, %v668_v15   ;;  %1306 = vperm.xlu2 %5391, %v669_v10   ;;  %11135 = vst [vmem:[#allocation106_spill] sm:$0xff] %v6441_v40  ;;  %v672_v10 = vmul.f32 %v5804_v30, %v6431_v27  ;;  %v671_v15 = vmul.f32 %v5840_v39, %v6435_v36  ;;  %v6575_v36 = vld [vmem:[%s10673_s2] ss:$0 sm:$0xff] }
 0x18f   : > { %1311 = vperm.xlu0 %5392, %v670_v14   ;;  %v593_v14 = vrot.slane %v6116_v52, 5 }
 0x190   : > { %v6425_v4 = vpop.permute.xlu1 %1020  ;;  %v6427_v7 = vpop.permute.xlu2 %1078 }
 0x191   : > { %11130 = vst [vmem:[#allocation101_spill] sm:$0xff] %v6425_v4  ;;  %v6437_v37 = vpop.permute.xlu0 %1018  ;;  %v6462_v39 = vsel %vm603_vm2, %v592_v61, %v593_v14 }
 0x192   : > { %11131 = vst [vmem:[#allocation102_spill] sm:$0xff] %v6427_v7  ;;  %v594_v7 = vrot.slane %v6119_v58, 5 }
 0x193   : > { %11134 = vst [vmem:[#allocation105_spill] sm:$0xff] %v6437_v37 }
 0x194   : > { %v6458_v30 = vsel %vm603_vm2, %v593_v14, %v594_v7  ;;  %11138 = vst [vmem:[#allocation109_spill] sm:$0xff] %v6462_v39  ;;  %v6468_v43 = vsel %vm603_vm2, %v594_v7, %v595_v23  ;;  %v598_v14 = vrot.slane %v6185_v9, 5 }
 0x195   : > { %11137 = vst [vmem:[#allocation108_spill] sm:$0xff] %v6458_v30  ;;  %v676_v61 = vmul.f32 %v5866_v46, %v6468_v43 }
 0x196   : > { %1316 = vperm.xlu1 %5390, %v671_v15   ;;  %1321 = vperm.xlu2 %5391, %v672_v10   ;;  %11140 = vst [vmem:[#allocation111_spill] sm:$0xff] %v6468_v43  ;;  %v675_v10 = vmul.f32 %v5816_v33, %v6458_v30  ;;  %v674_v15 = vmul.f32 %v5852_v42, %v6462_v39  ;;  %v687_v43 = vrot.slane %v6075_v55, 7 }
 0x197   : > { %1326 = vperm.xlu0 %5392, %v673_v6   ;;  %v596_v6 = vrot.slane %v6152_v56, 5 }
 0x198   : > { %v6452_v50 = vpop.permute.xlu1 %1026  ;;  %v6454_v37 = vpop.permute.xlu2 %1093 }
 0x199   : > { %11136 = vst [vmem:[#allocation107_spill] sm:$0xff] %v6452_v50  ;;  %v6464_v4 = vpop.permute.xlu0 %1024  ;;  %v597_v50 = vrot.slane %v6155_v47, 5  ;;  %v6489_v42 = vsel %vm603_vm2, %v595_v23, %v596_v6 }
 0x19a   : > { %11139 = vst [vmem:[#allocation110_spill] sm:$0xff] %v6464_v4 }
 0x19b   : > { %v6485_v33 = vsel %vm603_vm2, %v596_v6, %v597_v50  ;;  %11143 = vst [vmem:[#allocation114_spill] sm:$0xff] %v6489_v42  ;;  %v6495_v46 = vsel %vm603_vm2, %v597_v50, %v598_v14  ;;  %v601_v6 = vrot.slane %v6221_v11, 5 }
 0x19c   : > { %11142 = vst [vmem:[#allocation113_spill] sm:$0xff] %v6485_v33  ;;  %v679_v23 = vmul.f32 %v5878_v49, %v6495_v46 }
 0x19d   : > { %11145 = vst [vmem:[#allocation116_spill] sm:$0xff] %v6495_v46  ;;  %v11151_v46 = vld [vmem:[#allocation8_spill] sm:$0xff] }
 0x19e   : > { %1331 = vperm.xlu1 %5390, %v674_v15   ;;  %1336 = vperm.xlu2 %5391, %v675_v10   ;;  %v678_v10 = vmul.f32 %v5826_v35, %v6485_v33  ;;  %v677_v15 = vmul.f32 %v5864_v45, %v6489_v42  ;;  %v686_v42 = vrot.slane %v6081_v51, 7 }
 0x19f   : > { %1341 = vperm.xlu0 %5392, %v676_v61   ;;  %v599_v61 = vrot.slane %v6188_v57, 5 }
 0x1a0   : > { %v6479_v7 = vpop.permute.xlu1 %1032  ;;  %v6481_v4 = vpop.permute.xlu2 %1103 }
 0x1a1   : > { %11141 = vst [vmem:[#allocation112_spill] sm:$0xff] %v6479_v7  ;;  %v6491_v30 = vpop.permute.xlu0 %1030  ;;  %v600_v7 = vrot.slane %v6191_v1, 5  ;;  %v6516_v45 = vsel %vm603_vm2, %v598_v14, %v599_v61 }
 0x1a2   : > { %11144 = vst [vmem:[#allocation115_spill] sm:$0xff] %v6491_v30 }
 0x1a3   : > { %v6512_v35 = vsel %vm603_vm2, %v599_v61, %v600_v7  ;;  %11148 = vst [vmem:[#allocation119_spill] sm:$0xff] %v6516_v45  ;;  %v6522_v49 = vsel %vm603_vm2, %v600_v7, %v601_v6  ;;  %v685_v7 = vrot.slane %v6040_v0, 7 }
 0x1a4   : > { %11147 = vst [vmem:[#allocation118_spill] sm:$0xff] %v6512_v35  ;;  %v682_v14 = vmul.f32 %v11151_v46, %v6522_v49 }
 0x1a5   : > { %11150 = vst [vmem:[#allocation121_spill] sm:$0xff] %v6522_v49  ;;  %v11155_v49 = vld [vmem:[#allocation7_spill] sm:$0xff] }
 0x1a6   : > { %1346 = vperm.xlu1 %5390, %v677_v15   ;;  %1351 = vperm.xlu2 %5391, %v678_v10   ;;  %v681_v10 = vmul.f32 %v5838_v38, %v6512_v35  ;;  %v680_v15 = vmul.f32 %v5876_v48, %v6516_v45 }
 0x1a7   : > { %1356 = vperm.xlu0 %5392, %v679_v23   ;;  %v684_v23 = vrot.slane %v6043_v63, 7 }
 0x1a8   : > { %v6506_v50 = vpop.permute.xlu1 %1073  ;;  %v6508_v30 = vpop.permute.xlu2 %1118 }
 0x1a9   : > { %11146 = vst [vmem:[#allocation117_spill] sm:$0xff] %v6506_v50  ;;  %v6518_v33 = vpop.permute.xlu0 %1036  ;;  %v10708_v50 = vrot.slane %v6034_v62, 7 }
 0x1aa   : > { %11149 = vst [vmem:[#allocation120_spill] sm:$0xff] %v6518_v33  ;;  %v11152_v33 = vrot.slane %v6034_v62, 5 }
 0x1ab   : > { %v716_v48 = vsel %vm700_vm3, %v10708_v50, %v684_v23  ;;  %v11156_v50 = vld [vmem:[#allocation11_spill] sm:$0xff] }
 0x1ac   : > { %v6546_v46 = vsel %vm603_vm2, %v601_v6, %v11152_v33  ;;  %v688_v33 = vrot.slane %v6078_v53, 7 }
 0x1ad   : > { %11153 = vst [vmem:[#allocation8_spill] sm:$0xff] %v6546_v46  ;;  %v683_v45 = vmul.f32 %v11155_v49, %v6546_v46  ;;  %v714_v49 = vsel %vm700_vm3, %v685_v7, %v686_v42  ;;  %v690_v46 = vrot.slane %v6116_v52, 7 }
 0x1ae   : > { %1361 = vperm.xlu1 %5390, %v680_v15   ;;  %1366 = vperm.xlu2 %5391, %v681_v10   ;;  %v715_v10 = vsel %vm700_vm3, %v684_v23, %v685_v7  ;;  %v713_v23 = vsel %vm700_vm3, %v686_v42, %v687_v43  ;;  %v6580_v42 = vld [vmem:[%s10673_s2 + $0x1] ss:$0 sm:$0xff]  ;;  %v691_v7 = vrot.slane %v6119_v58, 7 }
 0x1af   : > { %1371 = vperm.xlu0 %5392, %v682_v14   ;;  %v11154_v14 = vld [vmem:[#allocation3_spill] sm:$0xff]  ;;  %v766_v39 = vmul.f32 %v11156_v50, %v715_v10  ;;  %v11158_v50 = vld [vmem:[#allocation4_spill] sm:$0xff]  ;;  %v689_v10 = vrot.slane %v6113_v59, 7 }
 0x1b0   : > { %v6534_v61 = vpop.permute.xlu1 %1088  ;;  %v6536_v38 = vpop.permute.xlu2 %1133  ;;  %v765_v35 = vmul.f32 %v11154_v14, %v716_v48  ;;  %v712_v14 = vsel %vm700_vm3, %v687_v43, %v688_v33 }
 0x1b1   : > { %v1084_v15 = vpop.permute.xlu0 %1083 }
 0x1b2   : > { %v1154_v43 = vmul.f32 %v6575_v36, %v1084_v15 }
 0x1b6   : > { %1376 = vperm.xlu1 %5390, %v683_v45   ;;  %1415 = vperm.xlu2 %5391, %v765_v35   ;;  %v768_v45 = vmul.f32 %v11158_v50, %v713_v23  ;;  %v11159_v35 = vld [vmem:[#allocation10_spill] sm:$0xff] }
 0x1b7   : > { %1420 = vperm.xlu0 %5392, %v766_v39   ;;  %v767_v39 = vmul.f32 %v11159_v35, %v714_v49 }
 0x1b8   : > { %v1099_v6 = vpop.permute.xlu1 %1098  ;;  %v6557_v27 = vpop.permute.xlu2 %1148 }
 0x1b9   : > { %11157 = vst [vmem:[#allocation3_spill] sm:$0xff] %v6557_v27  ;;  %v6563_v48 = vpop.permute.xlu0 %1108  ;;  %v11160_v27 = vld [vmem:[#allocation14_spill] sm:$0xff] }
 0x1ba   : > { %v769_v40 = vmul.f32 %v11160_v27, %v712_v14  ;;  %v710_v27 = vsel %vm700_vm3, %v689_v10, %v690_v46  ;;  %v711_v14 = vsel %vm700_vm3, %v688_v33, %v689_v10  ;;  %v694_v33 = vrot.slane %v6155_v47, 7 }
 0x1bb   : > { %v770_v2 = vmul.f32 %v11162_v32, %v711_v14  ;;  %v1157_v32 = vmul.f32 %v6575_v36, %v1099_v6  ;;  %v697_v6 = vrot.slane %v6191_v1, 7 }
 0x1be   : > { %1425 = vperm.xlu1 %5390, %v767_v39   ;;  %1430 = vperm.xlu2 %5391, %v768_v45   ;;  %v709_v45 = vsel %vm700_vm3, %v690_v46, %v691_v7  ;;  %v707_v46 = vsel %vm700_vm3, %v692_v54, %v693_v20 }
 0x1bf   : > { %1435 = vperm.xlu0 %5392, %v769_v40   ;;  %v11161_v40 = vld [vmem:[#allocation5_spill] sm:$0xff]  ;;  %v772_v29 = vmul.f32 %v11163_v34, %v709_v45  ;;  %v11164_v34 = vld [vmem:[#allocation6_spill] sm:$0xff]  ;;  %v11165_v45 = vld [vmem:[#allocation16_spill] sm:$0xff] }
 0x1c0   : > { %v1114_v23 = vpop.permute.xlu1 %1113  ;;  %v1198_v49 = vpop.permute.xlu2 %1197  ;;  %v771_v15 = vmul.f32 %v11161_v40, %v710_v27 }
 0x1c1   : > { %v6588_v50 = vpop.permute.xlu0 %1123  ;;  %v1268_v35 = vmul.f32 %v6580_v42, %v1198_v49 }
 0x1c3   : > { %v6593_v39 = vadd.f32 %v1268_v35, %v1154_v43  ;;  %v708_v43 = vsel %vm700_vm3, %v691_v7, %v692_v54  ;;  %v774_v35 = vmul.f32 %v11164_v34, %v707_v46  ;;  %v11166_v54 = vld [vmem:[#allocation20_spill] sm:$0xff] }
 0x1c4   : > { %v773_v40 = vmul.f32 %v11165_v45, %v708_v43  ;;  %v1160_v43 = vmul.f32 %v6575_v36, %v1114_v23 }
 0x1c6   : > { %1440 = vperm.xlu1 %5390, %v770_v2   ;;  %1445 = vperm.xlu2 %5391, %v771_v15   ;;  %v706_v2 = vsel %vm700_vm3, %v693_v20, %v694_v33  ;;  %v695_v15 = vrot.slane %v6185_v9, 7 }
 0x1c7   : > { %1450 = vperm.xlu0 %5392, %v772_v29   ;;  %v775_v7 = vmul.f32 %v11166_v54, %v706_v2  ;;  %v703_v2 = vsel %vm700_vm3, %v696_v19, %v697_v6 }
 0x1c8   : > { %v1129_v10 = vpop.permute.xlu1 %1128  ;;  %v1213_v49 = vpop.permute.xlu2 %1212  ;;  %v704_v20 = vsel %vm700_vm3, %v695_v15, %v696_v19  ;;  %v705_v46 = vsel %vm700_vm3, %v694_v33, %v695_v15  ;;  %v778_v17 = vmul.f32 %v11169_v26, %v703_v2  ;;  %v1155_v26 = vmul.f32 %v6575_v36, %v6534_v61  ;;  %v11171_v2 = vld [vmem:[#allocation12_spill] sm:$0xff] }
 0x1c9   : > { %v6606_v27 = vpop.permute.xlu0 %1138  ;;  %v1271_v14 = vmul.f32 %v6580_v42, %v1213_v49 }
 0x1cb   : > { %v6611_v29 = vadd.f32 %v1271_v14, %v1157_v32 }
 0x1ce   : > { %1455 = vperm.xlu1 %5390, %v773_v40   ;;  %1460 = vperm.xlu2 %5391, %v774_v35   ;;  %v11167_v35 = vld [vmem:[#allocation9_spill] sm:$0xff]  ;;  %v11168_v40 = vld [vmem:[#allocation19_spill] sm:$0xff] }
 0x1cf   : > { %1465 = vperm.xlu0 %5392, %v775_v7   ;;  %v777_v45 = vmul.f32 %v11167_v35, %v704_v20  ;;  %v776_v54 = vmul.f32 %v11168_v40, %v705_v46  ;;  %v698_v7 = vrot.slane %v6221_v11, 7  ;;  %v1163_v20 = vmul.f32 %v6575_v36, %v1129_v10 }
 0x1d0   : > { %v1144_v49 = vpop.permute.xlu1 %1143  ;;  %v1228_v31 = vpop.permute.xlu2 %1227 }
 0x1d1   : > { %v6624_v32 = vpop.permute.xlu0 %1187  ;;  %v1274_v14 = vmul.f32 %v6580_v42, %v1228_v31  ;;  %v11170_v31 = vrot.slane %v6034_v62, 7  ;;  %v702_v15 = vsel %vm700_vm3, %v697_v6, %v698_v7  ;;  %v1166_v61 = vmul.f32 %v6575_v36, %v1144_v49 }
 0x1d3   : > { %v6629_v34 = vadd.f32 %v1274_v14, %v1160_v43  ;;  %v701_v19 = vsel %vm700_vm3, %v698_v7, %v11170_v31  ;;  %v1156_v7 = vmul.f32 %v6575_v36, %v6454_v37  ;;  %v1159_v37 = vmul.f32 %v6575_v36, %v6563_v48 }
 0x1d4   : > { %v780_v35 = vmul.f32 %v11171_v2, %v701_v19  ;;  %v1162_v48 = vmul.f32 %v6575_v36, %v6588_v50 }
 0x1d6   : > { %1470 = vperm.xlu1 %5390, %v776_v54   ;;  %1475 = vperm.xlu2 %5391, %v777_v45   ;;  %v11172_v45 = vld [vmem:[#allocation22_spill] sm:$0xff] }
 0x1d7   : > { %1480 = vperm.xlu0 %5392, %v778_v17   ;;  %v779_v40 = vmul.f32 %v11172_v45, %v702_v15  ;;  %v1158_v15 = vmul.f32 %v6575_v36, %v6481_v4 }
 0x1d8   : > { %v6635_v23 = vpop.permute.xlu1 %1192  ;;  %v1243_v33 = vpop.permute.xlu2 %1242 }
 0x1d9   : > { %v1203_v46 = vpop.permute.xlu0 %1202  ;;  %v1277_v43 = vmul.f32 %v6580_v42, %v1243_v33 }
 0x1da   : > { %v1269_v17 = vmul.f32 %v6580_v42, %v1203_v46 }
 0x1db   : > { %v6648_v14 = vadd.f32 %v1277_v43, %v1163_v20 }
 0x1dc   : > { %v6652_v54 = vadd.f32 %v1269_v17, %v1155_v26 }
 0x1de   : > { %1485 = vperm.xlu1 %5390, %v779_v40   ;;  %1490 = vperm.xlu2 %5391, %v780_v35   ;;  %v1161_v35 = vmul.f32 %v6575_v36, %v6508_v30 }
 0x1df   : > { %1529 = vperm.xlu0 %5392, %v6043_v63  }
 0x1e0   : > { %v1208_v10 = vpop.permute.xlu1 %1207  ;;  %v1258_v6 = vpop.permute.xlu2 %1257 }
 0x1e1   : > { %v1218_v33 = vpop.permute.xlu0 %1217  ;;  %v1270_v31 = vmul.f32 %v6580_v42, %v1208_v10  ;;  %v1280_v19 = vmul.f32 %v6580_v42, %v1258_v6  ;;  %v6687_v6 = vld [vmem:[%s10673_s2 + $0x2] ss:$0 sm:$0xff] }
 0x1e2   : > { %v1272_v20 = vmul.f32 %v6580_v42, %v1218_v33 }
 0x1e3   : > { %v1286_v46 = vadd.f32 %v1270_v31, %v1156_v7  ;;  %v6663_v43 = vadd.f32 %v1280_v19, %v1166_v61  ;;  %v1164_v19 = vmul.f32 %v6575_v36, %v6536_v38 }
 0x1e4   : > { %v6665_v26 = vadd.f32 %v1272_v20, %v1158_v15 }
 0x1e6   : > { %1534 = vperm.xlu1 %5390, %v6040_v0   ;;  %1539 = vperm.xlu2 %5391, %v6081_v51  }
 0x1e7   : > { %1544 = vperm.xlu0 %5392, %v6075_v55  }
 0x1e8   : > { %v1223_v49 = vpop.permute.xlu1 %1222  ;;  %v6672_v17 = vpop.permute.xlu2 %1306 }
 0x1e9   : > { %v1233_v4 = vpop.permute.xlu0 %1232  ;;  %v1273_v2 = vmul.f32 %v6580_v42, %v1223_v49  ;;  %v1165_v49 = vmul.f32 %v6575_v36, %v6606_v27 }
 0x1ea   : > { %v1275_v45 = vmul.f32 %v6580_v42, %v1233_v4 }
 0x1eb   : > { %v1289_v40 = vadd.f32 %v1273_v2, %v1159_v37 }
 0x1ec   : > { %v6678_v10 = vadd.f32 %v1275_v45, %v1161_v35 }
 0x1ee   : > { %1549 = vperm.xlu1 %5390, %v6078_v53   ;;  %1554 = vperm.xlu2 %5391, %v6113_v59  }
 0x1ef   : > { %1559 = vperm.xlu0 %5392, %v6116_v52  }
 0x1f0   : > { %v1238_v30 = vpop.permute.xlu1 %1237  ;;  %v1322_v7 = vpop.permute.xlu2 %1321 }
 0x1f1   : > { %v1248_v61 = vpop.permute.xlu0 %1247  ;;  %v1276_v33 = vmul.f32 %v6580_v42, %v1238_v30  ;;  %v1384_v31 = vmul.f32 %v6687_v6, %v1322_v7 }
 0x1f2   : > { %v1278_v15 = vmul.f32 %v6580_v42, %v1248_v61 }
 0x1f3   : > { %v1292_v50 = vadd.f32 %v1276_v33, %v1162_v48  ;;  %v6695_v20 = vadd.f32 %v1384_v31, %v1286_v46  ;;  %v782_v31 = vrot.slane %v6040_v0, 1 }
 0x1f4   : > { %v6697_v37 = vadd.f32 %v1278_v15, %v1164_v19  ;;  %v10723_v19 = vrot.slane %v6043_v63, 1  ;;  %v784_v15 = vrot.slane %v6075_v55, 1 }
 0x1f6   : > { %1564 = vperm.xlu1 %5390, %v6119_v58   ;;  %1569 = vperm.xlu2 %5391, %v6149_v5  }
 0x1f7   : > { %1574 = vperm.xlu0 %5392, %v6152_v56  }
 0x1f8   : > { %v1253_v4 = vpop.permute.xlu1 %1252  ;;  %v1337_v2 = vpop.permute.xlu2 %1336 }
 0x1f9   : > { %v6704_v35 = vpop.permute.xlu0 %1262  ;;  %v1279_v38 = vmul.f32 %v6580_v42, %v1253_v4  ;;  %v1387_v46 = vmul.f32 %v6687_v6, %v1337_v2 }
 0x1fa   : > { %11173 = vst [vmem:[#allocation7_spill] sm:$0xff] %v6704_v35  ;;  %v785_v35 = vrot.slane %v6078_v53, 1 }
 0x1fb   : > { %v1295_v45 = vadd.f32 %v1279_v38, %v1165_v49  ;;  %v6708_v48 = vadd.f32 %v1387_v46, %v1289_v40  ;;  %v783_v40 = vrot.slane %v6081_v51, 1  ;;  %v812_v51 = vsel %vm797_vm4, %v10723_v19, %v782_v31  ;;  %v11176_v19 = vld [vmem:[#allocation15_spill] sm:$0xff] }
 0x1fd   : > { %v810_v2 = vsel %vm797_vm4, %v783_v40, %v784_v15 }
 0x1fe   : > { %1579 = vperm.xlu1 %5390, %v6155_v47   ;;  %1584 = vperm.xlu2 %5391, %v6185_v9  }
 0x1ff   : > { %1589 = vperm.xlu0 %5392, %v6188_v57  }
 0x200   : > { %v6713_v36 = vpop.permute.xlu1 %1301  ;;  %v1352_v27 = vpop.permute.xlu2 %1351 }
 0x201   : > { %v1312_v30 = vpop.permute.xlu0 %1311  ;;  %v1390_v7 = vmul.f32 %v6687_v6, %v1352_v27  ;;  %v11174_v27 = vld [vmem:[#allocation25_spill] sm:$0xff] }
 0x202   : > { %v1382_v61 = vmul.f32 %v6687_v6, %v1312_v30 }
 0x203   : > { %v6717_v42 = vadd.f32 %v1390_v7, %v1292_v50  ;;  %v11175_v7 = vld [vmem:[#allocation26_spill] sm:$0xff] }
 0x204   : > { %v6720_v33 = vadd.f32 %v1382_v61, %v6593_v39  ;;  %v811_v39 = vsel %vm797_vm4, %v782_v31, %v783_v40  ;;  %v862_v61 = vmul.f32 %v11175_v7, %v812_v51  ;;  %v787_v40 = vrot.slane %v6116_v52, 1 }
 0x205   : > { %v863_v30 = vmul.f32 %v11174_v27, %v811_v39  ;;  %v11179_v27 = vld [vmem:[#allocation18_spill] sm:$0xff]  ;;  %v790_v7 = vrot.slane %v6152_v56, 1 }
 0x206   : > { %1594 = vperm.xlu1 %5390, %v6191_v1   ;;  %1599 = vperm.xlu2 %5391, %v6221_v11  }
 0x207   : > { %1604 = vperm.xlu0 %5392, %v6034_v62  }
 0x208   : > { %v1317_v50 = vpop.permute.xlu1 %1316  ;;  %v1367_v49 = vpop.permute.xlu2 %1366 }
 0x209   : > { %v1327_v0 = vpop.permute.xlu0 %1326  ;;  %v1383_v55 = vmul.f32 %v6687_v6, %v1317_v50  ;;  %v1393_v4 = vmul.f32 %v6687_v6, %v1367_v49  ;;  %v864_v50 = vmul.f32 %v11176_v19, %v810_v2  ;;  %v786_v49 = vrot.slane %v6113_v59, 1 }
 0x20a   : > { %v1385_v62 = vmul.f32 %v6687_v6, %v1327_v0  ;;  %v11177_v0 = vld [vmem:[#allocation28_spill] sm:$0xff] }
 0x20b   : > { %v1399_v38 = vadd.f32 %v1383_v55, %v6652_v54  ;;  %v6742_v46 = vadd.f32 %v1393_v4, %v1295_v45  ;;  %v808_v39 = vsel %vm797_vm4, %v785_v35, %v786_v49  ;;  %v807_v53 = vsel %vm797_vm4, %v786_v49, %v787_v40  ;;  %v11178_v4 = vld [vmem:[#allocation29_spill] sm:$0xff] }
 0x20c   : > { %v6747_v31 = vadd.f32 %v1385_v62, %v6611_v29  ;;  %v809_v29 = vsel %vm797_vm4, %v784_v15, %v785_v35  ;;  %v866_v55 = vmul.f32 %v11177_v0, %v808_v39  ;;  %v789_v35 = vrot.slane %v6149_v5, 1 }
 0x20d   : > { %v865_v2 = vmul.f32 %v11178_v4, %v809_v29  ;;  %v788_v15 = vrot.slane %v6119_v58, 1 }
 0x20e   : > { %1643 = vperm.xlu1 %5390, %v862_v61   ;;  %1648 = vperm.xlu2 %5391, %v863_v30   ;;  %v867_v30 = vmul.f32 %v11179_v27, %v807_v53  ;;  %v791_v27 = vrot.slane %v6155_v47, 1 }
 0x20f   : > { %1653 = vperm.xlu0 %5392, %v864_v50   ;;  %v806_v5 = vsel %vm797_vm4, %v787_v40, %v788_v15 }
 0x210   : > { %v1332_v54 = vpop.permute.xlu1 %1331  ;;  %v6753_v45 = vpop.permute.xlu2 %1415 }
 0x211   : > { %v1342_v51 = vpop.permute.xlu0 %1341  ;;  %v1386_v19 = vmul.f32 %v6687_v6, %v1332_v54  ;;  %v804_v54 = vsel %vm797_vm4, %v789_v35, %v790_v7 }
 0x212   : > { %v1388_v52 = vmul.f32 %v6687_v6, %v1342_v51 }
 0x213   : > { %v1402_v59 = vadd.f32 %v1386_v19, %v6665_v26  ;;  %v6776_v26 = vld [vmem:[%s10673_s2 + $0x3] ss:$0 sm:$0xff] }
 0x214   : > { %v6767_v62 = vadd.f32 %v1388_v52, %v6629_v34  ;;  %v805_v34 = vsel %vm797_vm4, %v788_v15, %v789_v35  ;;  %v11180_v19 = vld [vmem:[#allocation31_spill] sm:$0xff]  ;;  %v11181_v52 = vld [vmem:[#allocation32_spill] sm:$0xff] }
 0x215   : > { %v869_v53 = vmul.f32 %v11180_v19, %v805_v34  ;;  %v868_v0 = vmul.f32 %v11181_v52, %v806_v5  ;;  %v11183_v5 = vld [vmem:[#allocation34_spill] sm:$0xff]  ;;  %v795_v19 = vrot.slane %v6221_v11, 1 }
 0x216   : > { %1658 = vperm.xlu1 %5390, %v865_v2   ;;  %1663 = vperm.xlu2 %5391, %v866_v55   ;;  %v11182_v55 = vld [vmem:[#allocation21_spill] sm:$0xff]  ;;  %v792_v2 = vrot.slane %v6185_v9, 1 }
 0x217   : > { %1668 = vperm.xlu0 %5392, %v867_v30   ;;  %v870_v4 = vmul.f32 %v11182_v55, %v804_v54  ;;  %v793_v30 = vrot.slane %v6188_v57, 1  ;;  %v11185_v54 = vld [vmem:[#allocation24_spill] sm:$0xff]  ;;  %v5484_v52 = vld [vmem:[%s6029_s28 + $0x78] sm:$0xff] }
 0x218   : > { %v1347_v61 = vpop.permute.xlu1 %1346  ;;  %v1431_v50 = vpop.permute.xlu2 %1430  ;;  %v802_v35 = vsel %vm797_vm4, %v791_v27, %v792_v2 }
 0x219   : > { %v1357_v49 = vpop.permute.xlu0 %1356  ;;  %v1389_v58 = vmul.f32 %v6687_v6, %v1347_v61  ;;  %v1497_v56 = vmul.f32 %v6776_v26, %v1431_v50  ;;  %v801_v57 = vsel %vm797_vm4, %v792_v2, %v793_v30 }
 0x21a   : > { %v1391_v39 = vmul.f32 %v6687_v6, %v1357_v49  ;;  %v872_v49 = vmul.f32 %v11183_v5, %v802_v35 }
 0x21b   : > { %v1405_v29 = vadd.f32 %v1389_v58, %v6678_v10  ;;  %v6788_v51 = vadd.f32 %v1497_v56, %v1399_v38  ;;  %v11184_v58 = vld [vmem:[#allocation35_spill] sm:$0xff] }
 0x21c   : > { %v6793_v40 = vadd.f32 %v1391_v39, %v6648_v14  ;;  %v803_v14 = vsel %vm797_vm4, %v790_v7, %v791_v27  ;;  %v873_v39 = vmul.f32 %v11185_v54, %v801_v57  ;;  %v11186_v27 = vld [vmem:[#allocation37_spill] sm:$0xff]  ;;  %v11190_v54 = vld [vmem:[#allocation46_spill] sm:$0xff] }
 0x21d   : > { %v871_v56 = vmul.f32 %v11184_v58, %v803_v14  ;;  %v11188_v14 = vld [vmem:[#allocation27_spill] sm:$0xff] }
 0x21e   : > { %1673 = vperm.xlu1 %5390, %v868_v0   ;;  %1678 = vperm.xlu2 %5391, %v869_v53   ;;  %v794_v53 = vrot.slane %v6191_v1, 1  ;;  %v796_v0 = vrot.slane %v5484_v52, 1 }
 0x21f   : > { %1683 = vperm.xlu0 %5392, %v870_v4  }
 0x220   : > { %v1362_v10 = vpop.permute.xlu1 %1361  ;;  %v1446_v38 = vpop.permute.xlu2 %1445  ;;  %v799_v55 = vsel %vm797_vm4, %v794_v53, %v795_v19  ;;  %v798_v1 = vsel %vm797_vm4, %v795_v19, %v796_v0 }
 0x221   : > { %v1372_v15 = vpop.permute.xlu0 %1371  ;;  %v1392_v61 = vmul.f32 %v6687_v6, %v1362_v10  ;;  %v1500_v9 = vmul.f32 %v6776_v26, %v1446_v38  ;;  %v875_v10 = vmul.f32 %v11186_v27, %v799_v55  ;;  %v11187_v38 = vld [vmem:[#allocation38_spill] sm:$0xff] }
 0x222   : > { %v1394_v47 = vmul.f32 %v6687_v6, %v1372_v15  ;;  %v876_v15 = vmul.f32 %v11188_v14, %v798_v1  ;;  %v11198_v14 = vld [vmem:[#allocation47_spill] sm:$0xff] }
 0x223   : > { %v1408_v50 = vadd.f32 %v1392_v61, %v6697_v37  ;;  %v6809_v34 = vadd.f32 %v1500_v9, %v1402_v59  ;;  %v11189_v9 = vrot.slane %v6043_v63, 1 }
 0x224   : > { %v6814_v7 = vadd.f32 %v1394_v47, %v6663_v43  ;;  %v800_v43 = vsel %vm797_vm4, %v793_v30, %v794_v53  ;;  %v11192_v53 = vld [vmem:[#allocation41_spill] sm:$0xff] }
 0x225   : > { %v874_v35 = vmul.f32 %v11187_v38, %v800_v43  ;;  %v813_v57 = vsel %vm797_vm4, %v796_v0, %v11189_v9  ;;  %v11193_v0 = vld [vmem:[#allocation53_spill] sm:$0xff] }
 0x226   : > { %1688 = vperm.xlu1 %5390, %v871_v56   ;;  %1693 = vperm.xlu2 %5391, %v872_v49   ;;  %v877_v52 = vmul.f32 %v11192_v53, %v813_v57  ;;  %v11196_v38 = vld [vmem:[#allocation45_spill] sm:$0xff]  ;;  %v11201_v53 = vld [vmem:[#allocation59_spill] sm:$0xff] }
 0x227   : > { %1698 = vperm.xlu0 %5392, %v873_v39   ;;  %v11191_v39 = vld [vmem:[#allocation40_spill] sm:$0xff]  ;;  %v11200_v9 = vld [vmem:[#allocation33_spill] sm:$0xff] }
 0x228   : > { %v6820_v37 = vpop.permute.xlu1 %1376  ;;  %v1461_v59 = vpop.permute.xlu2 %1460  ;;  %v926_v19 = vmul.f32 %v11191_v39, %v11190_v54 }
 0x229   : > { %v6826_v4 = vpop.permute.xlu0 %1420  ;;  %v1503_v11 = vmul.f32 %v6776_v26, %v1461_v59  ;;  %v11194_v59 = vld [vmem:[#allocation30_spill] sm:$0xff] }
 0x22a   : > { %v927_v55 = vmul.f32 %v11194_v59, %v11193_v0  ;;  %v11203_v59 = vld [vmem:[#allocation54_spill] sm:$0xff] }
 0x22b   : > { %v6831_v2 = vadd.f32 %v1503_v11, %v1405_v29 }
 0x22e   : > { %1703 = vperm.xlu1 %5390, %v874_v35   ;;  %1708 = vperm.xlu2 %5391, %v875_v10   ;;  %v11195_v10 = vld [vmem:[#allocation51_spill] sm:$0xff]  ;;  %v11197_v35 = vld [vmem:[#allocation48_spill] sm:$0xff] }
 0x22f   : > { %1713 = vperm.xlu0 %5392, %v876_v15   ;;  %v928_v15 = vmul.f32 %v11198_v14, %v11197_v35 }
 0x230   : > { %v1426_v61 = vpop.permute.xlu1 %1425  ;;  %v1476_v30 = vpop.permute.xlu2 %1475 }
 0x231   : > { %v1436_v47 = vpop.permute.xlu0 %1435  ;;  %v1496_v29 = vmul.f32 %v6776_v26, %v1426_v61  ;;  %v1506_v5 = vmul.f32 %v6776_v26, %v1476_v30  ;;  %v11199_v30 = vld [vmem:[#allocation57_spill] sm:$0xff] }
 0x232   : > { %v1498_v49 = vmul.f32 %v6776_v26, %v1436_v47  ;;  %v930_v57 = vmul.f32 %v11200_v9, %v11199_v30  ;;  %v6871_v47 = vld [vmem:[%s10673_s2 + $0x4] ss:$0 sm:$0xff]  ;;  %v11208_v9 = vld [vmem:[#allocation56_spill] sm:$0xff] }
 0x233   : > { %v1512_v58 = vadd.f32 %v1496_v29, %v6720_v33  ;;  %v6844_v56 = vadd.f32 %v1506_v5, %v1408_v50 }
 0x234   : > { %v6850_v63 = vadd.f32 %v1498_v49, %v6695_v20  ;;  %v929_v20 = vmul.f32 %v11196_v38, %v11195_v10 }
 0x236   : > { %1718 = vperm.xlu1 %5390, %v877_v52   ;;  %1757 = vperm.xlu2 %5391, %v926_v19   ;;  %v11202_v52 = vld [vmem:[#allocation50_spill] sm:$0xff] }
 0x237   : > { %1762 = vperm.xlu0 %5392, %v927_v55   ;;  %v932_v0 = vmul.f32 %v11202_v52, %v11201_v53  ;;  %v11204_v55 = vld [vmem:[#allocation52_spill] sm:$0xff] }
 0x238   : > { %v1441_v43 = vpop.permute.xlu1 %1440  ;;  %v6854_v11 = vpop.permute.xlu2 %1490 }
 0x239   : > { %v1451_v33 = vpop.permute.xlu0 %1450  ;;  %v1499_v50 = vmul.f32 %v6776_v26, %v1441_v43  ;;  %v931_v43 = vmul.f32 %v11204_v55, %v11203_v59 }
 0x23a   : > { %v1501_v1 = vmul.f32 %v6776_v26, %v1451_v33 }
 0x23b   : > { %v1515_v27 = vadd.f32 %v1499_v50, %v6747_v31  ;;  %v11205_v50 = vld [vmem:[#allocation63_spill] sm:$0xff] }
 0x23c   : > { %v6864_v61 = vadd.f32 %v1501_v1, %v6708_v48  ;;  %v11206_v1 = vld [vmem:[#allocation36_spill] sm:$0xff] }
 0x23d   : > { %v933_v10 = vmul.f32 %v11206_v1, %v11205_v50  ;;  %v11214_v1 = vld [vmem:[#allocation44_spill] sm:$0xff] }
 0x23e   : > { %1767 = vperm.xlu1 %5390, %v928_v15   ;;  %1772 = vperm.xlu2 %5391, %v929_v20  }
 0x23f   : > { %1777 = vperm.xlu0 %5392, %v930_v57  }
 0x240   : > { %v1456_v31 = vpop.permute.xlu1 %1455  ;;  %v1540_v29 = vpop.permute.xlu2 %1539 }
 0x241   : > { %v1466_v5 = vpop.permute.xlu0 %1465  ;;  %v1502_v49 = vmul.f32 %v6776_v26, %v1456_v31  ;;  %v1610_v54 = vmul.f32 %v6871_v47, %v1540_v29  ;;  %v11209_v31 = vld [vmem:[#allocation60_spill] sm:$0xff]  ;;  %v11210_v29 = vld [vmem:[#allocation58_spill] sm:$0xff] }
 0x242   : > { %v1504_v48 = vmul.f32 %v6776_v26, %v1466_v5  ;;  %v934_v5 = vmul.f32 %v11210_v29, %v11209_v31 }
 0x243   : > { %v1518_v39 = vadd.f32 %v1502_v49, %v6767_v62  ;;  %v6877_v19 = vadd.f32 %v1610_v54, %v1512_v58  ;;  %v11211_v54 = vld [vmem:[#allocation39_spill] sm:$0xff] }
 0x244   : > { %v6884_v33 = vadd.f32 %v1504_v48, %v6717_v42  ;;  %v11207_v42 = vld [vmem:[#allocation65_spill] sm:$0xff]  ;;  %v936_v48 = vmul.f32 %v11211_v54, %v6206_v8  ;;  %v11213_v8 = vld [vmem:[#allocation64_spill] sm:$0xff] }
 0x245   : > { %v935_v57 = vmul.f32 %v11208_v9, %v11207_v42  ;;  %v937_v50 = vmul.f32 %v11213_v8, %v6198_v12  ;;  %v11217_v12 = vld [vmem:[#allocation69_spill] sm:$0xff]  ;;  %v11218_v42 = vld [vmem:[#allocation68_spill] sm:$0xff]  ;;  %v11222_v8 = vld [vmem:[#allocation55_spill] sm:$0xff] }
 0x246   : > { %1782 = vperm.xlu1 %5390, %v931_v43   ;;  %1787 = vperm.xlu2 %5391, %v932_v0   ;;  %v940_v9 = vmul.f32 %v11218_v42, %v11217_v12  ;;  %v11225_v12 = vld [vmem:[#allocation77_spill] sm:$0xff] }
 0x247   : > { %1792 = vperm.xlu0 %5392, %v933_v10   ;;  %v939_v10 = vmul.f32 %v11214_v1, %v6239_v41  ;;  %v998_v42 = vmul.f32 %v11225_v12, %v6328_v28  ;;  %v11240_v12 = vld [vmem:[#allocation73_spill] sm:$0xff] }
 0x248   : > { %v1471_v38 = vpop.permute.xlu1 %1470  ;;  %v1555_v20 = vpop.permute.xlu2 %1554 }
 0x249   : > { %v1481_v62 = vpop.permute.xlu0 %1480  ;;  %v1505_v58 = vmul.f32 %v6776_v26, %v1471_v38  ;;  %v1613_v35 = vmul.f32 %v6871_v47, %v1555_v20 }
 0x24a   : > { %v1507_v14 = vmul.f32 %v6776_v26, %v1481_v62 }
 0x24b   : > { %v1521_v15 = vadd.f32 %v1505_v58, %v6793_v40  ;;  %v6892_v30 = vadd.f32 %v1613_v35, %v1515_v27  ;;  %v11216_v35 = vld [vmem:[#allocation67_spill] sm:$0xff] }
 0x24c   : > { %v6899_v49 = vadd.f32 %v1507_v14, %v6742_v46  ;;  %v11212_v46 = vld [vmem:[#allocation62_spill] sm:$0xff] }
 0x24d   : > { %v938_v43 = vmul.f32 %v11212_v46, %v6214_v3  ;;  %v11215_v3 = vld [vmem:[#allocation43_spill] sm:$0xff] }
 0x24e   : > { %1797 = vperm.xlu1 %5390, %v934_v5   ;;  %1802 = vperm.xlu2 %5391, %v935_v57   ;;  %v941_v14 = vmul.f32 %v11216_v35, %v11215_v3  ;;  %v11219_v57 = vld [vmem:[#allocation49_spill] sm:$0xff]  ;;  %v6963_v3 = vld [vmem:[%s10673_s2 + $0x5] ss:$0 sm:$0xff] }
 0x24f   : > { %1807 = vperm.xlu0 %5392, %v936_v48   ;;  %v990_v31 = vmul.f32 %v11219_v57, %v6268_v16  ;;  %v11221_v16 = vld [vmem:[#allocation72_spill] sm:$0xff]  ;;  %v11227_v57 = vld [vmem:[#allocation78_spill] sm:$0xff] }
 0x250   : > { %v1486_v53 = vpop.permute.xlu1 %1485  ;;  %v1570_v52 = vpop.permute.xlu2 %1569  ;;  %v991_v46 = vmul.f32 %v11221_v16, %v6264_v13  ;;  %v995_v13 = vmul.f32 %v6260_v44, %v6301_v24  ;;  %v11231_v16 = vld [vmem:[#allocation80_spill] sm:$0xff] }
 0x251   : > { %v6903_v40 = vpop.permute.xlu0 %1529  ;;  %v1508_v27 = vmul.f32 %v6776_v26, %v1486_v53  ;;  %v1616_v0 = vmul.f32 %v6871_v47, %v1570_v52 }
 0x253   : > { %v1524_v59 = vadd.f32 %v1508_v27, %v6814_v7  ;;  %v6908_v55 = vadd.f32 %v1616_v0, %v1518_v39 }
 0x256   : > { %1812 = vperm.xlu1 %5390, %v937_v50   ;;  %1817 = vperm.xlu2 %5391, %v938_v43   ;;  %v993_v50 = vmul.f32 %v11222_v8, %v6291_v21  ;;  %v11232_v8 = vld [vmem:[#allocation85_spill] sm:$0xff] }
 0x257   : > { %1822 = vperm.xlu0 %5392, %v939_v10  }
 0x258   : > { %v6916_v38 = vpop.permute.xlu1 %1534  ;;  %v1585_v20 = vpop.permute.xlu2 %1584 }
 0x259   : > { %v1545_v62 = vpop.permute.xlu0 %1544  ;;  %v1619_v7 = vmul.f32 %v6871_v47, %v1585_v20 }
 0x25a   : > { %v1611_v39 = vmul.f32 %v6871_v47, %v1545_v62 }
 0x25b   : > { %v6920_v58 = vadd.f32 %v1619_v7, %v1521_v15  ;;  %v11224_v7 = vld [vmem:[#allocation61_spill] sm:$0xff] }
 0x25c   : > { %v6927_v41 = vadd.f32 %v1611_v39, %v6788_v51  ;;  %v11220_v51 = vld [vmem:[#allocation71_spill] sm:$0xff]  ;;  %v996_v39 = vmul.f32 %v11224_v7, %v6322_v18 }
 0x25d   : > { %v992_v0 = vmul.f32 %v11220_v51, %v6274_v22 }
 0x25e   : > { %1827 = vperm.xlu1 %5390, %v940_v9   ;;  %1832 = vperm.xlu2 %5391, %v941_v14   ;;  %v11226_v9 = vld [vmem:[#allocation81_spill] sm:$0xff] }
 0x25f   : > { %1871 = vperm.xlu0 %5392, %v990_v31   ;;  %v997_v31 = vmul.f32 %v11227_v57, %v11226_v9 }
 0x260   : > { %v1550_v29 = vpop.permute.xlu1 %1549  ;;  %v1600_v5 = vpop.permute.xlu2 %1599 }
 0x261   : > { %v1560_v54 = vpop.permute.xlu0 %1559  ;;  %v1612_v15 = vmul.f32 %v6871_v47, %v1550_v29  ;;  %v1622_v48 = vmul.f32 %v6871_v47, %v1600_v5  ;;  %v11228_v5 = vld [vmem:[#allocation86_spill] sm:$0xff] }
 0x262   : > { %v1614_v53 = vmul.f32 %v6871_v47, %v1560_v54  ;;  %v11229_v54 = vld [vmem:[#allocation66_spill] sm:$0xff] }
 0x263   : > { %v1628_v52 = vadd.f32 %v1612_v15, %v6850_v63  ;;  %v6935_v27 = vadd.f32 %v1622_v48, %v1524_v59  ;;  %v999_v15 = vmul.f32 %v11229_v54, %v11228_v5 }
 0x264   : > { %v6942_v43 = vadd.f32 %v1614_v53, %v6809_v34  ;;  %v11223_v34 = vld [vmem:[#allocation75_spill] sm:$0xff] }
 0x265   : > { %v994_v62 = vmul.f32 %v11223_v34, %v6295_v25 }
 0x266   : > { %1876 = vperm.xlu1 %5390, %v991_v46   ;;  %1881 = vperm.xlu2 %5391, %v992_v0  }
 0x267   : > { %1886 = vperm.xlu0 %5392, %v993_v50   ;;  %v11233_v50 = vld [vmem:[#allocation82_spill] sm:$0xff] }
 0x268   : > { %v1565_v1 = vpop.permute.xlu1 %1564  ;;  %v6946_v10 = vpop.permute.xlu2 %1648 }
 0x269   : > { %v1575_v63 = vpop.permute.xlu0 %1574  ;;  %v1615_v59 = vmul.f32 %v6871_v47, %v1565_v1  ;;  %v1000_v1 = vmul.f32 %v11233_v50, %v11232_v8  ;;  %v11246_v50 = vld [vmem:[#allocation104_spill] sm:$0xff] }
 0x26a   : > { %v1617_v22 = vmul.f32 %v6871_v47, %v1575_v63  ;;  %v11234_v63 = vld [vmem:[#allocation92_spill] sm:$0xff] }
 0x26b   : > { %v1631_v20 = vadd.f32 %v1615_v59, %v6864_v61  ;;  %v11235_v59 = vld [vmem:[#allocation70_spill] sm:$0xff] }
 0x26c   : > { %v6956_v21 = vadd.f32 %v1617_v22, %v6831_v2  ;;  %v1002_v22 = vmul.f32 %v11235_v59, %v11234_v63 }
 0x26e   : > { %1891 = vperm.xlu1 %5390, %v994_v62   ;;  %1896 = vperm.xlu2 %5391, %v995_v13  }
 0x26f   : > { %1901 = vperm.xlu0 %5392, %v996_v39   ;;  %v11236_v39 = vld [vmem:[#allocation94_spill] sm:$0xff] }
 0x270   : > { %v1580_v61 = vpop.permute.xlu1 %1579  ;;  %v1664_v35 = vpop.permute.xlu2 %1663 }
 0x271   : > { %v1590_v44 = vpop.permute.xlu0 %1589  ;;  %v1618_v24 = vmul.f32 %v6871_v47, %v1580_v61  ;;  %v1726_v25 = vmul.f32 %v6963_v3, %v1664_v35  ;;  %v11237_v61 = vld [vmem:[#allocation84_spill] sm:$0xff] }
 0x272   : > { %v1620_v2 = vmul.f32 %v6871_v47, %v1590_v44  ;;  %v1004_v35 = vmul.f32 %v11237_v61, %v11236_v39  ;;  %v11238_v44 = vld [vmem:[#allocation91_spill] sm:$0xff] }
 0x273   : > { %v1634_v14 = vadd.f32 %v1618_v24, %v6884_v33  ;;  %v6969_v18 = vadd.f32 %v1726_v25, %v1628_v52  ;;  %v11239_v24 = vld [vmem:[#allocation87_spill] sm:$0xff] }
 0x274   : > { %v6976_v29 = vadd.f32 %v1620_v2, %v6844_v56  ;;  %v11230_v56 = vld [vmem:[#allocation88_spill] sm:$0xff]  ;;  %v1003_v25 = vmul.f32 %v11239_v24, %v11238_v44  ;;  %v11250_v39 = vld [vmem:[#allocation103_spill] sm:$0xff]  ;;  %v11252_v24 = vld [vmem:[#allocation109_spill] sm:$0xff] }
 0x275   : > { %v1001_v46 = vmul.f32 %v11231_v16, %v11230_v56  ;;  %v11244_v56 = vld [vmem:[#allocation97_spill] sm:$0xff]  ;;  %v11251_v61 = vld [vmem:[#allocation99_spill] sm:$0xff] }
 0x276   : > { %1906 = vperm.xlu1 %5390, %v997_v31   ;;  %1911 = vperm.xlu2 %5391, %v998_v42   ;;  %v11241_v42 = vld [vmem:[#allocation74_spill] sm:$0xff]  ;;  %v11245_v16 = vld [vmem:[#allocation93_spill] sm:$0xff] }
 0x277   : > { %1916 = vperm.xlu0 %5392, %v999_v15   ;;  %v1005_v9 = vmul.f32 %v11241_v42, %v11240_v12  ;;  %v7040_v42 = vld [vmem:[%s10673_s2 + $0x6] ss:$0 sm:$0xff] }
 0x278   : > { %v1595_v48 = vpop.permute.xlu1 %1594  ;;  %v1679_v53 = vpop.permute.xlu2 %1678 }
 0x279   : > { %v6980_v33 = vpop.permute.xlu0 %1604  ;;  %v1621_v52 = vmul.f32 %v6871_v47, %v1595_v48  ;;  %v1729_v28 = vmul.f32 %v6963_v3, %v1679_v53 }
 0x27b   : > { %v1637_v51 = vadd.f32 %v1621_v52, %v6899_v49  ;;  %v6985_v0 = vadd.f32 %v1729_v28, %v1631_v20  ;;  %v11243_v52 = vld [vmem:[#allocation90_spill] sm:$0xff] }
 0x27e   : > { %1921 = vperm.xlu1 %5390, %v1000_v1   ;;  %1926 = vperm.xlu2 %5391, %v1001_v46   ;;  %v1054_v46 = vmul.f32 %v11245_v16, %v11244_v56  ;;  %v11247_v1 = vld [vmem:[#allocation76_spill] sm:$0xff]  ;;  %v11257_v56 = vld [vmem:[#allocation105_spill] sm:$0xff] }
 0x27f   : > { %1931 = vperm.xlu0 %5392, %v1002_v22   ;;  %v1056_v63 = vmul.f32 %v11247_v1, %v11246_v50  ;;  %v11258_v50 = vld [vmem:[#allocation114_spill] sm:$0xff]  ;;  %v11259_v1 = vld [vmem:[#allocation83_spill] sm:$0xff] }
 0x280   : > { %v6993_v13 = vpop.permute.xlu1 %1643  ;;  %v1694_v34 = vpop.permute.xlu2 %1693 }
 0x281   : > { %v1654_v62 = vpop.permute.xlu0 %1653  ;;  %v1732_v49 = vmul.f32 %v6963_v3, %v1694_v34 }
 0x282   : > { %v1724_v20 = vmul.f32 %v6963_v3, %v1654_v62 }
 0x283   : > { %v6997_v7 = vadd.f32 %v1732_v49, %v1634_v14  ;;  %v11248_v49 = vld [vmem:[#allocation106_spill] sm:$0xff] }
 0x284   : > { %v7004_v2 = vadd.f32 %v1724_v20, %v6877_v19  ;;  %v11242_v19 = vld [vmem:[#allocation100_spill] sm:$0xff] }
 0x285   : > { %v1055_v28 = vmul.f32 %v11243_v52, %v11242_v19  ;;  %v11249_v20 = vld [vmem:[#allocation96_spill] sm:$0xff]  ;;  %v11255_v19 = vld [vmem:[#allocation101_spill] sm:$0xff] }
 0x286   : > { %1936 = vperm.xlu1 %5390, %v1003_v25   ;;  %1941 = vperm.xlu2 %5391, %v1004_v35   ;;  %v1057_v35 = vmul.f32 %v11251_v61, %v11250_v39  ;;  %v11253_v25 = vld [vmem:[#allocation79_spill] sm:$0xff]  ;;  %v11262_v61 = vld [vmem:[#allocation113_spill] sm:$0xff] }
 0x287   : > { %1946 = vperm.xlu0 %5392, %v1005_v9   ;;  %v1059_v12 = vmul.f32 %v11253_v25, %v11252_v24 }
 0x288   : > { %v1659_v57 = vpop.permute.xlu1 %1658  ;;  %v1709_v31 = vpop.permute.xlu2 %1708 }
 0x289   : > { %v1669_v5 = vpop.permute.xlu0 %1668  ;;  %v1725_v14 = vmul.f32 %v6963_v3, %v1659_v57  ;;  %v1735_v54 = vmul.f32 %v6963_v3, %v1709_v31 }
 0x28a   : > { %v1727_v15 = vmul.f32 %v6963_v3, %v1669_v5 }
 0x28b   : > { %v1741_v48 = vadd.f32 %v1725_v14, %v6927_v41  ;;  %v7012_v53 = vadd.f32 %v1735_v54, %v1637_v51 }
 0x28c   : > { %v7019_v8 = vadd.f32 %v1727_v15, %v6892_v30  ;;  %v1058_v30 = vmul.f32 %v11249_v20, %v11248_v49  ;;  %v11254_v15 = vld [vmem:[#allocation111_spill] sm:$0xff] }
 0x28d   : > { %v1061_v52 = vmul.f32 %v11255_v19, %v11254_v15  ;;  %v11267_v15 = vld [vmem:[#allocation112_spill] sm:$0xff] }
 0x28e   : > { %1985 = vperm.xlu1 %5390, %v1054_v46   ;;  %1990 = vperm.xlu2 %5391, %v1055_v28   ;;  %v11256_v28 = vld [vmem:[#allocation108_spill] sm:$0xff] }
 0x28f   : > { %1995 = vperm.xlu0 %5392, %v1056_v63   ;;  %v1060_v16 = vmul.f32 %v11257_v56, %v11256_v28  ;;  %v1062_v63 = vmul.f32 %v11259_v1, %v11258_v50  ;;  %v11270_v56 = vld [vmem:[#allocation8_spill] sm:$0xff] }
 0x290   : > { %v1674_v59 = vpop.permute.xlu1 %1673  ;;  %v7023_v22 = vpop.permute.xlu2 %1757 }
 0x291   : > { %v1684_v41 = vpop.permute.xlu0 %1683  ;;  %v1728_v51 = vmul.f32 %v6963_v3, %v1674_v59 }
 0x292   : > { %v1730_v34 = vmul.f32 %v6963_v3, %v1684_v41 }
 0x293   : > { %v1744_v62 = vadd.f32 %v1728_v51, %v6942_v43 }
 0x294   : > { %v7033_v44 = vadd.f32 %v1730_v34, %v6908_v55 }
 0x296   : > { %2000 = vperm.xlu1 %5390, %v1057_v35   ;;  %2005 = vperm.xlu2 %5391, %v1058_v30   ;;  %v11261_v30 = vld [vmem:[#allocation107_spill] sm:$0xff]  ;;  %v11263_v35 = vld [vmem:[#allocation110_spill] sm:$0xff] }
 0x297   : > { %2010 = vperm.xlu0 %5392, %v1059_v12   ;;  %v1063_v24 = vmul.f32 %v11263_v35, %v11262_v61  ;;  %v11264_v12 = vld [vmem:[#allocation119_spill] sm:$0xff] }
 0x298   : > { %v1689_v43 = vpop.permute.xlu1 %1688  ;;  %v1773_v9 = vpop.permute.xlu2 %1772  ;;  %v7099_v61 = vld [vmem:[%s10672_s1] sm:$0xff] }
 0x299   : > { %v1699_v57 = vpop.permute.xlu0 %1698  ;;  %v1731_v31 = vmul.f32 %v6963_v3, %v1689_v43  ;;  %v1839_v5 = vmul.f32 %v7040_v42, %v1773_v9  ;;  %v11265_v43 = vld [vmem:[#allocation89_spill] sm:$0xff] }
 0x29a   : > { %v1733_v55 = vmul.f32 %v6963_v3, %v1699_v57  ;;  %v1065_v9 = vmul.f32 %v11265_v43, %v11264_v12 }
 0x29b   : > { %v1747_v14 = vadd.f32 %v1731_v31, %v6956_v21  ;;  %v7046_v54 = vadd.f32 %v1839_v5, %v1741_v48 }
 0x29c   : > { %v7053_v46 = vadd.f32 %v1733_v55, %v6920_v58  ;;  %v11260_v58 = vld [vmem:[#allocation116_spill] sm:$0xff]  ;;  %v11266_v55 = vld [vmem:[#allocation121_spill] sm:$0xff] }
 0x29d   : > { %v1064_v39 = vmul.f32 %v11261_v30, %v11260_v58  ;;  %v1067_v19 = vmul.f32 %v11267_v15, %v11266_v55  ;;  %v11273_v58 = vld [vmem:[#allocation120_spill] sm:$0xff]  ;;  %v7130_v55 = vld [vmem:[%s10672_s1 + $0x18] sm:$0xff] }
 0x29e   : > { %2015 = vperm.xlu1 %5390, %v1060_v16   ;;  %2020 = vperm.xlu2 %5391, %v1061_v52   ;;  %v11269_v52 = vld [vmem:[#allocation115_spill] sm:$0xff] }
 0x29f   : > { %2025 = vperm.xlu0 %5392, %v1062_v63   ;;  %v11271_v16 = vld [vmem:[#allocation95_spill] sm:$0xff] }
 0x2a0   : > { %v1704_v59 = vpop.permute.xlu1 %1703  ;;  %v1788_v41 = vpop.permute.xlu2 %1787  ;;  %v1068_v50 = vmul.f32 %v11271_v16, %v11270_v56 }
 0x2a1   : > { %v1714_v21 = vpop.permute.xlu0 %1713  ;;  %v1734_v48 = vmul.f32 %v6963_v3, %v1704_v59  ;;  %v1842_v51 = vmul.f32 %v7040_v42, %v1788_v41 }
 0x2a2   : > { %v1736_v34 = vmul.f32 %v6963_v3, %v1714_v21 }
 0x2a3   : > { %v1750_v49 = vadd.f32 %v1734_v48, %v6976_v29  ;;  %v7061_v20 = vadd.f32 %v1842_v51, %v1744_v62 }
 0x2a4   : > { %v7068_v25 = vadd.f32 %v1736_v34, %v6935_v27  ;;  %v11268_v27 = vld [vmem:[#allocation118_spill] sm:$0xff] }
 0x2a5   : > { %v1066_v28 = vmul.f32 %v11269_v52, %v11268_v27  ;;  %v11272_v34 = vld [vmem:[#allocation98_spill] sm:$0xff] }
 0x2a6   : > { %2030 = vperm.xlu1 %5390, %v1063_v24   ;;  %2035 = vperm.xlu2 %5391, %v1064_v39   ;;  %v1069_v30 = vmul.f32 %v11273_v58, %v11272_v34 }
 0x2a7   : > { %2040 = vperm.xlu0 %5392, %v1065_v9  }
 0x2a8   : > { %v7072_v57 = vpop.permute.xlu1 %1718  ;;  %v1803_v29 = vpop.permute.xlu2 %1802 }
 0x2a9   : > { %v7074_v62 = vpop.permute.xlu0 %1762  ;;  %v1845_v31 = vmul.f32 %v7040_v42, %v1803_v29  ;;  %v7119_v29 = vld [vmem:[%s10673_s2 + $0x7] ss:$0 sm:$0xff] }
 0x2ab   : > { %v7077_v5 = vadd.f32 %v1845_v31, %v1747_v14  ;;  %v7124_v31 = vld [vmem:[%s10672_s1 + $0x10] sm:$0xff] }
 0x2ac   : > { %11274 = vst [vmem:[#allocation11_spill] sm:$0xff] %v7124_v31 }
 0x2ae   : > { %2045 = vperm.xlu1 %5390, %v1066_v28   ;;  %2050 = vperm.xlu2 %5391, %v1067_v19  }
 0x2af   : > { %2055 = vperm.xlu0 %5392, %v1068_v50  }
 0x2b0   : > { %v1768_v1 = vpop.permute.xlu1 %1767  ;;  %v1818_v63 = vpop.permute.xlu2 %1817 }
 0x2b1   : > { %v1778_v59 = vpop.permute.xlu0 %1777  ;;  %v1838_v41 = vmul.f32 %v7040_v42, %v1768_v1  ;;  %v1848_v14 = vmul.f32 %v7040_v42, %v1818_v63  ;;  %v7151_v1 = vld [vmem:[%s10672_s1 + $0x28] sm:$0xff]  ;;  %v7157_v63 = vld [vmem:[%s10672_s1 + $0x30] sm:$0xff] }
 0x2b2   : > { %v1840_v21 = vmul.f32 %v7040_v42, %v1778_v59  ;;  %11275 = vst [vmem:[#allocation4_spill] sm:$0xff] %v7151_v1 }
 0x2b3   : > { %v1854_v48 = vadd.f32 %v1838_v41, %v7004_v2  ;;  %v7089_v51 = vadd.f32 %v1848_v14, %v1750_v49  ;;  %v7105_v2 = vld [vmem:[%s10672_s1 + $0x8] sm:$0xff] }
 0x2b4   : > { %v7094_v39 = vadd.f32 %v1840_v21, %v6969_v18 }
 0x2b6   : > { %2060 = vperm.xlu1 %5390, %v1069_v30   ;;  %2181 = vperm.xlu2 %5391, %v7099_v61  }
 0x2b7   : > { %2185 = vperm.xlu0 %5392, %v7105_v2  }
 0x2b8   : > { %v1783_v49 = vpop.permute.xlu1 %1782  ;;  %v7108_v35 = vpop.permute.xlu2 %1832 }
 0x2b9   : > { %v1793_v18 = vpop.permute.xlu0 %1792  ;;  %v1841_v24 = vmul.f32 %v7040_v42, %v1783_v49  ;;  %v7178_v49 = vld [vmem:[%s10672_s1 + $0x40] sm:$0xff] }
 0x2ba   : > { %v1843_v12 = vmul.f32 %v7040_v42, %v1793_v18  ;;  %11276 = vst [vmem:[#allocation10_spill] sm:$0xff] %v7178_v49  ;;  %v7184_v18 = vld [vmem:[%s10672_s1 + $0x48] sm:$0xff] }
 0x2bb   : > { %v1857_v43 = vadd.f32 %v1841_v24, %v7019_v8 }
 0x2bc   : > { %v7114_v9 = vadd.f32 %v1843_v12, %v6985_v0  ;;  %v7136_v0 = vld [vmem:[%s10672_s1 + $0x20] sm:$0xff] }
 0x2be   : > { %2189 = vperm.xlu1 %5390, %v7124_v31   ;;  %2193 = vperm.xlu2 %5391, %v7130_v55  }
 0x2bf   : > { %2197 = vperm.xlu0 %5392, %v7136_v0  }
 0x2c0   : > { %v1798_v8 = vpop.permute.xlu1 %1797  ;;  %v1882_v15 = vpop.permute.xlu2 %1881 }
 0x2c1   : > { %v1808_v19 = vpop.permute.xlu0 %1807  ;;  %v1844_v27 = vmul.f32 %v7040_v42, %v1798_v8  ;;  %v1952_v52 = vmul.f32 %v7119_v29, %v1882_v15 }
 0x2c2   : > { %v1846_v28 = vmul.f32 %v7040_v42, %v1808_v19 }
 0x2c3   : > { %v1860_v56 = vadd.f32 %v1844_v27, %v7033_v44  ;;  %v7143_v16 = vadd.f32 %v1952_v52, %v1854_v48  ;;  %v7163_v44 = vld [vmem:[%s10672_s1 + $0x38] sm:$0xff]  ;;  %v7209_v52 = vld [vmem:[%s10672_s1 + $0x60] sm:$0xff] }
 0x2c4   : > { %v7146_v50 = vadd.f32 %v1846_v28, %v6997_v7  ;;  %v7203_v27 = vld [vmem:[%s10672_s1 + $0x58] sm:$0xff] }
 0x2c6   : > { %2201 = vperm.xlu1 %5390, %v7151_v1   ;;  %2205 = vperm.xlu2 %5391, %v7157_v63  }
 0x2c7   : > { %2209 = vperm.xlu0 %5392, %v7163_v44  }
 0x2c8   : > { %v1813_v7 = vpop.permute.xlu1 %1812  ;;  %v1897_v59 = vpop.permute.xlu2 %1896 }
 0x2c9   : > { %v1823_v41 = vpop.permute.xlu0 %1822  ;;  %v1847_v14 = vmul.f32 %v7040_v42, %v1813_v7  ;;  %v1955_v21 = vmul.f32 %v7119_v29, %v1897_v59 }
 0x2ca   : > { %v1849_v48 = vmul.f32 %v7040_v42, %v1823_v41 }
 0x2cb   : > { %v1863_v34 = vadd.f32 %v1847_v14, %v7053_v46  ;;  %v7170_v58 = vadd.f32 %v1955_v21, %v1857_v43  ;;  %v7190_v46 = vld [vmem:[%s10672_s1 + $0x50] sm:$0xff] }
 0x2cc   : > { %v7173_v30 = vadd.f32 %v1849_v48, %v7012_v53  ;;  %v7230_v48 = vld [vmem:[%s10672_s1 + $0x70] sm:$0xff] }
 0x2ce   : > { %2213 = vperm.xlu1 %5390, %v7178_v49   ;;  %2217 = vperm.xlu2 %5391, %v7184_v18  }
 0x2cf   : > { %2221 = vperm.xlu0 %5392, %v7190_v46  }
 0x2d0   : > { %v1828_v53 = vpop.permute.xlu1 %1827  ;;  %v1912_v24 = vpop.permute.xlu2 %1911 }
 0x2d1   : > { %v7193_v12 = vpop.permute.xlu0 %1871  ;;  %v1850_v43 = vmul.f32 %v7040_v42, %v1828_v53  ;;  %v1958_v8 = vmul.f32 %v7119_v29, %v1912_v24  ;;  %v7236_v53 = vld [vmem:[%s10672_s1 + $0x78] sm:$0xff]  ;;  %v5534_v24 = vmov 1  }
 0x2d3   : > { %v1866_v15 = vadd.f32 %v1850_v43, %v7068_v25  ;;  %v7198_v19 = vadd.f32 %v1958_v8, %v1860_v56  ;;  %v7215_v25 = vld [vmem:[%s10672_s1 + $0x68] sm:$0xff] }
 0x2d5   : > { %11277 = vst [vmem:[#allocation14_spill] sm:$0xff] %v7198_v19 }
 0x2d6   : > { %2225 = vperm.xlu1 %5390, %v7203_v27   ;;  %2229 = vperm.xlu2 %5391, %v7209_v52  }
 0x2d7   : > { %2233 = vperm.xlu0 %5392, %v7215_v25  }
 0x2d8   : > { %v7218_v28 = vpop.permute.xlu1 %1876  ;;  %v1927_v56 = vpop.permute.xlu2 %1926 }
 0x2d9   : > { %v1887_v7 = vpop.permute.xlu0 %1886  ;;  %v1961_v59 = vmul.f32 %v7119_v29, %v1927_v56 }
 0x2da   : > { %v1953_v41 = vmul.f32 %v7119_v29, %v1887_v7 }
 0x2db   : > { %v7222_v14 = vadd.f32 %v1961_v59, %v1863_v34 }
 0x2dc   : > { %v7225_v21 = vadd.f32 %v1953_v41, %v7046_v54 }
 0x2dd   : > { %11278 = vst [vmem:[#allocation5_spill] sm:$0xff] %v7222_v14 }
 0x2de   : > { %2237 = vperm.xlu1 %5390, %v7230_v48   ;;  %2241 = vperm.xlu2 %5391, %v7236_v53  }
 0x2df   : > { %5393 = vset.pattern.permute.xlu0 %v5534_v24 }
 0x2e0   : > { %2293 = vperm.xlu0 %5393, %v7099_v61   ;;  %v1892_v54 = vpop.permute.xlu1 %1891  ;;  %v1942_v34 = vpop.permute.xlu2 %1941 }
 0x2e1   : > { %v1902_v43 = vpop.permute.xlu0 %1901  ;;  %v1954_v8 = vmul.f32 %v7119_v29, %v1892_v54  ;;  %v1964_v56 = vmul.f32 %v7119_v29, %v1942_v34  ;;  %v7254_v54 = vld [vmem:[%s10673_s2 + $0x1] ss:$0 sm:$0xff] }
 0x2e2   : > { %v1956_v7 = vmul.f32 %v7119_v29, %v1902_v43  ;;  %v1267_v34 = vmul.f32 %v7254_v54, %v6635_v23 }
 0x2e3   : > { %v1970_v59 = vadd.f32 %v1954_v8, %v7094_v39  ;;  %v7244_v41 = vadd.f32 %v1964_v56, %v1866_v15  ;;  %v11281_v8 = vld [vmem:[#allocation102_spill] sm:$0xff] }
 0x2e4   : > { %v7247_v14 = vadd.f32 %v1956_v7, %v7061_v20  ;;  %v1381_v7 = vmul.f32 %v6687_v6, %v6672_v17 }
 0x2e5   : > { %11279 = vst [vmem:[#allocation13_spill] sm:$0xff] %v7244_v41 }
 0x2e6   : > { %11280 = vst [vmem:[#allocation17_spill] sm:$0xff] %v7247_v14  ;;  %5394 = vset.pattern.permute.xlu1 %v5534_v24  ;;  %5395 = vset.pattern.permute.xlu2 %v5534_v24  ;;  %v7263_v24 = vld [vmem:[%s10673_s2] ss:$0 sm:$0xff]  ;;  %v1609_v14 = vmul.f32 %v6871_v47, %v6916_v38  ;;  %v1266_v38 = vmul.f32 %v7254_v54, %v6624_v32 }
 0x2e7   : > { %2297 = vperm.xlu1 %5394, %v7105_v2   ;;  %2301 = vperm.xlu2 %5395, %v7124_v31   ;;  %v1153_v56 = vmul.f32 %v7263_v24, %v11281_v8  ;;  %v1495_v31 = vmul.f32 %v6776_v26, %v6826_v4  ;;  %v7281_v8 = vld [vmem:[%s10673_s2 + $0x8] ss:$0 sm:$0xff]  ;;  %v1723_v4 = vmul.f32 %v6963_v3, %v6946_v10  ;;  %v7302_v32 = vld [vmem:[%s10674_s3] ss:$0 sm:$0xff] }
 0x2e8   : > { %2313 = vperm.xlu0 %5393, %v7151_v1   ;;  %v1907_v39 = vpop.permute.xlu1 %1906  ;;  %v1991_v15 = vpop.permute.xlu2 %1990 }
 0x2e9   : > { %v1917_v20 = vpop.permute.xlu0 %1916  ;;  %v1957_v43 = vmul.f32 %v7119_v29, %v1907_v39  ;;  %v1283_v1 = vadd.f32 %v1267_v34, %v1153_v56  ;;  %v1837_v56 = vmul.f32 %v7040_v42, %v7074_v62  ;;  %v1951_v62 = vmul.f32 %v7119_v29, %v7218_v28 }
 0x2ea   : > { %v1959_v23 = vmul.f32 %v7119_v29, %v1917_v20 }
 0x2eb   : > { %v1973_v41 = vadd.f32 %v1957_v43, %v7114_v9  ;;  %v1397_v19 = vadd.f32 %v1381_v7, %v1283_v1  ;;  %v1380_v7 = vmul.f32 %v6687_v6, %v6713_v36 }
 0x2ec   : > { %v7274_v39 = vadd.f32 %v1959_v23, %v7077_v5 }
 0x2ed   : > { %v1511_v17 = vadd.f32 %v1495_v31, %v1397_v19  ;;  %v11282_v19 = vld [vmem:[#allocation117_spill] sm:$0xff] }
 0x2ee   : > { %v1152_v10 = vmul.f32 %v7263_v24, %v11282_v19  ;;  %v2065_v19 = vmul.f32 %v7281_v8, %v1991_v15 }
 0x2ef   : > { %2305 = vperm.xlu1 %5394, %v7130_v55   ;;  %2309 = vperm.xlu2 %5395, %v7136_v0   ;;  %v1625_v43 = vadd.f32 %v1609_v14, %v1511_v17 }
 0x2f0   : > { %2325 = vperm.xlu0 %5393, %v7178_v49   ;;  %v1922_v5 = vpop.permute.xlu1 %1921  ;;  %v2006_v9 = vpop.permute.xlu2 %2005 }
 0x2f1   : > { %v1932_v1 = vpop.permute.xlu0 %1931  ;;  %v1960_v34 = vmul.f32 %v7119_v29, %v1922_v5  ;;  %v2068_v20 = vmul.f32 %v7281_v8, %v2006_v9  ;;  %v1739_v14 = vadd.f32 %v1723_v4, %v1625_v43  ;;  %v1282_v9 = vadd.f32 %v1266_v38, %v1152_v10 }
 0x2f2   : > { %v1962_v31 = vmul.f32 %v7119_v29, %v1932_v1  ;;  %v1494_v1 = vmul.f32 %v6776_v26, %v6753_v45  ;;  %v1722_v4 = vmul.f32 %v6963_v3, %v6993_v13  ;;  %v1836_v43 = vmul.f32 %v7040_v42, %v7023_v22 }
 0x2f3   : > { %v1976_v23 = vadd.f32 %v1960_v34, %v7146_v50  ;;  %v2084_v5 = vadd.f32 %v2068_v20, %v1970_v59  ;;  %v1853_v36 = vadd.f32 %v1837_v56, %v1739_v14  ;;  %v1396_v49 = vadd.f32 %v1380_v7, %v1282_v9  ;;  %v11283_v9 = vld [vmem:[#allocation7_spill] sm:$0xff] }
 0x2f4   : > { %v7308_v17 = vadd.f32 %v1962_v31, %v7089_v51  ;;  %v1608_v50 = vmul.f32 %v6871_v47, %v6903_v40 }
 0x2f5   : > { %v7313_v6 = vadd.f32 %v7302_v32, %v2084_v5  ;;  %v1967_v51 = vadd.f32 %v1951_v62, %v1853_v36  ;;  %v1510_v45 = vadd.f32 %v1494_v1, %v1396_v49  ;;  %v1950_v49 = vmul.f32 %v7119_v29, %v7193_v12 }
 0x2f6   : > { %v1281_v1 = vmul.f32 %v7254_v54, %v11283_v9 }
 0x2f7   : > { %2317 = vperm.xlu1 %5394, %v7157_v63   ;;  %2321 = vperm.xlu2 %5395, %v7163_v44   ;;  %v2081_v40 = vadd.f32 %v2065_v19, %v1967_v51  ;;  %v1624_v20 = vadd.f32 %v1608_v50, %v1510_v45  ;;  %v5503_v45 = vld [vmem:[%s10673_s2 + $0x2] ss:$0 sm:$0xff] }
 0x2f8   : > { %2337 = vperm.xlu0 %5393, %v7203_v27   ;;  %v1937_v28 = vpop.permute.xlu1 %1936  ;;  %v2021_v59 = vpop.permute.xlu2 %2020 }
 0x2f9   : > { %v7323_v38 = vpop.permute.xlu0 %1946  ;;  %v1963_v15 = vmul.f32 %v7119_v29, %v1937_v28  ;;  %v2071_v34 = vmul.f32 %v7281_v8, %v2021_v59  ;;  %v1738_v10 = vadd.f32 %v1722_v4, %v1624_v20  ;;  %v2101_v7 = vadd.f32 %v7302_v32, %v2081_v40  ;;  %v11284_v28 = vld [vmem:[#allocation3_spill] sm:$0xff] }
 0x2fa   : > { %v1167_v59 = vmul.f32 %v7263_v24, %v11284_v28  ;;  %v1395_v4 = vmul.f32 %v5503_v45, %v6820_v37  ;;  %v5535_v37 = vmov 2  }
 0x2fb   : > { %v1979_v56 = vadd.f32 %v1963_v15, %v7173_v30  ;;  %v2087_v31 = vadd.f32 %v2071_v34, %v1973_v41  ;;  %v1852_v5 = vadd.f32 %v1836_v43, %v1738_v10  ;;  %v2117_v36 = vmul.f32 0.2, %v2101_v7 }
 0x2fc   : > { %v1297_v40 = vadd.f32 %v1281_v1, %v1167_v59 }
 0x2fd   : > { %v7333_v13 = vadd.f32 %v7302_v32, %v2087_v31  ;;  %v1966_v30 = vadd.f32 %v1950_v49, %v1852_v5  ;;  %v7355_v20 = vmax.f32 %v2101_v7, %v2117_v36  ;;  %v1509_v49 = vmul.f32 %v6776_v26, %v6854_v11 }
 0x2fe   : > { %v1411_v24 = vadd.f32 %v1395_v4, %v1297_v40  ;;  %v2120_v26 = vmul.f32 0.2, %v7313_v6 }
 0x2ff   : > { %2329 = vperm.xlu1 %5394, %v7184_v18   ;;  %2333 = vperm.xlu2 %5395, %v7190_v46  }
 0x300   : > { %2349 = vperm.xlu0 %5393, %v7230_v48   ;;  %v1986_v22 = vpop.permute.xlu1 %1985  ;;  %v2036_v14 = vpop.permute.xlu2 %2035  ;;  %v7403_v4 = vmax.f32 %v7313_v6, %v2120_v26  ;;  %v2485_v6 = vrot.slane %v7355_v20, 7  ;;  %v11290_v26 = vld [vmem:[#allocation14_spill] sm:$0xff] }
 0x301   : > { %v1996_v41 = vpop.permute.xlu0 %1995  ;;  %v2064_v62 = vmul.f32 %v7281_v8, %v1986_v22  ;;  %v2074_v12 = vmul.f32 %v7281_v8, %v2036_v14 }
 0x302   : > { %v2066_v19 = vmul.f32 %v7281_v8, %v1996_v41 }
 0x303   : > { %v2080_v50 = vadd.f32 %v2064_v62, %v1966_v30  ;;  %v2090_v51 = vadd.f32 %v2074_v12, %v1976_v23  ;;  %v1623_v30 = vmul.f32 %v6871_v47, %v6980_v33  ;;  %v2149_v12 = vrot.slane %v7355_v20, 3 }
 0x304   : > { %v2082_v15 = vadd.f32 %v2066_v19, %v7143_v16  ;;  %v1525_v33 = vadd.f32 %v1509_v49, %v1411_v24  ;;  %v10733_v24 = vrot.slane %v7355_v20, 5 }
 0x305   : > { %v2100_v34 = vadd.f32 %v7302_v32, %v2080_v50  ;;  %v7353_v54 = vadd.f32 %v7302_v32, %v2090_v51  ;;  %v10735_v50 = vrot.slane %v7355_v20, 4 }
 0x306   : > { %v2102_v23 = vadd.f32 %v7302_v32, %v2082_v15  ;;  %v1639_v45 = vadd.f32 %v1623_v30, %v1525_v33 }
 0x307   : > { %v2116_v43 = vmul.f32 0.2, %v2100_v34  ;;  %2341 = vperm.xlu1 %5394, %v7209_v52   ;;  %2345 = vperm.xlu2 %5395, %v7215_v25  }
 0x308   : > { %v2118_v31 = vmul.f32 0.2, %v2102_v23  ;;  %5397 = vset.pattern.permute.xlu0 %v5535_v37  ;;  %v2001_v16 = vpop.permute.xlu1 %2000  ;;  %v2051_v10 = vpop.permute.xlu2 %2050 }
 0x309   : > { %v7363_v5 = vmax.f32 %v2100_v34, %v2116_v43  ;;  %2409 = vperm.xlu0 %5397, %v7105_v2   ;;  %v2011_v7 = vpop.permute.xlu0 %2010  ;;  %v2067_v22 = vmul.f32 %v7281_v8, %v2001_v16  ;;  %v2077_v14 = vmul.f32 %v7281_v8, %v2051_v10  ;;  %v1737_v16 = vmul.f32 %v6963_v3, %v7072_v57 }
 0x30a   : > { %v7370_v41 = vmax.f32 %v2102_v23, %v2118_v31  ;;  %v2069_v62 = vmul.f32 %v7281_v8, %v2011_v7  ;;  %v1851_v10 = vmul.f32 %v7040_v42, %v7108_v35  ;;  %v11289_v42 = vld [vmem:[#allocation17_spill] sm:$0xff] }
 0x30b   : > { %v2083_v11 = vadd.f32 %v2067_v22, %v7225_v21  ;;  %v2093_v9 = vadd.f32 %v2077_v14, %v1979_v56  ;;  %v10736_v1 = vrot.slane %v7363_v5, 3  ;;  %v10743_v31 = vrot.slane %v7363_v5, 7 }
 0x30c   : > { %v2085_v36 = vadd.f32 %v2069_v62, %v7170_v58  ;;  %v2150_v19 = vrot.slane %v7370_v41, 3  ;;  %v2262_v47 = vrot.slane %v7370_v41, 4  ;;  %v2374_v34 = vrot.slane %v7370_v41, 5 }
 0x30d   : > { %v2103_v51 = vadd.f32 %v7302_v32, %v2083_v11  ;;  %v7383_v28 = vadd.f32 %v7302_v32, %v2093_v9  ;;  %v7389_v21 = vsel %vm425_vm0, %v10736_v1, %v2149_v12  ;;  %v7437_v3 = vsel %vm700_vm3, %v10743_v31, %v2485_v6 }
 0x30e   : > { %11285 = vst [vmem:[#allocation6_spill] sm:$0xff] %v7389_v21  ;;  %v2105_v58 = vadd.f32 %v7302_v32, %v2085_v36  ;;  %v7394_v56 = vsel %vm425_vm0, %v2149_v12, %v2150_v19  ;;  %v7400_v59 = vsel %vm490_vm1, %v10735_v50, %v2262_v47  ;;  %v7429_v62 = vsel %vm603_vm2, %v10733_v24, %v2374_v34 }
 0x30f   : > { %11286 = vst [vmem:[#allocation16_spill] sm:$0xff] %v7394_v56  ;;  %v2119_v15 = vmul.f32 0.2, %v2103_v51  ;;  %2353 = vperm.xlu1 %5394, %v7236_v53   ;;  %5396 = vset.pattern.permute.xlu2 %v5535_v37  ;;  %v10732_v36 = vrot.slane %v7403_v4, 4 }
 0x310   : > { %11287 = vst [vmem:[#allocation20_spill] sm:$0xff] %v7400_v59  ;;  %v2121_v40 = vmul.f32 0.2, %v2105_v58  ;;  %v2016_v23 = vpop.permute.xlu1 %2015  ;;  %2405 = vperm.xlu2 %5396, %v7099_v61   ;;  %v7409_v43 = vpop.permute.xlu2 %2181  ;;  %v11332_v59 = vrot.slane %v7363_v5, 3 }
 0x311   : > { %11288 = vst [vmem:[#allocation9_spill] sm:$0xff] %v7409_v43  ;;  %v7418_v49 = vmax.f32 %v2103_v51, %v2119_v15  ;;  %2429 = vperm.xlu0 %5397, %v7157_v63   ;;  %v2026_v7 = vpop.permute.xlu0 %2025  ;;  %v2070_v22 = vmul.f32 %v7281_v8, %v2016_v23  ;;  %v10730_v63 = vrot.slane %v7403_v4, 3  ;;  %v1753_v51 = vadd.f32 %v1737_v16, %v1639_v45 }
 0x312   : > { %v7422_v14 = vmax.f32 %v2105_v58, %v2121_v40  ;;  %v2072_v30 = vmul.f32 %v7281_v8, %v2026_v7  ;;  %v2126_v58 = vmul.f32 0.2, %v7353_v54 }
 0x313   : > { %v2086_v57 = vadd.f32 %v2070_v22, %v11289_v42  ;;  %v10729_v35 = vrot.slane %v7418_v49, 3  ;;  %v10731_v12 = vrot.slane %v7418_v49, 4  ;;  %v10734_v22 = vrot.slane %v7418_v49, 5 }
 0x314   : > { %v2088_v11 = vadd.f32 %v2072_v30, %v11290_v26  ;;  %v2153_v9 = vrot.slane %v7422_v14, 3  ;;  %v2265_v33 = vrot.slane %v7422_v14, 4  ;;  %v1867_v30 = vadd.f32 %v1851_v10, %v1753_v51  ;;  %v11295_v26 = vld [vmem:[#allocation11_spill] sm:$0xff] }
 0x315   : > { %v2106_v15 = vadd.f32 %v7302_v32, %v2086_v57  ;;  %v7453_v40 = vsel %vm425_vm0, %v2150_v19, %v10729_v35  ;;  %v7472_v19 = vsel %vm490_vm1, %v2262_v47, %v10731_v12  ;;  %v1965_v42 = vmul.f32 %v7119_v29, %v7323_v38 }
 0x316   : > { %11291 = vst [vmem:[#allocation19_spill] sm:$0xff] %v7453_v40  ;;  %v2108_v23 = vadd.f32 %v7302_v32, %v2088_v11  ;;  %v7460_v7 = vsel %vm425_vm0, %v10730_v63, %v2153_v9  ;;  %v7466_v45 = vsel %vm490_vm1, %v10732_v36, %v2265_v33  ;;  %v2129_v57 = vmul.f32 0.2, %v7383_v28  ;;  %v11312_v40 = vld [vmem:[#allocation10_spill] sm:$0xff] }
 0x317   : > { %11292 = vst [vmem:[#allocation23_spill] sm:$0xff] %v7460_v7  ;;  %v2122_v16 = vmul.f32 0.2, %v2106_v15  ;;  %5398 = vset.pattern.permute.xlu1 %v5535_v37  ;;  %v2597_v47 = vrot.slane %v7355_v20, 1  ;;  %v7492_v29 = vsel %vm603_vm2, %v2374_v34, %v10734_v22  ;;  %v7495_v38 = vmax.f32 %v7353_v54, %v2126_v58  ;;  %v11297_v22 = vld [vmem:[#allocation5_spill] sm:$0xff] }
 0x318   : > { %11293 = vst [vmem:[#allocation12_spill] sm:$0xff] %v7466_v45  ;;  %2413 = vperm.xlu1 %5398, %v11295_v26   ;;  %v2031_v11 = vpop.permute.xlu1 %2030  ;;  %2417 = vperm.xlu2 %5396, %v7130_v55   ;;  %v7481_v35 = vpop.permute.xlu2 %2193  ;;  %v2124_v63 = vmul.f32 0.2, %v2108_v23  ;;  %v10742_v36 = vrot.slane %v7363_v5, 1  ;;  %v10739_v24 = vrot.slane %v7418_v49, 7  ;;  %v7505_v34 = vmax.f32 %v7383_v28, %v2129_v57 }
 0x319   : > { %11294 = vst [vmem:[#allocation22_spill] sm:$0xff] %v7472_v19  ;;  %v7484_v12 = vmax.f32 %v2106_v15, %v2122_v16  ;;  %2441 = vperm.xlu0 %5397, %v7184_v18   ;;  %v2041_v37 = vpop.permute.xlu0 %2040  ;;  %v2073_v10 = vmul.f32 %v7281_v8, %v2031_v11  ;;  %v2486_v15 = vrot.slane %v7370_v41, 7  ;;  %v10737_v58 = vrot.slane %v7422_v14, 5 }
 0x31a   : > { %11296 = vst [vmem:[#allocation25_spill] sm:$0xff] %v7481_v35  ;;  %v2075_v51 = vmul.f32 %v7281_v8, %v2041_v37  ;;  %v7510_v50 = vmax.f32 %v2108_v23, %v2124_v63  ;;  %v1981_v23 = vadd.f32 %v1965_v42, %v1867_v30  ;;  %v10747_v30 = vrot.slane %v7370_v41, 1 }
 0x31b   : > { %v2089_v18 = vadd.f32 %v2073_v10, %v7274_v39  ;;  %v10741_v16 = vrot.slane %v7484_v12, 3  ;;  %v10740_v11 = vrot.slane %v7484_v12, 4  ;;  %v10738_v37 = vrot.slane %v7484_v12, 5 }
 0x31c   : > { %v2091_v54 = vadd.f32 %v2075_v51, %v11297_v22  ;;  %v7550_v10 = vsel %vm700_vm3, %v2486_v15, %v10739_v24 }
 0x31d   : > { %v2109_v1 = vadd.f32 %v7302_v32, %v2089_v18  ;;  %v7517_v39 = vsel %vm425_vm0, %v2153_v9, %v10741_v16  ;;  %v7523_v28 = vsel %vm490_vm1, %v2265_v33, %v10740_v11  ;;  %v7532_v63 = vsel %vm603_vm2, %v10737_v58, %v10738_v37 }
 0x31e   : > { %11298 = vst [vmem:[#allocation26_spill] sm:$0xff] %v7517_v39  ;;  %v2111_v22 = vadd.f32 %v7302_v32, %v2091_v54  ;;  %v7538_v9 = vsel %vm797_vm4, %v10742_v36, %v2597_v47  ;;  %v7544_v33 = vsel %vm700_vm3, %v2485_v6, %v2486_v15  ;;  %v11300_v54 = vld [vmem:[#allocation4_spill] sm:$0xff]  ;;  %v2158_v37 = vrot.slane %v7495_v38, 3 }
 0x31f   : > { %11299 = vst [vmem:[#allocation15_spill] sm:$0xff] %v7532_v63  ;;  %v2125_v57 = vmul.f32 0.2, %v2109_v1  ;;  %v2270_v6 = vrot.slane %v7495_v38, 4  ;;  %v2382_v11 = vrot.slane %v7495_v38, 5  ;;  %v11309_v39 = vrot.slane %v7510_v50, 5 }
 0x320   : > { %v2127_v51 = vmul.f32 0.2, %v2111_v22  ;;  %2421 = vperm.xlu1 %5398, %v7136_v0   ;;  %v2046_v18 = vpop.permute.xlu1 %2045  ;;  %2425 = vperm.xlu2 %5396, %v11300_v54   ;;  %v7554_v58 = vpop.permute.xlu2 %2205  ;;  %v2161_v0 = vrot.slane %v7505_v34, 3  ;;  %v2385_v63 = vrot.slane %v7505_v34, 5 }
 0x321   : > { %11301 = vst [vmem:[#allocation28_spill] sm:$0xff] %v7554_v58  ;;  %v7559_v42 = vmax.f32 %v2109_v1, %v2125_v57  ;;  %2453 = vperm.xlu0 %5397, %v7209_v52   ;;  %v2056_v15 = vpop.permute.xlu0 %2055  ;;  %v2076_v24 = vmul.f32 %v7281_v8, %v2046_v18  ;;  %v7573_v1 = vsel %vm797_vm4, %v2597_v47, %v10747_v30  ;;  %v11307_v30 = vrot.slane %v7510_v50, 4 }
 0x322   : > { %v7565_v16 = vmax.f32 %v2111_v22, %v2127_v51  ;;  %v2078_v36 = vmul.f32 %v7281_v8, %v2056_v15  ;;  %v11302_v22 = vld [vmem:[#allocation13_spill] sm:$0xff] }
 0x323   : > { %v2092_v52 = vadd.f32 %v2076_v24, %v7308_v17  ;;  %v10748_v57 = vrot.slane %v7559_v42, 3  ;;  %v2269_v18 = vrot.slane %v7559_v42, 4  ;;  %v2381_v35 = vrot.slane %v7559_v42, 5 }
 0x324   : > { %v2094_v51 = vadd.f32 %v2078_v36, %v11302_v22  ;;  %v2159_v15 = vrot.slane %v7565_v16, 3  ;;  %v2271_v31 = vrot.slane %v7565_v16, 4  ;;  %v2494_v36 = vrot.slane %v7495_v38, 7 }
 0x325   : > { %v2112_v7 = vadd.f32 %v7302_v32, %v2092_v52  ;;  %v7588_v17 = vsel %vm425_vm0, %v10748_v57, %v2158_v37  ;;  %v7592_v24 = vsel %vm490_vm1, %v2269_v18, %v2270_v6  ;;  %v7608_v57 = vsel %vm490_vm1, %v11307_v30, %v2269_v18 }
 0x326   : > { %11303 = vst [vmem:[#allocation29_spill] sm:$0xff] %v7588_v17  ;;  %v2114_v47 = vadd.f32 %v7302_v32, %v2094_v51  ;;  %v7598_v22 = vsel %vm425_vm0, %v2158_v37, %v2159_v15  ;;  %v7602_v52 = vsel %vm490_vm1, %v2270_v6, %v2271_v31  ;;  %v7614_v51 = vsel %vm603_vm2, %v11309_v39, %v2381_v35 }
 0x327   : > { %11304 = vst [vmem:[#allocation18_spill] sm:$0xff] %v7592_v24  ;;  %v2128_v58 = vmul.f32 0.2, %v2112_v7  ;;  %v2383_v37 = vrot.slane %v7565_v16, 5  ;;  %v7619_v17 = vsel %vm603_vm2, %v2381_v35, %v2382_v11  ;;  %v10758_v18 = vrot.slane %v7559_v42, 7 }
 0x328   : > { %11305 = vst [vmem:[#allocation31_spill] sm:$0xff] %v7598_v22  ;;  %v2130_v6 = vmul.f32 0.2, %v2114_v47  ;;  %2433 = vperm.xlu1 %5398, %v7163_v44   ;;  %v2061_v43 = vpop.permute.xlu1 %2060  ;;  %2437 = vperm.xlu2 %5396, %v11312_v40   ;;  %v7623_v30 = vpop.permute.xlu2 %2217  ;;  %v2607_v39 = vrot.slane %v7565_v16, 1  ;;  %v2273_v44 = vrot.slane %v7505_v34, 4  ;;  %v2495_v45 = vrot.slane %v7565_v16, 7 }
 0x329   : > { %11306 = vst [vmem:[#allocation32_spill] sm:$0xff] %v7602_v52  ;;  %2465 = vperm.xlu0 %5397, %v7236_v53   ;;  %v7631_v35 = vpop.permute.xlu0 %2185  ;;  %v2079_v22 = vmul.f32 %v7281_v8, %v2061_v43  ;;  %v7637_v40 = vsel %vm603_vm2, %v2382_v11, %v2383_v37  ;;  %v11316_v53 = vrot.slane %v7495_v38, 1 }
 0x32a   : > { %11308 = vst [vmem:[#allocation21_spill] sm:$0xff] %v7608_v57 }
 0x32b   : > { %11310 = vst [vmem:[#allocation34_spill] sm:$0xff] %v7614_v51  ;;  %v7628_v51 = vmax.f32 %v2112_v7, %v2128_v58  ;;  %v7646_v7 = vsel %vm700_vm3, %v10758_v18, %v2494_v36  ;;  %v7652_v8 = vsel %vm797_vm4, %v11316_v53, %v2607_v39  ;;  %v2095_v43 = vadd.f32 %v2079_v22, %v1981_v23 }
 0x32c   : > { %11311 = vst [vmem:[#allocation35_spill] sm:$0xff] %v7619_v17 }
 0x32d   : > { %11313 = vst [vmem:[#allocation24_spill] sm:$0xff] %v7623_v30  ;;  %v7639_v30 = vmax.f32 %v2114_v47, %v2130_v6  ;;  %v2160_v11 = vrot.slane %v7628_v51, 3  ;;  %v2272_v58 = vrot.slane %v7628_v51, 4  ;;  %v2384_v47 = vrot.slane %v7628_v51, 5 }
 0x32e   : > { %11314 = vst [vmem:[#allocation37_spill] sm:$0xff] %v7631_v35  ;;  %v2115_v17 = vadd.f32 %v7302_v32, %v2095_v43 }
 0x32f   : > { %11315 = vst [vmem:[#allocation38_spill] sm:$0xff] %v7637_v40  ;;  %v2162_v6 = vrot.slane %v7639_v30, 3  ;;  %v2274_v35 = vrot.slane %v7639_v30, 4  ;;  %v2386_v18 = vrot.slane %v7639_v30, 5  ;;  %v7664_v53 = vsel %vm425_vm0, %v2159_v15, %v2160_v11 }
 0x330   : > { %11317 = vst [vmem:[#allocation27_spill] sm:$0xff] %v7664_v53  ;;  %v7668_v23 = vsel %vm425_vm0, %v2160_v11, %v2161_v0  ;;  %v7672_v22 = vsel %vm490_vm1, %v2272_v58, %v2273_v44  ;;  %v7684_v32 = vsel %vm490_vm1, %v2271_v31, %v2272_v58  ;;  %v2131_v15 = vmul.f32 0.2, %v2115_v17  ;;  %2445 = vperm.xlu1 %5398, %v7190_v46   ;;  %v7702_v31 = vpop.permute.xlu2 %2229 }
 0x331   : > { %11318 = vst [vmem:[#allocation46_spill] sm:$0xff] %v7668_v23  ;;  %v7676_v19 = vsel %vm425_vm0, %v2161_v0, %v2162_v6  ;;  %v7680_v40 = vsel %vm490_vm1, %v2273_v44, %v2274_v35  ;;  %v7688_v43 = vsel %vm603_vm2, %v2383_v37, %v2384_v47  ;;  %v7692_v11 = vsel %vm603_vm2, %v2385_v63, %v2386_v18  ;;  %v7699_v44 = vpop.permute.xlu1 %2189 }
 0x332   : > { %11319 = vst [vmem:[#allocation40_spill] sm:$0xff] %v7672_v22  ;;  %v7696_v0 = vsel %vm603_vm2, %v2384_v47, %v2385_v63  ;;  %2449 = vperm.xlu2 %5396, %v7203_v27   ;;  %v7706_v37 = vsel %vm700_vm3, %v2494_v36, %v2495_v45  ;;  %v2608_v58 = vrot.slane %v7628_v51, 1  ;;  %v2496_v23 = vrot.slane %v7628_v51, 7  ;;  %v7713_v47 = vpop.permute.xlu0 %2197 }
 0x333   : > { %11320 = vst [vmem:[#allocation41_spill] sm:$0xff] %v7676_v19  ;;  %v7710_v19 = vmax.f32 %v2115_v17, %v2131_v15  ;;  %v10768_v63 = vmov 6   ;;  %v2497_v36 = vrot.slane %v7505_v34, 7  ;;  %v3022_v17 = vpack.c.bf16 %v7495_v38, %v7495_v38 }
 0x334   : > { %11321 = vst [vmem:[#allocation53_spill] sm:$0xff] %v7680_v40  ;;  %5404 = vset.pattern.permute.xlu0 %v10768_v63  ;;  %v3023_v15 = vpack.c.bf16 %v7565_v16, %v7565_v16  ;;  %v2123_v40 = vmul.f32 0.2, %v7333_v13 }
 0x335   : > { %11322 = vst [vmem:[#allocation30_spill] sm:$0xff] %v7699_v44  ;;  %2713 = vperm.xlu0 %5404, %v7105_v2   ;;  %v2163_v44 = vrot.slane %v7710_v19, 3  ;;  %v10777_v63 = vrot.slane %v7710_v19, 5  ;;  %v11328_v24 = vrot.slane %v7710_v19, 4 }
 0x336   : > { %11323 = vst [vmem:[#allocation51_spill] sm:$0xff] %v7702_v31  ;;  %v7718_v31 = vsel %vm797_vm4, %v2607_v39, %v2608_v58  ;;  %v7731_v39 = vsel %vm700_vm3, %v2496_v23, %v2497_v36 }
 0x337   : > { %11324 = vst [vmem:[#allocation45_spill] sm:$0xff] %v7713_v47  ;;  %v2499_v47 = vrot.slane %v7710_v19, 7  ;;  %v7735_v53 = vsel %vm425_vm0, %v2162_v6, %v2163_v44  ;;  %v7742_v52 = vsel %vm490_vm1, %v2274_v35, %v11328_v24  ;;  %v7748_v16 = vsel %vm603_vm2, %v2386_v18, %v10777_v63 }
 0x338   : > { %11325 = vst [vmem:[#allocation48_spill] sm:$0xff] %v7718_v31  ;;  %v11331_v6 = vrot.slane %v7363_v5, 7  ;;  %v7762_v24 = vsel %vm425_vm0, %v2163_v44, %v11332_v59  ;;  %v7764_v35 = vunpack.c.l.b16 %v3022_v17  ;;  %2457 = vperm.xlu1 %5398, %v7215_v25   ;;  %v7772_v63 = vpop.permute.xlu2 %2241  ;;  %v3014_v17 = vpack.c.bf16 %v7370_v41, %v7370_v41 }
 0x339   : > { %11326 = vst [vmem:[#allocation47_spill] sm:$0xff] %v7731_v39  ;;  %v3013_v39 = vpack.c.bf16 %v7355_v20, %v7355_v20  ;;  %v7769_v18 = vpop.permute.xlu1 %2201  ;;  %v7795_v59 = vmax.f32 %v7333_v13, %v2123_v40  ;;  %v2609_v44 = vrot.slane %v7505_v34, 1 }
 0x33a   : > { %11327 = vst [vmem:[#allocation57_spill] sm:$0xff] %v7735_v53  ;;  %v7756_v53 = vsel %vm700_vm3, %v2499_v47, %v11331_v6  ;;  %2461 = vperm.xlu2 %5396, %v7230_v48   ;;  %v3012_v6 = vpack.c.bf16 %v7363_v5, %v7363_v5  ;;  %v7776_v31 = vpop.permute.xlu0 %2209 }
 0x33b   : > { %11329 = vst [vmem:[#allocation33_spill] sm:$0xff] %v7742_v52  ;;  %v7766_v52 = vunpack.c.l.b16 %v3023_v15  ;;  %v7786_v48 = vunpack.c.l.b16 %v3013_v39  ;;  %v7790_v15 = vsel %vm700_vm3, %v2495_v45, %v2496_v23  ;;  %v10782_v39 = vrot.slane %v7639_v30, 1 }
 0x33c   : > { %11330 = vst [vmem:[#allocation59_spill] sm:$0xff] %v7748_v16  ;;  %v7784_v25 = vunpack.c.l.b16 %v3012_v6  ;;  %v11338_v45 = vrot.slane %v7418_v49, 1  ;;  %v11339_v23 = vrot.slane %v7370_v41, 1  ;;  %v3024_v41 = vpack.c.bf16 %v7628_v51, %v7628_v51 }
 0x33d   : > { %11333 = vst [vmem:[#allocation50_spill] sm:$0xff] %v7762_v24  ;;  %2753 = vperm.xlu0 %5404, %v7203_v27   ;;  %v7819_v40 = vsel %vm797_vm4, %v2609_v44, %v10782_v39  ;;  %v7830_v13 = vsel %vm797_vm4, %v2608_v58, %v2609_v44  ;;  %v11344_v51 = vrot.slane %v7422_v14, 1  ;;  %v2491_v58 = vrot.slane %v7795_v59, 7 }
 0x33e   : > { %11334 = vst [vmem:[#allocation54_spill] sm:$0xff] %v7769_v18  ;;  %v7800_v18 = vunpack.c.l.b16 %v3014_v17  ;;  %v7811_v24 = vsel %vm797_vm4, %v11339_v23, %v11338_v45  ;;  %v2602_v17 = vrot.slane %v7484_v12, 1  ;;  %v3025_v45 = vpack.c.bf16 %v7505_v34, %v7505_v34 }
 0x33f   : > { %11335 = vst [vmem:[#allocation52_spill] sm:$0xff] %v7772_v63  ;;  %v2498_v23 = vrot.slane %v7639_v30, 7  ;;  %v10784_v63 = vmov 3  }
 0x340   : > { %11336 = vst [vmem:[#allocation63_spill] sm:$0xff] %v7776_v31  ;;  %v3015_v31 = vpack.c.bf16 %v7418_v49, %v7418_v49  ;;  %5399 = vset.pattern.permute.xlu1 %v10784_v63  ;;  %v7841_v34 = vsel %vm797_vm4, %v11344_v51, %v2602_v17 }
 0x341   : > { %11337 = vst [vmem:[#allocation36_spill] sm:$0xff] %v7800_v18  ;;  %v7833_v39 = vpop.permute.xlu1 %2213  ;;  %2517 = vperm.xlu1 %5399, %v7099_v61   ;;  %v7858_v51 = vsel %vm700_vm3, %v2497_v36, %v2498_v23  ;;  %v7876_v36 = vsel %vm700_vm3, %v2498_v23, %v2499_v47 }
 0x342   : > { %v7802_v6 = vunpack.c.l.b16 %v3015_v31  ;;  %11340 = vst [vmem:[#allocation65_spill] sm:$0xff] %v7811_v24  ;;  %5400 = vset.pattern.permute.xlu2 %v10784_v63  ;;  %v7845_v44 = vpop.permute.xlu0 %2221  ;;  %v7851_v63 = vunpack.c.l.b16 %v3024_v41  ;;  %v7853_v31 = vunpack.c.l.b16 %v3025_v45  ;;  %v11353_v24 = vrot.slane %v7422_v14, 7 }
 0x343   : > { %11341 = vst [vmem:[#allocation56_spill] sm:$0xff] %v7819_v40  ;;  %v2490_v40 = vrot.slane %v7484_v12, 7  ;;  %2521 = vperm.xlu2 %5400, %v7105_v2   ;;  %v2267_v45 = vrot.slane %v7795_v59, 4 }
 0x344   : > { %11342 = vst [vmem:[#allocation60_spill] sm:$0xff] %v7830_v13  ;;  %v2611_v13 = vrot.slane %v7710_v19, 1 }
 0x345   : > { %11343 = vst [vmem:[#allocation58_spill] sm:$0xff] %v7833_v39  ;;  %v7849_v39 = vpop.permute.xlu2 %2301  ;;  %v7869_v41 = vsel %vm700_vm3, %v11353_v24, %v2490_v40  ;;  %v2604_v24 = vrot.slane %v7510_v50, 1 }
 0x346   : > { %11345 = vst [vmem:[#allocation39_spill] sm:$0xff] %v7841_v34  ;;  %v11351_v34 = vmov 3  }
 0x347   : > { %11346 = vst [vmem:[#allocation62_spill] sm:$0xff] %v7845_v44  ;;  %5413 = vset.pattern.permute.xlu0 %v11351_v34  ;;  %v7863_v44 = vsel %vm700_vm3, %v2490_v40, %v2491_v58  ;;  %v2155_v40 = vrot.slane %v7795_v59, 3 }
 0x348   : > { %11347 = vst [vmem:[#allocation64_spill] sm:$0xff] %v7849_v39  ;;  %2525 = vperm.xlu0 %5413, %v11295_v26   ;;  %v2603_v39 = vrot.slane %v7795_v59, 1  ;;  %v2156_v26 = vrot.slane %v7510_v50, 3 }
 0x349   : > { %11348 = vst [vmem:[#allocation44_spill] sm:$0xff] %v7851_v63  ;;  %v2605_v63 = vrot.slane %v7559_v42, 1  ;;  %2529 = vperm.xlu1 %5399, %v7130_v55  }
 0x34a   : > { %11349 = vst [vmem:[#allocation43_spill] sm:$0xff] %v7853_v31  ;;  %v7891_v47 = vsel %vm797_vm4, %v2602_v17, %v2603_v39  ;;  %v7895_v23 = vsel %vm797_vm4, %v2603_v39, %v2604_v24  ;;  %v11363_v17 = vrot.slane %v7484_v12, 3  ;;  %v11368_v31 = vrot.slane %v7484_v12, 4  ;;  %v7929_v18 = vpop.permute.xlu0 %2233 }
 0x34b   : > { %11350 = vst [vmem:[#allocation67_spill] sm:$0xff] %v7858_v51  ;;  %v11356_v51 = vrot.slane %v7363_v5, 1 }
 0x34c   : > { %11352 = vst [vmem:[#allocation69_spill] sm:$0xff] %v7863_v44  ;;  %v7913_v39 = vsel %vm425_vm0, %v11363_v17, %v2155_v40 }
 0x34d   : > { %11354 = vst [vmem:[#allocation68_spill] sm:$0xff] %v7869_v41  ;;  %v7882_v44 = vsel %vm797_vm4, %v2611_v13, %v11356_v51  ;;  %v2379_v51 = vrot.slane %v7795_v59, 5  ;;  %v7900_v41 = vsel %vm425_vm0, %v2155_v40, %v2156_v26  ;;  %v10794_v40 = vmov 5   ;;  %v7933_v17 = vpop.permute.xlu2 %2309 }
 0x34e   : > { %11355 = vst [vmem:[#allocation49_spill] sm:$0xff] %v7876_v36  ;;  %5401 = vset.pattern.permute.xlu2 %v10794_v40  ;;  %v3019_v40 = vpack.c.bf16 %v7795_v59, %v7795_v59  ;;  %v11379_v59 = vmov 5  }
 0x34f   : > { %11357 = vst [vmem:[#allocation71_spill] sm:$0xff] %v7882_v44  ;;  %v11361_v44 = vrot.slane %v7510_v50, 4  ;;  %2629 = vperm.xlu2 %5401, %v7099_v61  }
 0x350   : > { %11358 = vst [vmem:[#allocation72_spill] sm:$0xff] %v7891_v47  ;;  %v7915_v47 = vpop.permute.xlu1 %2225  ;;  %2557 = vperm.xlu0 %5413, %v7190_v46  }
 0x351   : > { %11359 = vst [vmem:[#allocation55_spill] sm:$0xff] %v7895_v23  ;;  %v7906_v36 = vsel %vm490_vm1, %v2267_v45, %v11361_v44  ;;  %v11366_v23 = vrot.slane %v7510_v50, 5  ;;  %v7927_v44 = vsel %vm490_vm1, %v11368_v31, %v2267_v45  ;;  %v11373_v31 = vrot.slane %v7484_v12, 5  ;;  %5402 = vset.pattern.permute.xlu1 %v11379_v59 }
 0x352   : > { %11360 = vst [vmem:[#allocation75_spill] sm:$0xff] %v7900_v41  ;;  %2633 = vperm.xlu1 %5402, %v7105_v2  }
 0x353   : > { %11362 = vst [vmem:[#allocation61_spill] sm:$0xff] %v7906_v36  ;;  %v7921_v41 = vsel %vm603_vm2, %v2379_v51, %v11366_v23  ;;  %v2492_v23 = vrot.slane %v7510_v50, 7  ;;  %v7948_v45 = vsel %vm603_vm2, %v11373_v31, %v2379_v51  ;;  %v3021_v51 = vpack.c.bf16 %v7559_v42, %v7559_v42 }
 0x354   : > { %11364 = vst [vmem:[#allocation77_spill] sm:$0xff] %v7913_v39  ;;  %v7937_v39 = vsel %vm797_vm4, %v2604_v24, %v2605_v63 }
 0x355   : > { %11365 = vst [vmem:[#allocation81_spill] sm:$0xff] %v7915_v47 }
 0x356   : > { %11367 = vst [vmem:[#allocation78_spill] sm:$0xff] %v7921_v41  ;;  %v3018_v41 = vpack.c.bf16 %v7484_v12, %v7484_v12 }
 0x357   : > { %11369 = vst [vmem:[#allocation86_spill] sm:$0xff] %v7927_v44 }
 0x358   : > { %11370 = vst [vmem:[#allocation66_spill] sm:$0xff] %v7929_v18  ;;  %v7952_v24 = vunpack.c.l.b16 %v3018_v41  ;;  %v7956_v18 = vsel %vm700_vm3, %v2491_v58, %v2492_v23  ;;  %v7964_v47 = vpop.permute.xlu1 %2237  ;;  %v7969_v41 = vpop.permute.xlu2 %2321  ;;  %2537 = vperm.xlu0 %5413, %v11300_v54  }
 0x359   : > { %11371 = vst [vmem:[#allocation88_spill] sm:$0xff] %v7933_v17  ;;  %v3020_v17 = vpack.c.bf16 %v7510_v50, %v7510_v50  ;;  %v7973_v58 = vpop.permute.xlu0 %2293  ;;  %v11384_v50 = vrot.slane %v7639_v30, 1 }
 0x35a   : > { %11372 = vst [vmem:[#allocation80_spill] sm:$0xff] %v7937_v39  ;;  %v7958_v39 = vunpack.c.l.b16 %v3019_v40  ;;  %v11383_v40 = vmov 6  }
 0x35b   : > { %11374 = vst [vmem:[#allocation85_spill] sm:$0xff] %v7948_v45  ;;  %v7971_v31 = vunpack.c.l.b16 %v3020_v17  ;;  %5403 = vset.pattern.permute.xlu2 %v11383_v40  ;;  %v7981_v12 = vsel %vm797_vm4, %v11384_v50, %v2611_v13  ;;  %v11388_v17 = vrot.slane %v7495_v38, 1  ;;  %v11391_v13 = vrot.slane %v7559_v42, 3 }
 0x35c   : > { %11375 = vst [vmem:[#allocation82_spill] sm:$0xff] %v7952_v24  ;;  %2709 = vperm.xlu2 %5403, %v7099_v61   ;;  %v2260_v38 = vrot.slane %v7363_v5, 4 }
 0x35d   : > { %11376 = vst [vmem:[#allocation92_spill] sm:$0xff] %v7956_v18  ;;  %v7993_v24 = vsel %vm797_vm4, %v2605_v63, %v11388_v17  ;;  %v8003_v50 = vsel %vm425_vm0, %v2156_v26, %v11391_v13  ;;  %v10803_v17 = vmov 7  }
 0x35e   : > { %11377 = vst [vmem:[#allocation70_spill] sm:$0xff] %v7958_v39  ;;  %v7995_v39 = vunpack.c.l.b16 %v3021_v51  ;;  %5405 = vset.pattern.permute.xlu1 %v10803_v17 }
 0x35f   : > { %11378 = vst [vmem:[#allocation94_spill] sm:$0xff] %v7964_v47  ;;  %v11386_v47 = vrot.slane %v7559_v42, 7  ;;  %2789 = vperm.xlu1 %5405, %v7099_v61   ;;  %v11396_v42 = vrot.slane %v7355_v20, 4 }
 0x360   : > { %11380 = vst [vmem:[#allocation84_spill] sm:$0xff] %v7969_v41  ;;  %v8010_v63 = vpop.permute.xlu2 %2333  ;;  %5430 = vset.pattern.permute.xlu0 %v10803_v17 }
 0x361   : > { %11381 = vst [vmem:[#allocation91_spill] sm:$0xff] %v7971_v31  ;;  %v7987_v18 = vsel %vm700_vm3, %v2492_v23, %v11386_v47  ;;  %v8008_v23 = vpop.permute.xlu1 %2297  ;;  %v8012_v51 = vpop.permute.xlu0 %2313  ;;  %2801 = vperm.xlu0 %5430, %v7130_v55   ;;  %v8023_v26 = vsel %vm490_vm1, %v2260_v38, %v11396_v42  ;;  %v11397_v47 = vrot.slane %v7710_v19, 4  ;;  %v3026_v55 = vpack.c.bf16 %v7639_v30, %v7639_v30 }
 0x362   : > { %11382 = vst [vmem:[#allocation87_spill] sm:$0xff] %v7973_v58  ;;  %v2357_v13 = vmul.f32 %v8008_v23, %v8023_v26  ;;  %v3027_v42 = vpack.c.bf16 %v7710_v19, %v7710_v19 }
 0x363   : > { %11385 = vst [vmem:[#allocation73_spill] sm:$0xff] %v7981_v12 }
 0x364   : > { %11387 = vst [vmem:[#allocation74_spill] sm:$0xff] %v7987_v18  ;;  %5406 = vset.pattern.permute.xlu2 %v10803_v17  ;;  %v8046_v18 = vunpack.c.l.b16 %v3027_v42 }
 0x365   : > { %11389 = vst [vmem:[#allocation100_spill] sm:$0xff] %v7993_v24  ;;  %2793 = vperm.xlu2 %5406, %v7105_v2  }
 0x366   : > { %11390 = vst [vmem:[#allocation90_spill] sm:$0xff] %v7995_v39 }
 0x367   : > { %11392 = vst [vmem:[#allocation97_spill] sm:$0xff] %v8003_v50  ;;  %v8032_v50 = vsel %vm490_vm1, %v11397_v47, %v2260_v38  ;;  %v10812_v47 = vmov 8   ;;  %v8049_v38 = vunpack.c.l.b16 %v3026_v55 }
 0x368   : > { %11393 = vst [vmem:[#allocation93_spill] sm:$0xff] %v8008_v23  ;;  %v2356_v17 = vmul.f32 %v7973_v58, %v8032_v50  ;;  %v8042_v39 = vpop.permute.xlu2 %2345  ;;  %v2965_v23 = vpack.c.bf16 %v2357_v13, %v2357_v13  ;;  %5407 = vset.pattern.permute.xlu1 %v10812_v47 }
 0x369   : > { %11394 = vst [vmem:[#allocation104_spill] sm:$0xff] %v8010_v63  ;;  %v8040_v31 = vpop.permute.xlu1 %2305  ;;  %v8044_v24 = vpop.permute.xlu0 %2325  ;;  %2809 = vperm.xlu0 %5430, %v11300_v54   ;;  %2869 = vperm.xlu1 %5407, %v7099_v61  }
 0x36a   : > { %11395 = vst [vmem:[#allocation76_spill] sm:$0xff] %v8012_v51  ;;  %v2964_v30 = vpack.c.bf16 %v2356_v17, %v2356_v17  ;;  %v3149_v13 = vunpack.c.l.b16 %v2965_v23  ;;  %v2372_v23 = vrot.slane %v7363_v5, 5  ;;  %v11410_v17 = vrot.slane %v7710_v19, 5 }
 0x36b   : > { %11398 = vst [vmem:[#allocation106_spill] sm:$0xff] %v8032_v50 }
 0x36c   : > { %11399 = vst [vmem:[#allocation96_spill] sm:$0xff] %v8040_v31  ;;  %v3148_v42 = vunpack.c.l.b16 %v2964_v30  ;;  %v8083_v30 = vsel %vm603_vm2, %v11410_v17, %v2372_v23  ;;  %v11415_v17 = vrot.slane %v7355_v20, 5 }
 0x36d   : > { %11400 = vst [vmem:[#allocation103_spill] sm:$0xff] %v8042_v39  ;;  %5408 = vset.pattern.permute.xlu2 %v10812_v47 }
 0x36e   : > { %11401 = vst [vmem:[#allocation99_spill] sm:$0xff] %v8044_v24  ;;  %2873 = vperm.xlu2 %5408, %v7105_v2   ;;  %v3164_v45 = vpack.c.b16 %v3149_v13, %v3148_v42 }
 0x36f   : > { %11402 = vst [vmem:[#allocation109_spill] sm:$0xff] %v8046_v18 }
 0x370   : > { %11403 = vst [vmem:[#allocation79_spill] sm:$0xff] %v8049_v38  ;;  %v8061_v55 = vpop.permute.xlu2 %2405 }
 0x371   : > { %v8057_v50 = vpop.permute.xlu1 %2317  ;;  %v8059_v51 = vpop.permute.xlu0 %2337  ;;  %11406 = vst [vmem:[#allocation108_spill] sm:$0xff] %v8061_v55  ;;  %3172 = vrot.lane.b32.xlu0 %v3164_v45, %s5541_s14  ;;  %5409 = vset.pattern.permute.xlu1 %v11351_v34  ;;  %v2369_v45 = vmul.f32 %v8042_v39, %v7672_v22  ;;  %v2468_v13 = vmul.f32 %v8061_v55, %v8083_v30 }
 0x372   : > { %11404 = vst [vmem:[#allocation111_spill] sm:$0xff] %v8057_v50  ;;  %2561 = vperm.xlu1 %5409, %v7203_v27   ;;  %v8101_v39 = vsel %vm603_vm2, %v2372_v23, %v11415_v17 }
 0x373   : > { %11405 = vst [vmem:[#allocation101_spill] sm:$0xff] %v8059_v51  ;;  %v2977_v42 = vpack.c.bf16 %v2369_v45, %v2369_v45  ;;  %v2980_v38 = vpack.c.bf16 %v2468_v13, %v2468_v13 }
 0x374   : > { %11411 = vst [vmem:[#allocation116_spill] sm:$0xff] %v8083_v30  ;;  %v11416_v30 = vmov 7  }
 0x375   : > { %v3204_v12 = vunpack.c.l.b16 %v2980_v38  ;;  %v11420_v38 = vmov 8  }
 0x376   : > { %5410 = vset.pattern.permute.xlu2 %v11379_v59 }
 0x377   : > { %2669 = vperm.xlu2 %5410, %v7190_v46  }
 0x378   : > { %v8072_v54 = vpop.permute.xlu2 %2417 }
 0x379   : > { %v8068_v61 = vpop.permute.xlu1 %2329  ;;  %v8070_v2 = vpop.permute.xlu0 %2349  ;;  %11409 = vst [vmem:[#allocation83_spill] sm:$0xff] %v8072_v54 }
 0x37a   : > { %11407 = vst [vmem:[#allocation105_spill] sm:$0xff] %v8068_v61  ;;  %5411 = vset.pattern.permute.xlu1 %v11379_v59 }
 0x37b   : > { %11408 = vst [vmem:[#allocation114_spill] sm:$0xff] %v8070_v2  ;;  %2673 = vperm.xlu1 %5411, %v7203_v27   ;;  %v8105_v2 = vunpack.c.l.b16 %v2977_v42 }
 0x37f   : > { %5412 = vset.pattern.permute.xlu2 %v11383_v40 }
 0x380   : > { %2749 = vperm.xlu2 %5412, %v7190_v46   ;;  %v8093_v47 = vpop.permute.xlu2 %2425 }
 0x381   : > { %v8089_v5 = vpop.permute.xlu1 %2341  ;;  %11413 = vst [vmem:[#allocation113_spill] sm:$0xff] %v8093_v47  ;;  %v8095_v19 = vpop.permute.xlu0 %2409 }
 0x382   : > { %11412 = vst [vmem:[#allocation107_spill] sm:$0xff] %v8089_v5  ;;  %v2368_v58 = vmul.f32 %v8089_v5, %v7684_v32  ;;  %v2469_v18 = vmul.f32 %v8095_v19, %v8101_v39 }
 0x383   : > { %11414 = vst [vmem:[#allocation110_spill] sm:$0xff] %v8095_v19  ;;  %5414 = vset.pattern.permute.xlu1 %v11416_v30 }
 0x384   : > { %v2976_v55 = vpack.c.bf16 %v2368_v58, %v2368_v58  ;;  %v2981_v5 = vpack.c.bf16 %v2469_v18, %v2469_v18  ;;  %2829 = vperm.xlu1 %5414, %v7190_v46   ;;  %v2362_v46 = vmul.f32 %v8057_v50, %v7523_v28  ;;  %v2471_v18 = vmul.f32 %v8072_v54, %v7492_v29 }
 0x385   : > { %v2376_v54 = vrot.slane %v7403_v4, 5 }
 0x386   : > { %v8107_v45 = vunpack.c.l.b16 %v2976_v55  ;;  %v3205_v23 = vunpack.c.l.b16 %v2981_v5  ;;  %v5505_v5 = vld [vmem:[%s10672_s1 + $0x58] sm:$0xff]  ;;  %v2983_v20 = vpack.c.bf16 %v2471_v18, %v2471_v18 }
 0x388   : > { %5415 = vset.pattern.permute.xlu2 %v11416_v30  ;;  %v3220_v13 = vpack.c.b16 %v3205_v23, %v3204_v12  ;;  %v8117_v42 = vpop.permute.xlu2 %2437  ;;  %v2363_v12 = vmul.f32 %v7969_v41, %v7927_v44  ;;  %v8155_v18 = vunpack.c.l.b16 %v2983_v20 }
 0x389   : > { %2833 = vperm.xlu2 %5415, %v7203_v27   ;;  %v8115_v58 = vpop.permute.xlu1 %2353  ;;  %11418 = vst [vmem:[#allocation89_spill] sm:$0xff] %v8117_v42  ;;  %v8119_v55 = vpop.permute.xlu0 %2429  ;;  %v5504_v27 = vld [vmem:[%s10672_s1 + $0x50] sm:$0xff] }
 0x38a   : > { %11417 = vst [vmem:[#allocation119_spill] sm:$0xff] %v8115_v58  ;;  %3228 = vrot.lane.b32.xlu0 %v3220_v13, %s5542_s15  ;;  %v2970_v13 = vpack.c.bf16 %v2362_v46, %v2362_v46  ;;  %v2971_v41 = vpack.c.bf16 %v2363_v12, %v2363_v12  ;;  %v2364_v12 = vmul.f32 %v8044_v24, %v7906_v36 }
 0x38b   : > { %11419 = vst [vmem:[#allocation121_spill] sm:$0xff] %v8119_v55  ;;  %v2365_v55 = vmul.f32 %v8068_v61, %v7608_v57  ;;  %v11429_v61 = vrot.slane %v7418_v49, 5 }
 0x38c   : > { %5416 = vset.pattern.permute.xlu1 %v11420_v38  ;;  %v8153_v46 = vunpack.c.l.b16 %v2970_v13  ;;  %v5506_v13 = vld [vmem:[%s10672_s1 + $0x18] sm:$0xff]  ;;  %v8169_v20 = vunpack.c.l.b16 %v2971_v41 }
 0x38d   : > { %2909 = vperm.xlu1 %5416, %v5504_v27   ;;  %v8178_v24 = vsel %vm603_vm2, %v11429_v61, %v2376_v54  ;;  %v2972_v61 = vpack.c.bf16 %v2364_v12, %v2364_v12 }
 0x38e   : > { %11426 = vst [vmem:[#allocation95_spill] sm:$0xff] %v8153_v46  ;;  %v8246_v46 = vld [vmem:[%s10672_s1 + $0x60] sm:$0xff] }
 0x38f   : > { %11427 = vst [vmem:[#allocation98_spill] sm:$0xff] %v8169_v20 }
 0x390   : > { %v8138_v23 = vpop.permute.xlu2 %2449 }
 0x391   : > { %5417 = vset.pattern.permute.xlu2 %v11420_v38  ;;  %v8136_v17 = vpop.permute.xlu1 %2413  ;;  %11422 = vst [vmem:[#allocation118_spill] sm:$0xff] %v8138_v23  ;;  %v8140_v50 = vpop.permute.xlu0 %2441 }
 0x392   : > { %2913 = vperm.xlu2 %5417, %v5505_v5   ;;  %11421 = vst [vmem:[#allocation112_spill] sm:$0xff] %v8136_v17  ;;  %v2470_v27 = vmul.f32 %v8136_v17, %v7429_v62  ;;  %v11424_v5 = vrot.slane %v7422_v14, 5 }
 0x393   : > { %11423 = vst [vmem:[#allocation115_spill] sm:$0xff] %v8140_v50 }
 0x394   : > { %v2982_v19 = vpack.c.bf16 %v2470_v27, %v2470_v27  ;;  %v8151_v42 = vsel %vm603_vm2, %v2376_v54, %v11424_v5  ;;  %v2973_v5 = vpack.c.bf16 %v2365_v55, %v2365_v55  ;;  %v8189_v55 = vld [vmem:[%s10672_s1 + $0x10] sm:$0xff] }
 0x395   : > { %11425 = vst [vmem:[#allocation8_spill] sm:$0xff] %v8151_v42  ;;  %v2473_v17 = vmul.f32 %v8093_v47, %v8151_v42  ;;  %5418 = vset.pattern.permute.xlu1 %v11379_v59  ;;  %v8202_v42 = vunpack.c.l.b16 %v2972_v61 }
 0x396   : > { %v8159_v58 = vunpack.c.l.b16 %v2982_v19  ;;  %2641 = vperm.xlu1 %5418, %v5506_v13   ;;  %v8194_v44 = vunpack.c.l.b16 %v2973_v5 }
 0x397   : > { %v2985_v27 = vpack.c.bf16 %v2473_v17, %v2473_v17  ;;  %11435 = vst [vmem:[#allocation14_spill] sm:$0xff] %v8202_v42 }
 0x398   : > { %v8180_v47 = vpop.permute.xlu2 %2461  ;;  %11432 = vst [vmem:[#allocation7_spill] sm:$0xff] %v8194_v44 }
 0x399   : > { %v8172_v19 = vpop.permute.xlu1 %2421  ;;  %11430 = vst [vmem:[#allocation102_spill] sm:$0xff] %v8180_v47  ;;  %v8182_v57 = vpop.permute.xlu0 %2453  ;;  %v8196_v17 = vunpack.c.l.b16 %v2985_v27 }
 0x39a   : > { %5419 = vset.pattern.permute.xlu2 %v11383_v40  ;;  %11428 = vst [vmem:[#allocation120_spill] sm:$0xff] %v8172_v19  ;;  %v2472_v41 = vmul.f32 %v8172_v19, %v8178_v24  ;;  %v2482_v19 = vmul.f32 %v8180_v47, %v7692_v11 }
 0x39b   : > { %11431 = vst [vmem:[#allocation117_spill] sm:$0xff] %v8182_v57  ;;  %2717 = vperm.xlu2 %5419, %v8189_v55  }
 0x39c   : > { %v2984_v54 = vpack.c.bf16 %v2472_v41, %v2472_v41  ;;  %11433 = vst [vmem:[#allocation3_spill] sm:$0xff] %v8196_v17  ;;  %v2994_v41 = vpack.c.bf16 %v2482_v19, %v2482_v19  ;;  %v11467_v17 = vld [vmem:[#allocation20_spill] sm:$0xff] }
 0x39e   : > { %v8198_v36 = vunpack.c.l.b16 %v2984_v54  ;;  %5420 = vset.pattern.permute.xlu1 %v11383_v40  ;;  %v8219_v22 = vunpack.c.l.b16 %v2994_v41  ;;  %v2480_v41 = vmul.f32 %v8182_v57, %v7688_v43 }
 0x39f   : > { %2721 = vperm.xlu1 %5420, %v5506_v13  }
 0x3a0   : > { %11434 = vst [vmem:[#allocation17_spill] sm:$0xff] %v8198_v36  ;;  %v8214_v5 = vpop.permute.xlu2 %2521 }
 0x3a1   : > { %v8207_v50 = vpop.permute.xlu1 %2433  ;;  %v8211_v27 = vpop.permute.xlu0 %2465  ;;  %11438 = vst [vmem:[#allocation4_spill] sm:$0xff] %v8214_v5 }
 0x3a2   : > { %11436 = vst [vmem:[#allocation11_spill] sm:$0xff] %v8207_v50  ;;  %v2483_v61 = vmul.f32 %v8211_v27, %v7748_v16  ;;  %v2581_v50 = vmul.f32 %v8214_v5, %v7437_v3 }
 0x3a3   : > { %11437 = vst [vmem:[#allocation5_spill] sm:$0xff] %v8211_v27  ;;  %5421 = vset.pattern.permute.xlu2 %v11416_v30 }
 0x3a4   : > { %2797 = vperm.xlu2 %5421, %v8189_v55   ;;  %v2995_v54 = vpack.c.bf16 %v2483_v61, %v2483_v61  ;;  %11439 = vst [vmem:[#allocation13_spill] sm:$0xff] %v8219_v22 }
 0x3a6   : > { %v8221_v47 = vunpack.c.l.b16 %v2995_v54  ;;  %v2992_v54 = vpack.c.bf16 %v2480_v41, %v2480_v41  ;;  %v5509_v41 = vld [vmem:[%s10672_s1 + $0x68] sm:$0xff] }
 0x3a7   : > { %5422 = vset.pattern.permute.xlu1 %v11420_v38 }
 0x3a8   : > { %11440 = vst [vmem:[#allocation10_spill] sm:$0xff] %v8221_v47  ;;  %2877 = vperm.xlu1 %5422, %v8189_v55   ;;  %v2997_v47 = vpack.c.bf16 %v2581_v50, %v2581_v50 }
 0x3a9   : > { %v8226_v42 = vpop.permute.xlu1 %2445  ;;  %v8229_v19 = vpop.permute.xlu0 %2713 }
 0x3aa   : > { %11441 = vst [vmem:[#allocation122_spill] sm:$0xff] %v8226_v42  ;;  %v8232_v27 = vpop.permute.xlu2 %2629 }
 0x3ab   : > { %11442 = vst [vmem:[#allocation123_spill] sm:$0xff] %v8229_v19 }
 0x3ac   : > { %5423 = vset.pattern.permute.xlu2 %v11420_v38  ;;  %11443 = vst [vmem:[#allocation124_spill] sm:$0xff] %v8232_v27 }
 0x3ad   : > { %2881 = vperm.xlu2 %5423, %v5506_v13  }
 0x3b0   : > { %5424 = vset.pattern.permute.xlu1 %v11351_v34 }
 0x3b1   : > { %v8236_v61 = vpop.permute.xlu1 %2457  ;;  %v8241_v44 = vpop.permute.xlu0 %2753  ;;  %2565 = vperm.xlu1 %5424, %v8246_v46  }
 0x3b2   : > { %11444 = vst [vmem:[#allocation125_spill] sm:$0xff] %v8236_v61  ;;  %v2481_v12 = vmul.f32 %v8236_v61, %v7696_v0  ;;  %v8255_v61 = vunpack.c.l.b16 %v2992_v54 }
 0x3b3   : > { %11445 = vst [vmem:[#allocation126_spill] sm:$0xff] %v8241_v44 }
 0x3b4   : > { %v2993_v13 = vpack.c.bf16 %v2481_v12, %v2481_v12  ;;  %11447 = vst [vmem:[#allocation128_spill] sm:$0xff] %v8255_v61 }
 0x3b5   : > { %5425 = vset.pattern.permute.xlu2 %v11351_v34 }
 0x3b6   : > { %v8250_v57 = vpop.permute.xlu2 %2709  ;;  %2569 = vperm.xlu2 %5425, %v5509_v41   ;;  %v8257_v20 = vunpack.c.l.b16 %v2993_v13  ;;  %v3261_v13 = vunpack.c.l.b16 %v2997_v47 }
 0x3b7   : > { %11446 = vst [vmem:[#allocation127_spill] sm:$0xff] %v8250_v57 }
 0x3b8   : > { %11448 = vst [vmem:[#allocation129_spill] sm:$0xff] %v8257_v20 }
 0x3b9   : > { %v8263_v12 = vpop.permute.xlu1 %2517  ;;  %5426 = vset.pattern.permute.xlu1 %v11379_v59 }
 0x3ba   : > { %11449 = vst [vmem:[#allocation130_spill] sm:$0xff] %v8263_v12  ;;  %v2580_v16 = vmul.f32 %v8263_v12, %v7756_v53  ;;  %v8268_v36 = vpop.permute.xlu0 %2525  ;;  %2681 = vperm.xlu1 %5426, %v5509_v41  }
 0x3bb   : > { %11450 = vst [vmem:[#allocation131_spill] sm:$0xff] %v8268_v36  ;;  %v2582_v50 = vmul.f32 %v8268_v36, %v7544_v33  ;;  %v8290_v33 = vld [vmem:[%s10672_s1 + $0x20] sm:$0xff] }
 0x3bc   : > { %v2996_v54 = vpack.c.bf16 %v2580_v16, %v2580_v16 }
 0x3bd   : > { %v2998_v53 = vpack.c.bf16 %v2582_v50, %v2582_v50 }
 0x3be   : > { %5427 = vset.pattern.permute.xlu2 %v11383_v40  ;;  %v3260_v22 = vunpack.c.l.b16 %v2996_v54 }
 0x3bf   : > { %2757 = vperm.xlu2 %5427, %v8246_v46   ;;  %v8272_v3 = vpop.permute.xlu2 %2793  ;;  %v8283_v47 = vunpack.c.l.b16 %v2998_v53 }
 0x3c0   : > { %11451 = vst [vmem:[#allocation132_spill] sm:$0xff] %v8272_v3  ;;  %v3276_v5 = vpack.c.b16 %v3261_v13, %v3260_v22  ;;  %v2692_v22 = vmul.f32 %v8232_v27, %v7538_v9  ;;  %v8304_v13 = vld [vmem:[%s10672_s1 + $0x70] sm:$0xff] }
 0x3c1   : > { %v8276_v61 = vpop.permute.xlu1 %2529  ;;  %11453 = vst [vmem:[#allocation134_spill] sm:$0xff] %v8283_v47  ;;  %v2773_v47 = vmul.f32 %v8229_v19, %v7394_v56 }
 0x3c2   : > { %11452 = vst [vmem:[#allocation133_spill] sm:$0xff] %v8276_v61  ;;  %v2583_v12 = vmul.f32 %v8276_v61, %v7550_v10  ;;  %3284 = vrot.lane.b32.xlu0 %v3276_v5, %s5543_s29  ;;  %5428 = vset.pattern.permute.xlu1 %v11383_v40  ;;  %v3028_v50 = vpack.c.bf16 %v2692_v22, %v2692_v22  ;;  %v5512_v22 = vld [vmem:[%s10672_s1 + $0x28] sm:$0xff] }
 0x3c3   : > { %2761 = vperm.xlu1 %5428, %v5509_v41  }
 0x3c4   : > { %v2999_v16 = vpack.c.bf16 %v2583_v12, %v2583_v12  ;;  %v8312_v9 = vunpack.c.l.b16 %v3028_v50 }
 0x3c6   : > { %v8285_v54 = vunpack.c.l.b16 %v2999_v16 }
 0x3c7   : > { %5429 = vset.pattern.permute.xlu2 %v11351_v34 }
 0x3c8   : > { %11454 = vst [vmem:[#allocation135_spill] sm:$0xff] %v8285_v54  ;;  %2533 = vperm.xlu2 %5429, %v8290_v33   ;;  %v8293_v10 = vpop.permute.xlu2 %2873 }
 0x3c9   : > { %11455 = vst [vmem:[#allocation136_spill] sm:$0xff] %v8293_v10  ;;  %v8299_v12 = vpop.permute.xlu1 %2633 }
 0x3ca   : > { %11456 = vst [vmem:[#allocation137_spill] sm:$0xff] %v8299_v12  ;;  %2845 = vperm.xlu0 %5430, %v8304_v13   ;;  %v2693_v53 = vmul.f32 %v8299_v12, %v7573_v1  ;;  %v2772_v12 = vmul.f32 %v8250_v57, %v7389_v21  ;;  %v11466_v57 = vld [vmem:[#allocation48_spill] sm:$0xff] }
 0x3cb   : > { %5431 = vset.pattern.permute.xlu1 %v11416_v30 }
 0x3cc   : > { %v3029_v16 = vpack.c.bf16 %v2693_v53, %v2693_v53  ;;  %2837 = vperm.xlu1 %5431, %v8246_v46  }
 0x3ce   : > { %v8314_v5 = vunpack.c.l.b16 %v3029_v16  ;;  %v8334_v16 = vpop.permute.xlu0 %2557 }
 0x3cf   : > { %11461 = vst [vmem:[#allocation142_spill] sm:$0xff] %v8334_v16  ;;  %v2590_v36 = vmul.f32 %v8334_v16, %v7646_v7  ;;  %v3044_v7 = vpack.c.bf16 %v2772_v12, %v2772_v12 }
 0x3d0   : > { %5432 = vset.pattern.permute.xlu2 %v11416_v30 }
 0x3d1   : > { %2841 = vperm.xlu2 %5432, %v5509_v41   ;;  %v8316_v61 = vpop.permute.xlu2 %2669  ;;  %v8321_v1 = vpop.permute.xlu1 %2789  ;;  %v3006_v27 = vpack.c.bf16 %v2590_v36, %v2590_v36 }
 0x3d2   : > { %11457 = vst [vmem:[#allocation138_spill] sm:$0xff] %v8316_v61  ;;  %5450 = vset.pattern.permute.xlu0 %v11420_v38 }
 0x3d3   : > { %11458 = vst [vmem:[#allocation139_spill] sm:$0xff] %v8321_v1  ;;  %2925 = vperm.xlu0 %5450, %v8304_v13  }
 0x3d4   : > { %5433 = vset.pattern.permute.xlu1 %v11420_v38 }
 0x3d5   : > { %2917 = vperm.xlu1 %5433, %v8246_v46  }
 0x3d9   : > { %5434 = vset.pattern.permute.xlu2 %v11420_v38 }
 0x3da   : > { %2921 = vperm.xlu2 %5434, %v5509_v41   ;;  %v8327_v50 = vpop.permute.xlu2 %2749 }
 0x3db   : > { %11459 = vst [vmem:[#allocation140_spill] sm:$0xff] %v8327_v50  ;;  %5451 = vset.pattern.permute.xlu0 %v11379_v59  ;;  %v8330_v53 = vpop.permute.xlu1 %2869 }
 0x3dc   : > { %11460 = vst [vmem:[#allocation141_spill] sm:$0xff] %v8330_v53  ;;  %2637 = vperm.xlu0 %5451, %v8189_v55  }
 0x3dd   : > { %5435 = vset.pattern.permute.xlu1 %v11379_v59 }
 0x3de   : > { %2649 = vperm.xlu1 %5435, %v5512_v22  }
 0x3e2   : > { %5436 = vset.pattern.permute.xlu2 %v11383_v40 }
 0x3e3   : > { %2725 = vperm.xlu2 %5436, %v8290_v33   ;;  %v8341_v41 = vpop.permute.xlu2 %2833 }
 0x3e4   : > { %11462 = vst [vmem:[#allocation143_spill] sm:$0xff] %v8341_v41  ;;  %2677 = vperm.xlu0 %5451, %v8246_v46   ;;  %v8346_v55 = vpop.permute.xlu1 %2561  ;;  %v8356_v46 = vunpack.c.l.b16 %v3006_v27  ;;  %v2852_v27 = vmul.f32 %v8321_v1, %v8023_v26 }
 0x3e5   : > { %11463 = vst [vmem:[#allocation144_spill] sm:$0xff] %v8346_v55  ;;  %v2591_v20 = vmul.f32 %v8346_v55, %v7706_v37  ;;  %v2702_v37 = vmul.f32 %v8316_v61, %v7652_v8  ;;  %v3045_v55 = vpack.c.bf16 %v2773_v47, %v2773_v47  ;;  %v2853_v8 = vmul.f32 %v8272_v3, %v11467_v17 }
 0x3e6   : > { %5437 = vset.pattern.permute.xlu1 %v11383_v40 }
 0x3e7   : > { %v3007_v54 = vpack.c.bf16 %v2591_v20, %v2591_v20  ;;  %2729 = vperm.xlu1 %5437, %v5512_v22   ;;  %v3428_v20 = vunpack.c.l.b16 %v3044_v7  ;;  %v3429_v21 = vunpack.c.l.b16 %v3045_v55  ;;  %v3060_v7 = vpack.c.bf16 %v2852_v27, %v2852_v27 }
 0x3e8   : > { %v2863_v55 = vmul.f32 %v8341_v41, %v7684_v32 }
 0x3e9   : > { %v8358_v16 = vunpack.c.l.b16 %v3007_v54  ;;  %v3038_v54 = vpack.c.bf16 %v2702_v37, %v2702_v37  ;;  %v3444_v19 = vpack.c.b16 %v3429_v21, %v3428_v20 }
 0x3eb   : > { %5438 = vset.pattern.permute.xlu2 %v11416_v30  ;;  %v8379_v26 = vunpack.c.l.b16 %v3038_v54  ;;  %v3071_v54 = vpack.c.bf16 %v2863_v55, %v2863_v55 }
 0x3ec   : > { %2805 = vperm.xlu2 %5438, %v8290_v33   ;;  %v8361_v36 = vpop.permute.xlu2 %2913  ;;  %2645 = vperm.xlu0 %5451, %v8290_v33  }
 0x3ed   : > { %11464 = vst [vmem:[#allocation145_spill] sm:$0xff] %v8361_v36  ;;  %v8370_v12 = vpop.permute.xlu1 %2673 }
 0x3ee   : > { %11465 = vst [vmem:[#allocation146_spill] sm:$0xff] %v8370_v12  ;;  %v2703_v56 = vmul.f32 %v8370_v12, %v11466_v57  ;;  %v3061_v57 = vpack.c.bf16 %v2853_v8, %v2853_v8  ;;  %v11470_v8 = vld [vmem:[#allocation32_spill] sm:$0xff]  ;;  %v11474_v12 = vld [vmem:[#allocation38_spill] sm:$0xff] }
 0x3ef   : > { %5439 = vset.pattern.permute.xlu1 %v11420_v38 }
 0x3f0   : > { %v3039_v47 = vpack.c.bf16 %v2703_v56, %v2703_v56  ;;  %2885 = vperm.xlu1 %5439, %v8290_v33   ;;  %v3484_v56 = vunpack.c.l.b16 %v3060_v7  ;;  %v2932_v33 = vmul.f32 %v8330_v53, %v8101_v39  ;;  %v3485_v27 = vunpack.c.l.b16 %v3061_v57 }
 0x3f1   : > { %v8401_v7 = vunpack.c.l.b16 %v3071_v54 }
 0x3f2   : > { %v8381_v61 = vunpack.c.l.b16 %v3039_v47  ;;  %v3076_v47 = vpack.c.bf16 %v2932_v33, %v2932_v33  ;;  %v2367_v33 = vmul.f32 %v8059_v51, %v11470_v8 }
 0x3f4   : > { %5440 = vset.pattern.permute.xlu2 %v11420_v38  ;;  %3452 = vrot.lane.b32.xlu0 %v3444_v19, %s5544_s18  ;;  %v3500_v19 = vpack.c.b16 %v3485_v27, %v3484_v56  ;;  %v2943_v56 = vmul.f32 %v8361_v36, %v7688_v43  ;;  %v2975_v41 = vpack.c.bf16 %v2367_v33, %v2367_v33 }
 0x3f5   : > { %2889 = vperm.xlu2 %5440, %v5512_v22   ;;  %v8383_v37 = vpop.permute.xlu2 %2717  ;;  %v2933_v22 = vmul.f32 %v8293_v10, %v7429_v62  ;;  %v8408_v62 = vld [vmem:[%s10672_s1 + $0x78] sm:$0xff] }
 0x3f6   : > { %11468 = vst [vmem:[#allocation48_spill] sm:$0xff] %v8383_v37  ;;  %v8392_v20 = vpop.permute.xlu1 %2829  ;;  %v3087_v10 = vpack.c.bf16 %v2943_v56, %v2943_v56  ;;  %v3159_v33 = vunpack.c.l.b16 %v2975_v41 }
 0x3f7   : > { %11469 = vst [vmem:[#allocation20_spill] sm:$0xff] %v8392_v20  ;;  %v2862_v32 = vmul.f32 %v8392_v20, %v11470_v8  ;;  %v3077_v39 = vpack.c.bf16 %v2933_v22, %v2933_v22  ;;  %v11472_v22 = vld [vmem:[#allocation18_spill] sm:$0xff] }
 0x3f8   : > { %5441 = vset.pattern.permute.xlu1 %v11351_v34  ;;  %v2366_v54 = vmul.f32 %v8010_v63, %v11472_v22 }
 0x3f9   : > { %v3070_v3 = vpack.c.bf16 %v2862_v32, %v2862_v32  ;;  %2573 = vperm.xlu1 %5441, %v8304_v13   ;;  %v3541_v32 = vunpack.c.l.b16 %v3077_v39 }
 0x3fa   : > { %v2974_v8 = vpack.c.bf16 %v2366_v54, %v2366_v54 }
 0x3fb   : > { %v8403_v57 = vunpack.c.l.b16 %v3070_v3  ;;  %v3540_v3 = vunpack.c.l.b16 %v3076_v47  ;;  %v8430_v47 = vunpack.c.l.b16 %v3087_v10 }
 0x3fc   : > { %3508 = vrot.lane.b32.xlu0 %v3500_v19, %s5545_s10  ;;  %v3158_v54 = vunpack.c.l.b16 %v2974_v8 }
 0x3fd   : > { %5442 = vset.pattern.permute.xlu2 %v11351_v34  ;;  %v3556_v20 = vpack.c.b16 %v3541_v32, %v3540_v3  ;;  %v8437_v3 = vpop.permute.xlu0 %2537 }
 0x3fe   : > { %2577 = vperm.xlu2 %5442, %v8408_v62   ;;  %v8411_v55 = vpop.permute.xlu2 %2797  ;;  %11476 = vst [vmem:[#allocation148_spill] sm:$0xff] %v8437_v3  ;;  %v3169_v27 = vpack.c.b16 %v3159_v33, %v3158_v54 }
 0x3ff   : > { %11471 = vst [vmem:[#allocation32_spill] sm:$0xff] %v8411_v55  ;;  %v8422_v21 = vpop.permute.xlu1 %2909 }
 0x400   : > { %11473 = vst [vmem:[#allocation147_spill] sm:$0xff] %v8422_v21  ;;  %v2942_v19 = vmul.f32 %v8422_v21, %v11474_v12  ;;  %v11486_v21 = vpack.c.b16 %v8155_v18, %v8159_v58 }
 0x401   : > { %5443 = vset.pattern.permute.xlu1 %v11379_v59 }
 0x402   : > { %v3086_v43 = vpack.c.bf16 %v2942_v19, %v2942_v19  ;;  %2685 = vperm.xlu1 %5443, %v8304_v13  }
 0x404   : > { %3564 = vrot.lane.b32.xlu0 %v3556_v20, %s5546_s23  ;;  %v8432_v39 = vunpack.c.l.b16 %v3086_v43  ;;  %v11481_v43 = vpack.c.b16 %v7766_v52, %v7764_v35  ;;  %v2488_v35 = vrot.slane %v7403_v4, 7 }
 0x405   : > { %v8450_v41 = vpop.permute.xlu0 %2801 }
 0x406   : > { %5444 = vset.pattern.permute.xlu2 %v11379_v59  ;;  %11479 = vst [vmem:[#allocation151_spill] sm:$0xff] %v8450_v41 }
 0x407   : > { %2689 = vperm.xlu2 %5444, %v8408_v62   ;;  %v8435_v56 = vpop.permute.xlu2 %2881 }
 0x408   : > { %11475 = vst [vmem:[#allocation38_spill] sm:$0xff] %v8435_v56  ;;  %v8441_v19 = vpop.permute.xlu1 %2641  ;;  %v2935_v52 = vmul.f32 %v8435_v56, %v8178_v24 }
 0x409   : > { %11477 = vst [vmem:[#allocation149_spill] sm:$0xff] %v8441_v19 }
 0x40a   : > { %5445 = vset.pattern.permute.xlu1 %v11383_v40  ;;  %v3079_v63 = vpack.c.bf16 %v2935_v52, %v2935_v52 }
 0x40b   : > { %2765 = vperm.xlu1 %5445, %v8304_v13   ;;  %v8462_v13 = vld [vmem:[%s10672_s1 + $0x30] sm:$0xff] }
 0x40c   : > { %3182 = vrot.lane.b32.xlu0 %v3169_v27, %s5541_s14  ;;  %v8469_v27 = vld [vmem:[%s10672_s1 + $0x38] sm:$0xff]  ;;  %v3543_v52 = vunpack.c.l.b16 %v3079_v63 }
 0x40d   : > { %v8477_v33 = vpop.permute.xlu0 %2809 }
 0x40e   : > { %11483 = vst [vmem:[#allocation154_spill] sm:$0xff] %v8477_v33 }
 0x40f   : > { %5446 = vset.pattern.permute.xlu2 %v11383_v40 }
 0x410   : > { %2769 = vperm.xlu2 %5446, %v8408_v62   ;;  %v8448_v10 = vpop.permute.xlu2 %2569 }
 0x411   : > { %11478 = vst [vmem:[#allocation150_spill] sm:$0xff] %v8448_v10  ;;  %v8452_v20 = vpop.permute.xlu1 %2721 }
 0x412   : > { %11480 = vst [vmem:[#allocation152_spill] sm:$0xff] %v8452_v20 }
 0x413   : > { %5447 = vset.pattern.permute.xlu1 %v11351_v34 }
 0x414   : > { %3350 = vrot.lane.b32.xlu0 %v11481_v43, %s5547_s24  ;;  %2541 = vperm.xlu1 %5447, %v8462_v13   ;;  %v11485_v43 = vrot.slane %v7422_v14, 7 }
 0x416   : > { %v2510_v32 = vsel %vm700_vm3, %v2488_v35, %v11485_v43  ;;  %v11487_v43 = vpack.c.b16 %v7786_v48, %v7784_v25  ;;  %v8508_v48 = vpop.permute.xlu0 %3172 }
 0x417   : > { %v2585_v24 = vmul.f32 %v8437_v3, %v2510_v32 }
 0x418   : > { %5448 = vset.pattern.permute.xlu2 %v11351_v34 }
 0x419   : > { %2545 = vperm.xlu2 %5448, %v8469_v27   ;;  %v8472_v8 = vpop.permute.xlu2 %2757 }
 0x41a   : > { %11482 = vst [vmem:[#allocation153_spill] sm:$0xff] %v8472_v8  ;;  %v8479_v54 = vpop.permute.xlu1 %2877 }
 0x41b   : > { %11484 = vst [vmem:[#allocation155_spill] sm:$0xff] %v8479_v54  ;;  %v2934_v51 = vmul.f32 %v8479_v54, %v7492_v29  ;;  %v11488_v29 = vrot.slane %v7418_v49, 7 }
 0x41c   : > { %3230 = vrot.lane.b32.xlu0 %v11486_v21, %s5542_s15  ;;  %5449 = vset.pattern.permute.xlu1 %v11416_v30  ;;  %v3001_v21 = vpack.c.bf16 %v2585_v24, %v2585_v24 }
 0x41d   : > { %v3078_v56 = vpack.c.bf16 %v2934_v51, %v2934_v51  ;;  %2849 = vperm.xlu1 %5449, %v8408_v62   ;;  %v2511_v58 = vsel %vm700_vm3, %v11488_v29, %v2488_v35  ;;  %v11490_v51 = vld [vmem:[#allocation47_spill] sm:$0xff] }
 0x41e   : > { %v2593_v32 = vmul.f32 %v8448_v10, %v11490_v51  ;;  %v8516_v35 = vunpack.c.l.b16 %v3001_v21  ;;  %v8538_v21 = vpop.permute.xlu0 %3228  ;;  %v11495_v51 = vld [vmem:[#allocation36_spill] sm:$0xff]  ;;  %v2479_v10 = vmul.f32 %v8138_v23, %v11474_v12  ;;  %v11511_v12 = vrot.slane %v7418_v49, 1 }
 0x41f   : > { %v3542_v36 = vunpack.c.l.b16 %v3078_v56  ;;  %v11492_v56 = vpack.c.b16 %v8401_v7, %v8403_v57  ;;  %v11493_v7 = vpack.c.b16 %v8314_v5, %v8312_v9  ;;  %v11498_v9 = vld [vmem:[#allocation22_spill] sm:$0xff] }
 0x421   : > { %3340 = vrot.lane.b32.xlu2 %v11487_v43, %s5547_s24  ;;  %v3557_v54 = vpack.c.b16 %v3543_v52, %v3542_v36  ;;  %v3009_v43 = vpack.c.bf16 %v2593_v32, %v2593_v32  ;;  %v11496_v32 = vpack.c.b16 %v7802_v6, %v11495_v51 }
 0x422   : > { %v8502_v18 = vpop.permute.xlu2 %2533  ;;  %5454 = vset.pattern.permute.xlu2 %v11379_v59 }
 0x423   : > { %11489 = vst [vmem:[#allocation156_spill] sm:$0xff] %v8502_v18  ;;  %v2584_v3 = vmul.f32 %v8502_v18, %v2511_v58  ;;  %v8510_v63 = vpop.permute.xlu1 %2565  ;;  %v8530_v57 = vunpack.c.l.b16 %v3009_v43 }
 0x424   : > { %11491 = vst [vmem:[#allocation47_spill] sm:$0xff] %v8510_v63  ;;  %3518 = vrot.lane.b32.xlu0 %v11492_v56, %s5545_s10  ;;  %v2592_v29 = vmul.f32 %v8510_v63, %v7790_v15  ;;  %v11500_v56 = vrot.slane %v7418_v49, 4 }
 0x425   : > { %v3000_v25 = vpack.c.bf16 %v2584_v3, %v2584_v3  ;;  %5452 = vset.pattern.permute.xlu1 %v11420_v38 }
 0x426   : > { %v3008_v3 = vpack.c.bf16 %v2592_v29, %v2592_v29  ;;  %2929 = vperm.xlu1 %5452, %v8408_v62   ;;  %v2854_v62 = vmul.f32 %v8411_v55, %v11498_v9  ;;  %v11508_v55 = vld [vmem:[#allocation12_spill] sm:$0xff] }
 0x427   : > { %v8518_v24 = vunpack.c.l.b16 %v3000_v25  ;;  %v11499_v25 = vrot.slane %v7403_v4, 4 }
 0x428   : > { %v8532_v52 = vunpack.c.l.b16 %v3008_v3  ;;  %v3062_v29 = vpack.c.bf16 %v2854_v62, %v2854_v62 }
 0x429   : > { %3396 = vrot.lane.b32.xlu2 %v11493_v7, %s5548_s12  ;;  %v8554_v43 = vsel %vm490_vm1, %v11500_v56, %v11499_v25 }
 0x42a   : > { %v2855_v6 = vmul.f32 %v8450_v41, %v8554_v43  ;;  %v3486_v25 = vunpack.c.l.b16 %v3062_v29 }
 0x42b   : > { %v8534_v58 = vpop.permute.xlu2 %2841 }
 0x42c   : > { %11494 = vst [vmem:[#allocation157_spill] sm:$0xff] %v8534_v58  ;;  %3342 = vrot.lane.b32.xlu0 %v11496_v32, %s5547_s24  ;;  %v8544_v5 = vpop.permute.xlu1 %2681  ;;  %v3063_v7 = vpack.c.bf16 %v2855_v6, %v2855_v6  ;;  %v8568_v32 = vld [vmem:[%s10672_s1 + $0x40] sm:$0xff] }
 0x42d   : > { %11497 = vst [vmem:[#allocation36_spill] sm:$0xff] %v8544_v5 }
 0x42e   : > { %5453 = vset.pattern.permute.xlu1 %v11379_v59  ;;  %v3487_v36 = vunpack.c.l.b16 %v3063_v7  ;;  %v2857_v7 = vmul.f32 %v8477_v33, %v7523_v28 }
 0x42f   : > { %2653 = vperm.xlu1 %5453, %v8462_v13  }
 0x430   : > { %v3501_v62 = vpack.c.b16 %v3487_v36, %v3486_v25  ;;  %v11506_v36 = vld [vmem:[#allocation35_spill] sm:$0xff] }
 0x431   : > { %2657 = vperm.xlu2 %5454, %v8469_v27   ;;  %v2478_v25 = vmul.f32 %v8226_v42, %v11506_v36  ;;  %v10891_v42 = vrot.slane %v7403_v4, 1 }
 0x433   : > { %v2990_v1 = vpack.c.bf16 %v2478_v25, %v2478_v25  ;;  %v2623_v25 = vsel %vm797_vm4, %v11511_v12, %v10891_v42  ;;  %v2359_v12 = vmul.f32 %v8040_v31, %v11498_v9 }
 0x434   : > { %v8561_v3 = vpop.permute.xlu2 %2921  ;;  %v8563_v51 = vpop.permute.xlu0 %3284  ;;  %2661 = vperm.xlu0 %5451, %v8568_v32  }
 0x435   : > { %11501 = vst [vmem:[#allocation22_spill] sm:$0xff] %v8561_v3  ;;  %v8571_v56 = vpop.permute.xlu1 %2761  ;;  %v2945_v41 = vmul.f32 %v8561_v3, %v7692_v11  ;;  %v11518_v3 = vpack.c.b16 %v8358_v16, %v8356_v46  ;;  %v11523_v46 = vld [vmem:[#allocation31_spill] sm:$0xff] }
 0x436   : > { %11502 = vst [vmem:[#allocation158_spill] sm:$0xff] %v8571_v56 }
 0x437   : > { %5455 = vset.pattern.permute.xlu1 %v11383_v40 }
 0x438   : > { %2733 = vperm.xlu1 %5455, %v8462_v13  }
 0x439   : > { %5456 = vset.pattern.permute.xlu2 %v11383_v40 }
 0x43a   : > { %2737 = vperm.xlu2 %5456, %v8469_v27  }
 0x43c   : > { %v8579_v15 = vpop.permute.xlu0 %2845  ;;  %3510 = vrot.lane.b32.xlu0 %v3501_v62, %s5545_s10  ;;  %v3065_v62 = vpack.c.bf16 %v2857_v7, %v2857_v7 }
 0x43d   : > { %v8577_v6 = vpop.permute.xlu2 %2725  ;;  %11504 = vst [vmem:[#allocation160_spill] sm:$0xff] %v8579_v15  ;;  %5470 = vset.pattern.permute.xlu0 %v11420_v38 }
 0x43e   : > { %11503 = vst [vmem:[#allocation159_spill] sm:$0xff] %v8577_v6  ;;  %v8583_v29 = vpop.permute.xlu1 %2837  ;;  %v8607_v36 = vunpack.c.l.b16 %v3065_v62  ;;  %v2991_v62 = vpack.c.bf16 %v2479_v10, %v2479_v10 }
 0x43f   : > { %11505 = vst [vmem:[#allocation161_spill] sm:$0xff] %v8583_v29 }
 0x440   : > { %5457 = vset.pattern.permute.xlu1 %v11416_v30 }
 0x441   : > { %2813 = vperm.xlu1 %5457, %v8462_v13  }
 0x442   : > { %5458 = vset.pattern.permute.xlu2 %v11416_v30 }
 0x443   : > { %2817 = vperm.xlu2 %5458, %v8469_v27  }
 0x444   : > { %3566 = vrot.lane.b32.xlu0 %v3557_v54, %s5546_s23  ;;  %v3089_v54 = vpack.c.bf16 %v2945_v41, %v2945_v41  ;;  %v2695_v41 = vmul.f32 %v8441_v19, %v2623_v25 }
 0x445   : > { %v8600_v33 = vpop.permute.xlu0 %2925 }
 0x446   : > { %v8593_v18 = vpop.permute.xlu2 %2805  ;;  %11509 = vst [vmem:[#allocation12_spill] sm:$0xff] %v8600_v33  ;;  %v8632_v42 = vunpack.c.l.b16 %v3089_v54  ;;  %v3031_v19 = vpack.c.bf16 %v2695_v41, %v2695_v41 }
 0x447   : > { %11507 = vst [vmem:[#allocation162_spill] sm:$0xff] %v8593_v18  ;;  %v2856_v28 = vmul.f32 %v8593_v18, %v11508_v55  ;;  %v8605_v53 = vpop.permute.xlu1 %2917 }
 0x448   : > { %11510 = vst [vmem:[#allocation163_spill] sm:$0xff] %v8605_v53  ;;  %v2944_v11 = vmul.f32 %v8605_v53, %v7696_v0  ;;  %v8652_v53 = vunpack.c.l.b16 %v3031_v19  ;;  %v2782_v19 = vmul.f32 %v8327_v50, %v11523_v46  ;;  %v11530_v50 = vpack.c.b16 %v8381_v61, %v8379_v26  ;;  %v5305_v61 = vld [vmem:[%s10675_s4 + $0x18] sm:$0xff] }
 0x449   : > { %v3064_v63 = vpack.c.bf16 %v2856_v28, %v2856_v28  ;;  %5459 = vset.pattern.permute.xlu1 %v11420_v38  ;;  %v11512_v28 = vpack.c.b16 %v8105_v2, %v8107_v45  ;;  %v11516_v45 = vld [vmem:[#allocation65_spill] sm:$0xff] }
 0x44a   : > { %v3088_v0 = vpack.c.bf16 %v2944_v11, %v2944_v11  ;;  %2893 = vperm.xlu1 %5459, %v8462_v13   ;;  %v3215_v13 = vunpack.c.l.b16 %v2991_v62  ;;  %v11519_v62 = vld [vmem:[#allocation56_spill] sm:$0xff] }
 0x44b   : > { %v8609_v7 = vunpack.c.l.b16 %v3064_v63  ;;  %5460 = vset.pattern.permute.xlu2 %v11420_v38  ;;  %v11514_v63 = vld [vmem:[#allocation64_spill] sm:$0xff]  ;;  %v2705_v41 = vmul.f32 %v8544_v5, %v11519_v62  ;;  %v11529_v5 = vld [vmem:[#allocation53_spill] sm:$0xff] }
 0x44c   : > { %2897 = vperm.xlu2 %5460, %v8469_v27   ;;  %3184 = vrot.lane.b32.xlu0 %v11512_v28, %s5541_s14  ;;  %v3214_v27 = vunpack.c.l.b16 %v2990_v1  ;;  %v8634_v10 = vunpack.c.l.b16 %v3088_v0  ;;  %v2358_v11 = vmul.f32 %v11514_v63, %v11467_v17  ;;  %v2967_v1 = vpack.c.bf16 %v2359_v12, %v2359_v12  ;;  %v11520_v12 = vld [vmem:[#allocation43_spill] sm:$0xff] }
 0x44d   : > { %v2865_v23 = vmul.f32 %v8534_v58, %v11529_v5 }
 0x44e   : > { %v8640_v18 = vpop.permute.xlu0 %2637  ;;  %v3225_v54 = vpack.c.b16 %v3215_v13, %v3214_v27  ;;  %v2966_v17 = vpack.c.bf16 %v2358_v11, %v2358_v11  ;;  %v11521_v27 = vld [vmem:[#allocation44_spill] sm:$0xff]  ;;  %v3151_v16 = vunpack.c.l.b16 %v2967_v1  ;;  %v11524_v11 = vld [vmem:[#allocation27_spill] sm:$0xff] }
 0x44f   : > { %v8636_v25 = vpop.permute.xlu2 %2889  ;;  %11515 = vst [vmem:[#allocation165_spill] sm:$0xff] %v8640_v18  ;;  %v2694_v9 = vmul.f32 %v8640_v18, %v11516_v45  ;;  %v11522_v13 = vpack.c.b16 %v11520_v12, %v11521_v27  ;;  %v2783_v45 = vmul.f32 %v8241_v44, %v11524_v11  ;;  %v3041_v12 = vpack.c.bf16 %v2705_v41, %v2705_v41  ;;  %v11528_v27 = vld [vmem:[#allocation60_spill] sm:$0xff] }
 0x450   : > { %11513 = vst [vmem:[#allocation164_spill] sm:$0xff] %v8636_v25  ;;  %v8646_v0 = vpop.permute.xlu1 %2649  ;;  %v3150_v1 = vunpack.c.l.b16 %v2966_v17 }
 0x451   : > { %v3030_v28 = vpack.c.bf16 %v2694_v9, %v2694_v9  ;;  %11517 = vst [vmem:[#allocation65_spill] sm:$0xff] %v8646_v0  ;;  %v11525_v9 = vld [vmem:[#allocation40_spill] sm:$0xff]  ;;  %v3055_v63 = vpack.c.bf16 %v2783_v45, %v2783_v45  ;;  %v8690_v41 = vunpack.c.l.b16 %v3041_v12  ;;  %v11534_v45 = vld [vmem:[#allocation17_spill] sm:$0xff] }
 0x452   : > { %3238 = vrot.lane.b32.xlu1 %v3225_v54, %s5542_s15  ;;  %v2864_v54 = vmul.f32 %v8583_v29, %v11525_v9  ;;  %v3165_v18 = vpack.c.b16 %v3151_v16, %v3150_v1  ;;  %v3054_v9 = vpack.c.bf16 %v2782_v19, %v2782_v19  ;;  %v3073_v19 = vpack.c.bf16 %v2865_v23, %v2865_v23 }
 0x453   : > { %v8656_v2 = vunpack.c.l.b16 %v3030_v28  ;;  %5461 = vset.pattern.permute.xlu1 %v11351_v34  ;;  %v3439_v12 = vunpack.c.l.b16 %v3055_v63 }
 0x454   : > { %3294 = vrot.lane.b32.xlu2 %v11518_v3, %s5543_s29  ;;  %3352 = vrot.lane.b32.xlu0 %v11522_v13, %s5547_s24  ;;  %v3072_v44 = vpack.c.bf16 %v2864_v54, %v2864_v54 }
 0x455   : > { %5462 = vset.pattern.permute.xlu2 %v11351_v34  ;;  %v3732_v34 = vld [vmem:[%s10675_s4 + $0x20] sm:$0xf] }
 0x456   : > { %v8675_v62 = vpop.permute.xlu0 %2677  ;;  %v3754_v3 = vunpack.c.l.b16 %v3732_v34  ;;  %v11532_v34 = vld [vmem:[#allocation39_spill] sm:$0xff] }
 0x457   : > { %11527 = vst [vmem:[#allocation43_spill] sm:$0xff] %v8675_v62  ;;  %v2704_v13 = vmul.f32 %v8675_v62, %v11528_v27  ;;  %v2697_v27 = vmul.f32 %v8646_v0, %v11532_v34 }
 0x458   : > { %v8673_v28 = vpop.permute.xlu2 %2577  ;;  %v3759_v31 = vpack.c.b16 %v3754_v3, %v3754_v3  ;;  %v11533_v3 = vld [vmem:[#allocation3_spill] sm:$0xff] }
 0x459   : > { %11526 = vst [vmem:[#allocation56_spill] sm:$0xff] %v8673_v28  ;;  %v3040_v29 = vpack.c.bf16 %v2704_v13, %v2704_v13  ;;  %v8688_v17 = vpop.permute.xlu1 %2729  ;;  %v11535_v54 = vpack.c.b16 %v11533_v3, %v11534_v45  ;;  %v3033_v13 = vpack.c.bf16 %v2697_v27, %v2697_v27 }
 0x45a   : > { %11531 = vst [vmem:[#allocation44_spill] sm:$0xff] %v8688_v17  ;;  %3174 = vrot.lane.b32.xlu1 %v3165_v18, %s5541_s14  ;;  %v3783_v16 = vsel %vm3781_vm5, %v3759_v31, 0  ;;  %v11536_v18 = vrot.slane %v7422_v14, 1  ;;  %v11537_v31 = vrot.slane %v7403_v4, 1 }
 0x45b   : > { %v8694_v58 = vunpack.c.l.b16 %v3040_v29  ;;  %3788 = vmatpush.bf16.msra.mxu0 %v3783_v16  ;;  %5349 = vmatpush.bf16.msra.mxu3 %v3783_v16  ;;  %v3496_v29 = vunpack.c.l.b16 %v3072_v44  ;;  %v5304_v44 = vld [vmem:[%s10675_s4 + $0x10] sm:$0xff]  ;;  %v3377_v63 = vunpack.c.l.b16 %v3033_v13 }
 0x45c   : > { %3406 = vrot.lane.b32.xlu2 %v11530_v50, %s5548_s12  ;;  %3232 = vrot.lane.b32.xlu0 %v11535_v54, %s5542_s15  ;;  %v3438_v50 = vunpack.c.l.b16 %v3054_v9  ;;  %v2622_v23 = vsel %vm797_vm4, %v11537_v31, %v11536_v18  ;;  %v3497_v9 = vunpack.c.l.b16 %v3073_v19  ;;  %v11540_v18 = vld [vmem:[#allocation135_spill] sm:$0xff]  ;;  %v11541_v31 = vld [vmem:[#allocation134_spill] sm:$0xff] }
 0x45d   : > { %v11542_v26 = vpack.c.b16 %v11540_v18, %v11541_v31  ;;  %v5303_v19 = vld [vmem:[%s10675_s4 + $0x8] sm:$0xff]  ;;  %v11548_v18 = vrot.slane %v7403_v4, 3  ;;  %v11549_v31 = vrot.slane %v7418_v49, 3 }
 0x45e   : > { %v8713_v1 = vpop.permute.xlu0 %2645  ;;  %v3449_v16 = vpack.c.b16 %v3439_v12, %v3438_v50  ;;  %v3506_v54 = vpack.c.b16 %v3497_v9, %v3496_v29  ;;  %v11544_v50 = vld [vmem:[#allocation8_spill] sm:$0xff]  ;;  %v5302_v9 = vld [vmem:[%s10675_s4] sm:$0xff] }
 0x45f   : > { %11538 = vst [vmem:[#allocation31_spill] sm:$0xff] %v8713_v1  ;;  %v2696_v34 = vmul.f32 %v8713_v1, %v2622_v23  ;;  %3789 = vmatpush.bf16.msra.mxu0 %v5305_v61  ;;  %5350 = vmatpush.bf16.msra.mxu3 %v5305_v61  ;;  %v11553_v49 = vld [vmem:[#allocation19_spill] sm:$0xff]  ;;  %v11554_v1 = vld [vmem:[#allocation50_spill] sm:$0xff] }
 0x461   : > { %v8716_v3 = vpop.permute.xlu2 %2689  ;;  %v3032_v45 = vpack.c.bf16 %v2696_v34, %v2696_v34 }
 0x462   : > { %11539 = vst [vmem:[#allocation40_spill] sm:$0xff] %v8716_v3  ;;  %v8725_v23 = vpop.permute.xlu1 %2885  ;;  %3462 = vrot.lane.b32.xlu1 %v3449_v16, %s5544_s18  ;;  %v11547_v16 = vld [vmem:[#allocation49_spill] sm:$0xff] }
 0x463   : > { %v3376_v27 = vunpack.c.l.b16 %v3032_v45  ;;  %11543 = vst [vmem:[#allocation60_spill] sm:$0xff] %v8725_v23  ;;  %3790 = vmatpush.bf16.msra.mxu0 %v5304_v44  ;;  %5351 = vmatpush.bf16.msra.mxu3 %v5304_v44  ;;  %v2936_v29 = vmul.f32 %v8725_v23, %v11544_v50  ;;  %v2595_v45 = vmul.f32 %v8673_v28, %v11547_v16  ;;  %v11552_v16 = vld [vmem:[#allocation67_spill] sm:$0xff] }
 0x464   : > { %3286 = vrot.lane.b32.xlu2 %v11542_v26, %s5543_s29  ;;  %3520 = vrot.lane.b32.xlu0 %v3506_v54, %s5545_s10  ;;  %v11545_v26 = vld [vmem:[#allocation15_spill] sm:$0xff] }
 0x465   : > { %v3390_v61 = vpack.c.b16 %v3377_v63, %v3376_v27  ;;  %v2937_v13 = vmul.f32 %v8636_v25, %v11545_v26  ;;  %v3080_v44 = vpack.c.bf16 %v2936_v29, %v2936_v29  ;;  %v8748_v54 = vld [vmem:[%s10672_s1 + $0x48] sm:$0xff]  ;;  %v8757_v63 = vsel %vm425_vm0, %v11549_v31, %v11548_v18 }
 0x466   : > { %v8734_v12 = vpop.permute.xlu0 %3452  ;;  %11550 = vst [vmem:[#allocation39_spill] sm:$0xff] %v8757_v63  ;;  %v2775_v27 = vmul.f32 %v8452_v20, %v8757_v63  ;;  %v3011_v29 = vpack.c.bf16 %v2595_v45, %v2595_v45  ;;  %v2774_v18 = vmul.f32 %v8383_v37, %v11553_v49  ;;  %v11555_v20 = vld [vmem:[#allocation9_spill] sm:$0xff] }
 0x467   : > { %3791 = vmatpush.bf16.msra.mxu0 %v5303_v19  ;;  %5352 = vmatpush.bf16.msra.mxu3 %v5303_v19  ;;  %v3081_v19 = vpack.c.bf16 %v2937_v13, %v2937_v13  ;;  %v3544_v31 = vunpack.c.l.b16 %v3080_v44  ;;  %v2244_v13 = vmul.f32 %v11555_v20, %v11554_v1  ;;  %v11560_v44 = vld [vmem:[#allocation71_spill] sm:$0xff]  ;;  %v11563_v20 = vld [vmem:[#allocation62_spill] sm:$0xff] }
 0x468   : > { %v3047_v28 = vpack.c.bf16 %v2775_v27, %v2775_v27  ;;  %v3275_v45 = vunpack.c.l.b16 %v3011_v29  ;;  %v3046_v37 = vpack.c.bf16 %v2774_v18, %v2774_v18  ;;  %v2707_v22 = vmul.f32 %v8716_v3, %v11560_v44 }
 0x469   : > { %v3545_v62 = vunpack.c.l.b16 %v3081_v19  ;;  %v11561_v27 = vpack.c.b16 %v8652_v53, %v8656_v2  ;;  %v11562_v19 = vld [vmem:[#allocation29_spill] sm:$0xff]  ;;  %v2948_v18 = vpack.c.bf16 %v2244_v13, %v2244_v13 }
 0x46a   : > { %v8738_v34 = vpop.permute.xlu2 %2769  ;;  %2549 = vperm.xlu1 %5461, %v8568_v32   ;;  %v3043_v44 = vpack.c.bf16 %v2707_v22, %v2707_v22 }
 0x46b   : > { %11546 = vst [vmem:[#allocation53_spill] sm:$0xff] %v8738_v34  ;;  %v8762_v50 = vpop.permute.xlu1 %2573  ;;  %3792 = vmatpush.bf16.msra.mxu0 %v5302_v9  ;;  %5353 = vmatpush.bf16.msra.mxu3 %v5302_v9  ;;  %v11558_v9 = vld [vmem:[#allocation6_spill] sm:$0xff] }
 0x46c   : > { %2553 = vperm.xlu2 %5462, %v8748_v54   ;;  %11551 = vst [vmem:[#allocation3_spill] sm:$0xff] %v8762_v50  ;;  %3400 = vrot.lane.b32.xlu0 %v3390_v61, %s5548_s12  ;;  %v2594_v23 = vmul.f32 %v8762_v50, %v11552_v16  ;;  %v11556_v61 = vld [vmem:[#allocation81_spill] sm:$0xff] }
 0x46d   : > { %v2255_v60 = vmul.f32 %v11556_v61, %v11523_v46  ;;  %v11559_v16 = vld [vmem:[#allocation37_spill] sm:$0xff]  ;;  %v2254_v46 = vmul.f32 %v11563_v20, %v11562_v19 }
 0x46e   : > { %v8769_v25 = vpop.permute.xlu0 %3508  ;;  %v3010_v0 = vpack.c.bf16 %v2594_v23, %v2594_v23  ;;  %v2245_v50 = vmul.f32 %v11559_v16, %v11558_v9  ;;  %v3558_v23 = vpack.c.b16 %v3545_v62, %v3544_v31  ;;  %v3431_v9 = vunpack.c.l.b16 %v3047_v28 }
 0x46f   : > { %v2959_v62 = vpack.c.bf16 %v2255_v60, %v2255_v60  ;;  %v3430_v31 = vunpack.c.l.b16 %v3046_v37 }
 0x470   : > { %v3274_v63 = vunpack.c.l.b16 %v3010_v0  ;;  %v11564_v0 = vpack.c.b16 %v8430_v47, %v8432_v39  ;;  %v2949_v2 = vpack.c.bf16 %v2245_v50, %v2245_v50  ;;  %v2958_v47 = vpack.c.bf16 %v2254_v46, %v2254_v46 }
 0x471   : > { %v3108_v39 = vunpack.c.l.b16 %v2948_v18  ;;  %v3119_v13 = vunpack.c.l.b16 %v2959_v62  ;;  %v11568_v62 = vld [vmem:[#allocation69_spill] sm:$0xff] }
 0x472   : > { %v3283_v29 = vpack.c.b16 %v3275_v45, %v3274_v63  ;;  %3574 = vrot.lane.b32.xlu1 %v11564_v0, %s5546_s23  ;;  %v11566_v63 = vld [vmem:[#allocation73_spill] sm:$0xff]  ;;  %v3445_v0 = vpack.c.b16 %v3431_v9, %v3430_v31  ;;  %v3109_v16 = vunpack.c.l.b16 %v2949_v2  ;;  %v3118_v60 = vunpack.c.l.b16 %v2958_v47 }
 0x473   : > { %v8775_v11 = vpop.permute.xlu2 %2545  ;;  %5463 = vset.pattern.permute.xlu1 %v11379_v59 }
 0x474   : > { %11557 = vst [vmem:[#allocation17_spill] sm:$0xff] %v8775_v11  ;;  %3398 = vrot.lane.b32.xlu2 %v11561_v27, %s5548_s12  ;;  %3568 = vrot.lane.b32.xlu0 %v3558_v23, %s5546_s23  ;;  %v8794_v53 = vpop.permute.xlu1 %2685  ;;  %v3387_v23 = vunpack.c.l.b16 %v3043_v44  ;;  %v3124_v59 = vpack.c.b16 %v3109_v16, %v3108_v39  ;;  %v3129_v22 = vpack.c.b16 %v3119_v13, %v3118_v60 }
 0x475   : > { %5465 = vset.pattern.permute.xlu2 %v11383_v40  ;;  %11565 = vst [vmem:[#allocation135_spill] sm:$0xff] %v8794_v53  ;;  %v2706_v45 = vmul.f32 %v8794_v53, %v11566_v63  ;;  %v2587_v2 = vmul.f32 %v8775_v11, %v11568_v62  ;;  %v11570_v63 = vld [vmem:[#allocation68_spill] sm:$0xff] }
 0x476   : > { %v3565_v27 = vpop.permute.xlu0 %3564  ;;  %v3583_v50 = vsel %vm3580_vm6, %v3124_v59, %v8508_v48 }
 0x477   : > { %v3042_v3 = vpack.c.bf16 %v2706_v45, %v2706_v45  ;;  %v3607_v18 = vsel %vm3605_vm7, %v3583_v50, %v8538_v21 }
 0x479   : > { %v3386_v20 = vunpack.c.l.b16 %v3042_v3 }
 0x47a   : > { %2665 = vperm.xlu1 %5463, %v8748_v54  }
 0x47b   : > { %v3341_v28 = vpop.permute.xlu2 %3340  ;;  %v3395_v37 = vpack.c.b16 %v3387_v23, %v3386_v20  ;;  %v3624_v20 = vsel %vm3622_vm8, %v3607_v18, %v8563_v51  ;;  %v11578_v18 = vld [vmem:[#allocation116_spill] sm:$0xff] }
 0x47c   : > { %3454 = vrot.lane.b32.xlu2 %v3445_v0, %s5544_s18  ;;  %3298 = vrot.lane.b32.xlu0 %v3283_v29, %s5543_s29  ;;  %v3641_v16 = vsel %vm3639_vm9, %v3624_v20, %v3341_v28  ;;  %v11574_v28 = vld [vmem:[#allocation59_spill] sm:$0xff] }
 0x47d   : > { %v8803_v46 = vpop.permute.xlu1 %2765  ;;  %v2946_v23 = vmul.f32 %v8600_v33, %v11574_v28 }
 0x47e   : > { %11567 = vst [vmem:[#allocation134_spill] sm:$0xff] %v8803_v46  ;;  %v3183_v3 = vpop.permute.xlu0 %3182 }
 0x47f   : > { %v8808_v9 = vsel %vm3580_vm6, %v3129_v22, %v3183_v3  ;;  %v3090_v50 = vpack.c.bf16 %v2946_v23, %v2946_v23 }
 0x482   : > { %5464 = vset.pattern.permute.xlu1 %v11383_v40 }
 0x483   : > { %v3397_v29 = vpop.permute.xlu2 %3396  ;;  %2741 = vperm.xlu1 %5464, %v8568_v32  }
 0x484   : > { %v3658_v48 = vsel %vm3656_vm10, %v3641_v16, %v3397_v29  ;;  %2745 = vperm.xlu2 %5465, %v8748_v54   ;;  %3410 = vrot.lane.b32.xlu0 %v3395_v37, %s5548_s12  ;;  %v11577_v37 = vld [vmem:[#allocation88_spill] sm:$0xff]  ;;  %v3554_v29 = vunpack.c.l.b16 %v3090_v50  ;;  %v11589_v50 = vpack.c.b16 %v8690_v41, %v8694_v58  ;;  %v11592_v58 = vpack.c.b16 %v8516_v35, %v8518_v24  ;;  %v11595_v24 = vld [vmem:[#allocation23_spill] sm:$0xff] }
 0x485   : > { %v3675_v21 = vsel %vm3673_vm11, %v3658_v48, %v8734_v12  ;;  %v3003_v12 = vpack.c.bf16 %v2587_v2, %v2587_v2  ;;  %v2360_v22 = vmul.f32 %v11577_v37, %v8554_v43  ;;  %v11581_v43 = vld [vmem:[#allocation129_spill] sm:$0xff]  ;;  %v11584_v2 = vld [vmem:[#allocation55_spill] sm:$0xff] }
 0x486   : > { %v3692_v51 = vsel %vm3690_vm12, %v3675_v21, %v8769_v25  ;;  %v8826_v44 = vpop.permute.xlu1 %2541  ;;  %v8853_v3 = vpop.permute.xlu0 %3350  ;;  %v11582_v21 = vld [vmem:[#allocation128_spill] sm:$0xff] }
 0x487   : > { %v3709_v31 = vsel %vm3707_vm13, %v3692_v51, %v3565_v27  ;;  %11569 = vst [vmem:[#allocation8_spill] sm:$0xff] %v8826_v44  ;;  %v2586_v40 = vmul.f32 %v8826_v44, %v11570_v63  ;;  %v3267_v39 = vunpack.c.l.b16 %v3003_v12  ;;  %v11583_v62 = vpack.c.b16 %v11581_v43, %v11582_v21  ;;  %v11585_v12 = vld [vmem:[#allocation41_spill] sm:$0xff] }
 0x488   : > { %5267 = vmatmul.msk.bf16.vlgmr.msra.gmra.mxu0 %vm3764_vm14, %v3709_v31  ;;  %v2785_v63 = vmul.f32 %v8571_v56, %v11585_v12  ;;  %v11620_v56 = vld [vmem:[#allocation98_spill] sm:$0xff] }
 0x489   : > { %v3002_v47 = vpack.c.bf16 %v2586_v40, %v2586_v40 }
 0x48b   : > { %v8830_v45 = vpop.permute.xlu2 %2657  ;;  %v3266_v0 = vunpack.c.l.b16 %v3002_v47  ;;  %5466 = vset.pattern.permute.xlu1 %v11416_v30 }
 0x48c   : > { %11571 = vst [vmem:[#allocation15_spill] sm:$0xff] %v8830_v45  ;;  %5467 = vset.pattern.permute.xlu2 %v11416_v30  ;;  %2821 = vperm.xlu1 %5466, %v8568_v32   ;;  %v11575_v30 = vld [vmem:[#allocation76_spill] sm:$0xff]  ;;  %v2699_v51 = vmul.f32 %v8830_v45, %v11584_v2 }
 0x48d   : > { %2825 = vperm.xlu2 %5467, %v8748_v54   ;;  %v3279_v25 = vpack.c.b16 %v3267_v39, %v3266_v0  ;;  %v2361_v60 = vmul.f32 %v11575_v30, %v11508_v55  ;;  %v2968_v55 = vpack.c.bf16 %v2360_v22, %v2360_v22  ;;  %v11586_v39 = vld [vmem:[#allocation46_spill] sm:$0xff] }
 0x48e   : > { %v3035_v0 = vpack.c.bf16 %v2699_v51, %v2699_v51  ;;  %v8878_v22 = vpop.permute.xlu0 %3230  ;;  %v3016_v51 = vpack.c.bf16 %v7403_v4, %v7403_v4 }
 0x48f   : > { %v8836_v27 = vpop.permute.xlu1 %2849  ;;  %3290 = vrot.lane.b32.xlu0 %v3279_v25, %s5543_s29  ;;  %v2969_v20 = vpack.c.bf16 %v2361_v60, %v2361_v60  ;;  %v3152_v47 = vunpack.c.l.b16 %v2968_v55  ;;  %v11588_v25 = vld [vmem:[#allocation72_spill] sm:$0xff]  ;;  %v3057_v60 = vpack.c.bf16 %v2785_v63, %v2785_v63 }
 0x490   : > { %11572 = vst [vmem:[#allocation49_spill] sm:$0xff] %v8836_v27 }
 0x491   : > { %v3153_v31 = vunpack.c.l.b16 %v2969_v20  ;;  %v3441_v55 = vunpack.c.l.b16 %v3057_v60 }
 0x493   : > { %v3166_v23 = vpack.c.b16 %v3153_v31, %v3152_v47  ;;  %v11593_v31 = vld [vmem:[#allocation26_spill] sm:$0xff]  ;;  %v11594_v47 = vld [vmem:[#allocation61_spill] sm:$0xff] }
 0x494   : > { %v8839_v13 = vpop.permute.xlu2 %2737  ;;  %5468 = vset.pattern.permute.xlu1 %v11420_v38  ;;  %v2777_v63 = vmul.f32 %v8688_v17, %v11593_v31 }
 0x495   : > { %11573 = vst [vmem:[#allocation67_spill] sm:$0xff] %v8839_v13  ;;  %5469 = vset.pattern.permute.xlu2 %v11420_v38  ;;  %2901 = vperm.xlu1 %5468, %v8568_v32   ;;  %v11580_v32 = vpack.c.b16 %v8530_v57, %v8532_v52  ;;  %v2784_v57 = vmul.f32 %v8472_v8, %v11586_v39 }
 0x496   : > { %2905 = vperm.xlu2 %5469, %v8748_v54   ;;  %v8903_v2 = vpop.permute.xlu0 %3518 }
 0x497   : > { %v3056_v20 = vpack.c.bf16 %v2784_v57, %v2784_v57  ;;  %v2776_v57 = vmul.f32 %v8577_v6, %v11595_v24 }
 0x498   : > { %v8849_v59 = vpop.permute.xlu1 %2929 }
 0x499   : > { %11576 = vst [vmem:[#allocation19_spill] sm:$0xff] %v8849_v59  ;;  %v2947_v54 = vmul.f32 %v8849_v59, %v11578_v18 }
 0x49b   : > { %v3091_v16 = vpack.c.bf16 %v2947_v54, %v2947_v54 }
 0x49d   : > { %v8857_v38 = vpop.permute.xlu2 %2817  ;;  %v3555_v48 = vunpack.c.l.b16 %v3091_v16  ;;  %3240 = vrot.lane.b32.xlu1 %v11583_v62, %s5542_s15  ;;  %v8887_v16 = vunpack.c.l.b16 %v3035_v0  ;;  %v3017_v62 = vpack.c.bf16 %v7422_v14, %v7422_v14  ;;  %v3320_v0 = vunpack.c.l.b16 %v3016_v51  ;;  %v11602_v51 = vld [vmem:[#allocation119_spill] sm:$0xff] }
 0x49e   : > { %11579 = vst [vmem:[#allocation50_spill] sm:$0xff] %v8857_v38  ;;  %3296 = vrot.lane.b32.xlu2 %v11580_v32, %s5543_s29  ;;  %v2859_v35 = vmul.f32 %v8857_v38, %v11594_v47  ;;  %v11596_v14 = vpack.c.b16 %v8632_v42, %v8634_v10 }
 0x49f   : > { %v3563_v40 = vpack.c.b16 %v3555_v48, %v3554_v29  ;;  %v3440_v48 = vunpack.c.l.b16 %v3056_v20  ;;  %v3048_v20 = vpack.c.bf16 %v2776_v57, %v2776_v57 }
 0x4a0   : > { %v3067_v60 = vpack.c.bf16 %v2859_v35, %v2859_v35 }
 0x4a1   : > { %v8873_v52 = vpop.permute.xlu1 %2653  ;;  %3578 = vrot.lane.b32.xlu0 %v3563_v40, %s5546_s23  ;;  %v3450_v21 = vpack.c.b16 %v3441_v55, %v3440_v48  ;;  %v3321_v40 = vunpack.c.l.b16 %v3017_v62  ;;  %v11599_v55 = vld [vmem:[#allocation34_spill] sm:$0xff]  ;;  %v11600_v48 = vld [vmem:[#allocation115_spill] sm:$0xff]  ;;  %v11601_v62 = vld [vmem:[#allocation33_spill] sm:$0xff]  ;;  %v3432_v29 = vunpack.c.l.b16 %v3048_v20 }
 0x4a2   : > { %11587 = vst [vmem:[#allocation81_spill] sm:$0xff] %v8873_v52  ;;  %v2698_v28 = vmul.f32 %v8873_v52, %v11588_v25  ;;  %v3049_v25 = vpack.c.bf16 %v2777_v63, %v2777_v63  ;;  %v2371_v42 = vmul.f32 %v11602_v51, %v11601_v62  ;;  %v8929_v63 = vpop.permute.xlu0 %3342  ;;  %v3491_v47 = vunpack.c.l.b16 %v3067_v60  ;;  %v11698_v52 = vld [vmem:[#allocation123_spill] sm:$0xff] }
 0x4a4   : > { %v3034_v54 = vpack.c.bf16 %v2698_v28, %v2698_v28  ;;  %v3433_v10 = vunpack.c.l.b16 %v3049_v25  ;;  %v2979_v33 = vpack.c.bf16 %v2371_v42, %v2371_v42  ;;  %v11606_v25 = vpack.c.b16 %v8607_v36, %v8609_v7  ;;  %v11610_v42 = vld [vmem:[#allocation30_spill] sm:$0xff] }
 0x4a5   : > { %3176 = vrot.lane.b32.xlu1 %v3166_v23, %s5541_s14  ;;  %v3334_v23 = vpack.c.b16 %v3321_v40, %v3320_v0  ;;  %v11604_v40 = vld [vmem:[#allocation89_spill] sm:$0xff] }
 0x4a6   : > { %3408 = vrot.lane.b32.xlu2 %v11589_v50, %s5548_s12  ;;  %v8884_v18 = vpop.permute.xlu2 %2897  ;;  %v8889_v32 = vunpack.c.l.b16 %v3034_v54  ;;  %v11598_v50 = vld [vmem:[#allocation86_spill] sm:$0xff]  ;;  %v3446_v53 = vpack.c.b16 %v3433_v10, %v3432_v29  ;;  %v11609_v29 = vld [vmem:[#allocation16_spill] sm:$0xff] }
 0x4a7   : > { %11590 = vst [vmem:[#allocation6_spill] sm:$0xff] %v8884_v18  ;;  %v2246_v10 = vmul.f32 %v11610_v42, %v11609_v29 }
 0x4aa   : > { %v8893_v43 = vpop.permute.xlu1 %2733 }
 0x4ab   : > { %11591 = vst [vmem:[#allocation71_spill] sm:$0xff] %v8893_v43 }
 0x4ad   : > { %3464 = vrot.lane.b32.xlu1 %v3450_v21, %s5544_s18  ;;  %v2477_v21 = vmul.f32 %v11600_v48, %v11599_v55  ;;  %v2950_v48 = vpack.c.bf16 %v2246_v10, %v2246_v10  ;;  %v2787_v10 = vmul.f32 %v8738_v34, %v11554_v1 }
 0x4ae   : > { %3288 = vrot.lane.b32.xlu2 %v11592_v58, %s5543_s29  ;;  %v8899_v41 = vpop.permute.xlu2 %3294 }
 0x4af   : > { %v2989_v59 = vpack.c.bf16 %v2477_v21, %v2477_v21 }
 0x4b1   : > { %v3213_v21 = vunpack.c.l.b16 %v2989_v59  ;;  %v3059_v59 = vpack.c.bf16 %v2787_v10, %v2787_v10 }
 0x4b3   : > { %v8920_v4 = vpop.permute.xlu1 %2813  ;;  %v3443_v10 = vunpack.c.l.b16 %v3059_v59 }
 0x4b4   : > { %11597 = vst [vmem:[#allocation29_spill] sm:$0xff] %v8920_v4  ;;  %v2858_v54 = vmul.f32 %v8920_v4, %v11598_v50  ;;  %v11605_v50 = vld [vmem:[#allocation114_spill] sm:$0xff]  ;;  %v11624_v4 = vld [vmem:[#allocation79_spill] sm:$0xff] }
 0x4b5   : > { %3344 = vrot.lane.b32.xlu1 %v3334_v23, %s5547_s24  ;;  %v2370_v57 = vmul.f32 %v11605_v50, %v11529_v5 }
 0x4b6   : > { %3576 = vrot.lane.b32.xlu2 %v11596_v14, %s5546_s23  ;;  %v8918_v28 = vpop.permute.xlu2 %3406  ;;  %v3066_v58 = vpack.c.bf16 %v2858_v54, %v2858_v54  ;;  %v11603_v14 = vld [vmem:[#allocation78_spill] sm:$0xff] }
 0x4b7   : > { %v2476_v35 = vmul.f32 %v11604_v40, %v11603_v14  ;;  %v2939_v23 = vmul.f32 %v8884_v18, %v11603_v14  ;;  %v2978_v5 = vpack.c.bf16 %v2370_v57, %v2370_v57  ;;  %v8953_v57 = vpop.permute.xlu0 %2661 }
 0x4b8   : > { %v3490_v0 = vunpack.c.l.b16 %v3066_v58  ;;  %v11608_v58 = vld [vmem:[#allocation85_spill] sm:$0xff]  ;;  %11612 = vst [vmem:[#allocation69_spill] sm:$0xff] %v8953_v57 }
 0x4b9   : > { %v2988_v6 = vpack.c.bf16 %v2476_v35, %v2476_v35  ;;  %v3083_v20 = vpack.c.bf16 %v2939_v23, %v2939_v23  ;;  %v11611_v35 = vld [vmem:[#allocation25_spill] sm:$0xff] }
 0x4ba   : > { %v3503_v54 = vpack.c.b16 %v3491_v47, %v3490_v0  ;;  %v3163_v47 = vunpack.c.l.b16 %v2979_v33  ;;  %v2247_v0 = vmul.f32 %v11611_v35, %v11553_v49  ;;  %v11613_v33 = vld [vmem:[#allocation10_spill] sm:$0xff] }
 0x4bb   : > { %v3212_v7 = vunpack.c.l.b16 %v2988_v6  ;;  %v8951_v8 = vunpack.c.l.b16 %v3083_v20  ;;  %v11617_v20 = vld [vmem:[#allocation57_spill] sm:$0xff] }
 0x4bc   : > { %v8941_v17 = vpop.permute.xlu1 %2893  ;;  %3514 = vrot.lane.b32.xlu0 %v3503_v54, %s5545_s10 }
 0x4bd   : > { %11607 = vst [vmem:[#allocation73_spill] sm:$0xff] %v8941_v17  ;;  %v2938_v14 = vmul.f32 %v8941_v17, %v11608_v58  ;;  %3456 = vrot.lane.b32.xlu1 %v3446_v53, %s5544_s18  ;;  %v3224_v54 = vpack.c.b16 %v3213_v21, %v3212_v7  ;;  %v3110_v21 = vunpack.c.l.b16 %v2950_v48 }
 0x4be   : > { %3512 = vrot.lane.b32.xlu2 %v11606_v25, %s5545_s10  ;;  %v3287_v60 = vpop.permute.xlu2 %3286  ;;  %v3162_v25 = vunpack.c.l.b16 %v2978_v5  ;;  %v2951_v5 = vpack.c.bf16 %v2247_v0, %v2247_v0 }
 0x4bf   : > { %v3082_v36 = vpack.c.bf16 %v2938_v14, %v2938_v14  ;;  %v11614_v14 = vld [vmem:[#allocation13_spill] sm:$0xff] }
 0x4c0   : > { %v3171_v53 = vpack.c.b16 %v3163_v47, %v3162_v25  ;;  %v11615_v6 = vpack.c.b16 %v11613_v33, %v11614_v14  ;;  %v11618_v47 = vld [vmem:[#allocation11_spill] sm:$0xff]  ;;  %v3111_v25 = vunpack.c.l.b16 %v2951_v5  ;;  %v11619_v33 = vld [vmem:[#allocation121_spill] sm:$0xff] }
 0x4c1   : > { %v8955_v23 = vunpack.c.l.b16 %v3082_v36  ;;  %v2786_v36 = vmul.f32 %v8803_v46, %v11617_v20  ;;  %v2475_v7 = vmul.f32 %v11618_v47, %v11608_v58  ;;  %v2474_v14 = vmul.f32 %v11619_v33, %v11545_v26  ;;  %v11621_v46 = vld [vmem:[#allocation95_spill] sm:$0xff]  ;;  %v11623_v5 = vld [vmem:[#allocation109_spill] sm:$0xff] }
 0x4c2   : > { %v11622_v40 = vpack.c.b16 %v11620_v56, %v11621_v46  ;;  %v11625_v26 = vpack.c.b16 %v11623_v5, %v11624_v4  ;;  %v11699_v47 = vld [vmem:[#allocation137_spill] sm:$0xff] }
 0x4c3   : > { %v2987_v0 = vpack.c.bf16 %v2475_v7, %v2475_v7  ;;  %v2986_v1 = vpack.c.bf16 %v2474_v14, %v2474_v14  ;;  %v11626_v7 = vld [vmem:[#allocation106_spill] sm:$0xff] }
 0x4c4   : > { %v3239_v49 = vpop.permute.xlu1 %3238  ;;  %3236 = vrot.lane.b32.xlu0 %v3224_v54, %s5542_s15  ;;  %v3511_v54 = vpop.permute.xlu0 %3510  ;;  %v2867_v56 = vmul.f32 %v8836_v27, %v11626_v7 }
 0x4c5   : > { %3186 = vrot.lane.b32.xlu1 %v3171_v53, %s5541_s14  ;;  %v3125_v53 = vpack.c.b16 %v3111_v25, %v3110_v21  ;;  %v3211_v46 = vunpack.c.l.b16 %v2987_v0  ;;  %v3210_v25 = vunpack.c.l.b16 %v2986_v1  ;;  %v11628_v1 = vld [vmem:[#allocation75_spill] sm:$0xff] }
 0x4c6   : > { %3242 = vrot.lane.b32.xlu2 %v11615_v6, %s5542_s15  ;;  %v8963_v29 = vpop.permute.xlu2 %2553  ;;  %v3058_v6 = vpack.c.bf16 %v2786_v36, %v2786_v36 }
 0x4c7   : > { %11616 = vst [vmem:[#allocation68_spill] sm:$0xff] %v8963_v29 }
 0x4c8   : > { %v3442_v34 = vunpack.c.l.b16 %v3058_v6  ;;  %v3075_v6 = vpack.c.bf16 %v2867_v56, %v2867_v56  ;;  %v11629_v56 = vld [vmem:[#allocation74_spill] sm:$0xff] }
 0x4ca   : > { %v3451_v14 = vpack.c.b16 %v3443_v10, %v3442_v34 }
 0x4cc   : > { %v3175_v38 = vpop.permute.xlu1 %3174 }
 0x4cd   : > { %v3586_v58 = vsel %vm3580_vm6, %v3125_v53, %v3175_v38  ;;  %3354 = vrot.lane.b32.xlu1 %v11625_v26, %s5547_s24  ;;  %v2866_v38 = vmul.f32 %v8579_v15, %v11601_v62  ;;  %v3223_v53 = vpack.c.b16 %v3211_v46, %v3210_v25  ;;  %v2779_v26 = vmul.f32 %v8839_v13, %v11628_v1  ;;  %v11630_v25 = vld [vmem:[#allocation70_spill] sm:$0xff] }
 0x4ce   : > { %3178 = vrot.lane.b32.xlu2 %v11622_v40, %s5541_s14  ;;  %v3399_v48 = vpop.permute.xlu2 %3398  ;;  %v3609_v36 = vsel %vm3605_vm7, %v3586_v58, %v8878_v22  ;;  %v2589_v46 = vmul.f32 %v8963_v29, %v11629_v56  ;;  %v11638_v56 = vld [vmem:[#allocation7_spill] sm:$0xff] }
 0x4cf   : > { %v3626_v40 = vsel %vm3622_vm8, %v3609_v36, %v3287_v60  ;;  %v3074_v58 = vpack.c.bf16 %v2866_v38, %v2866_v38  ;;  %v11627_v60 = vld [vmem:[#allocation77_spill] sm:$0xff]  ;;  %v3617_v36 = vsel %vm3605_vm7, %v8808_v9, %v3239_v49  ;;  %v11631_v38 = vld [vmem:[#allocation82_spill] sm:$0xff]  ;;  %v11689_v29 = vld [vmem:[#allocation143_spill] sm:$0xff] }
 0x4d0   : > { %v3643_v21 = vsel %vm3639_vm9, %v3626_v40, %v8929_v63  ;;  %v2778_v5 = vmul.f32 %v8893_v43, %v11627_v60  ;;  %v3567_v63 = vpop.permute.xlu0 %3566  ;;  %v3634_v40 = vsel %vm3622_vm8, %v3617_v36, %v8899_v41  ;;  %v3005_v49 = vpack.c.bf16 %v2589_v46, %v2589_v46  ;;  %v11639_v46 = vld [vmem:[#allocation14_spill] sm:$0xff] }
 0x4d1   : > { %v3660_v4 = vsel %vm3656_vm10, %v3643_v21, %v3399_v48  ;;  %v3499_v48 = vunpack.c.l.b16 %v3075_v6  ;;  %v3498_v10 = vunpack.c.l.b16 %v3074_v58  ;;  %v3051_v21 = vpack.c.bf16 %v2779_v26, %v2779_v26 }
 0x4d2   : > { %v3050_v7 = vpack.c.bf16 %v2778_v5, %v2778_v5  ;;  %v3651_v6 = vsel %vm3639_vm9, %v3634_v40, %v8853_v3  ;;  %v11640_v40 = vpack.c.b16 %v11638_v56, %v11639_v46 }
 0x4d3   : > { %v3435_v41 = vunpack.c.l.b16 %v3051_v21  ;;  %v3668_v58 = vsel %vm3656_vm10, %v3651_v6, %v8918_v28 }
 0x4d4   : > { %v3463_v0 = vpop.permute.xlu1 %3462  ;;  %v3434_v9 = vunpack.c.l.b16 %v3050_v7 }
 0x4d5   : > { %3234 = vrot.lane.b32.xlu1 %v3223_v53, %s5542_s15  ;;  %v11634_v53 = vld [vmem:[#allocation92_spill] sm:$0xff] }
 0x4d6   : > { %3466 = vrot.lane.b32.xlu2 %v3451_v14, %s5544_s18  ;;  %v3455_v22 = vpop.permute.xlu2 %3454  ;;  %v11632_v14 = vpack.c.b16 %v11630_v25, %v11631_v38  ;;  %v3447_v5 = vpack.c.b16 %v3435_v41, %v3434_v9  ;;  %v11643_v25 = vld [vmem:[#allocation100_spill] sm:$0xff] }
 0x4d7   : > { %v3677_v59 = vsel %vm3673_vm11, %v3660_v4, %v3455_v22 }
 0x4d8   : > { %v3694_v62 = vsel %vm3690_vm12, %v3677_v59, %v3511_v54  ;;  %v3507_v54 = vpack.c.b16 %v3499_v48, %v3498_v10  ;;  %v11636_v10 = vpack.c.b16 %v8887_v16, %v8889_v32  ;;  %v11644_v32 = vpack.c.b16 %v8951_v8, %v8955_v23  ;;  %v11649_v23 = vld [vmem:[#allocation97_spill] sm:$0xff] }
 0x4d9   : > { %v3711_v34 = vsel %vm3707_vm13, %v3694_v62, %v3567_v63  ;;  %v3269_v63 = vunpack.c.l.b16 %v3005_v49  ;;  %v3685_v62 = vsel %vm3673_vm11, %v3668_v58, %v3463_v0  ;;  %v11637_v0 = vld [vmem:[#allocation80_spill] sm:$0xff] }
 0x4da   : > { %5268 = vmatmul.msk.bf16.gmra.mxu0 %vm3764_vm14, %v3711_v34  ;;  %v3702_v36 = vsel %vm3690_vm12, %v3685_v62, %v8903_v2  ;;  %v2700_v7 = vmul.f32 %v8953_v57, %v11637_v0 }
 0x4dc   : > { %v9014_v4 = vpop.permute.xlu1 %2549  ;;  %v3036_v2 = vpack.c.bf16 %v2700_v7, %v2700_v7 }
 0x4dd   : > { %11633 = vst [vmem:[#allocation59_spill] sm:$0xff] %v9014_v4  ;;  %v2588_v22 = vmul.f32 %v9014_v4, %v11634_v53  ;;  %3522 = vrot.lane.b32.xlu1 %v3507_v54, %s5545_s10  ;;  %v11645_v53 = vld [vmem:[#allocation90_spill] sm:$0xff] }
 0x4de   : > { %3346 = vrot.lane.b32.xlu2 %v11632_v14, %s5547_s24  ;;  %v9024_v48 = vpop.permute.xlu2 %2745  ;;  %v3380_v14 = vunpack.c.l.b16 %v3036_v2 }
 0x4df   : > { %v3004_v59 = vpack.c.bf16 %v2588_v22, %v2588_v22  ;;  %11635 = vst [vmem:[#allocation116_spill] sm:$0xff] %v9024_v48  ;;  %v2781_v49 = vmul.f32 %v9024_v48, %v11562_v19  ;;  %v11646_v22 = vld [vmem:[#allocation91_spill] sm:$0xff]  ;;  %v3185_v19 = vpop.permute.xlu0 %3184 }
 0x4e0   : > { %v11647_v41 = vpack.c.b16 %v11645_v53, %v11646_v22  ;;  %v11657_v22 = vld [vmem:[#allocation27_spill] sm:$0xff] }
 0x4e1   : > { %v3268_v34 = vunpack.c.l.b16 %v3004_v59  ;;  %v3053_v8 = vpack.c.bf16 %v2781_v49, %v2781_v49 }
 0x4e3   : > { %v3280_v26 = vpack.c.b16 %v3269_v63, %v3268_v34  ;;  %v3437_v62 = vunpack.c.l.b16 %v3053_v8 }
 0x4e4   : > { %v3575_v3 = vpop.permute.xlu1 %3574 }
 0x4e5   : > { %3402 = vrot.lane.b32.xlu1 %v11636_v10, %s5548_s12  ;;  %v3719_v28 = vsel %vm3707_vm13, %v3702_v36, %v3575_v3  ;;  %v11651_v3 = vld [vmem:[#allocation18_spill] sm:$0xff] }
 0x4e6   : > { %3458 = vrot.lane.b32.xlu2 %v3447_v5, %s5544_s18  ;;  %5272 = vmatmul.msk.bf16.vlgmr.msra.gmra.mxu3 %vm3764_vm14, %v3719_v28 }
 0x4e7   : > { %v9043_v21 = vpop.permute.xlu2 %2825 }
 0x4e8   : > { %11642 = vst [vmem:[#allocation128_spill] sm:$0xff] %v9043_v21  ;;  %v2861_v36 = vmul.f32 %v9043_v21, %v11651_v3 }
 0x4ea   : > { %v3069_v0 = vpack.c.bf16 %v2861_v36, %v2861_v36 }
 0x4ec   : > { %v9041_v54 = vpop.permute.xlu1 %2665 }
 0x4ed   : > { %11641 = vst [vmem:[#allocation129_spill] sm:$0xff] %v9041_v54  ;;  %v2701_v16 = vmul.f32 %v9041_v54, %v11643_v25  ;;  %3570 = vrot.lane.b32.xlu1 %v11644_v32, %s5546_s23  ;;  %v3353_v25 = vpop.permute.xlu0 %3352  ;;  %v11685_v54 = vld [vmem:[#allocation140_spill] sm:$0xff] }
 0x4ee   : > { %3180 = vrot.lane.b32.xlu2 %v11640_v40, %s5541_s14  ;;  %v3493_v40 = vunpack.c.l.b16 %v3069_v0 }
 0x4ef   : > { %v3037_v38 = vpack.c.bf16 %v2701_v16, %v2701_v16  ;;  %v11654_v16 = vld [vmem:[#allocation35_spill] sm:$0xff] }
 0x4f0   : > { %v9063_v5 = vpop.permute.xlu2 %2905 }
 0x4f1   : > { %v3381_v9 = vunpack.c.l.b16 %v3037_v38  ;;  %11650 = vst [vmem:[#allocation41_spill] sm:$0xff] %v9063_v5  ;;  %v2941_v32 = vmul.f32 %v9063_v5, %v11654_v16  ;;  %v11659_v16 = vld [vmem:[#allocation54_spill] sm:$0xff] }
 0x4f3   : > { %v3392_v6 = vpack.c.b16 %v3381_v9, %v3380_v14  ;;  %v11655_v14 = vld [vmem:[#allocation66_spill] sm:$0xff] }
 0x4f4   : > { %v2257_v9 = vmul.f32 %v11655_v14, %v11586_v39  ;;  %v11690_v14 = vld [vmem:[#allocation146_spill] sm:$0xff] }
 0x4f5   : > { %v9057_v59 = vpop.permute.xlu1 %2741  ;;  %3404 = vrot.lane.b32.xlu0 %v3392_v6, %s5548_s12  ;;  %3292 = vrot.lane.b32.xlu1 %v3280_v26, %s5543_s29  ;;  %v11653_v26 = vld [vmem:[#allocation21_spill] sm:$0xff]  ;;  %v3085_v6 = vpack.c.bf16 %v2941_v32, %v2941_v32  ;;  %v2249_v32 = vmul.f32 %v11659_v16, %v11595_v24 }
 0x4f6   : > { %3348 = vrot.lane.b32.xlu2 %v11647_v41, %s5547_s24  ;;  %11648 = vst [vmem:[#allocation55_spill] sm:$0xff] %v9057_v59  ;;  %v2780_v58 = vmul.f32 %v9057_v59, %v11649_v23  ;;  %v11658_v41 = vld [vmem:[#allocation51_spill] sm:$0xff]  ;;  %v11680_v59 = vld [vmem:[#allocation141_spill] sm:$0xff] }
 0x4f7   : > { %v2256_v8 = vmul.f32 %v11658_v41, %v11657_v22  ;;  %v11695_v41 = vld [vmem:[#allocation126_spill] sm:$0xff] }
 0x4f8   : > { %v3052_v63 = vpack.c.bf16 %v2780_v58, %v2780_v58  ;;  %v3297_v56 = vpop.permute.xlu2 %3296 }
 0x4f9   : > { %v2960_v36 = vpack.c.bf16 %v2256_v8, %v2256_v8 }
 0x4fa   : > { %v3436_v34 = vunpack.c.l.b16 %v3052_v63  ;;  %v2961_v63 = vpack.c.bf16 %v2257_v9, %v2257_v9 }
 0x4fc   : > { %v3448_v10 = vpack.c.b16 %v3437_v62, %v3436_v34  ;;  %v3549_v34 = vunpack.c.l.b16 %v3085_v6  ;;  %v3121_v39 = vunpack.c.l.b16 %v2961_v63  ;;  %v11660_v6 = vld [vmem:[#allocation39_spill] sm:$0xff] }
 0x4fe   : > { %v9067_v28 = vpop.permute.xlu1 %2821  ;;  %3460 = vrot.lane.b32.xlu1 %v3448_v10, %s5544_s18  ;;  %v3233_v10 = vpop.permute.xlu0 %3232 }
 0x4ff   : > { %11652 = vst [vmem:[#allocation46_spill] sm:$0xff] %v9067_v28  ;;  %v2860_v7 = vmul.f32 %v9067_v28, %v11653_v26 }
 0x500   : > { %v3409_v62 = vpop.permute.xlu2 %3408 }
 0x501   : > { %v3068_v46 = vpack.c.bf16 %v2860_v7, %v2860_v7  ;;  %v3120_v7 = vunpack.c.l.b16 %v2960_v36 }
 0x503   : > { %v3492_v2 = vunpack.c.l.b16 %v3068_v46  ;;  %v3130_v46 = vpack.c.b16 %v3121_v39, %v3120_v7 }
 0x505   : > { %v3504_v38 = vpack.c.b16 %v3493_v40, %v3492_v2  ;;  %v3601_v40 = vsel %vm3580_vm6, %v3130_v46, %v3185_v19 }
 0x506   : > { %v3521_v9 = vpop.permute.xlu0 %3520 }
 0x507   : > { %v9076_v49 = vpop.permute.xlu1 %2901  ;;  %3516 = vrot.lane.b32.xlu2 %v3504_v38, %s5545_s10 }
 0x508   : > { %11656 = vst [vmem:[#allocation72_spill] sm:$0xff] %v9076_v49  ;;  %v2940_v53 = vmul.f32 %v9076_v49, %v11599_v55  ;;  %v3289_v55 = vpop.permute.xlu2 %3288 }
 0x50a   : > { %v3084_v58 = vpack.c.bf16 %v2940_v53, %v2940_v53  ;;  %v11661_v53 = vld [vmem:[#allocation45_spill] sm:$0xff] }
 0x50b   : > { %v2248_v22 = vmul.f32 %v11661_v53, %v11660_v6 }
 0x50c   : > { %v3548_v3 = vunpack.c.l.b16 %v3084_v58  ;;  %v2953_v58 = vpack.c.bf16 %v2249_v32, %v2249_v32 }
 0x50e   : > { %v3560_v0 = vpack.c.b16 %v3549_v34, %v3548_v3  ;;  %v2952_v34 = vpack.c.bf16 %v2248_v22, %v2248_v22  ;;  %v3113_v3 = vunpack.c.l.b16 %v2953_v58  ;;  %v3401_v7 = vpop.permute.xlu0 %3400 }
 0x50f   : > { %v3241_v26 = vpop.permute.xlu1 %3240 }
 0x510   : > { %3572 = vrot.lane.b32.xlu0 %v3560_v0, %s5546_s23  ;;  %v3619_v2 = vsel %vm3605_vm7, %v3601_v40, %v3241_v26  ;;  %v3577_v36 = vpop.permute.xlu2 %3576  ;;  %v3112_v26 = vunpack.c.l.b16 %v2952_v34 }
 0x511   : > { %v3636_v8 = vsel %vm3622_vm8, %v3619_v2, %v3297_v56 }
 0x512   : > { %v3653_v63 = vsel %vm3639_vm9, %v3636_v8, %v3353_v25  ;;  %v3126_v40 = vpack.c.b16 %v3113_v3, %v3112_v26 }
 0x513   : > { %v3670_v0 = vsel %vm3656_vm10, %v3653_v63, %v3409_v62 }
 0x516   : > { %v3569_v62 = vpop.permute.xlu0 %3568 }
 0x517   : > { %v3177_v38 = vpop.permute.xlu1 %3176 }
 0x518   : > { %v3589_v56 = vsel %vm3580_vm6, %v3126_v40, %v3177_v38  ;;  %v3513_v32 = vpop.permute.xlu2 %3512 }
 0x519   : > { %v3611_v2 = vsel %vm3605_vm7, %v3589_v56, %v3233_v10  ;;  %v11662_v10 = vld [vmem:[#allocation94_spill] sm:$0xff] }
 0x51a   : > { %v3628_v6 = vsel %vm3622_vm8, %v3611_v2, %v3289_v55  ;;  %v2258_v38 = vmul.f32 %v11662_v10, %v11585_v12  ;;  %v11663_v55 = vld [vmem:[#allocation52_spill] sm:$0xff] }
 0x51b   : > { %v11665_v12 = vld [vmem:[#allocation28_spill] sm:$0xff] }
 0x51f   : > { %v3465_v19 = vpop.permute.xlu1 %3464 }
 0x520   : > { %v3687_v39 = vsel %vm3673_vm11, %v3670_v0, %v3465_v19  ;;  %v3243_v3 = vpop.permute.xlu2 %3242  ;;  %v3299_v19 = vpop.permute.xlu0 %3298 }
 0x521   : > { %v3704_v24 = vsel %vm3690_vm12, %v3687_v39, %v3521_v9  ;;  %v2962_v39 = vpack.c.bf16 %v2258_v38, %v2258_v38 }
 0x522   : > { %v3721_v46 = vsel %vm3707_vm13, %v3704_v24, %v3577_v36  ;;  %v2259_v36 = vmul.f32 %v11663_v55, %v11617_v20  ;;  %v11676_v55 = vld [vmem:[#allocation110_spill] sm:$0xff] }
 0x523   : > { %5273 = vmatmul.msk.bf16.gmra.mxu3 %vm3764_vm14, %v3721_v46  ;;  %v3122_v24 = vunpack.c.l.b16 %v2962_v39 }
 0x524   : > { %v2963_v26 = vpack.c.bf16 %v2259_v36, %v2259_v36 }
 0x526   : > { %v3123_v46 = vunpack.c.l.b16 %v2963_v26 }
 0x527   : > { %v3345_v25 = vpop.permute.xlu1 %3344 }
 0x528   : > { %v3645_v22 = vsel %vm3639_vm9, %v3628_v6, %v3345_v25  ;;  %v3411_v56 = vpop.permute.xlu0 %3410  ;;  %v3131_v25 = vpack.c.b16 %v3123_v46, %v3122_v24 }
 0x529   : > { %v3662_v9 = vsel %vm3656_vm10, %v3645_v22, %v3401_v7  ;;  %v3179_v7 = vpop.permute.xlu2 %3178 }
 0x52f   : > { %v3457_v8 = vpop.permute.xlu1 %3456 }
 0x530   : > { %v3679_v58 = vsel %vm3673_vm11, %v3662_v9, %v3457_v8 }
 0x531   : > { %v3696_v63 = vsel %vm3690_vm12, %v3679_v58, %v3513_v32  ;;  %v11664_v32 = vld [vmem:[#allocation63_spill] sm:$0xff]  ;;  %v3467_v8 = vpop.permute.xlu2 %3466  ;;  %v3291_v58 = vpop.permute.xlu0 %3290 }
 0x532   : > { %v3713_v34 = vsel %vm3707_vm13, %v3696_v63, %v3569_v62  ;;  %v2251_v6 = vmul.f32 %v11664_v32, %v11627_v60  ;;  %v2250_v62 = vmul.f32 %v11665_v12, %v11593_v31 }
 0x533   : > { %5269 = vmatmul.msk.bf16.gmra.mxu0 %vm3764_vm14, %v3713_v34 }
 0x534   : > { %v2955_v22 = vpack.c.bf16 %v2251_v6, %v2251_v6  ;;  %v2954_v34 = vpack.c.bf16 %v2250_v62, %v2250_v62 }
 0x536   : > { %v3115_v36 = vunpack.c.l.b16 %v2955_v22  ;;  %v3114_v39 = vunpack.c.l.b16 %v2954_v34 }
 0x537   : > { %v3187_v0 = vpop.permute.xlu1 %3186 }
 0x538   : > { %v3604_v2 = vsel %vm3580_vm6, %v3131_v25, %v3187_v0  ;;  %v3127_v26 = vpack.c.b16 %v3115_v36, %v3114_v39  ;;  %v11667_v36 = vld [vmem:[#allocation24_spill] sm:$0xff] }
 0x539   : > { %v3621_v20 = vsel %vm3605_vm7, %v3604_v2, %v3243_v3  ;;  %v3579_v31 = vpop.permute.xlu0 %3578  ;;  %v3347_v25 = vpop.permute.xlu2 %3346 }
 0x53a   : > { %v3638_v63 = vsel %vm3622_vm8, %v3621_v20, %v3299_v19  ;;  %v3592_v46 = vsel %vm3580_vm6, %v3127_v26, %v3179_v7 }
 0x53f   : > { %v3355_v40 = vpop.permute.xlu1 %3354 }
 0x540   : > { %v3655_v38 = vsel %vm3639_vm9, %v3638_v63, %v3355_v40 }
 0x541   : > { %v3672_v0 = vsel %vm3656_vm10, %v3655_v38, %v3411_v56  ;;  %v3459_v20 = vpop.permute.xlu2 %3458 }
 0x542   : > { %v3689_v24 = vsel %vm3673_vm11, %v3672_v0, %v3467_v8  ;;  %v3515_v8 = vpop.permute.xlu0 %3514  ;;  %v2253_v0 = vmul.f32 %v11667_v36, %v11649_v23 }
 0x544   : > { %v2957_v26 = vpack.c.bf16 %v2253_v0, %v2253_v0 }
 0x547   : > { %v3235_v9 = vpop.permute.xlu1 %3234 }
 0x548   : > { %v3613_v19 = vsel %vm3605_vm7, %v3592_v46, %v3235_v9  ;;  %v11666_v9 = vld [vmem:[#allocation58_spill] sm:$0xff] }
 0x549   : > { %v3630_v40 = vsel %vm3622_vm8, %v3613_v19, %v3291_v58  ;;  %v2252_v38 = vmul.f32 %v11666_v9, %v11628_v1  ;;  %v9134_v58 = vpop.f32.mrf.mxu0 }
 0x54a   : > { %v3647_v6 = vsel %vm3639_vm9, %v3630_v40, %v3347_v25  ;;  %v3237_v46 = vpop.permute.xlu0 %3236 }
 0x54b   : > { %v2956_v39 = vpack.c.bf16 %v2252_v38, %v2252_v38 }
 0x54f   : > { %v3523_v60 = vpop.permute.xlu1 %3522 }
 0x550   : > { %v3706_v3 = vsel %vm3690_vm12, %v3689_v24, %v3523_v60  ;;  %v3116_v60 = vunpack.c.l.b16 %v2956_v39  ;;  %v3181_v24 = vpop.permute.xlu2 %3180 }
 0x551   : > { %v3723_v2 = vsel %vm3707_vm13, %v3706_v3, %v3579_v31  ;;  %v3117_v31 = vunpack.c.l.b16 %v2957_v26  ;;  %v3796_v3 = vpop.f32.mrf.mxu0 }
 0x552   : > { %5274 = vmatmul.msk.bf16.gmra.mxu3 %vm3764_vm14, %v3723_v2 }
 0x553   : > { %v3128_v25 = vpack.c.b16 %v3117_v31, %v3116_v60 }
 0x555   : > { %v3595_v19 = vsel %vm3580_vm6, %v3128_v25, %v3181_v24 }
 0x556   : > { %v3615_v40 = vsel %vm3605_vm7, %v3595_v19, %v3237_v46 }
 0x557   : > { %v3403_v56 = vpop.permute.xlu1 %3402 }
 0x558   : > { %v3664_v62 = vsel %vm3656_vm10, %v3647_v6, %v3403_v56  ;;  %v3349_v56 = vpop.permute.xlu2 %3348 }
 0x559   : > { %v3681_v22 = vsel %vm3673_vm11, %v3664_v62, %v3459_v20  ;;  %v3799_v6 = vpop.f32.mrf.mxu0 }
 0x55a   : > { %v3698_v7 = vsel %vm3690_vm12, %v3681_v22, %v3515_v8  ;;  %v9146_v8 = vld [vmem:[%s10676_s5] ss:$0 sm:$0xff] }
 0x55b   : > { %v3797_v39 = vadd.f32 %v9146_v8, %v3796_v3 }
 0x55d   : > { %v3835_v31 = vmul.f32 0.2, %v3797_v39 }
 0x55f   : > { %v3571_v63 = vpop.permute.xlu1 %3570 }
 0x560   : > { %v3715_v34 = vsel %vm3707_vm13, %v3698_v7, %v3571_v63  ;;  %v3800_v7 = vadd.f32 %v9146_v8, %v3799_v6 }
 0x561   : > { %5270 = vmatmul.msk.bf16.gmra.mxu0 %vm3764_vm14, %v3715_v34  ;;  %v3517_v34 = vpop.permute.xlu2 %3516  ;;  %v3801_v60 = vpop.f32.mrf.mxu0 }
 0x562   : > { %v3836_v24 = vmul.f32 0.2, %v3800_v7  ;;  %v3802_v46 = vadd.f32 %v9146_v8, %v3801_v60 }
 0x564   : > { %v9155_v25 = vmax.f32 %v3800_v7, %v3836_v24  ;;  %v3837_v19 = vmul.f32 0.2, %v3802_v46 }
 0x566   : > { %v11684_v5 = vrot.slane %v9155_v25, 1 }
 0x567   : > { %v3293_v2 = vpop.permute.xlu1 %3292  ;;  %v3405_v62 = vpop.permute.xlu0 %3404 }
 0x568   : > { %v3632_v1 = vsel %vm3622_vm8, %v3615_v40, %v3293_v2  ;;  %v9157_v2 = vmax.f32 %v3797_v39, %v3835_v31  ;;  %v3795_v31 = vadd.f32 %v9146_v8, %v9134_v58 }
 0x569   : > { %v3649_v23 = vsel %vm3639_vm9, %v3632_v1, %v3349_v56  ;;  %v3819_v40 = vpop.f32.mrf.mxu3  ;;  %v3868_v1 = vrot.slane %v9155_v25, 3  ;;  %v9160_v56 = vmax.f32 %v3802_v46, %v3837_v19 }
 0x56a   : > { %v3666_v22 = vsel %vm3656_vm10, %v3649_v23, %v3405_v62  ;;  %v3867_v3 = vrot.slane %v9157_v2, 3  ;;  %v3820_v7 = vadd.f32 %v9146_v8, %v3819_v40  ;;  %v4219_v16 = vpack.c.bf16 %v9157_v2, %v9157_v2 }
 0x56b   : > { %v10928_v23 = vrot.slane %v9160_v56, 3  ;;  %v11694_v18 = vrot.slane %v9157_v2, 5 }
 0x56c   : > { %v9165_v62 = vsel %vm425_vm0, %v3867_v3, %v3868_v1  ;;  %v9284_v43 = vunpack.c.l.b16 %v4219_v16 }
 0x56d   : > { %v4107_v17 = vmul.f32 %v9165_v62, %v11698_v52 }
 0x570   : > { %v3461_v20 = vpop.permute.xlu1 %3460 }
 0x571   : > { %v3683_v63 = vsel %vm3673_vm11, %v3666_v22, %v3461_v20  ;;  %v3900_v20 = vmul.f32 %v9165_v62, %v11610_v42  ;;  %v9174_v22 = vsel %vm425_vm0, %v3868_v1, %v10928_v23  ;;  %v3834_v23 = vmul.f32 0.2, %v3795_v31 }
 0x572   : > { %v3700_v0 = vsel %vm3690_vm12, %v3683_v63, %v3517_v34  ;;  %v3821_v63 = vpop.f32.mrf.mxu3  ;;  %v3901_v34 = vmul.f32 %v9174_v22, %v11611_v35 }
 0x574   : > { %v4157_v39 = vpack.c.bf16 %v3901_v34, %v3901_v34 }
 0x576   : > { %v9180_v60 = vunpack.c.l.b16 %v4157_v39 }
 0x578   : > { %11669 = vst [vmem:[#allocation26_spill] sm:$0xff] %v9180_v60  ;;  %v11678_v60 = vld [vmem:[#allocation127_spill] sm:$0xff] }
 0x582   : > { %v3573_v38 = vpop.permute.xlu0 %3572 }
 0x583   : > { %v3717_v26 = vsel %vm3707_vm13, %v3700_v0, %v3573_v38  ;;  %v4156_v38 = vpack.c.bf16 %v3900_v20, %v3900_v20  ;;  %v3822_v0 = vadd.f32 %v9146_v8, %v3821_v63 }
 0x584   : > { %5271 = vmatmul.msk.bf16.gmra.mxu0 %vm3764_vm14, %v3717_v26  ;;  %v3844_v26 = vmul.f32 0.2, %v3820_v7 }
 0x585   : > { %v9182_v42 = vunpack.c.l.b16 %v4156_v38  ;;  %v3845_v24 = vmul.f32 0.2, %v3822_v0 }
 0x586   : > { %v9186_v46 = vmax.f32 %v3820_v7, %v3844_v26 }
 0x587   : > { %11670 = vst [vmem:[#allocation61_spill] sm:$0xff] %v9182_v42  ;;  %v9188_v19 = vmax.f32 %v3822_v0, %v3845_v24 }
 0x588   : > { %v4228_v35 = vpack.c.bf16 %v9186_v46, %v9186_v46  ;;  %v10929_v40 = vrot.slane %v9186_v46, 5  ;;  %v10931_v1 = vrot.slane %v9186_v46, 4  ;;  %v10933_v7 = vrot.slane %v9186_v46, 7 }
 0x589   : > { %v4229_v20 = vpack.c.bf16 %v9188_v19, %v9188_v19  ;;  %v10930_v63 = vrot.slane %v9188_v19, 5  ;;  %v10932_v34 = vrot.slane %v9188_v19, 4  ;;  %v10934_v38 = vrot.slane %v9188_v19, 7 }
 0x58a   : > { %v9200_v0 = vunpack.c.l.b16 %v4228_v35 }
 0x58b   : > { %v9202_v39 = vunpack.c.l.b16 %v4229_v20  ;;  %v9210_v26 = vsel %vm603_vm2, %v10929_v40, %v10930_v63  ;;  %v9218_v24 = vsel %vm490_vm1, %v10931_v1, %v10932_v34  ;;  %v9226_v35 = vsel %vm700_vm3, %v10933_v7, %v10934_v38 }
 0x58c   : > { %v9232_v63 = vmax.f32 %v3795_v31, %v3834_v23  ;;  %v10935_v1 = vrot.slane %v9157_v2, 7  ;;  %v10938_v34 = vrot.slane %v9157_v2, 5  ;;  %v4059_v38 = vrot.slane %v9157_v2, 1 }
 0x58d   : > { %v11672_v20 = vrot.slane %v9157_v2, 4 }
 0x58e   : > { %11671 = vst [vmem:[#allocation23_spill] sm:$0xff] %v9232_v63  ;;  %v10937_v9 = vrot.slane %v9232_v63, 7  ;;  %v10936_v36 = vrot.slane %v9232_v63, 5  ;;  %v10941_v31 = vrot.slane %v9232_v63, 3  ;;  %v10943_v7 = vrot.slane %v9232_v63, 1 }
 0x58f   : > { %v11673_v12 = vrot.slane %v9232_v63, 4 }
 0x590   : > { %v4040_v58 = vsel %vm700_vm3, %v10937_v9, %v10935_v1  ;;  %v3992_v23 = vsel %vm603_vm2, %v10936_v36, %v10938_v34  ;;  %v9265_v1 = vsel %vm425_vm0, %v10941_v31, %v3867_v3  ;;  %v4088_v36 = vsel %vm797_vm4, %v10943_v7, %v4059_v38  ;;  %v11675_v34 = vld [vmem:[#allocation4_spill] sm:$0xff] }
 0x591   : > { %v3944_v10 = vsel %vm490_vm1, %v11673_v12, %v11672_v20  ;;  %11674 = vst [vmem:[#allocation86_spill] sm:$0xff] %v9265_v1  ;;  %v4043_v32 = vmul.f32 %v4040_v58, %v11675_v34  ;;  %v3995_v53 = vmul.f32 %v3992_v23, %v11676_v55  ;;  %v11677_v20 = vld [vmem:[#allocation93_spill] sm:$0xff]  ;;  %v4106_v3 = vmul.f32 %v9265_v1, %v11678_v60  ;;  %v11679_v31 = vld [vmem:[#allocation124_spill] sm:$0xff]  ;;  %v11681_v34 = vld [vmem:[#allocation139_spill] sm:$0xff] }
 0x592   : > { %v3947_v42 = vmul.f32 %v3944_v10, %v11677_v20  ;;  %v4090_v48 = vmul.f32 %v4088_v36, %v11679_v31  ;;  %v4218_v7 = vpack.c.bf16 %v9232_v63, %v9232_v63  ;;  %v4138_v27 = vmul.f32 %v3992_v23, %v11680_v59 }
 0x593   : > { %v4122_v58 = vmul.f32 %v3944_v10, %v11681_v34  ;;  %v4203_v55 = vpack.c.bf16 %v4043_v32, %v4043_v32  ;;  %v4187_v15 = vpack.c.bf16 %v3995_v53, %v3995_v53  ;;  %v4250_v21 = vpack.c.bf16 %v4106_v3, %v4106_v3 }
 0x594   : > { %v4171_v20 = vpack.c.bf16 %v3947_v42, %v3947_v42  ;;  %v4234_v28 = vpack.c.bf16 %v4090_v48, %v4090_v48  ;;  %v9287_v60 = vunpack.c.l.b16 %v4218_v7  ;;  %v4282_v36 = vpack.c.bf16 %v4138_v27, %v4138_v27 }
 0x595   : > { %v4266_v31 = vpack.c.bf16 %v4122_v58, %v4122_v58  ;;  %v10952_v1 = vrot.slane %v9186_v46, 1  ;;  %v3877_v59 = vrot.slane %v9188_v19, 3  ;;  %v9293_v10 = vunpack.c.l.b16 %v4203_v55 }
 0x596   : > { %v9295_v16 = vunpack.c.l.b16 %v4187_v15  ;;  %v10954_v42 = vrot.slane %v9186_v46, 3  ;;  %v9307_v7 = vunpack.c.l.b16 %v4171_v20  ;;  %v9309_v3 = vunpack.c.l.b16 %v4250_v21 }
 0x597   : > { %v9312_v34 = vunpack.c.l.b16 %v4234_v28  ;;  %v9314_v58 = vunpack.c.l.b16 %v4282_v36  ;;  %v4220_v28 = vpack.c.bf16 %v9155_v25, %v9155_v25  ;;  %v11683_v36 = vld [vmem:[#allocation138_spill] sm:$0xff] }
 0x598   : > { %v9324_v55 = vsel %vm425_vm0, %v10954_v42, %v3877_v59  ;;  %v4087_v42 = vsel %vm797_vm4, %v4059_v38, %v11684_v5  ;;  %v11688_v38 = vrot.slane %v9188_v19, 5 }
 0x599   : > { %v4116_v57 = vmul.f32 %v9324_v55, %v11685_v54  ;;  %v4091_v37 = vmul.f32 %v4087_v42, %v11699_v47  ;;  %v11711_v47 = vrot.slane %v9232_v63, 7 }
 0x59b   : > { %v4235_v44 = vpack.c.bf16 %v4091_v37, %v4091_v37 }
 0x5a6   : > { %v3824_v40 = vpop.f32.mrf.mxu3 }
 0x5a7   : > { %v3825_v12 = vadd.f32 %v9146_v8, %v3824_v40  ;;  %v4069_v40 = vrot.slane %v9188_v19, 1 }
 0x5a9   : > { %v3846_v13 = vmul.f32 0.2, %v3825_v12  ;;  %v4078_v27 = vsel %vm797_vm4, %v10952_v1, %v4069_v40 }
 0x5aa   : > { %v4100_v1 = vmul.f32 %v4078_v27, %v11683_v36  ;;  %v11686_v27 = vrot.slane %v9188_v19, 4 }
 0x5ab   : > { %v9299_v32 = vmax.f32 %v3825_v12, %v3846_v13  ;;  %v9316_v13 = vunpack.c.l.b16 %v4266_v31 }
 0x5ad   : > { %v10960_v53 = vrot.slane %v9299_v32, 4  ;;  %v3974_v15 = vrot.slane %v9299_v32, 5  ;;  %v11687_v49 = vrot.slane %v9299_v32, 1 }
 0x5ae   : > { %v3826_v9 = vpop.f32.mrf.mxu3 }
 0x5af   : > { %v3827_v48 = vadd.f32 %v9146_v8, %v3826_v9  ;;  %v11682_v9 = vld [vmem:[#allocation20_spill] sm:$0xff]  ;;  %v9348_v36 = vsel %vm490_vm1, %v11686_v27, %v10960_v53  ;;  %v4077_v5 = vsel %vm797_vm4, %v4069_v40, %v11687_v49  ;;  %v3981_v21 = vsel %vm603_vm2, %v11688_v38, %v3974_v15 }
 0x5b0   : > { %v4132_v12 = vmul.f32 %v9218_v24, %v11682_v9  ;;  %v9358_v54 = vpop.f32.mrf.mxu0  ;;  %v4133_v4 = vmul.f32 %v9348_v36, %v11689_v29  ;;  %v4101_v27 = vmul.f32 %v4077_v5, %v11690_v14  ;;  %v4244_v53 = vpack.c.bf16 %v4100_v1, %v4100_v1 }
 0x5b1   : > { %v3847_v31 = vmul.f32 0.2, %v3827_v48  ;;  %v11693_v38 = vrot.slane %v9155_v25, 5  ;;  %v11696_v1 = vrot.slane %v9155_v25, 4  ;;  %v11697_v5 = vrot.slane %v9157_v2, 4 }
 0x5b2   : > { %v4276_v9 = vpack.c.bf16 %v4132_v12, %v4132_v12  ;;  %v11691_v12 = vrot.slane %v9299_v32, 3 }
 0x5b3   : > { %v9369_v49 = vmax.f32 %v3827_v48, %v3847_v31  ;;  %v3991_v29 = vsel %vm603_vm2, %v11694_v18, %v11693_v38  ;;  %v4277_v48 = vpack.c.bf16 %v4133_v4, %v4133_v4  ;;  %v4245_v31 = vpack.c.bf16 %v4101_v27, %v4101_v27  ;;  %v11704_v4 = vld [vmem:[#allocation136_spill] sm:$0xff] }
 0x5b4   : > { %v9367_v45 = vsel %vm425_vm0, %v3877_v59, %v11691_v12  ;;  %v3943_v59 = vsel %vm490_vm1, %v11697_v5, %v11696_v1  ;;  %v9389_v38 = vunpack.c.l.b16 %v4276_v9  ;;  %v9400_v27 = vmul.f32 %v3991_v29, %v11704_v4  ;;  %v11708_v5 = vld [vmem:[#allocation117_spill] sm:$0xff]  ;;  %v11710_v4 = vld [vmem:[#allocation147_spill] sm:$0xff] }
 0x5b5   : > { %11692 = vst [vmem:[#allocation34_spill] sm:$0xff] %v9367_v45  ;;  %v4117_v14 = vmul.f32 %v9367_v45, %v11695_v41  ;;  %v9391_v41 = vunpack.c.l.b16 %v4277_v48  ;;  %v9393_v45 = vunpack.c.l.b16 %v4244_v53  ;;  %v9395_v33 = vunpack.c.l.b16 %v4245_v31  ;;  %v11707_v53 = vld [vmem:[#allocation145_spill] sm:$0xff]  ;;  %v11709_v31 = vld [vmem:[#allocation132_spill] sm:$0xff] }
 0x5b6   : > { %11700 = vst [vmem:[#allocation33_spill] sm:$0xff] %v9389_v38  ;;  %v4149_v42 = vmul.f32 %v3981_v21, %v11707_v53  ;;  %v4006_v48 = vmul.f32 %v3981_v21, %v11708_v5  ;;  %v4148_v53 = vmul.f32 %v9210_v26, %v11710_v4  ;;  %v11712_v5 = vrot.slane %v9232_v63, 5 }
 0x5b7   : > { %v4261_v18 = vpack.c.bf16 %v4117_v14, %v4117_v14  ;;  %11701 = vst [vmem:[#allocation119_spill] sm:$0xff] %v9391_v41  ;;  %v10985_v37 = vrot.slane %v9369_v49, 1 }
 0x5b8   : > { %11702 = vst [vmem:[#allocation78_spill] sm:$0xff] %v9393_v45  ;;  %v9459_v45 = vunpack.c.l.b16 %v4220_v28 }
 0x5b9   : > { %11703 = vst [vmem:[#allocation114_spill] sm:$0xff] %v9395_v33  ;;  %v9403_v1 = vunpack.c.l.b16 %v4261_v18  ;;  %v11720_v33 = vld [vmem:[#allocation112_spill] sm:$0xff] }
 0x5ba   : > { %v9462_v38 = vmul.f32 %v3991_v29, %v11720_v33 }
 0x5bb   : > { %11705 = vst [vmem:[#allocation85_spill] sm:$0xff] %v9403_v1 }
 0x5d5   : > { %v9291_v23 = vpop.f32.mrf.mxu3 }
 0x5dd   : > { %v3831_v20 = vpop.f32.mrf.mxu3 }
 0x5de   : > { %v3832_v40 = vadd.f32 %v9146_v8, %v3831_v20  ;;  %v4260_v20 = vpack.c.bf16 %v4116_v57, %v4116_v57  ;;  %v10967_v57 = vrot.slane %v9369_v49, 5 }
 0x5e0   : > { %v3849_v12 = vmul.f32 0.2, %v3832_v40  ;;  %v9409_v62 = vunpack.c.l.b16 %v4260_v20  ;;  %v9421_v18 = vsel %vm603_vm2, %v3974_v15, %v10967_v57  ;;  %v11716_v20 = vld [vmem:[#allocation64_spill] sm:$0xff] }
 0x5e1   : > { %v9450_v52 = vmul.f32 %v3943_v59, %v11716_v20  ;;  %v4198_v20 = vpack.c.bf16 %v4006_v48, %v4006_v48 }
 0x5e2   : > { %v9397_v30 = vmax.f32 %v3832_v40, %v3849_v12  ;;  %11706 = vst [vmem:[#allocation16_spill] sm:$0xff] %v9409_v62  ;;  %v4123_v12 = vmul.f32 %v3943_v59, %v11709_v31  ;;  %v11714_v31 = vrot.slane %v9232_v63, 4  ;;  %v11718_v62 = vld [vmem:[#allocation108_spill] sm:$0xff]  ;;  %v4293_v63 = vpack.c.bf16 %v4149_v42, %v4149_v42 }
 0x5e4   : > { %v10966_v9 = vrot.slane %v9397_v30, 7  ;;  %v10970_v40 = vrot.slane %v9397_v30, 5  ;;  %v10976_v14 = vrot.slane %v9397_v30, 4 }
 0x5e6   : > { %v4041_v21 = vsel %vm700_vm3, %v10966_v9, %v11711_v47  ;;  %v9439_v15 = vsel %vm603_vm2, %v10970_v40, %v11712_v5  ;;  %v9447_v4 = vsel %vm490_vm1, %v10976_v14, %v11714_v31  ;;  %v9452_v47 = vpop.f32.mrf.mxu0  ;;  %v11717_v9 = vld [vmem:[#allocation130_spill] sm:$0xff]  ;;  %v11719_v5 = vld [vmem:[#allocation87_spill] sm:$0xff]  ;;  %v11721_v31 = vld [vmem:[#allocation125_spill] sm:$0xff] }
 0x5e7   : > { %11713 = vst [vmem:[#allocation30_spill] sm:$0xff] %v9439_v15  ;;  %v4042_v57 = vmul.f32 %v4041_v21, %v11717_v9  ;;  %v3994_v1 = vmul.f32 %v9439_v15, %v11718_v62  ;;  %v3946_v40 = vmul.f32 %v9447_v4, %v11719_v5  ;;  %v4007_v59 = vmul.f32 %v9421_v18, %v11721_v31 }
 0x5e8   : > { %11715 = vst [vmem:[#allocation25_spill] sm:$0xff] %v9447_v4  ;;  %v4292_v9 = vpack.c.bf16 %v4148_v53, %v4148_v53  ;;  %v4251_v21 = vpack.c.bf16 %v4107_v17, %v4107_v17  ;;  %v11722_v62 = vrot.slane %v9155_v25, 7  ;;  %v11723_v5 = vrot.slane %v9157_v2, 7 }
 0x5e9   : > { %v4202_v14 = vpack.c.bf16 %v4042_v57, %v4042_v57  ;;  %v4186_v41 = vpack.c.bf16 %v3994_v1, %v3994_v1  ;;  %v4170_v11 = vpack.c.bf16 %v3946_v40, %v3946_v40  ;;  %v4199_v42 = vpack.c.bf16 %v4007_v59, %v4007_v59 }
 0x5ea   : > { %v4039_v28 = vsel %vm700_vm3, %v11723_v5, %v11722_v62  ;;  %v9472_v4 = vunpack.c.l.b16 %v4293_v63  ;;  %v4283_v57 = vpack.c.bf16 %v9400_v27, %v9400_v27  ;;  %v9476_v1 = vunpack.c.l.b16 %v4198_v20  ;;  %v11726_v62 = vld [vmem:[#allocation131_spill] sm:$0xff] }
 0x5eb   : > { %v4466_v33 = vunpack.c.l.b16 %v4202_v14  ;;  %v4410_v29 = vunpack.c.l.b16 %v4186_v41  ;;  %v4354_v15 = vunpack.c.l.b16 %v4170_v11  ;;  %v9478_v17 = vunpack.c.l.b16 %v4199_v42 }
 0x5ec   : > { %v9484_v14 = vunpack.c.l.b16 %v4292_v9  ;;  %v4635_v11 = vunpack.c.l.b16 %v4251_v21  ;;  %v4267_v63 = vpack.c.bf16 %v4123_v12, %v4123_v12  ;;  %v4172_v41 = vpack.c.bf16 %v9450_v52, %v9450_v52 }
 0x5ed   : > { %v4482_v2 = vpack.c.b16 %v9293_v10, %v4466_v33  ;;  %v4426_v40 = vpack.c.b16 %v9295_v16, %v4410_v29  ;;  %v4370_v48 = vpack.c.b16 %v9307_v7, %v4354_v15  ;;  %v4579_v10 = vunpack.c.l.b16 %v4235_v44  ;;  %v11724_v15 = vld [vmem:[#allocation107_spill] sm:$0xff] }
 0x5ee   : > { %v9490_v53 = vpop.f32.mrf.mxu0  ;;  %v3917_v16 = vrot.slane %v9160_v56, 4  ;;  %v3958_v12 = vmul.f32 %v9348_v36, %v11724_v15  ;;  %v10982_v52 = vrot.slane %v9160_v56, 5  ;;  %v11725_v31 = vrot.slane %v9299_v32, 1 }
 0x5ef   : > { %4490 = vrot.lane.b32.xlu0 %v4482_v2, %s5543_s29  ;;  %4434 = vrot.lane.b32.xlu2 %v4426_v40, %s5542_s15  ;;  %v10984_v44 = vrot.slane %v9369_v49, 4  ;;  %v4022_v20 = vrot.slane %v9299_v32, 7  ;;  %v4747_v9 = vunpack.c.l.b16 %v4283_v57  ;;  %v4188_v36 = vpack.c.bf16 %v9462_v38, %v9462_v38 }
 0x5f0   : > { %4378 = vrot.lane.b32.xlu1 %v4370_v48, %s5541_s14  ;;  %v9507_v59 = vsel %vm797_vm4, %v11725_v31, %v10985_v37  ;;  %v10986_v21 = vrot.slane %v9160_v56, 7  ;;  %v9515_v5 = vmul.f32 %v4039_v28, %v11726_v62  ;;  %v4691_v42 = vunpack.c.l.b16 %v4267_v63  ;;  %v11728_v28 = vld [vmem:[#allocation103_spill] sm:$0xff] }
 0x5f1   : > { %v4221_v33 = vpack.c.bf16 %v9160_v56, %v9160_v56  ;;  %v11727_v29 = vrot.slane %v9299_v32, 4  ;;  %v10983_v57 = vrot.slane %v9369_v49, 7  ;;  %v4650_v38 = vpack.c.b16 %v4635_v11, %v9309_v3 }
 0x5f2   : > { %v4594_v40 = vpack.c.b16 %v4579_v10, %v9312_v34  ;;  %v4182_v63 = vpack.c.bf16 %v3958_v12, %v3958_v12  ;;  %v11729_v15 = vrot.slane %v9155_v25, 4  ;;  %v11730_v62 = vrot.slane %v9155_v25, 5 }
 0x5f3   : > { %v9525_v2 = vsel %vm490_vm1, %v11727_v29, %v10984_v44  ;;  %v4028_v34 = vsel %vm700_vm3, %v4022_v20, %v10983_v57  ;;  %v11731_v11 = vrot.slane %v9188_v19, 7  ;;  %v3805_v12 = vadd.f32 %v9146_v8, %v9358_v54  ;;  %v11733_v19 = vld [vmem:[#allocation47_spill] sm:$0xff]  ;;  %v11735_v54 = vld [vmem:[#allocation96_spill] sm:$0xff] }
 0x5f4   : > { %v3959_v48 = vmul.f32 %v9525_v2, %v11728_v28  ;;  %v3942_v31 = vsel %vm490_vm1, %v11729_v15, %v3917_v16  ;;  %v3990_v3 = vsel %vm603_vm2, %v11730_v62, %v10982_v52  ;;  %v11732_v29 = vrot.slane %v9155_v25, 7  ;;  %v11736_v44 = vld [vmem:[#allocation83_spill] sm:$0xff] }
 0x5f5   : > { %v4029_v10 = vsel %vm700_vm3, %v11731_v11, %v4022_v20  ;;  %v10989_v15 = vrot.slane %v9160_v56, 1  ;;  %v4762_v7 = vpack.c.b16 %v4747_v9, %v9314_v58  ;;  %v9562_v27 = vunpack.c.l.b16 %v4172_v41  ;;  %v11734_v20 = vld [vmem:[#allocation150_spill] sm:$0xff]  ;;  %v11740_v9 = vld [vmem:[#allocation133_spill] sm:$0xff] }
 0x5f6   : > { %v4038_v28 = vsel %vm700_vm3, %v11732_v29, %v10986_v21  ;;  %v4183_v62 = vpack.c.bf16 %v3959_v48, %v3959_v48  ;;  %v4054_v52 = vmul.f32 %v4029_v10, %v11733_v19  ;;  %v4055_v11 = vmul.f32 %v4028_v34, %v11734_v20  ;;  %v9580_v10 = vpop.f32.mrf.mxu0 }
 0x5f7   : > { %4658 = vrot.lane.b32.xlu0 %v4650_v38, %s5544_s18  ;;  %4602 = vrot.lane.b32.xlu2 %v4594_v40, %s5548_s12  ;;  %v3949_v57 = vmul.f32 %v3942_v31, %v11735_v54  ;;  %v3997_v37 = vmul.f32 %v3990_v3, %v11736_v44  ;;  %v9570_v29 = vunpack.c.l.b16 %v4182_v63  ;;  %v11739_v58 = vpack.c.b16 %v9284_v43, %v9287_v60  ;;  %v11745_v54 = vld [vmem:[#allocation165_spill] sm:$0xff] }
 0x5f8   : > { %v9572_v21 = vunpack.c.l.b16 %v4183_v62  ;;  %v4706_v41 = vpack.c.b16 %v4691_v42, %v9316_v13  ;;  %v4045_v48 = vmul.f32 %v4038_v28, %v11740_v9  ;;  %v4214_v38 = vpack.c.bf16 %v4054_v52, %v4054_v52  ;;  %v11744_v62 = vld [vmem:[#allocation32_spill] sm:$0xff] }
 0x5f9   : > { %11737 = vst [vmem:[#allocation10_spill] sm:$0xff] %v9570_v29  ;;  %4546 = vrot.lane.b32.xlu1 %v11739_v58, %s5547_s24  ;;  %v4215_v34 = vpack.c.bf16 %v4055_v11, %v4055_v11  ;;  %v3838_v40 = vmul.f32 0.2, %v3805_v12  ;;  %v9582_v19 = vunpack.c.l.b16 %v4221_v33  ;;  %v11741_v44 = vrot.slane %v9155_v25, 1 }
 0x5fa   : > { %11738 = vst [vmem:[#allocation13_spill] sm:$0xff] %v9572_v21  ;;  %v9592_v60 = vunpack.c.l.b16 %v4188_v36  ;;  %v9594_v13 = vunpack.c.l.b16 %v4214_v38  ;;  %v4230_v42 = vpack.c.bf16 %v9299_v32, %v9299_v32  ;;  %v4173_v33 = vpack.c.bf16 %v3949_v57, %v3949_v57 }
 0x5fb   : > { %v4086_v63 = vsel %vm797_vm4, %v11741_v44, %v10989_v15  ;;  %v9596_v52 = vunpack.c.l.b16 %v4215_v34  ;;  %v4189_v28 = vpack.c.bf16 %v3997_v37, %v3997_v37  ;;  %v4124_v20 = vmul.f32 %v3942_v31, %v11744_v62  ;;  %v11746_v37 = vld [vmem:[#allocation48_spill] sm:$0xff]  ;;  %v11748_v44 = vld [vmem:[#allocation101_spill] sm:$0xff] }
 0x5fc   : > { %11742 = vst [vmem:[#allocation57_spill] sm:$0xff] %v9594_v13  ;;  %v4204_v25 = vpack.c.bf16 %v9515_v5, %v9515_v5  ;;  %v4205_v11 = vpack.c.bf16 %v4045_v48, %v4045_v48  ;;  %v4092_v58 = vmul.f32 %v4086_v63, %v11745_v54  ;;  %v4231_v9 = vpack.c.bf16 %v9369_v49, %v9369_v49  ;;  %v11747_v5 = vld [vmem:[#allocation118_spill] sm:$0xff] }
 0x5fd   : > { %11743 = vst [vmem:[#allocation98_spill] sm:$0xff] %v9596_v52  ;;  %v9608_v38 = vmax.f32 %v3805_v12, %v3838_v40  ;;  %v3830_v57 = vadd.f32 %v9146_v8, %v9291_v23  ;;  %v4108_v31 = vmul.f32 %v9174_v22, %v11746_v37  ;;  %v3879_v34 = vrot.slane %v9369_v49, 3  ;;  %v11751_v40 = vld [vmem:[#allocation144_spill] sm:$0xff]  ;;  %v11779_v52 = vld [vmem:[#allocation142_spill] sm:$0xff] }
 0x5fe   : > { %v4005_v48 = vmul.f32 %v9210_v26, %v11747_v5  ;;  %v3957_v63 = vmul.f32 %v9218_v24, %v11748_v44  ;;  %v9619_v62 = vunpack.c.l.b16 %v4230_v42  ;;  %v9621_v54 = vunpack.c.l.b16 %v4231_v9  ;;  %v11753_v42 = vld [vmem:[#allocation155_spill] sm:$0xff] }
 0x5ff   : > { %4770 = vrot.lane.b32.xlu2 %v4762_v7, %s5546_s23  ;;  %v4357_v12 = vunpack.c.l.b16 %v4173_v33  ;;  %v4053_v23 = vmul.f32 %v9226_v35, %v11751_v40  ;;  %v4268_v36 = vpack.c.bf16 %v4124_v20, %v4124_v20  ;;  %v11752_v22 = vrot.slane %v9299_v32, 3 }
 0x600   : > { %11749 = vst [vmem:[#allocation95_spill] sm:$0xff] %v9619_v62  ;;  %v9633_v26 = vunpack.c.l.b16 %v4189_v28  ;;  %v4236_v24 = vpack.c.bf16 %v4092_v58, %v4092_v58  ;;  %v9636_v9 = vmul.f32 %v3990_v3, %v11753_v42  ;;  %v3848_v33 = vmul.f32 0.2, %v3830_v57 }
 0x601   : > { %11750 = vst [vmem:[#allocation109_spill] sm:$0xff] %v9621_v54  ;;  %v9630_v37 = vsel %vm425_vm0, %v11752_v22, %v3879_v34  ;;  %4714 = vrot.lane.b32.xlu1 %v4706_v41, %s5545_s10  ;;  %v9640_v35 = vpop.f32.mrf.mxu0  ;;  %v10987_v32 = vrot.slane %v9608_v38, 4  ;;  %v9643_v20 = vunpack.c.l.b16 %v4205_v11  ;;  %v4252_v5 = vpack.c.bf16 %v4108_v31, %v4108_v31 }
 0x602   : > { %v4197_v28 = vpack.c.bf16 %v4005_v48, %v4005_v48  ;;  %v4181_v44 = vpack.c.bf16 %v3957_v63, %v3957_v63  ;;  %v9647_v58 = vunpack.c.l.b16 %v4204_v25  ;;  %v3807_v3 = vadd.f32 %v9146_v8, %v9452_v47 }
 0x603   : > { %v3810_v40 = vadd.f32 %v9146_v8, %v9490_v53  ;;  %v4213_v22 = vpack.c.bf16 %v4053_v23, %v4053_v23  ;;  %v9653_v42 = vunpack.c.l.b16 %v4268_v36  ;;  %v4371_v11 = vpack.c.b16 %v4357_v12, %v9562_v27  ;;  %v11754_v12 = vld [vmem:[#allocation43_spill] sm:$0xff] }
 0x604   : > { %v9658_v7 = vunpack.c.l.b16 %v4236_v24  ;;  %v9662_v48 = vmax.f32 %v3830_v57, %v3848_v33  ;;  %v9670_v47 = vsel %vm490_vm1, %v3917_v16, %v10987_v32  ;;  %v9674_v53 = vunpack.c.l.b16 %v4252_v5  ;;  %v11755_v23 = vld [vmem:[#allocation163_spill] sm:$0xff] }
 0x605   : > { %v9676_v36 = vunpack.c.l.b16 %v4197_v28  ;;  %v9678_v63 = vunpack.c.l.b16 %v4181_v44  ;;  %v4102_v57 = vmul.f32 %v9507_v59, %v11754_v12  ;;  %v4150_v24 = vmul.f32 %v9421_v18, %v11755_v23  ;;  %v11756_v44 = vld [vmem:[#allocation151_spill] sm:$0xff]  ;;  %v11762_v59 = vld [vmem:[#allocation22_spill] sm:$0xff] }
 0x606   : > { %v3839_v33 = vmul.f32 0.2, %v3807_v3  ;;  %v3840_v43 = vmul.f32 0.2, %v3810_v40  ;;  %v9685_v16 = vunpack.c.l.b16 %v4213_v22  ;;  %v9689_v5 = vmul.f32 %v9324_v55, %v11556_v61 }
 0x607   : > { %4380 = vrot.lane.b32.xlu2 %v4371_v11, %s5541_s14  ;;  %v3812_v28 = vadd.f32 %v9146_v8, %v9580_v10  ;;  %v9695_v27 = vmul.f32 %v9670_v47, %v11756_v44  ;;  %v10988_v11 = vrot.slane %v9662_v48, 1  ;;  %v10991_v22 = vrot.slane %v9662_v48, 5 }
 0x608   : > { %v3928_v23 = vrot.slane %v9662_v48, 4  ;;  %v10994_v61 = vrot.slane %v9662_v48, 3  ;;  %v4246_v10 = vpack.c.bf16 %v4102_v57, %v4102_v57  ;;  %v4294_v32 = vpack.c.bf16 %v4150_v24, %v4150_v24 }
 0x609   : > { %v3816_v12 = vpop.f32.mrf.mxu0  ;;  %v4024_v44 = vrot.slane %v9662_v48, 7  ;;  %v11757_v31 = vrot.slane %v9369_v49, 1  ;;  %v11758_v41 = vrot.slane %v9369_v49, 5  ;;  %v11759_v57 = vrot.slane %v9369_v49, 4 }
 0x60a   : > { %v3817_v55 = vadd.f32 %v9146_v8, %v3816_v12  ;;  %v9727_v12 = vsel %vm425_vm0, %v3879_v34, %v10994_v61  ;;  %v9736_v54 = vmax.f32 %v3810_v40, %v3840_v43  ;;  %v11764_v13 = vrot.slane %v9160_v56, 1 }
 0x60b   : > { %v4075_v25 = vsel %vm797_vm4, %v11757_v31, %v10988_v11  ;;  %v9717_v18 = vsel %vm603_vm2, %v11758_v41, %v10991_v22  ;;  %v3931_v24 = vsel %vm490_vm1, %v11759_v57, %v3928_v23  ;;  %11760 = vst [vmem:[#allocation79_spill] sm:$0xff] %v9727_v12  ;;  %v11761_v11 = vld [vmem:[#allocation36_spill] sm:$0xff]  ;;  %v9734_v22 = vmax.f32 %v3807_v3, %v3839_v33 }
 0x60c   : > { %v3843_v31 = vmul.f32 0.2, %v3817_v55  ;;  %v4103_v15 = vmul.f32 %v4075_v25, %v11761_v11  ;;  %v4151_v62 = vmul.f32 %v9717_v18, %v11762_v59  ;;  %v11763_v57 = vrot.slane %v9608_v38, 1 }
 0x60d   : > { %v11765_v61 = vrot.slane %v9369_v49, 7  ;;  %v11766_v11 = vrot.slane %v9608_v38, 5  ;;  %v11767_v3 = vrot.slane %v9160_v56, 5  ;;  %v3841_v41 = vmul.f32 0.2, %v3812_v28 }
 0x60e   : > { %v4085_v34 = vsel %vm797_vm4, %v11764_v13, %v11763_v57  ;;  %v9748_v59 = vmax.f32 %v3817_v55, %v3843_v31  ;;  %v4247_v40 = vpack.c.bf16 %v4103_v15, %v4103_v15  ;;  %v4295_v33 = vpack.c.bf16 %v4151_v62, %v4151_v62 }
 0x60f   : > { %v4027_v25 = vsel %vm700_vm3, %v11765_v61, %v4024_v44  ;;  %v9756_v43 = vsel %vm603_vm2, %v11767_v3, %v11766_v11  ;;  %v11768_v49 = vpack.c.b16 %v9202_v39, %v9200_v0  ;;  %v9764_v61 = vunpack.c.l.b16 %v4246_v10  ;;  %v11771_v39 = vld [vmem:[#allocation3_spill] sm:$0xff] }
 0x610   : > { %v9766_v55 = vunpack.c.l.b16 %v4294_v32  ;;  %v10995_v31 = vrot.slane %v9748_v59, 5  ;;  %v10998_v57 = vrot.slane %v9748_v59, 4  ;;  %v11001_v15 = vrot.slane %v9748_v59, 7 }
 0x611   : > { %4556 = vrot.lane.b32.xlu2 %v11768_v49, %s5547_s24  ;;  %v9771_v62 = vunpack.c.l.b16 %v4247_v40  ;;  %v9773_v11 = vunpack.c.l.b16 %v4295_v33  ;;  %v3960_v0 = vmul.f32 %v3931_v24, %v11605_v50  ;;  %v4056_v3 = vmul.f32 %v4027_v25, %v11771_v39  ;;  %v11772_v49 = vld [vmem:[#allocation161_spill] sm:$0xff]  ;;  %v11777_v39 = vld [vmem:[#allocation122_spill] sm:$0xff] }
 0x612   : > { %11769 = vst [vmem:[#allocation106_spill] sm:$0xff] %v9766_v55  ;;  %v4134_v10 = vmul.f32 %v9525_v2, %v11772_v49  ;;  %v11773_v32 = vrot.slane %v9186_v46, 5  ;;  %v11774_v40 = vrot.slane %v9186_v46, 4  ;;  %v11776_v25 = vrot.slane %v9186_v46, 7 }
 0x613   : > { %11770 = vst [vmem:[#allocation77_spill] sm:$0xff] %v9773_v11  ;;  %v9809_v21 = vmax.f32 %v3812_v28, %v3841_v41  ;;  %v4184_v41 = vpack.c.bf16 %v3960_v0, %v3960_v0  ;;  %v4216_v55 = vpack.c.bf16 %v4056_v3, %v4056_v3 }
 0x614   : > { %v9785_v13 = vsel %vm603_vm2, %v10995_v31, %v11773_v32  ;;  %v9793_v50 = vsel %vm490_vm1, %v10998_v57, %v11774_v40  ;;  %v4031_v2 = vsel %vm700_vm3, %v11001_v15, %v11776_v25  ;;  %v11778_v32 = vld [vmem:[#allocation104_spill] sm:$0xff]  ;;  %v11780_v40 = vld [vmem:[#allocation157_spill] sm:$0xff]  ;;  %v11781_v25 = vrot.slane %v9397_v30, 4 }
 0x615   : > { %11775 = vst [vmem:[#allocation75_spill] sm:$0xff] %v9793_v50  ;;  %v4004_v49 = vmul.f32 %v9785_v13, %v11777_v39  ;;  %v3956_v31 = vmul.f32 %v9793_v50, %v11778_v32  ;;  %v4052_v29 = vmul.f32 %v4031_v2, %v11779_v52  ;;  %v4135_v57 = vmul.f32 %v3931_v24, %v11780_v40  ;;  %v11784_v40 = vld [vmem:[#allocation56_spill] sm:$0xff] }
 0x616   : > { %v9817_v15 = vsel %vm490_vm1, %v3928_v23, %v11781_v25  ;;  %v11783_v39 = vrot.slane %v9397_v30, 7  ;;  %v4278_v24 = vpack.c.bf16 %v4134_v10, %v4134_v10  ;;  %v11785_v23 = vpack.c.b16 %v9582_v19, %v9459_v45 }
 0x617   : > { %11782 = vst [vmem:[#allocation74_spill] sm:$0xff] %v9817_v15  ;;  %v4196_v33 = vpack.c.bf16 %v4004_v49, %v4004_v49  ;;  %v4180_v52 = vpack.c.bf16 %v3956_v31, %v3956_v31  ;;  %v4212_v2 = vpack.c.bf16 %v4052_v29, %v4052_v29  ;;  %v3961_v28 = vmul.f32 %v9817_v15, %v11602_v51  ;;  %v11786_v49 = vld [vmem:[#allocation149_spill] sm:$0xff] }
 0x618   : > { %v4026_v32 = vsel %vm700_vm3, %v4024_v44, %v11783_v39  ;;  %v4279_v44 = vpack.c.bf16 %v4135_v57, %v4135_v57  ;;  %v4093_v31 = vmul.f32 %v4085_v34, %v11786_v49  ;;  %v3967_v29 = vrot.slane %v9734_v22, 5 }
 0x619   : > { %v4057_v12 = vmul.f32 %v4026_v32, %v11784_v40  ;;  %4548 = vrot.lane.b32.xlu2 %v11785_v23, %s5547_s24  ;;  %v4420_v25 = vunpack.c.l.b16 %v4196_v33  ;;  %v4364_v11 = vunpack.c.l.b16 %v4180_v52  ;;  %v4476_v50 = vunpack.c.l.b16 %v4212_v2  ;;  %v11789_v2 = vld [vmem:[#allocation120_spill] sm:$0xff] }
 0x61a   : > { %v4185_v10 = vpack.c.bf16 %v3961_v28, %v3961_v28  ;;  %v11008_v32 = vrot.slane %v9734_v22, 7  ;;  %v9836_v45 = vunpack.c.l.b16 %v4184_v41  ;;  %v9840_v33 = vunpack.c.l.b16 %v4216_v55 }
 0x61b   : > { %v4217_v39 = vpack.c.bf16 %v4057_v12, %v4057_v12  ;;  %v4431_v51 = vpack.c.b16 %v9676_v36, %v4420_v25  ;;  %v4375_v0 = vpack.c.b16 %v9678_v63, %v4364_v11  ;;  %v4487_v3 = vpack.c.b16 %v9685_v16, %v4476_v50 }
 0x61c   : > { %v9838_v19 = vunpack.c.l.b16 %v4185_v10  ;;  %v9846_v12 = vunpack.c.l.b16 %v4278_v24  ;;  %v9848_v36 = vunpack.c.l.b16 %v4279_v44  ;;  %v4016_v63 = vrot.slane %v9736_v54, 7  ;;  %v11792_v10 = vld [vmem:[#allocation8_spill] sm:$0xff] }
 0x61d   : > { %v9842_v57 = vunpack.c.l.b16 %v4217_v39  ;;  %4444 = vrot.lane.b32.xlu1 %v4431_v51, %s5542_s15  ;;  %4388 = vrot.lane.b32.xlu0 %v4375_v0, %s5541_s14  ;;  %v11006_v16 = vrot.slane %v9809_v21, 7  ;;  %v11788_v34 = vrot.slane %v9608_v38, 5  ;;  %v11005_v11 = vrot.slane %v9608_v38, 3  ;;  %v11793_v51 = vld [vmem:[#allocation17_spill] sm:$0xff] }
 0x61e   : > { %11787 = vst [vmem:[#allocation70_spill] sm:$0xff] %v9846_v12  ;;  %v3998_v24 = vmul.f32 %v9756_v43, %v11789_v2  ;;  %v4035_v40 = vsel %vm700_vm3, %v11008_v32, %v4016_v63  ;;  %v11790_v23 = vpack.c.bf16 %v9695_v27, %v9695_v27  ;;  %v11791_v44 = vpack.c.bf16 %v9636_v9, %v9636_v9  ;;  %v11795_v2 = vld [vmem:[#allocation33_spill] sm:$0xff] }
 0x61f   : > { %v9858_v55 = vsel %vm603_vm2, %v11788_v34, %v3967_v29  ;;  %v4034_v41 = vsel %vm700_vm3, %v4016_v63, %v11006_v16  ;;  %v4048_v39 = vmul.f32 %v4035_v40, %v11792_v10  ;;  %v11794_v34 = vld [vmem:[#allocation119_spill] sm:$0xff]  ;;  %v4237_v52 = vpack.c.bf16 %v4093_v31, %v4093_v31  ;;  %v11797_v63 = vld [vmem:[#allocation113_spill] sm:$0xff] }
 0x620   : > { %v4693_v25 = vunpack.c.l.b16 %v11790_v23  ;;  %v9883_v49 = vunpack.c.l.b16 %v11791_v44  ;;  %v4049_v0 = vmul.f32 %v4034_v41, %v11793_v51  ;;  %v11796_v28 = vpack.c.b16 %v11794_v34, %v11795_v2  ;;  %v11800_v51 = vld [vmem:[#allocation102_spill] sm:$0xff] }
 0x621   : > { %v3999_v50 = vmul.f32 %v9858_v55, %v11797_v63  ;;  %v3919_v27 = vrot.slane %v9734_v22, 4  ;;  %v3920_v23 = vrot.slane %v9736_v54, 4  ;;  %v11798_v9 = vrot.slane %v9160_v56, 3 }
 0x622   : > { %4724 = vrot.lane.b32.xlu2 %v11796_v28, %s5545_s10  ;;  %v11007_v40 = vrot.slane %v9734_v22, 1  ;;  %v4208_v44 = vpack.c.bf16 %v4048_v39, %v4048_v39  ;;  %v4209_v28 = vpack.c.bf16 %v4049_v0, %v4049_v0  ;;  %v4190_v31 = vpack.c.bf16 %v3998_v24, %v3998_v24 }
 0x623   : > { %v9901_v41 = vsel %vm425_vm0, %v11798_v9, %v11005_v11  ;;  %v9906_v10 = vsel %vm490_vm1, %v3919_v27, %v3920_v23  ;;  %v4008_v34 = vmul.f32 %v9717_v18, %v11800_v51  ;;  %v11801_v2 = vpack.c.bf16 %v9689_v5, %v9689_v5  ;;  %v11802_v11 = vld [vmem:[#allocation38_spill] sm:$0xff]  ;;  %v11806_v5 = vld [vmem:[#allocation152_spill] sm:$0xff] }
 0x624   : > { %11799 = vst [vmem:[#allocation82_spill] sm:$0xff] %v9901_v41  ;;  %v4707_v9 = vpack.c.b16 %v4693_v25, %v9653_v42  ;;  %v4141_v16 = vmul.f32 %v9756_v43, %v11802_v11  ;;  %v9918_v39 = vunpack.c.l.b16 %v4208_v44  ;;  %v9920_v24 = vunpack.c.l.b16 %v4209_v28 }
 0x625   : > { %v9913_v63 = vunpack.c.l.b16 %v11801_v2  ;;  %v11805_v0 = vpack.c.b16 %v9633_v26, %v9592_v60  ;;  %4500 = vrot.lane.b32.xlu0 %v4487_v3, %s5543_s29  ;;  %v9927_v18 = vunpack.c.l.b16 %v4237_v52  ;;  %v4109_v51 = vmul.f32 %v9901_v41, %v11806_v5  ;;  %v11808_v3 = vld [vmem:[#allocation111_spill] sm:$0xff]  ;;  %v11813_v26 = vld [vmem:[#allocation84_spill] sm:$0xff] }
 0x626   : > { %11803 = vst [vmem:[#allocation92_spill] sm:$0xff] %v9918_v39  ;;  %v3968_v42 = vrot.slane %v9736_v54, 5  ;;  %v11009_v43 = vrot.slane %v9809_v21, 4  ;;  %v4191_v11 = vpack.c.bf16 %v3999_v50, %v3999_v50  ;;  %v11807_v25 = vrot.slane %v9608_v38, 1 }
 0x627   : > { %11804 = vst [vmem:[#allocation80_spill] sm:$0xff] %v9920_v24  ;;  %4436 = vrot.lane.b32.xlu1 %v11805_v0, %s5542_s15  ;;  %v3952_v52 = vmul.f32 %v9906_v10, %v11808_v3  ;;  %v11809_v44 = vrot.slane %v9608_v38, 4  ;;  %v11810_v2 = vrot.slane %v9397_v30, 5  ;;  %v11811_v0 = vrot.slane %v9662_v48, 5 }
 0x628   : > { %v4084_v60 = vsel %vm797_vm4, %v11807_v25, %v11007_v40  ;;  %v9953_v50 = vsel %vm490_vm1, %v3920_v23, %v11009_v43  ;;  %v4200_v25 = vpack.c.bf16 %v4008_v34, %v4008_v34  ;;  %v4285_v3 = vpack.c.bf16 %v4141_v16, %v4141_v16  ;;  %v11814_v40 = vld [vmem:[#allocation5_spill] sm:$0xff]  ;;  %v11815_v34 = vld [vmem:[#allocation31_spill] sm:$0xff] }
 0x629   : > { %v9947_v28 = vsel %vm490_vm1, %v11809_v44, %v3919_v27  ;;  %v9961_v5 = vsel %vm603_vm2, %v11811_v0, %v11810_v2  ;;  %v3953_v27 = vmul.f32 %v9953_v50, %v11813_v26  ;;  %v4176_v44 = vpack.c.bf16 %v3952_v52, %v3952_v52  ;;  %v11816_v26 = vld [vmem:[#allocation76_spill] sm:$0xff] }
 0x62a   : > { %11812 = vst [vmem:[#allocation7_spill] sm:$0xff] %v9961_v5  ;;  %v4009_v32 = vmul.f32 %v9961_v5, %v11814_v40  ;;  %4716 = vrot.lane.b32.xlu2 %v4707_v9, %s5545_s10  ;;  %v4253_v23 = vpack.c.bf16 %v4109_v51, %v4109_v51  ;;  %v11012_v43 = vrot.slane %v9736_v54, 3  ;;  %v9973_v2 = vsel %vm603_vm2, %v3967_v29, %v3968_v42 }
 0x62b   : > { %v11013_v16 = vrot.slane %v9809_v21, 3  ;;  %v4094_v0 = vmul.f32 %v4084_v60, %v11815_v34  ;;  %v3951_v52 = vmul.f32 %v9947_v28, %v11816_v26  ;;  %v4177_v41 = vpack.c.bf16 %v3953_v27, %v3953_v27  ;;  %v11819_v27 = vld [vmem:[#allocation121_spill] sm:$0xff] }
 0x62c   : > { %v4201_v40 = vpack.c.bf16 %v4009_v32, %v4009_v32  ;;  %v3815_v9 = vadd.f32 %v9146_v8, %v9640_v35  ;;  %v9981_v51 = vunpack.c.l.b16 %v4200_v25  ;;  %v3969_v60 = vrot.slane %v9809_v21, 5  ;;  %v11820_v35 = vld [vmem:[#allocation114_spill] sm:$0xff] }
 0x62d   : > { %v9989_v29 = vsel %vm425_vm0, %v11012_v43, %v11013_v16  ;;  %v9992_v34 = vunpack.c.l.b16 %v4176_v44  ;;  %v9994_v26 = vunpack.c.l.b16 %v4177_v41  ;;  %v4000_v8 = vmul.f32 %v9973_v2, %v11819_v27  ;;  %v11821_v25 = vld [vmem:[#allocation78_spill] sm:$0xff]  ;;  %v11824_v27 = vld [vmem:[#allocation88_spill] sm:$0xff] }
 0x62e   : > { %11817 = vst [vmem:[#allocation14_spill] sm:$0xff] %v9981_v51  ;;  %v9996_v32 = vunpack.c.l.b16 %v4201_v40  ;;  %v11822_v5 = vpack.c.b16 %v11820_v35, %v11821_v25  ;;  %v11823_v43 = vpack.c.b16 %v9643_v20, %v9647_v58  ;;  %v4414_v16 = vunpack.c.l.b16 %v4190_v31  ;;  %v11825_v58 = vld [vmem:[#allocation11_spill] sm:$0xff] }
 0x62f   : > { %11818 = vst [vmem:[#allocation100_spill] sm:$0xff] %v9989_v29  ;;  %v3986_v41 = vsel %vm603_vm2, %v3968_v42, %v3969_v60  ;;  %v4224_v44 = vpack.c.bf16 %v9736_v54, %v9736_v54  ;;  %v4225_v40 = vpack.c.bf16 %v9809_v21, %v9809_v21  ;;  %v3950_v15 = vmul.f32 %v9670_v47, %v11824_v27 }
 0x630   : > { %4612 = vrot.lane.b32.xlu1 %v11822_v5, %s5548_s12  ;;  %4492 = vrot.lane.b32.xlu0 %v11823_v43, %s5543_s29  ;;  %v4001_v31 = vmul.f32 %v3986_v41, %v11825_v58  ;;  %v3842_v43 = vmul.f32 0.2, %v3815_v9  ;;  %v4415_v35 = vunpack.c.l.b16 %v4191_v11  ;;  %v4014_v42 = vrot.slane %v9608_v38, 7 }
 0x631   : > { %v4192_v25 = vpack.c.bf16 %v4000_v8, %v4000_v8  ;;  %v10022_v29 = vunpack.c.l.b16 %v4285_v3  ;;  %v10024_v24 = vunpack.c.l.b16 %v4224_v44  ;;  %v10026_v12 = vunpack.c.l.b16 %v4225_v40 }
 0x632   : > { %v4193_v39 = vpack.c.bf16 %v4001_v31, %v4001_v31  ;;  %v11828_v47 = vpack.c.b16 %v9478_v17, %v9476_v1  ;;  %v4637_v27 = vunpack.c.l.b16 %v4253_v23  ;;  %v4064_v58 = vrot.slane %v9736_v54, 1 }
 0x633   : > { %11826 = vst [vmem:[#allocation90_spill] sm:$0xff] %v10024_v24  ;;  %v4238_v20 = vpack.c.bf16 %v4094_v0, %v4094_v0  ;;  %v4175_v11 = vpack.c.bf16 %v3951_v52, %v3951_v52  ;;  %v4174_v5 = vpack.c.bf16 %v3950_v15, %v3950_v15  ;;  %v10033_v51 = vunpack.c.l.b16 %v4192_v25  ;;  %v11843_v52 = vld [vmem:[#allocation6_spill] sm:$0xff] }
 0x634   : > { %11827 = vst [vmem:[#allocation91_spill] sm:$0xff] %v10026_v12  ;;  %4446 = vrot.lane.b32.xlu2 %v11828_v47, %s5542_s15  ;;  %v10035_v3 = vunpack.c.l.b16 %v4193_v39  ;;  %v10039_v44 = vmax.f32 %v3815_v9, %v3842_v43  ;;  %v4595_v40 = vpack.c.b16 %v9927_v18, %v9658_v7  ;;  %v4428_v1 = vpack.c.b16 %v4415_v35, %v4414_v16  ;;  %v11832_v7 = vld [vmem:[#allocation16_spill] sm:$0xff]  ;;  %v11846_v12 = vld [vmem:[#allocation29_spill] sm:$0xff] }
 0x635   : > { %v11829_v17 = vrot.slane %v9160_v56, 7  ;;  %v11830_v39 = vrot.slane %v9734_v22, 7  ;;  %v4065_v9 = vrot.slane %v9809_v21, 1  ;;  %v11831_v56 = vld [vmem:[#allocation85_spill] sm:$0xff]  ;;  %v4651_v16 = vpack.c.b16 %v4637_v27, %v9674_v53  ;;  %v11835_v47 = vld [vmem:[#allocation156_spill] sm:$0xff] }
 0x636   : > { %v11833_v18 = vpack.c.b16 %v11831_v56, %v11832_v7  ;;  %v11834_v31 = vrot.slane %v9734_v22, 1  ;;  %v10066_v35 = vunpack.c.l.b16 %v4238_v20  ;;  %v10070_v25 = vunpack.c.l.b16 %v4174_v5  ;;  %v11837_v53 = vld [vmem:[#allocation148_spill] sm:$0xff]  ;;  %v11838_v5 = vld [vmem:[#allocation65_spill] sm:$0xff] }
 0x637   : > { %v4037_v23 = vsel %vm700_vm3, %v11829_v17, %v4014_v42  ;;  %v4036_v0 = vsel %vm700_vm3, %v4014_v42, %v11830_v39  ;;  %v10068_v42 = vunpack.c.l.b16 %v4175_v11  ;;  %v11836_v17 = vld [vmem:[#allocation73_spill] sm:$0xff]  ;;  %v4082_v56 = vsel %vm797_vm4, %v4064_v58, %v4065_v9 }
 0x638   : > { %4604 = vrot.lane.b32.xlu1 %v4595_v40, %s5548_s12  ;;  %4668 = vrot.lane.b32.xlu0 %v11833_v18, %s5544_s18  ;;  %v4083_v43 = vsel %vm797_vm4, %v11834_v31, %v4064_v58  ;;  %v10073_v40 = vmul.f32 %v4037_v23, %v11835_v47  ;;  %v4144_v39 = vmul.f32 %v3986_v41, %v11836_v17  ;;  %v3874_v20 = vrot.slane %v10039_v44, 3  ;;  %v11839_v41 = vld [vmem:[#allocation81_spill] sm:$0xff] }
 0x639   : > { %v10079_v27 = vmul.f32 %v4036_v0, %v11837_v53  ;;  %v3970_v11 = vrot.slane %v10039_v44, 5  ;;  %v4095_v18 = vmul.f32 %v4083_v43, %v11838_v5  ;;  %v4018_v23 = vrot.slane %v10039_v44, 7  ;;  %v11841_v53 = vld [vmem:[#allocation51_spill] sm:$0xff]  ;;  %v11842_v5 = vld [vmem:[#allocation34_spill] sm:$0xff] }
 0x63a   : > { %v11022_v31 = vrot.slane %v10039_v44, 1  ;;  %v4096_v47 = vmul.f32 %v4082_v56, %v11839_v41  ;;  %v11840_v0 = vrot.slane %v9809_v21, 3  ;;  %v10102_v8 = vmul.f32 %v11842_v5, %v11841_v53  ;;  %v11845_v5 = vld [vmem:[#allocation15_spill] sm:$0xff] }
 0x63b   : > { %v3985_v43 = vsel %vm603_vm2, %v3969_v60, %v3970_v11  ;;  %v4288_v41 = vpack.c.bf16 %v4144_v39, %v4144_v39  ;;  %v4207_v53 = vpack.c.bf16 %v10079_v27, %v10079_v27  ;;  %v4239_v39 = vpack.c.bf16 %v4095_v18, %v4095_v18  ;;  %v11854_v18 = vld [vmem:[#allocation89_spill] sm:$0xff] }
 0x63c   : > { %4438 = vrot.lane.b32.xlu2 %v4428_v1, %s5542_s15  ;;  %v10096_v17 = vsel %vm425_vm0, %v11840_v0, %v3874_v20  ;;  %v4145_v56 = vmul.f32 %v3985_v43, %v11843_v52  ;;  %v11844_v1 = vrot.slane %v9809_v21, 7  ;;  %v4081_v0 = vsel %vm797_vm4, %v4065_v9, %v11022_v31  ;;  %v11848_v31 = vld [vmem:[#allocation66_spill] sm:$0xff] }
 0x63d   : > { %v4097_v58 = vmul.f32 %v4081_v0, %v11845_v5  ;;  %v4240_v52 = vpack.c.bf16 %v4096_v47, %v4096_v47  ;;  %v3922_v24 = vrot.slane %v10039_v44, 4  ;;  %v11847_v9 = vpack.c.b16 %v9472_v4, %v9484_v14  ;;  %v11853_v5 = vld [vmem:[#allocation50_spill] sm:$0xff] }
 0x63e   : > { %v4033_v7 = vsel %vm700_vm3, %v11844_v1, %v4018_v23  ;;  %v4289_v15 = vpack.c.bf16 %v4145_v56, %v4145_v56  ;;  %v4128_v1 = vmul.f32 %v9953_v50, %v11846_v12  ;;  %v10129_v47 = vmul.f32 %v9630_v37, %v11848_v31  ;;  %v11849_v50 = vld [vmem:[#allocation59_spill] sm:$0xff] }
 0x63f   : > { %v4241_v27 = vpack.c.bf16 %v4097_v58, %v4097_v58  ;;  %v10133_v56 = vunpack.c.l.b16 %v4288_v41  ;;  %v4050_v0 = vmul.f32 %v4033_v7, %v11849_v50  ;;  %v11850_v4 = vrot.slane %v9809_v21, 4 }
 0x640   : > { %4780 = vrot.lane.b32.xlu1 %v11847_v9, %s5546_s23  ;;  %4660 = vrot.lane.b32.xlu0 %v4651_v16, %s5544_s18  ;;  %v10135_v12 = vunpack.c.l.b16 %v4289_v15  ;;  %v10142_v16 = vunpack.c.l.b16 %v4240_v52  ;;  %v3875_v31 = vrot.slane %v9748_v59, 3  ;;  %v4583_v60 = vunpack.c.l.b16 %v4239_v39  ;;  %v4930_v52 = vld [vmem:[%s10677_s6 + $0x20] sm:$0xf] }
 0x641   : > { %v3937_v14 = vsel %vm490_vm1, %v11850_v4, %v3922_v24  ;;  %v10144_v58 = vunpack.c.l.b16 %v4241_v27  ;;  %v4272_v41 = vpack.c.bf16 %v4128_v1, %v4128_v1  ;;  %v4002_v7 = vmul.f32 %v3985_v43, %v11854_v18  ;;  %v11859_v18 = vld [vmem:[#allocation68_spill] sm:$0xff]  ;;  %v11862_v15 = vld [vmem:[#allocation79_spill] sm:$0xff] }
 0x642   : > { %11851 = vst [vmem:[#allocation97_spill] sm:$0xff] %v10142_v16  ;;  %v4129_v9 = vmul.f32 %v3937_v14, %v11853_v5  ;;  %v11855_v21 = vpack.c.b16 %v9771_v62, %v9764_v61  ;;  %v11856_v27 = vrot.slane %v9748_v59, 7  ;;  %v11857_v1 = vrot.slane %v9186_v46, 3 }
 0x643   : > { %11852 = vst [vmem:[#allocation18_spill] sm:$0xff] %v10144_v58  ;;  %v10172_v61 = vsel %vm425_vm0, %v3874_v20, %v3875_v31  ;;  %v4952_v62 = vunpack.c.l.b16 %v4930_v52  ;;  %v4210_v5 = vpack.c.bf16 %v4050_v0, %v4050_v0  ;;  %v11863_v58 = vrot.slane %v9748_v59, 5 }
 0x644   : > { %4614 = vrot.lane.b32.xlu2 %v11855_v21, %s5548_s12  ;;  %v4032_v39 = vsel %vm700_vm3, %v4018_v23, %v11856_v27  ;;  %v10168_v43 = vsel %vm425_vm0, %v3875_v31, %v11857_v1  ;;  %v11860_v21 = vld [vmem:[#allocation62_spill] sm:$0xff]  ;;  %v4273_v16 = vpack.c.bf16 %v4129_v9, %v4129_v9  ;;  %v4596_v31 = vpack.c.b16 %v4583_v60, %v10066_v35 }
 0x645   : > { %11858 = vst [vmem:[#allocation21_spill] sm:$0xff] %v10168_v43  ;;  %v4051_v4 = vmul.f32 %v4032_v39, %v11859_v18  ;;  %v3908_v23 = vmul.f32 %v10168_v43, %v11860_v21  ;;  %v11861_v27 = vld [vmem:[#allocation158_spill] sm:$0xff]  ;;  %v3984_v1 = vsel %vm603_vm2, %v3970_v11, %v11863_v58  ;;  %v4957_v52 = vpack.c.b16 %v4952_v62, %v4952_v62  ;;  %v11864_v18 = vld [vmem:[#allocation13_spill] sm:$0xff]  ;;  %v11868_v58 = vld [vmem:[#allocation115_spill] sm:$0xff] }
 0x646   : > { %v10179_v50 = vmul.f32 %v11862_v15, %v11861_v27  ;;  %v11865_v21 = vld [vmem:[#allocation10_spill] sm:$0xff]  ;;  %v11867_v9 = vpack.c.b16 %v10022_v29, %v9883_v49  ;;  %v10196_v27 = vunpack.c.l.b16 %v4272_v41  ;;  %v10198_v11 = vunpack.c.l.b16 %v4273_v16 }
 0x647   : > { %v4211_v0 = vpack.c.bf16 %v4051_v4, %v4051_v4  ;;  %v4164_v39 = vpack.c.bf16 %v3908_v23, %v3908_v23  ;;  %v11866_v43 = vpack.c.b16 %v11864_v18, %v11865_v21  ;;  %v4003_v20 = vmul.f32 %v3984_v1, %v11868_v58  ;;  %v5309_v49 = vld [vmem:[%s10677_s6 + $0x18] sm:$0xff] }
 0x648   : > { %4772 = vrot.lane.b32.xlu0 %v11867_v9, %s5546_s23  ;;  %v4194_v35 = vpack.c.bf16 %v4002_v7, %v4002_v7  ;;  %v4979_v60 = vsel %vm3781_vm5, %v4957_v52, 0  ;;  %v10202_v62 = vunpack.c.l.b16 %v4210_v5  ;;  %v11869_v41 = vrot.slane %v9748_v59, 4  ;;  %v11870_v52 = vld [vmem:[#allocation99_spill] sm:$0xff]  ;;  %v11878_v5 = vld [vmem:[#allocation57_spill] sm:$0xff] }
 0x649   : > { %4390 = vrot.lane.b32.xlu1 %v11866_v43, %s5541_s14  ;;  %v10204_v4 = vunpack.c.l.b16 %v4211_v0  ;;  %v10206_v23 = vunpack.c.l.b16 %v4164_v39  ;;  %v10208_v43 = vunpack.c.l.b16 %v4207_v53  ;;  %4984 = vmatpush.bf16.msra.mxu1 %v4979_v60  ;;  %v4195_v16 = vpack.c.bf16 %v4003_v20, %v4003_v20  ;;  %v11871_v39 = vld [vmem:[#allocation105_spill] sm:$0xff]  ;;  %v11872_v53 = vld [vmem:[#allocation72_spill] sm:$0xff] }
 0x64a   : > { %v3936_v7 = vsel %vm490_vm1, %v3922_v24, %v11869_v41  ;;  %5354 = vmatpush.bf16.msra.mxu2 %v4979_v60  ;;  %v3954_v0 = vmul.f32 %v3937_v14, %v11870_v52  ;;  %v10226_v21 = vunpack.c.l.b16 %v4194_v35  ;;  %v4067_v9 = vrot.slane %v9748_v59, 1  ;;  %v11876_v35 = vld [vmem:[#allocation129_spill] sm:$0xff] }
 0x64b   : > { %v3955_v18 = vmul.f32 %v3936_v7, %v11871_v39  ;;  %v10228_v20 = vunpack.c.l.b16 %v4195_v16  ;;  %v4226_v24 = vpack.c.bf16 %v10039_v44, %v10039_v44  ;;  %v4227_v41 = vpack.c.bf16 %v9748_v59, %v9748_v59 }
 0x64c   : > { %4606 = vrot.lane.b32.xlu2 %v4596_v31, %s5548_s12  ;;  %v4178_v58 = vpack.c.bf16 %v3954_v0, %v3954_v0  ;;  %v4146_v14 = vmul.f32 %v3984_v1, %v11872_v53  ;;  %v5308_v31 = vld [vmem:[%s10677_s6 + $0x10] sm:$0xff]  ;;  %v11873_v16 = vrot.slane %v9186_v46, 1  ;;  %v11874_v0 = vrot.slane %v10039_v44, 1  ;;  %v11877_v46 = vld [vmem:[#allocation98_spill] sm:$0xff] }
 0x64d   : > { %v4179_v60 = vpack.c.bf16 %v3955_v18, %v3955_v18  ;;  %4985 = vmatpush.bf16.msra.mxu1 %v5309_v49  ;;  %v10249_v1 = vunpack.c.l.b16 %v4226_v24  ;;  %v11875_v18 = vld [vmem:[#allocation69_spill] sm:$0xff]  ;;  %v11879_v15 = vpack.c.b16 %v11877_v46, %v11878_v5  ;;  %v11880_v44 = vpack.c.b16 %v10068_v42, %v10070_v25  ;;  %v11883_v5 = vld [vmem:[#allocation128_spill] sm:$0xff] }
 0x64e   : > { %5355 = vmatpush.bf16.msra.mxu2 %v5309_v49  ;;  %v4079_v52 = vsel %vm797_vm4, %v4067_v9, %v11873_v16  ;;  %v4080_v59 = vsel %vm797_vm4, %v11874_v0, %v4067_v9  ;;  %v10251_v53 = vunpack.c.l.b16 %v4178_v58  ;;  %v10265_v9 = vunpack.c.l.b16 %v4227_v41  ;;  %v11881_v24 = vld [vmem:[#allocation41_spill] sm:$0xff]  ;;  %v11882_v16 = vld [vmem:[#allocation46_spill] sm:$0xff]  ;;  %v5307_v42 = vld [vmem:[%s10677_s6 + $0x8] sm:$0xff] }
 0x64f   : > { %v10253_v39 = vunpack.c.l.b16 %v4179_v60  ;;  %v4098_v29 = vmul.f32 %v4080_v59, %v11875_v18  ;;  %v4099_v49 = vmul.f32 %v4079_v52, %v11876_v35  ;;  %v4147_v58 = vmul.f32 %v9785_v13, %v11881_v24  ;;  %v11886_v24 = vld [vmem:[#allocation77_spill] sm:$0xff] }
 0x650   : > { %4382 = vrot.lane.b32.xlu0 %v11880_v44, %s5541_s14  ;;  %v4290_v60 = vpack.c.bf16 %v4146_v14, %v4146_v14  ;;  %v4130_v0 = vmul.f32 %v3936_v7, %v11882_v16  ;;  %v11885_v14 = vld [vmem:[#allocation153_spill] sm:$0xff]  ;;  %v11887_v16 = vld [vmem:[#allocation106_spill] sm:$0xff] }
 0x651   : > { %4502 = vrot.lane.b32.xlu1 %v11879_v15, %s5543_s29  ;;  %v4242_v52 = vpack.c.bf16 %v4098_v29, %v4098_v29  ;;  %v4243_v59 = vpack.c.bf16 %v4099_v49, %v4099_v49  ;;  %v11884_v15 = vld [vmem:[#allocation75_spill] sm:$0xff]  ;;  %4986 = vmatpush.bf16.msra.mxu1 %v5308_v31  ;;  %v4291_v13 = vpack.c.bf16 %v4147_v58, %v4147_v58  ;;  %v11909_v35 = vld [vmem:[#allocation37_spill] sm:$0xff] }
 0x652   : > { %v4131_v18 = vmul.f32 %v11884_v15, %v11883_v5  ;;  %5356 = vmatpush.bf16.msra.mxu2 %v5308_v31  ;;  %v10279_v41 = vunpack.c.l.b16 %v4290_v60  ;;  %v4274_v7 = vpack.c.bf16 %v4130_v0, %v4130_v0  ;;  %v4118_v29 = vmul.f32 %v9630_v37, %v11885_v14  ;;  %v11907_v37 = vld [vmem:[#allocation9_spill] sm:$0xff] }
 0x653   : > { %v10283_v49 = vunpack.c.l.b16 %v4242_v52  ;;  %v10285_v46 = vunpack.c.l.b16 %v4243_v59  ;;  %v11888_v5 = vpack.c.b16 %v11886_v24, %v11887_v16  ;;  %v11889_v31 = vpack.c.bf16 %v10073_v40, %v10073_v40  ;;  %v4435_v24 = vpop.permute.xlu2 %4434 }
 0x654   : > { %v4275_v44 = vpack.c.bf16 %v4131_v18, %v4131_v18  ;;  %v3881_v60 = vrot.slane %v9397_v30, 3  ;;  %v10295_v0 = vunpack.c.l.b16 %v4291_v13  ;;  %v10297_v15 = vunpack.c.l.b16 %v4274_v7 }
 0x655   : > { %4782 = vrot.lane.b32.xlu2 %v11888_v5, %s5546_s23  ;;  %v4470_v58 = vunpack.c.l.b16 %v11889_v31  ;;  %v11890_v59 = vpack.c.bf16 %v10102_v8, %v10102_v8  ;;  %v11892_v40 = vpack.c.bf16 %v10129_v47, %v10129_v47  ;;  %v4263_v7 = vpack.c.bf16 %v10179_v50, %v10179_v50  ;;  %4987 = vmatpush.bf16.msra.mxu1 %v5307_v42  ;;  %v11898_v31 = vld [vmem:[#allocation95_spill] sm:$0xff] }
 0x656   : > { %v10301_v52 = vunpack.c.l.b16 %v4275_v44  ;;  %v5306_v44 = vld [vmem:[%s10677_s6] sm:$0xff]  ;;  %5357 = vmatpush.bf16.msra.mxu2 %v5307_v42  ;;  %v11894_v16 = vrot.slane %v9736_v54, 3  ;;  %v11895_v47 = vrot.slane %v9734_v22, 3  ;;  %v11897_v42 = vld [vmem:[#allocation109_spill] sm:$0xff]  ;;  %v4262_v54 = vpack.c.bf16 %v4118_v29, %v4118_v29 }
 0x657   : > { %v10306_v18 = vunpack.c.l.b16 %v11890_v59  ;;  %v10311_v14 = vunpack.c.l.b16 %v11892_v40  ;;  %v4484_v13 = vpack.c.b16 %v10208_v43, %v4470_v58  ;;  %v11899_v58 = vpack.c.b16 %v11897_v42, %v11898_v31  ;;  %v11900_v40 = vld [vmem:[#allocation23_spill] sm:$0xff]  ;;  %v11905_v31 = vld [vmem:[#allocation44_spill] sm:$0xff] }
 0x658   : > { %v10327_v43 = vsel %vm425_vm0, %v11895_v47, %v11894_v16  ;;  %v4222_v59 = vpack.c.bf16 %v9608_v38, %v9608_v38  ;;  %v11901_v16 = vrot.slane %v11900_v40, 3  ;;  %v11902_v50 = vrot.slane %v9734_v22, 3 }
 0x659   : > { %11891 = vst [vmem:[#allocation35_spill] sm:$0xff] %v10306_v18  ;;  %4494 = vrot.lane.b32.xlu1 %v4484_v13, %s5543_s29  ;;  %4558 = vrot.lane.b32.xlu0 %v11899_v58, %s5547_s24  ;;  %v11903_v5 = vrot.slane %v9608_v38, 3  ;;  %v4647_v8 = vunpack.c.l.b16 %v4263_v7  ;;  %v11904_v29 = vpack.c.bf16 %v9734_v22, %v9734_v22  ;;  %v4111_v58 = vmul.f32 %v10327_v43, %v11905_v31  ;;  %v11910_v22 = vld [vmem:[#allocation86_spill] sm:$0xff] }
 0x65a   : > { %11893 = vst [vmem:[#allocation27_spill] sm:$0xff] %v10311_v14  ;;  %v3897_v47 = vsel %vm425_vm0, %v3881_v60, %v11901_v16  ;;  %4988 = vmatpush.bf16.msra.mxu1 %v5306_v44  ;;  %5358 = vmatpush.bf16.msra.mxu2 %v5306_v44  ;;  %v11906_v16 = vpack.c.b16 %v9838_v19, %v9836_v45  ;;  %v4646_v38 = vunpack.c.l.b16 %v4262_v54  ;;  %v4526_v25 = vunpack.c.l.b16 %v4222_v59 }
 0x65b   : > { %11896 = vst [vmem:[#allocation39_spill] sm:$0xff] %v10327_v43  ;;  %v10350_v13 = vsel %vm425_vm0, %v11903_v5, %v11902_v50  ;;  %v4527_v42 = vunpack.c.l.b16 %v11904_v29  ;;  %v3898_v50 = vmul.f32 %v3897_v47, %v11907_v37  ;;  %v11908_v5 = vld [vmem:[#allocation159_spill] sm:$0xff]  ;;  %v3899_v29 = vmul.f32 %v11910_v22, %v11909_v35  ;;  %v4603_v19 = vpop.permute.xlu2 %4602  ;;  %v11912_v43 = vld [vmem:[#allocation154_spill] sm:$0xff] }
 0x65c   : > { %v4110_v7 = vmul.f32 %v10350_v13, %v11908_v5  ;;  %v4656_v18 = vpack.c.b16 %v4647_v8, %v4646_v38  ;;  %v4255_v31 = vpack.c.bf16 %v4111_v58, %v4111_v58  ;;  %v4127_v5 = vmul.f32 %v9906_v10, %v11912_v43  ;;  %v11917_v43 = vld [vmem:[#allocation53_spill] sm:$0xff] }
 0x65d   : > { %4392 = vrot.lane.b32.xlu2 %v11906_v16, %s5541_s14  ;;  %v4540_v14 = vpack.c.b16 %v4527_v42, %v4526_v25  ;;  %v4154_v44 = vpack.c.bf16 %v3898_v50, %v3898_v50  ;;  %v4155_v54 = vpack.c.bf16 %v3899_v29, %v3899_v29  ;;  %v11911_v16 = vld [vmem:[#allocation164_spill] sm:$0xff]  ;;  %v11913_v35 = vrot.slane %v9662_v48, 3  ;;  %v11918_v29 = vld [vmem:[#allocation134_spill] sm:$0xff] }
 0x65e   : > { %v4254_v45 = vpack.c.bf16 %v4110_v7, %v4110_v7  ;;  %v4639_v59 = vunpack.c.l.b16 %v4255_v31  ;;  %v4143_v37 = vmul.f32 %v9973_v2, %v11911_v16  ;;  %v11915_v42 = vld [vmem:[#allocation60_spill] sm:$0xff]  ;;  %v11916_v2 = vld [vmem:[#allocation162_spill] sm:$0xff]  ;;  %v4121_v50 = vmul.f32 %v3897_v47, %v11917_v43 }
 0x65f   : > { %v10376_v25 = vsel %vm425_vm0, %v11913_v35, %v3881_v60  ;;  %v4142_v58 = vmul.f32 %v9858_v55, %v11915_v42  ;;  %v4126_v38 = vmul.f32 %v9947_v28, %v11916_v2  ;;  %v4315_v10 = vunpack.c.l.b16 %v4155_v54 }
 0x660   : > { %v4638_v8 = vunpack.c.l.b16 %v4254_v45  ;;  %v4287_v22 = vpack.c.bf16 %v4143_v37, %v4143_v37  ;;  %v4271_v60 = vpack.c.bf16 %v4127_v5, %v4127_v5  ;;  %v4120_v31 = vmul.f32 %v10376_v25, %v11918_v29  ;;  %v11925_v29 = vld [vmem:[#allocation71_spill] sm:$0xff] }
 0x661   : > { %4670 = vrot.lane.b32.xlu1 %v4656_v18, %s5544_s18  ;;  %4550 = vrot.lane.b32.xlu0 %v4540_v14, %s5547_s24  ;;  %v11914_v18 = vpack.c.b16 %v9842_v57, %v9840_v33  ;;  %v4314_v14 = vunpack.c.l.b16 %v4154_v44  ;;  %v11919_v57 = vld [vmem:[#allocation70_spill] sm:$0xff]  ;;  %v4286_v44 = vpack.c.bf16 %v4142_v58, %v4142_v58  ;;  %v4270_v28 = vpack.c.bf16 %v4126_v38, %v4126_v38  ;;  %v4491_v35 = vpop.permute.xlu0 %4490 }
 0x662   : > { %v4652_v7 = vpack.c.b16 %v4639_v59, %v4638_v8  ;;  %v4379_v16 = vpop.permute.xlu1 %4378  ;;  %v11920_v55 = vpack.c.b16 %v9848_v36, %v11919_v57  ;;  %v4265_v45 = vpack.c.bf16 %v4121_v50, %v4121_v50  ;;  %v4751_v54 = vunpack.c.l.b16 %v4287_v22  ;;  %v11924_v50 = vld [vmem:[#allocation67_spill] sm:$0xff] }
 0x663   : > { %v4330_v33 = vpack.c.b16 %v4315_v10, %v4314_v14  ;;  %v4695_v59 = vunpack.c.l.b16 %v4271_v60  ;;  %v4264_v37 = vpack.c.bf16 %v4120_v31, %v4120_v31  ;;  %v4771_v5 = vpop.permute.xlu2 %4770  ;;  %v11922_v14 = vld [vmem:[#allocation92_spill] sm:$0xff]  ;;  %v4750_v42 = vunpack.c.l.b16 %v4286_v44 }
 0x664   : > { %v4694_v2 = vunpack.c.l.b16 %v4270_v28  ;;  %v4649_v10 = vunpack.c.l.b16 %v4265_v45  ;;  %v11926_v31 = vld [vmem:[#allocation100_spill] sm:$0xff] }
 0x665   : > { %4504 = vrot.lane.b32.xlu2 %v11914_v18, %s5543_s29  ;;  %v4788_v47 = vsel %vm3580_vm6, %v4330_v33, %v4379_v16  ;;  %v11921_v18 = vld [vmem:[#allocation80_spill] sm:$0xff]  ;;  %v4764_v58 = vpack.c.b16 %v4751_v54, %v4750_v42  ;;  %v4648_v43 = vunpack.c.l.b16 %v4264_v37  ;;  %v4112_v16 = vmul.f32 %v11926_v31, %v11925_v29 }
 0x666   : > { %v11923_v8 = vpack.c.b16 %v11921_v18, %v11922_v14  ;;  %v4811_v36 = vsel %vm3605_vm7, %v4788_v47, %v4435_v24  ;;  %v4708_v38 = vpack.c.b16 %v4695_v59, %v4694_v2  ;;  %v4233_v59 = vpack.c.bf16 %v9397_v30, %v9397_v30 }
 0x667   : > { %v4827_v60 = vsel %vm3622_vm8, %v4811_v36, %v4491_v35  ;;  %v4657_v24 = vpack.c.b16 %v4649_v10, %v4648_v43  ;;  %v4256_v28 = vpack.c.bf16 %v4112_v16, %v4112_v16  ;;  %v11927_v18 = vrot.slane %v9662_v48, 1  ;;  %v11932_v43 = vld [vmem:[#allocation135_spill] sm:$0xff]  ;;  %v11936_v16 = vld [vmem:[#allocation74_spill] sm:$0xff] }
 0x668   : > { %v11929_v2 = vpack.c.b16 %v9994_v26, %v9992_v34 }
 0x669   : > { %4662 = vrot.lane.b32.xlu1 %v4652_v7, %s5544_s18  ;;  %4726 = vrot.lane.b32.xlu0 %v11920_v55, %s5545_s10  ;;  %v4113_v7 = vmul.f32 %v10096_v17, %v11924_v50  ;;  %v4073_v55 = vrot.slane %v9397_v30, 1  ;;  %v4659_v47 = vpop.permute.xlu0 %4658  ;;  %v11930_v30 = vld [vmem:[#allocation14_spill] sm:$0xff]  ;;  %v4640_v10 = vunpack.c.l.b16 %v4256_v28 }
 0x66a   : > { %v11931_v36 = vpack.c.b16 %v9996_v32, %v11930_v30 }
 0x66b   : > { %v4547_v22 = vpop.permute.xlu1 %4546  ;;  %v4257_v57 = vpack.c.bf16 %v4113_v7, %v4113_v7  ;;  %v10411_v45 = vpop.permute.xlu2 %4380  ;;  %v4074_v14 = vsel %vm797_vm4, %v11927_v18, %v4073_v55  ;;  %v11933_v7 = vld [vmem:[#allocation40_spill] sm:$0xff]  ;;  %v11942_v18 = vld [vmem:[#allocation21_spill] sm:$0xff] }
 0x66c   : > { %v4843_v33 = vsel %vm3639_vm9, %v4827_v60, %v4547_v22  ;;  %v4104_v50 = vmul.f32 %v4074_v14, %v11932_v43 }
 0x66d   : > { %4496 = vrot.lane.b32.xlu2 %v11923_v8, %s5543_s29  ;;  %v4859_v44 = vsel %vm3656_vm10, %v4843_v33, %v4603_v19  ;;  %v4641_v54 = vunpack.c.l.b16 %v4257_v57  ;;  %v11928_v19 = vrot.slane %v11900_v40, 1 }
 0x66e   : > { %v4875_v35 = vsel %vm3673_vm11, %v4859_v44, %v4659_v47  ;;  %v4248_v32 = vpack.c.bf16 %v4104_v50, %v4104_v50  ;;  %v11938_v44 = vld [vmem:[#allocation25_spill] sm:$0xff]  ;;  %v11939_v47 = vpack.c.b16 %v10135_v12, %v10133_v56  ;;  %v11946_v56 = vld [vmem:[#allocation12_spill] sm:$0xff]  ;;  %v11947_v12 = vld [vmem:[#allocation7_spill] sm:$0xff]  ;;  %v11950_v50 = vpack.c.b16 %v10204_v4, %v10202_v62 }
 0x66f   : > { %v4089_v8 = vsel %vm797_vm4, %v4073_v55, %v11928_v19  ;;  %v4653_v6 = vpack.c.b16 %v4641_v54, %v4640_v10  ;;  %v11937_v55 = vld [vmem:[#allocation49_spill] sm:$0xff]  ;;  %v11943_v19 = vld [vmem:[#allocation91_spill] sm:$0xff]  ;;  %v11954_v4 = vpack.c.b16 %v10198_v11, %v10196_v27 }
 0x670   : > { %v4105_v34 = vmul.f32 %v4089_v8, %v11933_v7  ;;  %v4137_v28 = vmul.f32 %v11938_v44, %v11937_v55  ;;  %v11944_v8 = vld [vmem:[#allocation90_spill] sm:$0xff] }
 0x671   : > { %4774 = vrot.lane.b32.xlu1 %v4764_v58, %s5546_s23  ;;  %4718 = vrot.lane.b32.xlu0 %v4708_v38, %s5545_s10  ;;  %v4232_v58 = vpack.c.bf16 %v9662_v48, %v9662_v48  ;;  %v4537_v38 = vunpack.c.l.b16 %v4233_v59  ;;  %v11934_v48 = vpack.c.b16 %v10035_v3, %v10033_v51  ;;  %v11941_v3 = vld [vmem:[#allocation116_spill] sm:$0xff] }
 0x672   : > { %v4249_v60 = vpack.c.bf16 %v4105_v34, %v4105_v34  ;;  %v4115_v14 = vmul.f32 %v11942_v18, %v11941_v3  ;;  %v11957_v3 = vpack.c.b16 %v9913_v63, %v10206_v23  ;;  %v11958_v18 = vpack.c.b16 %v10285_v46, %v10283_v49  ;;  %v11960_v49 = vld [vmem:[#allocation26_spill] sm:$0xff]  ;;  %v11961_v46 = vld [vmem:[#allocation61_spill] sm:$0xff] }
 0x673   : > { %v4715_v37 = vpop.permute.xlu1 %4714  ;;  %v4536_v26 = vunpack.c.l.b16 %v4232_v58  ;;  %v4557_v29 = vpop.permute.xlu2 %4556 }
 0x674   : > { %v4891_v42 = vsel %vm3690_vm12, %v4875_v35, %v4715_v37  ;;  %v4593_v57 = vunpack.c.l.b16 %v4249_v60  ;;  %v4281_v37 = vpack.c.bf16 %v4137_v28, %v4137_v28  ;;  %v11940_v35 = vld [vmem:[#allocation55_spill] sm:$0xff]  ;;  %v11951_v60 = vld [vmem:[#allocation18_spill] sm:$0xff] }
 0x675   : > { %4672 = vrot.lane.b32.xlu2 %v4657_v24, %s5544_s18  ;;  %v4907_v40 = vsel %vm3707_vm13, %v4891_v42, %v4771_v5  ;;  %v4545_v22 = vpack.c.b16 %v4537_v38, %v4536_v26  ;;  %v11935_v5 = vld [vmem:[#allocation160_spill] sm:$0xff]  ;;  %v4592_v24 = vunpack.c.l.b16 %v4248_v32  ;;  %v4114_v51 = vmul.f32 %v10172_v61, %v11940_v35  ;;  %v11949_v38 = vld [vmem:[#allocation30_spill] sm:$0xff] }
 0x676   : > { %5291 = vmatmul.msk.bf16.vlgmr.msra.gmra.mxu1 %vm3764_vm14, %v4907_v40  ;;  %v4136_v33 = vmul.f32 %v11936_v16, %v11935_v5  ;;  %v11945_v42 = vpack.c.b16 %v11943_v19, %v11944_v8  ;;  %v4705_v10 = vunpack.c.l.b16 %v4281_v37  ;;  %v4259_v40 = vpack.c.bf16 %v4115_v14, %v4115_v14 }
 0x677   : > { %v4601_v59 = vpack.c.b16 %v4593_v57, %v4592_v24  ;;  %v4258_v58 = vpack.c.bf16 %v4114_v51, %v4114_v51  ;;  %v11956_v37 = vpack.c.b16 %v10253_v39, %v10251_v53  ;;  %v11962_v8 = vpack.c.b16 %v11960_v49, %v11961_v46 }
 0x678   : > { %v4280_v54 = vpack.c.bf16 %v4136_v33, %v4136_v33 }
 0x679   : > { %4384 = vrot.lane.b32.xlu1 %v11929_v2, %s5541_s14  ;;  %4448 = vrot.lane.b32.xlu0 %v11931_v36, %s5542_s15  ;;  %v4152_v36 = vmul.f32 %v11947_v12, %v11946_v56  ;;  %v4642_v26 = vunpack.c.l.b16 %v4258_v58 }
 0x67a   : > { %v4704_v30 = vunpack.c.l.b16 %v4280_v54 }
 0x67b   : > { %v4549_v2 = vpop.permute.xlu2 %4548  ;;  %v4296_v7 = vpack.c.bf16 %v4152_v36, %v4152_v36 }
 0x67c   : > { %v4713_v34 = vpack.c.b16 %v4705_v10, %v4704_v30 }
 0x67d   : > { %4664 = vrot.lane.b32.xlu2 %v4653_v6, %s5544_s18  ;;  %v11948_v6 = vld [vmem:[#allocation19_spill] sm:$0xff]  ;;  %v4760_v57 = vunpack.c.l.b16 %v4296_v7 }
 0x67e   : > { %v4153_v43 = vmul.f32 %v11949_v38, %v11948_v6 }
 0x680   : > { %v4297_v32 = vpack.c.bf16 %v4153_v43, %v4153_v43 }
 0x681   : > { %4560 = vrot.lane.b32.xlu1 %v4545_v22, %s5547_s24  ;;  %4440 = vrot.lane.b32.xlu0 %v11934_v48, %s5542_s15  ;;  %v4643_v22 = vunpack.c.l.b16 %v4259_v40  ;;  %v11952_v48 = vld [vmem:[#allocation97_spill] sm:$0xff] }
 0x682   : > { %v11953_v5 = vpack.c.b16 %v11951_v60, %v11952_v48  ;;  %v4761_v55 = vunpack.c.l.b16 %v4297_v32  ;;  %v11966_v32 = vld [vmem:[#allocation45_spill] sm:$0xff]  ;;  %v11967_v60 = vld [vmem:[#allocation82_spill] sm:$0xff] }
 0x683   : > { %v4654_v24 = vpack.c.b16 %v4643_v22, %v4642_v26  ;;  %v4725_v44 = vpop.permute.xlu2 %4724  ;;  %v11965_v22 = vld [vmem:[#allocation54_spill] sm:$0xff]  ;;  %v3902_v48 = vmul.f32 %v11967_v60, %v11966_v32 }
 0x684   : > { %v4769_v62 = vpack.c.b16 %v4761_v55, %v4760_v57 }
 0x685   : > { %4776 = vrot.lane.b32.xlu2 %v11939_v47, %s5546_s23 }
 0x689   : > { %4552 = vrot.lane.b32.xlu1 %v11945_v42, %s5547_s24  ;;  %4616 = vrot.lane.b32.xlu0 %v4601_v59, %s5548_s12  ;;  %v11955_v59 = vpack.c.b16 %v10228_v20, %v10226_v21  ;;  %v11959_v21 = vpack.c.b16 %v10265_v9, %v10249_v1  ;;  %v4791_v42 = vsel %vm3580_vm6, %v11962_v8, %v10411_v45 }
 0x68a   : > { %v11963_v1 = vpack.c.b16 %v10295_v0, %v10279_v41  ;;  %v11964_v9 = vpack.c.b16 %v10301_v52, %v10297_v15 }
 0x68b   : > { %v4717_v54 = vpop.permute.xlu2 %4716 }
 0x68d   : > { %4498 = vrot.lane.b32.xlu2 %v11950_v50, %s5543_s29  ;;  %s5250_s29 = sshll.u32 %s11983_s20, 3 }
 0x68f   : > { %v4445_v16 = vpop.permute.xlu1 %4444  ;;  %v4389_v33 = vpop.permute.xlu0 %4388 }
 0x690   : > { %v4803_v27 = vsel %vm3580_vm6, %v11957_v3, %v4389_v33  ;;  %v11968_v33 = vld [vmem:[#allocation27_spill] sm:$0xff] }
 0x691   : > { %4728 = vrot.lane.b32.xlu1 %v4713_v34, %s5545_s10  ;;  %4608 = vrot.lane.b32.xlu0 %v11953_v5, %s5548_s12  ;;  %v4821_v20 = vsel %vm3605_vm7, %v4803_v27, %v4445_v16 }
 0x693   : > { %v4447_v11 = vpop.permute.xlu2 %4446 }
 0x695   : > { %4666 = vrot.lane.b32.xlu2 %v4654_v24, %s5544_s18  ;;  %v11969_v24 = vld [vmem:[#allocation35_spill] sm:$0xff] }
 0x696   : > { %v11970_v57 = vpack.c.b16 %v11968_v33, %v11969_v24 }
 0x697   : > { %v4501_v47 = vpop.permute.xlu0 %4500 }
 0x698   : > { %v4837_v53 = vsel %vm3622_vm8, %v4821_v20, %v4501_v47 }
 0x699   : > { %4784 = vrot.lane.b32.xlu0 %v4769_v62, %s5546_s23  ;;  %4720 = vrot.lane.b32.xlu1 %v11954_v4, %s5545_s10  ;;  %v4437_v28 = vpop.permute.xlu1 %4436  ;;  %v4853_v63 = vsel %vm3639_vm9, %v4837_v53, %v4557_v29 }
 0x69a   : > { %v4813_v30 = vsel %vm3605_vm7, %v4791_v42, %v4437_v28 }
 0x69b   : > { %v4439_v29 = vpop.permute.xlu2 %4438 }
 0x6a1   : > { %4442 = vrot.lane.b32.xlu1 %v11955_v59, %s5542_s15  ;;  %4386 = vrot.lane.b32.xlu0 %v11956_v37, %s5541_s14 }
 0x6a2   : > { %v4613_v35 = vpop.permute.xlu1 %4612  ;;  %v4493_v51 = vpop.permute.xlu0 %4492 }
 0x6a3   : > { %v4869_v23 = vsel %vm3656_vm10, %v4853_v63, %v4613_v35  ;;  %v4829_v56 = vsel %vm3622_vm8, %v4813_v30, %v4493_v51  ;;  %v4615_v6 = vpop.permute.xlu2 %4614  ;;  %v11971_v30 = vld [vmem:[#allocation52_spill] sm:$0xff] }
 0x6a4   : > { %v4845_v41 = vsel %vm3639_vm9, %v4829_v56, %v4549_v2  ;;  %v3903_v2 = vmul.f32 %v10350_v13, %v11965_v22  ;;  %v3913_v56 = vmul.f32 %v10376_v25, %v11971_v30 }
 0x6a6   : > { %v4159_v16 = vpack.c.bf16 %v3903_v2, %v3903_v2 }
 0x6a8   : > { %v4319_v28 = vunpack.c.l.b16 %v4159_v16 }
 0x6a9   : > { %4610 = vrot.lane.b32.xlu1 %v11958_v18, %s5548_s12  ;;  %4554 = vrot.lane.b32.xlu0 %v11959_v21, %s5547_s24 }
 0x6aa   : > { %v4605_v39 = vpop.permute.xlu1 %4604  ;;  %v4669_v14 = vpop.permute.xlu0 %4668 }
 0x6ab   : > { %v4885_v19 = vsel %vm3673_vm11, %v4869_v23, %v4669_v14  ;;  %v4861_v0 = vsel %vm3656_vm10, %v4845_v41, %v4605_v39  ;;  %v4607_v7 = vpop.permute.xlu2 %4606  ;;  %v11973_v41 = vld [vmem:[#allocation94_spill] sm:$0xff] }
 0x6ac   : > { %v4901_v10 = vsel %vm3690_vm12, %v4885_v19, %v4725_v44  ;;  %v4158_v44 = vpack.c.bf16 %v3902_v48, %v3902_v48 }
 0x6ae   : > { %v4318_v59 = vunpack.c.l.b16 %v4158_v44 }
 0x6b0   : > { %v4332_v37 = vpack.c.b16 %v4319_v28, %v4318_v59  ;;  %v11977_v59 = vld [vmem:[#allocation24_spill] sm:$0xff] }
 0x6b1   : > { %4778 = vrot.lane.b32.xlu1 %v11963_v1, %s5546_s23  ;;  %4722 = vrot.lane.b32.xlu0 %v11964_v9, %s5545_s10  ;;  %s388_s23 = scalar_lea.vmem %s10682_s11, %s5250_s29 }
 0x6b2   : > { %v4781_v12 = vpop.permute.xlu1 %4780  ;;  %v4661_v36 = vpop.permute.xlu0 %4660 }
 0x6b3   : > { %v4917_v45 = vsel %vm3707_vm13, %v4901_v10, %v4781_v12  ;;  %v4877_v15 = vsel %vm3673_vm11, %v4861_v0, %v4661_v36  ;;  %v4783_v5 = vpop.permute.xlu2 %4782  ;;  %v11972_v10 = vld [vmem:[#allocation63_spill] sm:$0xff] }
 0x6b4   : > { %5296 = vmatmul.msk.bf16.vlgmr.msra.gmra.mxu2 %vm3764_vm14, %v4917_v45  ;;  %v4893_v40 = vsel %vm3690_vm12, %v4877_v15, %v4717_v54  ;;  %v3905_v45 = vmul.f32 %v11926_v31, %v11972_v10  ;;  %v11974_v0 = vld [vmem:[#allocation79_spill] sm:$0xff] }
 0x6b5   : > { %v3912_v15 = vmul.f32 %v11974_v0, %v11973_v41 }
 0x6ba   : > { %v4773_v58 = vpop.permute.xlu0 %4772 }
 0x6bb   : > { %v4391_v52 = vpop.permute.xlu1 %4390  ;;  %v4909_v38 = vsel %vm3707_vm13, %v4893_v40, %v4773_v58  ;;  %v4393_v35 = vpop.permute.xlu2 %4392  ;;  %v11976_v58 = vld [vmem:[#allocation39_spill] sm:$0xff] }
 0x6bc   : > { %5292 = vmatmul.msk.bf16.gmra.mxu1 %vm3764_vm14, %v4909_v38  ;;  %v4806_v55 = vsel %vm3580_vm6, %v11970_v57, %v4391_v52  ;;  %v11975_v52 = vld [vmem:[#allocation28_spill] sm:$0xff] }
 0x6bd   : > { %v4823_v47 = vsel %vm3605_vm7, %v4806_v55, %v4447_v11  ;;  %v3904_v40 = vmul.f32 %v11976_v58, %v11975_v52 }
 0x6c2   : > { %v4383_v50 = vpop.permute.xlu0 %4382 }
 0x6c3   : > { %v4503_v43 = vpop.permute.xlu1 %4502  ;;  %v4794_v51 = vsel %vm3580_vm6, %v4332_v37, %v4383_v50  ;;  %v4505_v46 = vpop.permute.xlu2 %4504  ;;  %v4168_v50 = vpack.c.bf16 %v3912_v15, %v3912_v15 }
 0x6c4   : > { %v4839_v54 = vsel %vm3622_vm8, %v4823_v47, %v4503_v43  ;;  %v4815_v53 = vsel %vm3605_vm7, %v4794_v51, %v4439_v29  ;;  %v4161_v43 = vpack.c.bf16 %v3905_v45, %v3905_v45 }
 0x6c5   : > { %v4328_v2 = vunpack.c.l.b16 %v4168_v50 }
 0x6c6   : > { %v4321_v25 = vunpack.c.l.b16 %v4161_v43 }
 0x6cb   : > { %v4495_v34 = vpop.permute.xlu1 %4494  ;;  %v4559_v26 = vpop.permute.xlu0 %4558 }
 0x6cc   : > { %v4855_v13 = vsel %vm3639_vm9, %v4839_v54, %v4559_v26  ;;  %v4831_v39 = vsel %vm3622_vm8, %v4815_v53, %v4495_v34  ;;  %v4497_v29 = vpop.permute.xlu2 %4496 }
 0x6cd   : > { %v4871_v3 = vsel %vm3656_vm10, %v4855_v13, %v4615_v6  ;;  %v4169_v6 = vpack.c.bf16 %v3913_v56, %v3913_v56  ;;  %v3907_v13 = vmul.f32 %v10172_v61, %v11977_v59 }
 0x6cf   : > { %v4329_v34 = vunpack.c.l.b16 %v4169_v6 }
 0x6d1   : > { %v4337_v60 = vpack.c.b16 %v4329_v34, %v4328_v2 }
 0x6d3   : > { %v4671_v62 = vpop.permute.xlu1 %4670  ;;  %v4551_v4 = vpop.permute.xlu0 %4550  ;;  %v4809_v31 = vsel %vm3580_vm6, %v4337_v60, %v4393_v35  ;;  %v11978_v35 = vld [vmem:[#allocation58_spill] sm:$0xff] }
 0x6d4   : > { %v4887_v27 = vsel %vm3673_vm11, %v4871_v3, %v4671_v62  ;;  %v4847_v14 = vsel %vm3639_vm9, %v4831_v39, %v4551_v4  ;;  %v4673_v38 = vpop.permute.xlu2 %4672  ;;  %v3906_v51 = vmul.f32 %v10096_v17, %v11978_v35  ;;  %v4163_v39 = vpack.c.bf16 %v3907_v13, %v3907_v13 }
 0x6d5   : > { %v4863_v63 = vsel %vm3656_vm10, %v4847_v14, %v4607_v7  ;;  %v4160_v7 = vpack.c.bf16 %v3904_v40, %v3904_v40  ;;  %v10597_v40 = vld [vmem:[%s10678_s7] ss:$0 sm:$0xff] }
 0x6d6   : > { %v4162_v14 = vpack.c.bf16 %v3906_v51, %v3906_v51  ;;  %v4323_v17 = vunpack.c.l.b16 %v4163_v39 }
 0x6d7   : > { %v4320_v32 = vunpack.c.l.b16 %v4160_v7 }
 0x6d9   : > { %v4333_v48 = vpack.c.b16 %v4321_v25, %v4320_v32 }
 0x6db   : > { %v4663_v18 = vpop.permute.xlu1 %4662  ;;  %v4727_v21 = vpop.permute.xlu0 %4726 }
 0x6dc   : > { %v4903_v20 = vsel %vm3690_vm12, %v4887_v27, %v4727_v21  ;;  %v4879_v23 = vsel %vm3673_vm11, %v4863_v63, %v4663_v18  ;;  %v4322_v63 = vunpack.c.l.b16 %v4162_v14 }
 0x6dd   : > { %v4919_v11 = vsel %vm3707_vm13, %v4903_v20, %v4783_v5  ;;  %v4665_v5 = vpop.permute.xlu2 %4664 }
 0x6de   : > { %5297 = vmatmul.msk.bf16.gmra.mxu2 %vm3764_vm14, %v4919_v11 }
 0x6e3   : > { %v4775_v19 = vpop.permute.xlu1 %4774  ;;  %v4719_v49 = vpop.permute.xlu0 %4718 }
 0x6e4   : > { %v4895_v8 = vsel %vm3690_vm12, %v4879_v23, %v4719_v49  ;;  %v4334_v49 = vpack.c.b16 %v4323_v17, %v4322_v63 }
 0x6e5   : > { %v4911_v42 = vsel %vm3707_vm13, %v4895_v8, %v4775_v19  ;;  %v4777_v20 = vpop.permute.xlu2 %4776 }
 0x6e6   : > { %5293 = vmatmul.msk.bf16.gmra.mxu1 %vm3764_vm14, %v4911_v42 }
 0x6eb   : > { %v4385_v1 = vpop.permute.xlu1 %4384  ;;  %v4449_v9 = vpop.permute.xlu0 %4448 }
 0x6ec   : > { %v4797_v16 = vsel %vm3580_vm6, %v4333_v48, %v4385_v1  ;;  %v4825_v33 = vsel %vm3605_vm7, %v4809_v31, %v4449_v9  ;;  %v5311_v48 = vld [vmem:[%s10679_s8] sm:$0xff]  }
 0x6ed   : > { %v4841_v44 = vsel %vm3622_vm8, %v4825_v33, %v4505_v46  ;;  %v4499_v8 = vpop.permute.xlu2 %4498  ;;  %v5312_v33 = vunpack.c.l.bf16 %v5311_v48 }
 0x6f3   : > { %v4561_v12 = vpop.permute.xlu1 %4560  ;;  %v4441_v36 = vpop.permute.xlu0 %4440 }
 0x6f4   : > { %v4817_v24 = vsel %vm3605_vm7, %v4797_v16, %v4441_v36  ;;  %v4857_v62 = vsel %vm3639_vm9, %v4841_v44, %v4561_v12  ;;  %v4990_v15 = vpop.f32.mrf.mxu1 }
 0x6f5   : > { %v4833_v4 = vsel %vm3622_vm8, %v4817_v24, %v4497_v29  ;;  %v4667_v12 = vpop.permute.xlu2 %4666  ;;  %v5313_v24 = vunpack.c.h.bf16 %v5311_v48 }
 0x6fb   : > { %v4553_v26 = vpop.permute.xlu1 %4552  ;;  %v4617_v22 = vpop.permute.xlu0 %4616 }
 0x6fc   : > { %v4849_v28 = vsel %vm3639_vm9, %v4833_v4, %v4553_v26  ;;  %v4873_v47 = vsel %vm3656_vm10, %v4857_v62, %v4617_v22  ;;  %v4992_v52 = vpop.f32.mrf.mxu1 }
 0x6fd   : > { %v4889_v37 = vsel %vm3673_vm11, %v4873_v47, %v4673_v38  ;;  %v4991_v38 = vadd.f32 %v10597_v40, %v4990_v15  ;;  %v4993_v43 = vadd.f32 %v10597_v40, %v4992_v52 }
 0x6ff   : > { %v5030_v50 = vmul.f32 0.2, %v4991_v38  ;;  %v5031_v7 = vmul.f32 0.2, %v4993_v43 }
 0x701   : > { %v5046_v22 = vmax.f32 %v4991_v38, %v5030_v50  ;;  %v5047_v25 = vmax.f32 %v4993_v43, %v5031_v7 }
 0x703   : > { %v4729_v57 = vpop.permute.xlu1 %4728  ;;  %v4609_v55 = vpop.permute.xlu0 %4608  ;;  %v5062_v2 = vpack.c.bf16 %v5046_v22, %v5046_v22  ;;  %v5063_v32 = vpack.c.bf16 %v5047_v25, %v5047_v25 }
 0x704   : > { %v4865_v54 = vsel %vm3656_vm10, %v4849_v28, %v4609_v55  ;;  %v4905_v3 = vsel %vm3690_vm12, %v4889_v37, %v4729_v57 }
 0x705   : > { %v4881_v21 = vsel %vm3673_vm11, %v4865_v54, %v4665_v5  ;;  %v5094_v5 = vunpack.c.l.bf16 %v5062_v2  ;;  %v5095_v16 = vunpack.c.l.bf16 %v5063_v32 }
 0x707   : > { %v10610_v57 = vmul.f32 %v5312_v33, %v5094_v5  ;;  %v10612_v55 = vmul.f32 %v5313_v24, %v5095_v16 }
 0x709   : > { %v5142_v44 = vpack.c.bf16 %v10612_v55, %v10610_v57 }
 0x70b   : > { %v4785_v27 = vpop.permute.xlu0 %4784  ;;  %v4721_v18 = vpop.permute.xlu1 %4720 }
 0x70c   : > { %v4897_v53 = vsel %vm3690_vm12, %v4881_v21, %v4721_v18  ;;  %v4921_v11 = vsel %vm3707_vm13, %v4905_v3, %v4785_v27 }
 0x70d   : > { %5298 = vmatmul.msk.bf16.gmra.mxu2 %vm3764_vm14, %v4921_v11  ;;  %v4913_v61 = vsel %vm3707_vm13, %v4897_v53, %v4777_v20 }
 0x70e   : > { %5294 = vmatmul.msk.bf16.gmra.mxu1 %vm3764_vm14, %v4913_v61 }
 0x713   : > { %v4443_v23 = vpop.permute.xlu1 %4442  ;;  %v4387_v19 = vpop.permute.xlu0 %4386 }
 0x714   : > { %v4800_v46 = vsel %vm3580_vm6, %v4334_v49, %v4387_v19  ;;  %v5348_v19 = vld [vmem:[%s10679_s8 + $0x38] sm:$0xff]  }
 0x715   : > { %v4819_v42 = vsel %vm3605_vm7, %v4800_v46, %v4443_v23 }
 0x716   : > { %v4835_v29 = vsel %vm3622_vm8, %v4819_v42, %v4499_v8 }
 0x71b   : > { %v4611_v1 = vpop.permute.xlu1 %4610  ;;  %v4555_v9 = vpop.permute.xlu0 %4554 }
 0x71c   : > { %v4851_v30 = vsel %vm3639_vm9, %v4835_v29, %v4555_v9  ;;  %v5340_v29 = vunpack.c.l.bf16 %v5348_v19 }
 0x71d   : > { %v4867_v56 = vsel %vm3656_vm10, %v4851_v30, %v4611_v1  ;;  %v5341_v30 = vunpack.c.h.bf16 %v5348_v19 }
 0x71e   : > { %v4883_v45 = vsel %vm3673_vm11, %v4867_v56, %v4667_v12  ;;  %v5347_v12 = vld [vmem:[%s10679_s8 + $0x30] sm:$0xff]  }
 0x71f   : > { %v5336_v38 = vunpack.c.l.bf16 %v5347_v12 }
 0x723   : > { %v4779_v36 = vpop.permute.xlu1 %4778  ;;  %v4723_v10 = vpop.permute.xlu0 %4722 }
 0x724   : > { %v4899_v41 = vsel %vm3690_vm12, %v4883_v45, %v4723_v10  ;;  %v5337_v45 = vunpack.c.h.bf16 %v5347_v12 }
 0x725   : > { %v4915_v0 = vsel %vm3707_vm13, %v4899_v41, %v4779_v36 }
 0x726   : > { %5295 = vmatmul.msk.bf16.gmra.mxu1 %vm3764_vm14, %v4915_v0 }
 0x737   : > { %v5015_v58 = vpop.f32.mrf.mxu2 }
 0x738   : > { %v5016_v3 = vadd.f32 %v10597_v40, %v5015_v58 }
 0x739   : > { %v10599_v6 = vpop.f32.mrf.mxu1 }
 0x73a   : > { %v5040_v39 = vmul.f32 0.2, %v5016_v3 }
 0x73c   : > { %v5056_v8 = vmax.f32 %v5016_v3, %v5040_v39 }
 0x73e   : > { %v5072_v41 = vpack.c.bf16 %v5056_v8, %v5056_v8 }
 0x73f   : > { %v5017_v34 = vpop.f32.mrf.mxu2 }
 0x740   : > { %v5018_v35 = vadd.f32 %v10597_v40, %v5017_v34  ;;  %v5346_v34 = vld [vmem:[%s10679_s8 + $0x28] sm:$0xff]   ;;  %v5104_v48 = vunpack.c.l.bf16 %v5072_v41 }
 0x741   : > { %v10603_v26 = vpop.f32.mrf.mxu1  ;;  %v5333_v32 = vunpack.c.h.bf16 %v5346_v34  ;;  %v5332_v16 = vunpack.c.l.bf16 %v5346_v34 }
 0x742   : > { %v5041_v21 = vmul.f32 0.2, %v5018_v35 }
 0x744   : > { %v5057_v23 = vmax.f32 %v5018_v35, %v5041_v21  ;;  %v5136_v35 = vmul.f32 %v5332_v16, %v5104_v48 }
 0x746   : > { %v5073_v56 = vpack.c.bf16 %v5057_v23, %v5057_v23 }
 0x748   : > { %v5105_v43 = vunpack.c.l.bf16 %v5073_v56 }
 0x761   : > { %v5020_v60 = vpop.f32.mrf.mxu2 }
 0x762   : > { %v5021_v13 = vadd.f32 %v10597_v40, %v5020_v60 }
 0x763   : > { %v10608_v31 = vpop.f32.mrf.mxu1 }
 0x764   : > { %v5042_v27 = vmul.f32 0.2, %v5021_v13 }
 0x766   : > { %v5058_v61 = vmax.f32 %v5021_v13, %v5042_v27 }
 0x768   : > { %v5074_v42 = vpack.c.bf16 %v5058_v61, %v5058_v61  ;;  %v5345_v61 = vld [vmem:[%s10679_s8 + $0x20] sm:$0xff]  }
 0x769   : > { %v5022_v62 = vpop.f32.mrf.mxu2  ;;  %v5329_v8 = vunpack.c.h.bf16 %v5345_v61 }
 0x76a   : > { %v5023_v47 = vadd.f32 %v10597_v40, %v5022_v62  ;;  %v5106_v0 = vunpack.c.l.bf16 %v5074_v42  ;;  %v5001_v62 = vadd.f32 %v10597_v40, %v10608_v31 }
 0x76b   : > { %v5002_v4 = vpop.f32.mrf.mxu1 }
 0x76c   : > { %v5043_v51 = vmul.f32 0.2, %v5023_v47  ;;  %v5138_v5 = vmul.f32 %v5336_v38, %v5106_v0  ;;  %v5003_v33 = vadd.f32 %v10597_v40, %v5002_v4 }
 0x76e   : > { %v5059_v53 = vmax.f32 %v5023_v47, %v5043_v51  ;;  %v4996_v51 = vadd.f32 %v10597_v40, %v10599_v6  ;;  %v5035_v3 = vmul.f32 0.2, %v5003_v33 }
 0x770   : > { %v5075_v49 = vpack.c.bf16 %v5059_v53, %v5059_v53  ;;  %v5051_v6 = vmax.f32 %v5003_v33, %v5035_v3 }
 0x772   : > { %v5107_v36 = vunpack.c.l.bf16 %v5075_v49 }
 0x774   : > { %v5139_v2 = vmul.f32 %v5337_v45, %v5107_v36 }
 0x776   : > { %v5148_v47 = vpack.c.bf16 %v5139_v2, %v5138_v5  ;;  %v5342_v2 = vld [vmem:[%s10679_s8 + $0x8] sm:$0xff]  }
 0x777   : > { %v5317_v5 = vunpack.c.h.bf16 %v5342_v2 }
 0x78b   : > { %v5005_v54 = vpop.f32.mrf.mxu1 }
 0x78c   : > { %v5006_v22 = vadd.f32 %v10597_v40, %v5005_v54  ;;  %v4998_v54 = vadd.f32 %v10597_v40, %v10603_v26 }
 0x78e   : > { %v5033_v26 = vmul.f32 0.2, %v4998_v54 }
 0x790   : > { %v5025_v28 = vpop.f32.mrf.mxu2  ;;  %v5049_v42 = vmax.f32 %v4998_v54, %v5033_v26 }
 0x791   : > { %v5026_v59 = vadd.f32 %v10597_v40, %v5025_v28  ;;  %v5036_v28 = vmul.f32 0.2, %v5006_v22 }
 0x793   : > { %v5044_v37 = vmul.f32 0.2, %v5026_v59  ;;  %v5007_v17 = vpop.f32.mrf.mxu1  ;;  %v5052_v21 = vmax.f32 %v5006_v22, %v5036_v28 }
 0x794   : > { %v5008_v50 = vadd.f32 %v10597_v40, %v5007_v17 }
 0x795   : > { %v5060_v18 = vmax.f32 %v5026_v59, %v5044_v37  ;;  %v5137_v59 = vmul.f32 %v5333_v32, %v5105_v43  ;;  %v5068_v23 = vpack.c.bf16 %v5052_v21, %v5052_v21 }
 0x796   : > { %v5037_v24 = vmul.f32 0.2, %v5008_v50 }
 0x797   : > { %v5076_v14 = vpack.c.bf16 %v5060_v18, %v5060_v18  ;;  %v5034_v18 = vmul.f32 0.2, %v5001_v62  ;;  %v5147_v31 = vpack.c.bf16 %v5137_v59, %v5136_v35 }
 0x798   : > { %v5027_v20 = vpop.f32.mrf.mxu2  ;;  %v5053_v27 = vmax.f32 %v5008_v50, %v5037_v24  ;;  %v5316_v24 = vunpack.c.l.bf16 %v5342_v2 }
 0x799   : > { %v5028_v11 = vadd.f32 %v10597_v40, %v5027_v20  ;;  %v5108_v1 = vunpack.c.l.bf16 %v5076_v14  ;;  %v11979_v20 = vmov 0  }
 0x79a   : > { %v5173_v53 = vsel %vm3781_vm5, 1065369472, %v11979_v20  ;;  %v5069_v14 = vpack.c.bf16 %v5053_v27, %v5053_v27 }
 0x79b   : > { %v5045_v63 = vmul.f32 0.2, %v5028_v11  ;;  %v5140_v52 = vmul.f32 %v5340_v29, %v5108_v1  ;;  %5182 = vmatpush.bf16.msrb.mxu3 %v5173_v53  ;;  %v5344_v1 = vld [vmem:[%s10679_s8 + $0x18] sm:$0xff]  }
 0x79c   : > { %v5101_v29 = vunpack.c.l.bf16 %v5069_v14  ;;  %v5325_v56 = vunpack.c.h.bf16 %v5344_v1  ;;  %v5324_v0 = vunpack.c.l.bf16 %v5344_v1 }
 0x79d   : > { %v5061_v46 = vmax.f32 %v5028_v11, %v5045_v63  ;;  %v5032_v63 = vmul.f32 0.2, %v4996_v51 }
 0x79e   : > { %v5133_v43 = vmul.f32 %v5325_v56, %v5101_v29 }
 0x79f   : > { %v5077_v9 = vpack.c.bf16 %v5061_v46, %v5061_v46  ;;  %v5328_v46 = vunpack.c.l.bf16 %v5345_v61  ;;  %v5048_v12 = vmax.f32 %v4996_v51, %v5032_v63  ;;  %v5483_v51 = vld [vmem:[#allocation2] ss:$0 sm:$0xff] }
 0x7a1   : > { %v5109_v10 = vunpack.c.l.bf16 %v5077_v9  ;;  %v5067_v9 = vpack.c.bf16 %v5051_v6, %v5051_v6 }
 0x7a3   : > { %v5010_v15 = vpop.f32.mrf.mxu1  ;;  %v5141_v58 = vmul.f32 %v5341_v30, %v5109_v10  ;;  %v5100_v10 = vunpack.c.l.bf16 %v5068_v23 }
 0x7a4   : > { %v5011_v7 = vadd.f32 %v10597_v40, %v5010_v15  ;;  %v5065_v15 = vpack.c.bf16 %v5049_v42, %v5049_v42 }
 0x7a5   : > { %v5149_v25 = vpack.c.bf16 %v5141_v58, %v5140_v52  ;;  %v5343_v52 = vld [vmem:[%s10679_s8 + $0x10] sm:$0xff]   ;;  %v5099_v58 = vunpack.c.l.bf16 %v5067_v9  ;;  %v5132_v22 = vmul.f32 %v5324_v0, %v5100_v10 }
 0x7a6   : > { %v5038_v60 = vmul.f32 0.2, %v5011_v7  ;;  %v5321_v50 = vunpack.c.h.bf16 %v5343_v52  ;;  %v5097_v32 = vunpack.c.l.bf16 %v5065_v15 }
 0x7a7   : > { %5151 = vmatpush.bf16.msrb.mxu2 %v5149_v25  ;;  %v5320_v25 = vunpack.c.l.bf16 %v5343_v52 }
 0x7a8   : > { %v5054_v13 = vmax.f32 %v5011_v7, %v5038_v60  ;;  %v5064_v7 = vpack.c.bf16 %v5048_v12, %v5048_v12  ;;  %v5145_v60 = vpack.c.bf16 %v5133_v43, %v5132_v22  ;;  %v5131_v48 = vmul.f32 %v5321_v50, %v5099_v58 }
 0x7a9   : > { %v5129_v28 = vmul.f32 %v5317_v5, %v5097_v32 }
 0x7aa   : > { %v5070_v11 = vpack.c.bf16 %v5054_v13, %v5054_v13  ;;  %v5096_v16 = vunpack.c.l.bf16 %v5064_v7  ;;  %v5150_v13 = vld [vmem:[%s10680_s9] sm:$0xf] }
 0x7ab   : > { %v5012_v37 = vpop.f32.mrf.mxu1  ;;  %5152 = vmatpush.bf16.msrb.mxu2 %v5148_v47 }
 0x7ac   : > { %v5013_v4 = vadd.f32 %v10597_v40, %v5012_v37  ;;  %v5050_v40 = vmax.f32 %v5001_v62, %v5034_v18  ;;  %v5102_v19 = vunpack.c.l.bf16 %v5070_v11  ;;  %v5128_v47 = vmul.f32 %v5316_v24, %v5096_v16 }
 0x7ae   : > { %v5039_v39 = vmul.f32 0.2, %v5013_v4  ;;  %v5066_v36 = vpack.c.bf16 %v5050_v40, %v5050_v40  ;;  %v5134_v45 = vmul.f32 %v5328_v46, %v5102_v19  ;;  %v5143_v59 = vpack.c.bf16 %v5129_v28, %v5128_v47 }
 0x7af   : > { %5153 = vmatpush.bf16.msrb.mxu2 %v5147_v31 }
 0x7b0   : > { %v5055_v17 = vmax.f32 %v5013_v4, %v5039_v39  ;;  %v5098_v34 = vunpack.c.l.bf16 %v5066_v36 }
 0x7b2   : > { %v5071_v49 = vpack.c.bf16 %v5055_v17, %v5055_v17  ;;  %v5130_v33 = vmul.f32 %v5320_v25, %v5098_v34 }
 0x7b4   : > { %v5103_v30 = vunpack.c.l.bf16 %v5071_v49  ;;  %v5144_v62 = vpack.c.bf16 %v5131_v48, %v5130_v33 }
 0x7b6   : > { %v5135_v41 = vmul.f32 %v5329_v8, %v5103_v30 }
 0x7b8   : > { %v5146_v38 = vpack.c.bf16 %v5135_v41, %v5134_v45 }
 0x7ba   : > { %5154 = vmatpush.bf16.msrb.mxu2 %v5146_v38 }
 0x7be   : > { %5155 = vmatpush.bf16.msrb.mxu2 %v5145_v60 }
 0x7c2   : > { %5156 = vmatpush.bf16.msrb.mxu2 %v5144_v62 }
 0x7c6   : > { %5157 = vmatpush.bf16.msrb.mxu2 %v5143_v59 }
 0x7ca   : > { %5158 = vmatpush.bf16.msrb.mxu2 %v5142_v44 }
 0x7cd   : > { %5159 = vmatmul.bf16.vlgmr.msrb.gmra.mxu2 %v5150_v13 }
 0x850   : > { %v5160_v54 = vpop.f32.mrf.mxu2 }
 0x851   : > { %v5164_v37 = vpack.c.bf16 %v5160_v54, %v5160_v54 }
 0x853   : > { %5299 = vmatmul.msk.bf16.vlgmr.msrb.gmra.mxu3 %vm3580_vm6, %v5164_v37 }
 0x858   : > { %v5162_v35 = vpop.f32.mrf.mxu2 }
 0x8d6   : > { %v5184_v57 = vpop.f32.mrf.mxu3 }
 0x8d7   : > { %v5185_v55 = vadd.f32 %v5483_v51, %v5184_v57 }
 0x8d9   : > { %5189 = vst.msk [vmem:[%s388_s23] sm:$0xff] %vm5188_vm15, %v5185_v55 }
 0x8de   : > { %v5186_v44 = vpop.f32.mrf.mxu3 }
 0x8df PF: > { %s23_s19 = sadd.s32 1, %s5524_s19  }
 0x8e0   : > { %p20_p5 = scmp.ge.s32.totalorder %s23_s19, 4  }
 0x8e2   :  { %22 = sbr.rel (!%p20_p5) target bundleno = 3 (0x3), region = 94 }

</bundles_post_ra>
